<compile_context>
chip_gen: v7x
topology: tpu7x:2x2x1
jax: 0.10.0
libtpu: 0.0.40
codegen_flags: <defaults>
</compile_context>

<pallas_src>
import functools

import jax
import jax.numpy as jnp
from jax.experimental import pallas as pl
from jax.experimental.pallas import tpu as pltpu

# ----------------------------- configuration --------------------------------
B = 2                 # batch
C = 3                 # channels
IMG = 32              # image height/width
PATCH = 8             # patch size
NUM_PATCHES = (IMG // PATCH) ** 2          # 16
PATCH_DIM = C * PATCH * PATCH              # 192 (pixel_values_per_patch)

ENC_DIM = 32
ENC_DEPTH = 2
ENC_HEADS = 4
ENC_DIM_HEAD = 16
ENC_MLP_RATIO = 4

DEC_DIM = 64
DEC_DEPTH = 1
DEC_HEADS = 8
DEC_DIM_HEAD = 64
DEC_MLP_RATIO = 4

MASKING_RATIO = 0.75
SHIFT = 0.0
SCALE = 1.0

LN_EPS = 1e-5

LAYER_KEYS = ("attn_ln_g", "attn_ln_b", "wqkv", "bqkv", "wo", "bo",
              "ff_ln_g", "ff_ln_b", "w1", "b1", "w2", "b2")
NKEYS = len(LAYER_KEYS)


# ------------------------- in-kernel building blocks --------------------------
def _ln(x, g, b):
    mu = jnp.mean(x, axis=-1, keepdims=True)
    var = jnp.mean(jnp.square(x - mu), axis=-1, keepdims=True)
    return (x - mu) * jax.lax.rsqrt(var + LN_EPS) * g + b


def _gelu(y):
    # TODO(synk): PyTorch nn.GELU defaults to the exact erf form; tanh approximation
    # used here to avoid relying on an erf lowering in Mosaic.
    return 0.5 * y * (1.0 + jnp.tanh(0.7978845608028654 * (y + 0.044715 * y * y * y)))


def _tf_layer(x, p, qkv_scr, attn_scr, *, batch, n, heads, dh):
    """One pre-norm transformer block. x: (batch*n, dim) f32 value (VMEM-resident)."""
    inner = heads * dh
    scale = dh ** -0.5

    # ---- attention ----
    h = _ln(x, p["attn_ln_g"][...], p["attn_ln_b"][...])
    qkv_scr[...] = (jnp.dot(h, p["wqkv"][...], preferred_element_type=jnp.float32)
                    + p["bqkv"][...])
    for bi in range(batch):                       # unrolled, all on-chip
        r0 = bi * n
        for hi in range(heads):
            c0 = hi * dh
            q = qkv_scr[r0:r0 + n, c0:c0 + dh]
            k = qkv_scr[r0:r0 + n, inner + c0:inner + c0 + dh]
            v = qkv_scr[r0:r0 + n, 2 * inner + c0:2 * inner + c0 + dh]
            s = jnp.dot(q, k.T, preferred_element_type=jnp.float32) * scale
            s = s - jnp.max(s, axis=-1, keepdims=True)
            e = jnp.exp(s)
            pr = e * pl.reciprocal(jnp.sum(e, axis=-1, keepdims=True), approx=True)
            attn_scr[r0:r0 + n, c0:c0 + dh] = jnp.dot(
                pr, v, preferred_element_type=jnp.float32)
    o = (jnp.dot(attn_scr[...], p["wo"][...], preferred_element_type=jnp.float32)
         + p["bo"][...])
    x = x + o

    # ---- feed-forward ----
    h = _ln(x, p["ff_ln_g"][...], p["ff_ln_b"][...])
    h = _gelu(jnp.dot(h, p["w1"][...], preferred_element_type=jnp.float32) + p["b1"][...])
    h = jnp.dot(h, p["w2"][...], preferred_element_type=jnp.float32) + p["b2"][...]
    return x + h


# ------------------------------- Pallas kernels ------------------------------
def _patch_embed_kernel(p_ref, g1_ref, b1_ref, w_ref, bias_ref, g2_ref, b2_ref,
                        pos_ref, out_ref, *, batch, n):
    x = p_ref[...].astype(jnp.float32)
    x = _ln(x, g1_ref[...], b1_ref[...])
    x = jnp.dot(x, w_ref[...], preferred_element_type=jnp.float32) + bias_ref[...]
    x = _ln(x, g2_ref[...], b2_ref[...])
    pos = pos_ref[...]                                  # (n, enc_dim)
    for bi in range(batch):
        out_ref[bi * n:(bi + 1) * n, :] = (
            x[bi * n:(bi + 1) * n, :] + pos).astype(out_ref.dtype)


def _encoder_kernel(*args, depth, heads, dh, batch, n):
    nl = depth * NKEYS
    x_ref = args[0]
    layer_refs = args[1:1 + nl]
    fg_ref, fb_ref, ew_ref, eb_ref = args[1 + nl:1 + nl + 4]
    out_ref = args[1 + nl + 4]
    qkv_scr = args[1 + nl + 5]
    attn_scr = args[1 + nl + 6]

    x = x_ref[...].astype(jnp.float32)
    for li in range(depth):
        p = dict(zip(LAYER_KEYS, layer_refs[li * NKEYS:(li + 1) * NKEYS]))
        x = _tf_layer(x, p, qkv_scr, attn_scr, batch=batch, n=n, heads=heads, dh=dh)
    x = _ln(x, fg_ref[...], fb_ref[...])
    # fused enc_to_dec projection
    out_ref[...] = (jnp.dot(x, ew_ref[...], preferred_element_type=jnp.float32)
                    + eb_ref[...]).astype(out_ref.dtype)


def _decoder_loss_kernel(*args, depth, heads, dh, batch, n, num_masked,
                         patch_dim, shift, scale):
    nl = depth * NKEYS
    x_ref, t_ref, m_ref = args[0], args[1], args[2]
    layer_refs = args[3:3 + nl]
    fg_ref, fb_ref, pw_ref, pb_ref = args[3 + nl:3 + nl + 4]
    out_ref = args[3 + nl + 4]
    qkv_scr = args[3 + nl + 5]
    attn_scr = args[3 + nl + 6]

    x = x_ref[...].astype(jnp.float32)
    for li in range(depth):
        p = dict(zip(LAYER_KEYS, layer_refs[li * NKEYS:(li + 1) * NKEYS]))
        x = _tf_layer(x, p, qkv_scr, attn_scr, batch=batch, n=n, heads=heads, dh=dh)
    x = _ln(x, fg_ref[...], fb_ref[...])

    # fused to_pixels + masked weighted-MSE loss
    pred = jnp.dot(x, pw_ref[...], preferred_element_type=jnp.float32) + pb_ref[...]
    t = t_ref[...].astype(jnp.float32)                  # (batch*n, patch_dim)
    weight = (t + shift) * scale * m_ref[...]           # mask zeros out unmasked rows
    err = jnp.square(pred - t) * weight
    total = jnp.sum(jnp.sum(err, axis=1, keepdims=True), axis=0, keepdims=True)  # (1,1)
    # mean over (batch, num_masked, patch_dim) elements, times 10
    out_ref[...] = total * (10.0 / (batch * num_masked * patch_dim))


# ------------------------------ kernel wrappers -------------------------------
def _as2d(v):
    return v.reshape(1, -1) if v.ndim == 1 else v


def _flatten_layers(layers):
    flat = []
    for lp in layers:
        for k in LAYER_KEYS:
            flat.append(_as2d(lp[k]))
    return flat


def patch_embed(params, patches):
    b, n, pd = patches.shape
    out = pl.pallas_call(
        functools.partial(_patch_embed_kernel, batch=b, n=n),
        out_shape=jax.ShapeDtypeStruct((b * n, ENC_DIM), jnp.float32),
    )(patches.reshape(b * n, pd),
      _as2d(params["pe_ln1_g"]), _as2d(params["pe_ln1_b"]),
      params["pe_w"], _as2d(params["pe_b"]),
      _as2d(params["pe_ln2_g"]), _as2d(params["pe_ln2_b"]),
      params["pos_embedding"][0])
    return out.reshape(b, n, ENC_DIM)


def encode_and_project(params, tokens):
    """Encoder transformer (+ final LN + enc_to_dec) in one fused kernel."""
    b, n, d = tokens.shape
    inner = ENC_HEADS * ENC_DIM_HEAD
    args = ([tokens.reshape(b * n, d)]
            + _flatten_layers(params["enc_layers"])
            + [_as2d(params["enc_final_g"]), _as2d(params["enc_final_b"]),
               params["e2d_w"], _as2d(params["e2d_b"])])
    out = pl.pallas_call(
        functools.partial(_encoder_kernel, depth=ENC_DEPTH, heads=ENC_HEADS,
                          dh=ENC_DIM_HEAD, batch=b, n=n),
        out_shape=jax.ShapeDtypeStruct((b * n, DEC_DIM), jnp.float32),
        scratch_shapes=[pltpu.VMEM((b * n, 3 * inner), jnp.float32),
                        pltpu.VMEM((b * n, inner), jnp.float32)],
    )(*args)
    return out.reshape(b, n, DEC_DIM)


def decode_and_loss(params, dec_seq, patches, mask, num_masked):
    """Decoder transformer + final LN + to_pixels + masked weighted MSE, one kernel."""
    b, n, d = dec_seq.shape
    pd = patches.shape[-1]
    inner = DEC_HEADS * DEC_DIM_HEAD
    args = ([dec_seq.reshape(b * n, d),
             patches.reshape(b * n, pd).astype(jnp.float32),
             mask.reshape(b * n, 1).astype(jnp.float32)]
            + _flatten_layers(params["dec_layers"])
            + [_as2d(params["dec_final_g"]), _as2d(params["dec_final_b"]),
               params["pix_w"], _as2d(params["pix_b"])])
    out = pl.pallas_call(
        functools.partial(_decoder_loss_kernel, depth=DEC_DEPTH, heads=DEC_HEADS,
                          dh=DEC_DIM_HEAD, batch=b, n=n, num_masked=num_masked,
                          patch_dim=pd, shift=SHIFT, scale=SCALE),
        out_shape=jax.ShapeDtypeStruct((1, 1), jnp.float32),
        scratch_shapes=[pltpu.VMEM((b * n, 3 * inner), jnp.float32),
                        pltpu.VMEM((b * n, inner), jnp.float32)],
    )(*args)
    return out[0, 0]


# ------------------------------ parameter init --------------------------------
class KeyGen:
    def __init__(self, key):
        self._key = key

    def __call__(self):
        self._key, sub = jax.random.split(self._key)
        return sub


def _nrm(kg, shape, std=0.02):
    return std * jax.random.normal(kg(), shape, jnp.float32)


def init_tf_layer(kg, dim, heads, dim_head, mlp_ratio):
    inner = heads * dim_head
    hidden = dim * mlp_ratio
    return dict(
        attn_ln_g=jnp.ones((dim,), jnp.float32), attn_ln_b=jnp.zeros((dim,), jnp.float32),
        wqkv=_nrm(kg, (dim, 3 * inner)), bqkv=jnp.zeros((3 * inner,), jnp.float32),
        wo=_nrm(kg, (inner, dim)), bo=_nrm(kg, (dim,)),
        ff_ln_g=jnp.ones((dim,), jnp.float32), ff_ln_b=jnp.zeros((dim,), jnp.float32),
        w1=_nrm(kg, (dim, hidden)), b1=_nrm(kg, (hidden,)),
        w2=_nrm(kg, (hidden, dim)), b2=_nrm(kg, (dim,)),
    )


def init_params(key):
    kg = KeyGen(key)
    p = {}
    # encoder.to_patch_embedding = [Rearrange, LN(patch_dim), Linear(patch_dim, dim), LN(dim)]
    p["pe_ln1_g"] = jnp.ones((PATCH_DIM,), jnp.float32)
    p["pe_ln1_b"] = jnp.zeros((PATCH_DIM,), jnp.float32)
    p["pe_w"] = _nrm(kg, (PATCH_DIM, ENC_DIM))
    p["pe_b"] = _nrm(kg, (ENC_DIM,))
    p["pe_ln2_g"] = jnp.ones((ENC_DIM,), jnp.float32)
    p["pe_ln2_b"] = jnp.zeros((ENC_DIM,), jnp.float32)
    # encoder.pos_embedding (pool == 'mean' -> shape (1, num_patches, dim))
    p["pos_embedding"] = _nrm(kg, (1, NUM_PATCHES, ENC_DIM))
    # encoder transformer
    p["enc_layers"] = [init_tf_layer(kg, ENC_DIM, ENC_HEADS, ENC_DIM_HEAD, ENC_MLP_RATIO)
                       for _ in range(ENC_DEPTH)]
    p["enc_final_g"] = jnp.ones((ENC_DIM,), jnp.float32)
    p["enc_final_b"] = jnp.zeros((ENC_DIM,), jnp.float32)
    # enc_to_dec (encoder_dim != decoder_dim -> Linear)
    p["e2d_w"] = _nrm(kg, (ENC_DIM, DEC_DIM))
    p["e2d_b"] = _nrm(kg, (DEC_DIM,))
    # mask token / decoder positional embedding (torch.randn -> std 1)
    p["mask_token"] = _nrm(kg, (DEC_DIM,), std=1.0)
    p["dec_pos_emb"] = _nrm(kg, (NUM_PATCHES, DEC_DIM), std=1.0)
    # decoder transformer
    p["dec_layers"] = [init_tf_layer(kg, DEC_DIM, DEC_HEADS, DEC_DIM_HEAD, DEC_MLP_RATIO)
                       for _ in range(DEC_DEPTH)]
    p["dec_final_g"] = jnp.ones((DEC_DIM,), jnp.float32)
    p["dec_final_b"] = jnp.zeros((DEC_DIM,), jnp.float32)
    # to_pixels
    p["pix_w"] = _nrm(kg, (DEC_DIM, PATCH_DIM))
    p["pix_b"] = _nrm(kg, (PATCH_DIM,))
    return p


# -------------------------------- MAE forward --------------------------------
def mae_forward(params, img, mask_key):
    b, c, h, w = img.shape
    ph, pw = h // PATCH, w // PATCH
    num_patches = ph * pw

    # to_patch: 'b c (h p1) (w p2) -> b (h w) (p1 p2 c)'
    x = img.reshape(b, c, ph, PATCH, pw, PATCH)
    x = jnp.transpose(x, (0, 2, 4, 3, 5, 1))
    patches = x.reshape(b, num_patches, PATCH * PATCH * c)

    # patch_to_emb (LN -> Linear -> LN) + pos_embedding, fused in one kernel
    tokens = patch_embed(params, patches)                 # (b, num_patches, ENC_DIM)

    # perform_masking (torch.rand + argsort -> jax.random.uniform + argsort)
    num_masked = int(MASKING_RATIO * num_patches)
    rand = jax.random.uniform(mask_key, (b, num_patches))
    rand_indices = jnp.argsort(rand, axis=-1)
    masked_indices = rand_indices[:, :num_masked]
    unmasked_indices = rand_indices[:, num_masked:]
    batch_range = jnp.arange(b)[:, None]

    unmasked_tokens = tokens[batch_range, unmasked_indices]

    # encoder transformer + final LN + enc_to_dec, fused in one kernel
    dec_tokens = encode_and_project(params, unmasked_tokens)   # (b, n_unmasked, DEC_DIM)

    # build decoder sequence (scatter) — JAX glue
    unmasked_dec = dec_tokens + jnp.take(params["dec_pos_emb"], unmasked_indices, axis=0)
    mask_tok = params["mask_token"][None, None, :] + jnp.take(params["dec_pos_emb"],
                                                              masked_indices, axis=0)
    dec_seq = jnp.zeros((b, num_patches, DEC_DIM), jnp.float32)
    dec_seq = dec_seq.at[batch_range, unmasked_indices].set(unmasked_dec)
    dec_seq = dec_seq.at[batch_range, masked_indices].set(mask_tok)

    # 0/1 mask of masked positions (loss is computed over masked patches only)
    mask = jnp.zeros((b, num_patches), jnp.float32)
    mask = mask.at[batch_range, masked_indices].set(1.0)

    # decoder transformer + final LN + to_pixels + weighted-MSE loss, one kernel
    return decode_and_loss(params, dec_seq, patches, mask, num_masked)


# ----------------------------------- main -------------------------------------
if __name__ == "__main__":
    root = jax.random.PRNGKey(0)
    pkey, ikey, mkey = jax.random.split(root, 3)
    params = init_params(pkey)
    img = jax.random.normal(ikey, (B, C, IMG, IMG), jnp.float32)

    loss = jax.jit(mae_forward)(params, img, mkey)
    loss = jax.block_until_ready(loss)
    assert loss.shape == () and jnp.isfinite(loss)
    print("KERNEL_OK")
</pallas_src>

<mosaic_0001>
module attributes {stable_mosaic.version = 11 : i64} {
  func.func @_patch_embed_kernel(%arg0: memref<32x192xf32, #tpu.memory_space<vmem>>, %arg1: memref<1x192xf32, #tpu.memory_space<vmem>>, %arg2: memref<1x192xf32, #tpu.memory_space<vmem>>, %arg3: memref<192x32xf32, #tpu.memory_space<vmem>>, %arg4: memref<1x32xf32, #tpu.memory_space<vmem>>, %arg5: memref<1x32xf32, #tpu.memory_space<vmem>>, %arg6: memref<1x32xf32, #tpu.memory_space<vmem>>, %arg7: memref<16x32xf32, #tpu.memory_space<vmem>>, %arg8: memref<32x32xf32, #tpu.memory_space<vmem>>) attributes {dimension_semantics = [], scalar_prefetch = 0 : i64, scratch_operands = 0 : i64, tpu.core_type = #tpu.core_type<tc>} {
    %c0 = arith.constant 0 : index
    %c0_0 = arith.constant 0 : index
    %0 = vector.load %arg0[%c0, %c0_0] : memref<32x192xf32, #tpu.memory_space<vmem>>, vector<32x192xf32>
    %c0_1 = arith.constant 0 : index
    %c0_2 = arith.constant 0 : index
    %1 = vector.load %arg1[%c0_1, %c0_2] : memref<1x192xf32, #tpu.memory_space<vmem>>, vector<1x192xf32>
    %c0_3 = arith.constant 0 : index
    %c0_4 = arith.constant 0 : index
    %2 = vector.load %arg2[%c0_3, %c0_4] : memref<1x192xf32, #tpu.memory_space<vmem>>, vector<1x192xf32>
    %cst = arith.constant dense<0.000000e+00> : vector<32xf32>
    %3 = vector.multi_reduction <add>, %0, %cst [1] : vector<32x192xf32> to vector<32xf32>
    %4 = vector.shape_cast %3 : vector<32xf32> to vector<32x1xf32>
    %cst_5 = arith.constant 1.920000e+02 : f32
    %5 = vector.broadcast %cst_5 : f32 to vector<32x1xf32>
    %6 = arith.divf %4, %5 : vector<32x1xf32>
    %7 = vector.broadcast %6 : vector<32x1xf32> to vector<32x192xf32>
    %8 = arith.subf %0, %7 : vector<32x192xf32>
    %9 = arith.mulf %8, %8 : vector<32x192xf32>
    %cst_6 = arith.constant dense<0.000000e+00> : vector<32xf32>
    %10 = vector.multi_reduction <add>, %9, %cst_6 [1] : vector<32x192xf32> to vector<32xf32>
    %11 = vector.shape_cast %10 : vector<32xf32> to vector<32x1xf32>
    %cst_7 = arith.constant 1.920000e+02 : f32
    %12 = vector.broadcast %cst_7 : f32 to vector<32x1xf32>
    %13 = arith.divf %11, %12 : vector<32x1xf32>
    %14 = vector.broadcast %6 : vector<32x1xf32> to vector<32x192xf32>
    %15 = arith.subf %0, %14 : vector<32x192xf32>
    %cst_8 = arith.constant 9.99999974E-6 : f32
    %16 = vector.broadcast %cst_8 : f32 to vector<32x1xf32>
    %17 = arith.addf %13, %16 : vector<32x1xf32>
    %18 = math.rsqrt %17 : vector<32x1xf32>
    %19 = vector.broadcast %18 : vector<32x1xf32> to vector<32x192xf32>
    %20 = arith.mulf %15, %19 : vector<32x192xf32>
    %21 = vector.broadcast %1 : vector<1x192xf32> to vector<32x192xf32>
    %22 = arith.mulf %20, %21 : vector<32x192xf32>
    %23 = vector.broadcast %2 : vector<1x192xf32> to vector<32x192xf32>
    %24 = arith.addf %22, %23 : vector<32x192xf32>
    %c0_9 = arith.constant 0 : index
    %c0_10 = arith.constant 0 : index
    %25 = vector.load %arg3[%c0_9, %c0_10] : memref<192x32xf32, #tpu.memory_space<vmem>>, vector<192x32xf32>
    %cst_11 = arith.constant dense<0.000000e+00> : vector<32x32xf32>
    %26 = tpu.matmul %24, %25, %cst_11 {dimension_numbers = #tpu.dot_dimension_numbers<[1], [0], [0], [1], [0, 0, 1, 1], [], []>} : vector<32x192xf32>, vector<192x32xf32>, vector<32x32xf32> -> vector<32x32xf32>
    %c0_12 = arith.constant 0 : index
    %c0_13 = arith.constant 0 : index
    %27 = vector.load %arg4[%c0_12, %c0_13] : memref<1x32xf32, #tpu.memory_space<vmem>>, vector<1x32xf32>
    %28 = vector.broadcast %27 : vector<1x32xf32> to vector<32x32xf32>
    %29 = arith.addf %26, %28 : vector<32x32xf32>
    %c0_14 = arith.constant 0 : index
    %c0_15 = arith.constant 0 : index
    %30 = vector.load %arg5[%c0_14, %c0_15] : memref<1x32xf32, #tpu.memory_space<vmem>>, vector<1x32xf32>
    %c0_16 = arith.constant 0 : index
    %c0_17 = arith.constant 0 : index
    %31 = vector.load %arg6[%c0_16, %c0_17] : memref<1x32xf32, #tpu.memory_space<vmem>>, vector<1x32xf32>
    %cst_18 = arith.constant dense<0.000000e+00> : vector<32xf32>
    %32 = vector.multi_reduction <add>, %29, %cst_18 [1] : vector<32x32xf32> to vector<32xf32>
    %33 = vector.shape_cast %32 : vector<32xf32> to vector<32x1xf32>
    %cst_19 = arith.constant 3.200000e+01 : f32
    %34 = vector.broadcast %cst_19 : f32 to vector<32x1xf32>
    %35 = arith.divf %33, %34 : vector<32x1xf32>
    %36 = vector.broadcast %35 : vector<32x1xf32> to vector<32x32xf32>
    %37 = arith.subf %29, %36 : vector<32x32xf32>
    %38 = arith.mulf %37, %37 : vector<32x32xf32>
    %cst_20 = arith.constant dense<0.000000e+00> : vector<32xf32>
    %39 = vector.multi_reduction <add>, %38, %cst_20 [1] : vector<32x32xf32> to vector<32xf32>
    %40 = vector.shape_cast %39 : vector<32xf32> to vector<32x1xf32>
    %cst_21 = arith.constant 3.200000e+01 : f32
    %41 = vector.broadcast %cst_21 : f32 to vector<32x1xf32>
    %42 = arith.divf %40, %41 : vector<32x1xf32>
    %43 = vector.broadcast %35 : vector<32x1xf32> to vector<32x32xf32>
    %44 = arith.subf %29, %43 : vector<32x32xf32>
    %cst_22 = arith.constant 9.99999974E-6 : f32
    %45 = vector.broadcast %cst_22 : f32 to vector<32x1xf32>
    %46 = arith.addf %42, %45 : vector<32x1xf32>
    %47 = math.rsqrt %46 : vector<32x1xf32>
    %48 = vector.broadcast %47 : vector<32x1xf32> to vector<32x32xf32>
    %49 = arith.mulf %44, %48 : vector<32x32xf32>
    %50 = vector.broadcast %30 : vector<1x32xf32> to vector<32x32xf32>
    %51 = arith.mulf %49, %50 : vector<32x32xf32>
    %52 = vector.broadcast %31 : vector<1x32xf32> to vector<32x32xf32>
    %53 = arith.addf %51, %52 : vector<32x32xf32>
    %c0_23 = arith.constant 0 : index
    %c0_24 = arith.constant 0 : index
    %54 = vector.load %arg7[%c0_23, %c0_24] : memref<16x32xf32, #tpu.memory_space<vmem>>, vector<16x32xf32>
    %55 = vector.extract_strided_slice %53 {offsets = [0, 0], sizes = [16, 32], strides = [1, 1]} : vector<32x32xf32> to vector<16x32xf32>
    %56 = arith.addf %55, %54 : vector<16x32xf32>
    %c0_25 = arith.constant 0 : index
    %c0_26 = arith.constant 0 : index
    %57 = vector.load %arg8[%c0_25, %c0_26] : memref<32x32xf32, #tpu.memory_space<vmem>>, vector<16x32xf32>
    tpu.vector_store %arg8[%c0_25, %c0_26], %56 {strides = array<i32>} : memref<32x32xf32, #tpu.memory_space<vmem>>, vector<16x32xf32>,
    %58 = vector.extract_strided_slice %53 {offsets = [16, 0], sizes = [16, 32], strides = [1, 1]} : vector<32x32xf32> to vector<16x32xf32>
    %59 = arith.addf %58, %54 : vector<16x32xf32>
    %c16 = arith.constant 16 : index
    %c0_27 = arith.constant 0 : index
    %60 = vector.load %arg8[%c16, %c0_27] : memref<32x32xf32, #tpu.memory_space<vmem>>, vector<16x32xf32>
    tpu.vector_store %arg8[%c16, %c0_27], %59 {strides = array<i32>} : memref<32x32xf32, #tpu.memory_space<vmem>>, vector<16x32xf32>,
    return
  }
}

module attributes {stable_mosaic.version = 11 : i64} {
  func.func @_encoder_kernel(%arg0: memref<8x32xf32, #tpu.memory_space<vmem>>, %arg1: memref<1x32xf32, #tpu.memory_space<vmem>>, %arg2: memref<1x32xf32, #tpu.memory_space<vmem>>, %arg3: memref<32x192xf32, #tpu.memory_space<vmem>>, %arg4: memref<1x192xf32, #tpu.memory_space<vmem>>, %arg5: memref<64x32xf32, #tpu.memory_space<vmem>>, %arg6: memref<1x32xf32, #tpu.memory_space<vmem>>, %arg7: memref<1x32xf32, #tpu.memory_space<vmem>>, %arg8: memref<1x32xf32, #tpu.memory_space<vmem>>, %arg9: memref<32x128xf32, #tpu.memory_space<vmem>>, %arg10: memref<1x128xf32, #tpu.memory_space<vmem>>, %arg11: memref<128x32xf32, #tpu.memory_space<vmem>>, %arg12: memref<1x32xf32, #tpu.memory_space<vmem>>, %arg13: memref<1x32xf32, #tpu.memory_space<vmem>>, %arg14: memref<1x32xf32, #tpu.memory_space<vmem>>, %arg15: memref<32x192xf32, #tpu.memory_space<vmem>>, %arg16: memref<1x192xf32, #tpu.memory_space<vmem>>, %arg17: memref<64x32xf32, #tpu.memory_space<vmem>>, %arg18: memref<1x32xf32, #tpu.memory_space<vmem>>, %arg19: memref<1x32xf32, #tpu.memory_space<vmem>>, %arg20: memref<1x32xf32, #tpu.memory_space<vmem>>, %arg21: memref<32x128xf32, #tpu.memory_space<vmem>>, %arg22: memref<1x128xf32, #tpu.memory_space<vmem>>, %arg23: memref<128x32xf32, #tpu.memory_space<vmem>>, %arg24: memref<1x32xf32, #tpu.memory_space<vmem>>, %arg25: memref<1x32xf32, #tpu.memory_space<vmem>>, %arg26: memref<1x32xf32, #tpu.memory_space<vmem>>, %arg27: memref<32x64xf32, #tpu.memory_space<vmem>>, %arg28: memref<1x64xf32, #tpu.memory_space<vmem>>, %arg29: memref<8x64xf32, #tpu.memory_space<vmem>>, %arg30: memref<8x192xf32, #tpu.memory_space<vmem>>, %arg31: memref<8x64xf32, #tpu.memory_space<vmem>>) attributes {dimension_semantics = [], scalar_prefetch = 0 : i64, scratch_operands = 2 : i64, tpu.core_type = #tpu.core_type<tc>} {
    %c0 = arith.constant 0 : index
    %c0_0 = arith.constant 0 : index
    %0 = vector.load %arg0[%c0, %c0_0] : memref<8x32xf32, #tpu.memory_space<vmem>>, vector<8x32xf32>
    %c0_1 = arith.constant 0 : index
    %c0_2 = arith.constant 0 : index
    %1 = vector.load %arg1[%c0_1, %c0_2] : memref<1x32xf32, #tpu.memory_space<vmem>>, vector<1x32xf32>
    %c0_3 = arith.constant 0 : index
    %c0_4 = arith.constant 0 : index
    %2 = vector.load %arg2[%c0_3, %c0_4] : memref<1x32xf32, #tpu.memory_space<vmem>>, vector<1x32xf32>
    %cst = arith.constant dense<0.000000e+00> : vector<8xf32>
    %3 = vector.multi_reduction <add>, %0, %cst [1] : vector<8x32xf32> to vector<8xf32>
    %4 = vector.shape_cast %3 : vector<8xf32> to vector<8x1xf32>
    %cst_5 = arith.constant 3.200000e+01 : f32
    %5 = vector.broadcast %cst_5 : f32 to vector<8x1xf32>
    %6 = arith.divf %4, %5 : vector<8x1xf32>
    %7 = vector.broadcast %6 : vector<8x1xf32> to vector<8x32xf32>
    %8 = arith.subf %0, %7 : vector<8x32xf32>
    %9 = arith.mulf %8, %8 : vector<8x32xf32>
    %cst_6 = arith.constant dense<0.000000e+00> : vector<8xf32>
    %10 = vector.multi_reduction <add>, %9, %cst_6 [1] : vector<8x32xf32> to vector<8xf32>
    %11 = vector.shape_cast %10 : vector<8xf32> to vector<8x1xf32>
    %cst_7 = arith.constant 3.200000e+01 : f32
    %12 = vector.broadcast %cst_7 : f32 to vector<8x1xf32>
    %13 = arith.divf %11, %12 : vector<8x1xf32>
    %14 = vector.broadcast %6 : vector<8x1xf32> to vector<8x32xf32>
    %15 = arith.subf %0, %14 : vector<8x32xf32>
    %cst_8 = arith.constant 9.99999974E-6 : f32
    %16 = vector.broadcast %cst_8 : f32 to vector<8x1xf32>
    %17 = arith.addf %13, %16 : vector<8x1xf32>
    %18 = math.rsqrt %17 : vector<8x1xf32>
    %19 = vector.broadcast %18 : vector<8x1xf32> to vector<8x32xf32>
    %20 = arith.mulf %15, %19 : vector<8x32xf32>
    %21 = vector.broadcast %1 : vector<1x32xf32> to vector<8x32xf32>
    %22 = arith.mulf %20, %21 : vector<8x32xf32>
    %23 = vector.broadcast %2 : vector<1x32xf32> to vector<8x32xf32>
    %24 = arith.addf %22, %23 : vector<8x32xf32>
    %c0_9 = arith.constant 0 : index
    %c0_10 = arith.constant 0 : index
    %25 = vector.load %arg3[%c0_9, %c0_10] : memref<32x192xf32, #tpu.memory_space<vmem>>, vector<32x192xf32>
    %cst_11 = arith.constant dense<0.000000e+00> : vector<8x192xf32>
    %26 = tpu.matmul %24, %25, %cst_11 {dimension_numbers = #tpu.dot_dimension_numbers<[1], [0], [0], [1], [0, 0, 1, 1], [], []>} : vector<8x32xf32>, vector<32x192xf32>, vector<8x192xf32> -> vector<8x192xf32>
    %c0_12 = arith.constant 0 : index
    %c0_13 = arith.constant 0 : index
    %27 = vector.load %arg4[%c0_12, %c0_13] : memref<1x192xf32, #tpu.memory_space<vmem>>, vector<1x192xf32>
    %28 = vector.broadcast %27 : vector<1x192xf32> to vector<8x192xf32>
    %29 = arith.addf %26, %28 : vector<8x192xf32>
    %c0_14 = arith.constant 0 : index
    %c0_15 = arith.constant 0 : index
    %30 = vector.load %arg30[%c0_14, %c0_15] : memref<8x192xf32, #tpu.memory_space<vmem>>, vector<8x192xf32>
    tpu.vector_store %arg30[%c0_14, %c0_15], %29 {strides = array<i32>} : memref<8x192xf32, #tpu.memory_space<vmem>>, vector<8x192xf32>,
    %c0_16 = arith.constant 0 : index
    %c0_17 = arith.constant 0 : index
    %31 = vector.load %arg30[%c0_16, %c0_17] : memref<8x192xf32, #tpu.memory_space<vmem>>, vector<4x16xf32>
    %c0_18 = arith.constant 0 : index
    %c64 = arith.constant 64 : index
    %32 = vector.load %arg30[%c0_18, %c64] : memref<8x192xf32, #tpu.memory_space<vmem>>, vector<4x16xf32>
    %c0_19 = arith.constant 0 : index
    %c128 = arith.constant 128 : index
    %33 = vector.load %arg30[%c0_19, %c128] : memref<8x192xf32, #tpu.memory_space<vmem>>, vector<4x16xf32>
    %34 = tpu.transpose %32, [1, 0] : vector<4x16xf32> -> vector<16x4xf32>
    %cst_20 = arith.constant dense<0.000000e+00> : vector<4x4xf32>
    %35 = tpu.matmul %31, %34, %cst_20 {dimension_numbers = #tpu.dot_dimension_numbers<[1], [0], [0], [1], [0, 0, 1, 1], [], []>} : vector<4x16xf32>, vector<16x4xf32>, vector<4x4xf32> -> vector<4x4xf32>
    %cst_21 = arith.constant 2.500000e-01 : f32
    %36 = vector.broadcast %cst_21 : f32 to vector<4x4xf32>
    %37 = arith.mulf %35, %36 : vector<4x4xf32>
    %cst_22 = arith.constant dense<0xFF800000> : vector<4xf32>
    %38 = vector.multi_reduction <maximumf>, %37, %cst_22 [1] : vector<4x4xf32> to vector<4xf32>
    %39 = vector.shape_cast %38 : vector<4xf32> to vector<4x1xf32>
    %40 = vector.broadcast %39 : vector<4x1xf32> to vector<4x4xf32>
    %41 = arith.subf %37, %40 : vector<4x4xf32>
    %42 = math.exp %41 : vector<4x4xf32>
    %cst_23 = arith.constant dense<0.000000e+00> : vector<4xf32>
    %43 = vector.multi_reduction <add>, %42, %cst_23 [1] : vector<4x4xf32> to vector<4xf32>
    %44 = vector.shape_cast %43 : vector<4xf32> to vector<4x1xf32>
    %45 = tpu.reciprocal %44 {approx = true} : vector<4x1xf32> -> vector<4x1xf32>
    %46 = vector.broadcast %45 : vector<4x1xf32> to vector<4x4xf32>
    %47 = arith.mulf %42, %46 : vector<4x4xf32>
    %cst_24 = arith.constant dense<0.000000e+00> : vector<4x16xf32>
    %48 = tpu.matmul %47, %33, %cst_24 {dimension_numbers = #tpu.dot_dimension_numbers<[1], [0], [0], [1], [0, 0, 1, 1], [], []>} : vector<4x4xf32>, vector<4x16xf32>, vector<4x16xf32> -> vector<4x16xf32>
    %c0_25 = arith.constant 0 : index
    %c0_26 = arith.constant 0 : index
    %49 = vector.load %arg31[%c0_25, %c0_26] : memref<8x64xf32, #tpu.memory_space<vmem>>, vector<4x16xf32>
    tpu.vector_store %arg31[%c0_25, %c0_26], %48 {strides = array<i32>} : memref<8x64xf32, #tpu.memory_space<vmem>>, vector<4x16xf32>,
    %c0_27 = arith.constant 0 : index
    %c16 = arith.constant 16 : index
    %50 = vector.load %arg30[%c0_27, %c16] : memref<8x192xf32, #tpu.memory_space<vmem>>, vector<4x16xf32>
    %c0_28 = arith.constant 0 : index
    %c80 = arith.constant 80 : index
    %51 = vector.load %arg30[%c0_28, %c80] : memref<8x192xf32, #tpu.memory_space<vmem>>, vector<4x16xf32>
    %c0_29 = arith.constant 0 : index
    %c144 = arith.constant 144 : index
    %52 = vector.load %arg30[%c0_29, %c144] : memref<8x192xf32, #tpu.memory_space<vmem>>, vector<4x16xf32>
    %53 = tpu.transpose %51, [1, 0] : vector<4x16xf32> -> vector<16x4xf32>
    %cst_30 = arith.constant dense<0.000000e+00> : vector<4x4xf32>
    %54 = tpu.matmul %50, %53, %cst_30 {dimension_numbers = #tpu.dot_dimension_numbers<[1], [0], [0], [1], [0, 0, 1, 1], [], []>} : vector<4x16xf32>, vector<16x4xf32>, vector<4x4xf32> -> vector<4x4xf32>
    %cst_31 = arith.constant 2.500000e-01 : f32
    %55 = vector.broadcast %cst_31 : f32 to vector<4x4xf32>
    %56 = arith.mulf %54, %55 : vector<4x4xf32>
    %cst_32 = arith.constant dense<0xFF800000> : vector<4xf32>
    %57 = vector.multi_reduction <maximumf>, %56, %cst_32 [1] : vector<4x4xf32> to vector<4xf32>
    %58 = vector.shape_cast %57 : vector<4xf32> to vector<4x1xf32>
    %59 = vector.broadcast %58 : vector<4x1xf32> to vector<4x4xf32>
    %60 = arith.subf %56, %59 : vector<4x4xf32>
    %61 = math.exp %60 : vector<4x4xf32>
    %cst_33 = arith.constant dense<0.000000e+00> : vector<4xf32>
    %62 = vector.multi_reduction <add>, %61, %cst_33 [1] : vector<4x4xf32> to vector<4xf32>
    %63 = vector.shape_cast %62 : vector<4xf32> to vector<4x1xf32>
    %64 = tpu.reciprocal %63 {approx = true} : vector<4x1xf32> -> vector<4x1xf32>
    %65 = vector.broadcast %64 : vector<4x1xf32> to vector<4x4xf32>
    %66 = arith.mulf %61, %65 : vector<4x4xf32>
    %cst_34 = arith.constant dense<0.000000e+00> : vector<4x16xf32>
    %67 = tpu.matmul %66, %52, %cst_34 {dimension_numbers = #tpu.dot_dimension_numbers<[1], [0], [0], [1], [0, 0, 1, 1], [], []>} : vector<4x4xf32>, vector<4x16xf32>, vector<4x16xf32> -> vector<4x16xf32>
    %c0_35 = arith.constant 0 : index
    %c16_36 = arith.constant 16 : index
    %68 = vector.load %arg31[%c0_35, %c16_36] : memref<8x64xf32, #tpu.memory_space<vmem>>, vector<4x16xf32>
    tpu.vector_store %arg31[%c0_35, %c16_36], %67 {strides = array<i32>} : memref<8x64xf32, #tpu.memory_space<vmem>>, vector<4x16xf32>,
    %c0_37 = arith.constant 0 : index
    %c32 = arith.constant 32 : index
    %69 = vector.load %arg30[%c0_37, %c32] : memref<8x192xf32, #tpu.memory_space<vmem>>, vector<4x16xf32>
    %c0_38 = arith.constant 0 : index
    %c96 = arith.constant 96 : index
    %70 = vector.load %arg30[%c0_38, %c96] : memref<8x192xf32, #tpu.memory_space<vmem>>, vector<4x16xf32>
    %c0_39 = arith.constant 0 : index
    %c160 = arith.constant 160 : index
    %71 = vector.load %arg30[%c0_39, %c160] : memref<8x192xf32, #tpu.memory_space<vmem>>, vector<4x16xf32>
    %72 = tpu.transpose %70, [1, 0] : vector<4x16xf32> -> vector<16x4xf32>
    %cst_40 = arith.constant dense<0.000000e+00> : vector<4x4xf32>
    %73 = tpu.matmul %69, %72, %cst_40 {dimension_numbers = #tpu.dot_dimension_numbers<[1], [0], [0], [1], [0, 0, 1, 1], [], []>} : vector<4x16xf32>, vector<16x4xf32>, vector<4x4xf32> -> vector<4x4xf32>
    %cst_41 = arith.constant 2.500000e-01 : f32
    %74 = vector.broadcast %cst_41 : f32 to vector<4x4xf32>
    %75 = arith.mulf %73, %74 : vector<4x4xf32>
    %cst_42 = arith.constant dense<0xFF800000> : vector<4xf32>
    %76 = vector.multi_reduction <maximumf>, %75, %cst_42 [1] : vector<4x4xf32> to vector<4xf32>
    %77 = vector.shape_cast %76 : vector<4xf32> to vector<4x1xf32>
    %78 = vector.broadcast %77 : vector<4x1xf32> to vector<4x4xf32>
    %79 = arith.subf %75, %78 : vector<4x4xf32>
    %80 = math.exp %79 : vector<4x4xf32>
    %cst_43 = arith.constant dense<0.000000e+00> : vector<4xf32>
    %81 = vector.multi_reduction <add>, %80, %cst_43 [1] : vector<4x4xf32> to vector<4xf32>
    %82 = vector.shape_cast %81 : vector<4xf32> to vector<4x1xf32>
    %83 = tpu.reciprocal %82 {approx = true} : vector<4x1xf32> -> vector<4x1xf32>
    %84 = vector.broadcast %83 : vector<4x1xf32> to vector<4x4xf32>
    %85 = arith.mulf %80, %84 : vector<4x4xf32>
    %cst_44 = arith.constant dense<0.000000e+00> : vector<4x16xf32>
    %86 = tpu.matmul %85, %71, %cst_44 {dimension_numbers = #tpu.dot_dimension_numbers<[1], [0], [0], [1], [0, 0, 1, 1], [], []>} : vector<4x4xf32>, vector<4x16xf32>, vector<4x16xf32> -> vector<4x16xf32>
    %c0_45 = arith.constant 0 : index
    %c32_46 = arith.constant 32 : index
    %87 = vector.load %arg31[%c0_45, %c32_46] : memref<8x64xf32, #tpu.memory_space<vmem>>, vector<4x16xf32>
    tpu.vector_store %arg31[%c0_45, %c32_46], %86 {strides = array<i32>} : memref<8x64xf32, #tpu.memory_space<vmem>>, vector<4x16xf32>,
    %c0_47 = arith.constant 0 : index
    %c48 = arith.constant 48 : index
    %88 = vector.load %arg30[%c0_47, %c48] : memref<8x192xf32, #tpu.memory_space<vmem>>, vector<4x16xf32>
    %c0_48 = arith.constant 0 : index
    %c112 = arith.constant 112 : index
    %89 = vector.load %arg30[%c0_48, %c112] : memref<8x192xf32, #tpu.memory_space<vmem>>, vector<4x16xf32>
    %c0_49 = arith.constant 0 : index
    %c176 = arith.constant 176 : index
    %90 = vector.load %arg30[%c0_49, %c176] : memref<8x192xf32, #tpu.memory_space<vmem>>, vector<4x16xf32>
    %91 = tpu.transpose %89, [1, 0] : vector<4x16xf32> -> vector<16x4xf32>
    %cst_50 = arith.constant dense<0.000000e+00> : vector<4x4xf32>
    %92 = tpu.matmul %88, %91, %cst_50 {dimension_numbers = #tpu.dot_dimension_numbers<[1], [0], [0], [1], [0, 0, 1, 1], [], []>} : vector<4x16xf32>, vector<16x4xf32>, vector<4x4xf32> -> vector<4x4xf32>
    %cst_51 = arith.constant 2.500000e-01 : f32
    %93 = vector.broadcast %cst_51 : f32 to vector<4x4xf32>
    %94 = arith.mulf %92, %93 : vector<4x4xf32>
    %cst_52 = arith.constant dense<0xFF800000> : vector<4xf32>
    %95 = vector.multi_reduction <maximumf>, %94, %cst_52 [1] : vector<4x4xf32> to vector<4xf32>
    %96 = vector.shape_cast %95 : vector<4xf32> to vector<4x1xf32>
    %97 = vector.broadcast %96 : vector<4x1xf32> to vector<4x4xf32>
    %98 = arith.subf %94, %97 : vector<4x4xf32>
    %99 = math.exp %98 : vector<4x4xf32>
    %cst_53 = arith.constant dense<0.000000e+00> : vector<4xf32>
    %100 = vector.multi_reduction <add>, %99, %cst_53 [1] : vector<4x4xf32> to vector<4xf32>
    %101 = vector.shape_cast %100 : vector<4xf32> to vector<4x1xf32>
    %102 = tpu.reciprocal %101 {approx = true} : vector<4x1xf32> -> vector<4x1xf32>
    %103 = vector.broadcast %102 : vector<4x1xf32> to vector<4x4xf32>
    %104 = arith.mulf %99, %103 : vector<4x4xf32>
    %cst_54 = arith.constant dense<0.000000e+00> : vector<4x16xf32>
    %105 = tpu.matmul %104, %90, %cst_54 {dimension_numbers = #tpu.dot_dimension_numbers<[1], [0], [0], [1], [0, 0, 1, 1], [], []>} : vector<4x4xf32>, vector<4x16xf32>, vector<4x16xf32> -> vector<4x16xf32>
    %c0_55 = arith.constant 0 : index
    %c48_56 = arith.constant 48 : index
    %106 = vector.load %arg31[%c0_55, %c48_56] : memref<8x64xf32, #tpu.memory_space<vmem>>, vector<4x16xf32>
    tpu.vector_store %arg31[%c0_55, %c48_56], %105 {strides = array<i32>} : memref<8x64xf32, #tpu.memory_space<vmem>>, vector<4x16xf32>,
    %c4 = arith.constant 4 : index
    %c0_57 = arith.constant 0 : index
    %107 = vector.load %arg30[%c4, %c0_57] : memref<8x192xf32, #tpu.memory_space<vmem>>, vector<4x16xf32>
    %c4_58 = arith.constant 4 : index
    %c64_59 = arith.constant 64 : index
    %108 = vector.load %arg30[%c4_58, %c64_59] : memref<8x192xf32, #tpu.memory_space<vmem>>, vector<4x16xf32>
    %c4_60 = arith.constant 4 : index
    %c128_61 = arith.constant 128 : index
    %109 = vector.load %arg30[%c4_60, %c128_61] : memref<8x192xf32, #tpu.memory_space<vmem>>, vector<4x16xf32>
    %110 = tpu.transpose %108, [1, 0] : vector<4x16xf32> -> vector<16x4xf32>
    %cst_62 = arith.constant dense<0.000000e+00> : vector<4x4xf32>
    %111 = tpu.matmul %107, %110, %cst_62 {dimension_numbers = #tpu.dot_dimension_numbers<[1], [0], [0], [1], [0, 0, 1, 1], [], []>} : vector<4x16xf32>, vector<16x4xf32>, vector<4x4xf32> -> vector<4x4xf32>
    %cst_63 = arith.constant 2.500000e-01 : f32
    %112 = vector.broadcast %cst_63 : f32 to vector<4x4xf32>
    %113 = arith.mulf %111, %112 : vector<4x4xf32>
    %cst_64 = arith.constant dense<0xFF800000> : vector<4xf32>
    %114 = vector.multi_reduction <maximumf>, %113, %cst_64 [1] : vector<4x4xf32> to vector<4xf32>
    %115 = vector.shape_cast %114 : vector<4xf32> to vector<4x1xf32>
    %116 = vector.broadcast %115 : vector<4x1xf32> to vector<4x4xf32>
    %117 = arith.subf %113, %116 : vector<4x4xf32>
    %118 = math.exp %117 : vector<4x4xf32>
    %cst_65 = arith.constant dense<0.000000e+00> : vector<4xf32>
    %119 = vector.multi_reduction <add>, %118, %cst_65 [1] : vector<4x4xf32> to vector<4xf32>
    %120 = vector.shape_cast %119 : vector<4xf32> to vector<4x1xf32>
    %121 = tpu.reciprocal %120 {approx = true} : vector<4x1xf32> -> vector<4x1xf32>
    %122 = vector.broadcast %121 : vector<4x1xf32> to vector<4x4xf32>
    %123 = arith.mulf %118, %122 : vector<4x4xf32>
    %cst_66 = arith.constant dense<0.000000e+00> : vector<4x16xf32>
    %124 = tpu.matmul %123, %109, %cst_66 {dimension_numbers = #tpu.dot_dimension_numbers<[1], [0], [0], [1], [0, 0, 1, 1], [], []>} : vector<4x4xf32>, vector<4x16xf32>, vector<4x16xf32> -> vector<4x16xf32>
    %c4_67 = arith.constant 4 : index
    %c0_68 = arith.constant 0 : index
    %125 = vector.load %arg31[%c4_67, %c0_68] : memref<8x64xf32, #tpu.memory_space<vmem>>, vector<4x16xf32>
    tpu.vector_store %arg31[%c4_67, %c0_68], %124 {strides = array<i32>} : memref<8x64xf32, #tpu.memory_space<vmem>>, vector<4x16xf32>,
    %c4_69 = arith.constant 4 : index
    %c16_70 = arith.constant 16 : index
    %126 = vector.load %arg30[%c4_69, %c16_70] : memref<8x192xf32, #tpu.memory_space<vmem>>, vector<4x16xf32>
    %c4_71 = arith.constant 4 : index
    %c80_72 = arith.constant 80 : index
    %127 = vector.load %arg30[%c4_71, %c80_72] : memref<8x192xf32, #tpu.memory_space<vmem>>, vector<4x16xf32>
    %c4_73 = arith.constant 4 : index
    %c144_74 = arith.constant 144 : index
    %128 = vector.load %arg30[%c4_73, %c144_74] : memref<8x192xf32, #tpu.memory_space<vmem>>, vector<4x16xf32>
    %129 = tpu.transpose %127, [1, 0] : vector<4x16xf32> -> vector<16x4xf32>
    %cst_75 = arith.constant dense<0.000000e+00> : vector<4x4xf32>
    %130 = tpu.matmul %126, %129, %cst_75 {dimension_numbers = #tpu.dot_dimension_numbers<[1], [0], [0], [1], [0, 0, 1, 1], [], []>} : vector<4x16xf32>, vector<16x4xf32>, vector<4x4xf32> -> vector<4x4xf32>
    %cst_76 = arith.constant 2.500000e-01 : f32
    %131 = vector.broadcast %cst_76 : f32 to vector<4x4xf32>
    %132 = arith.mulf %130, %131 : vector<4x4xf32>
    %cst_77 = arith.constant dense<0xFF800000> : vector<4xf32>
    %133 = vector.multi_reduction <maximumf>, %132, %cst_77 [1] : vector<4x4xf32> to vector<4xf32>
    %134 = vector.shape_cast %133 : vector<4xf32> to vector<4x1xf32>
    %135 = vector.broadcast %134 : vector<4x1xf32> to vector<4x4xf32>
    %136 = arith.subf %132, %135 : vector<4x4xf32>
    %137 = math.exp %136 : vector<4x4xf32>
    %cst_78 = arith.constant dense<0.000000e+00> : vector<4xf32>
    %138 = vector.multi_reduction <add>, %137, %cst_78 [1] : vector<4x4xf32> to vector<4xf32>
    %139 = vector.shape_cast %138 : vector<4xf32> to vector<4x1xf32>
    %140 = tpu.reciprocal %139 {approx = true} : vector<4x1xf32> -> vector<4x1xf32>
    %141 = vector.broadcast %140 : vector<4x1xf32> to vector<4x4xf32>
    %142 = arith.mulf %137, %141 : vector<4x4xf32>
    %cst_79 = arith.constant dense<0.000000e+00> : vector<4x16xf32>
    %143 = tpu.matmul %142, %128, %cst_79 {dimension_numbers = #tpu.dot_dimension_numbers<[1], [0], [0], [1], [0, 0, 1, 1], [], []>} : vector<4x4xf32>, vector<4x16xf32>, vector<4x16xf32> -> vector<4x16xf32>
    %c4_80 = arith.constant 4 : index
    %c16_81 = arith.constant 16 : index
    %144 = vector.load %arg31[%c4_80, %c16_81] : memref<8x64xf32, #tpu.memory_space<vmem>>, vector<4x16xf32>
    tpu.vector_store %arg31[%c4_80, %c16_81], %143 {strides = array<i32>} : memref<8x64xf32, #tpu.memory_space<vmem>>, vector<4x16xf32>,
    %c4_82 = arith.constant 4 : index
    %c32_83 = arith.constant 32 : index
    %145 = vector.load %arg30[%c4_82, %c32_83] : memref<8x192xf32, #tpu.memory_space<vmem>>, vector<4x16xf32>
    %c4_84 = arith.constant 4 : index
    %c96_85 = arith.constant 96 : index
    %146 = vector.load %arg30[%c4_84, %c96_85] : memref<8x192xf32, #tpu.memory_space<vmem>>, vector<4x16xf32>
    %c4_86 = arith.constant 4 : index
    %c160_87 = arith.constant 160 : index
    %147 = vector.load %arg30[%c4_86, %c160_87] : memref<8x192xf32, #tpu.memory_space<vmem>>, vector<4x16xf32>
    %148 = tpu.transpose %146, [1, 0] : vector<4x16xf32> -> vector<16x4xf32>
    %cst_88 = arith.constant dense<0.000000e+00> : vector<4x4xf32>
    %149 = tpu.matmul %145, %148, %cst_88 {dimension_numbers = #tpu.dot_dimension_numbers<[1], [0], [0], [1], [0, 0, 1, 1], [], []>} : vector<4x16xf32>, vector<16x4xf32>, vector<4x4xf32> -> vector<4x4xf32>
    %cst_89 = arith.constant 2.500000e-01 : f32
    %150 = vector.broadcast %cst_89 : f32 to vector<4x4xf32>
    %151 = arith.mulf %149, %150 : vector<4x4xf32>
    %cst_90 = arith.constant dense<0xFF800000> : vector<4xf32>
    %152 = vector.multi_reduction <maximumf>, %151, %cst_90 [1] : vector<4x4xf32> to vector<4xf32>
    %153 = vector.shape_cast %152 : vector<4xf32> to vector<4x1xf32>
    %154 = vector.broadcast %153 : vector<4x1xf32> to vector<4x4xf32>
    %155 = arith.subf %151, %154 : vector<4x4xf32>
    %156 = math.exp %155 : vector<4x4xf32>
    %cst_91 = arith.constant dense<0.000000e+00> : vector<4xf32>
    %157 = vector.multi_reduction <add>, %156, %cst_91 [1] : vector<4x4xf32> to vector<4xf32>
    %158 = vector.shape_cast %157 : vector<4xf32> to vector<4x1xf32>
    %159 = tpu.reciprocal %158 {approx = true} : vector<4x1xf32> -> vector<4x1xf32>
    %160 = vector.broadcast %159 : vector<4x1xf32> to vector<4x4xf32>
    %161 = arith.mulf %156, %160 : vector<4x4xf32>
    %cst_92 = arith.constant dense<0.000000e+00> : vector<4x16xf32>
    %162 = tpu.matmul %161, %147, %cst_92 {dimension_numbers = #tpu.dot_dimension_numbers<[1], [0], [0], [1], [0, 0, 1, 1], [], []>} : vector<4x4xf32>, vector<4x16xf32>, vector<4x16xf32> -> vector<4x16xf32>
    %c4_93 = arith.constant 4 : index
    %c32_94 = arith.constant 32 : index
    %163 = vector.load %arg31[%c4_93, %c32_94] : memref<8x64xf32, #tpu.memory_space<vmem>>, vector<4x16xf32>
    tpu.vector_store %arg31[%c4_93, %c32_94], %162 {strides = array<i32>} : memref<8x64xf32, #tpu.memory_space<vmem>>, vector<4x16xf32>,
    %c4_95 = arith.constant 4 : index
    %c48_96 = arith.constant 48 : index
    %164 = vector.load %arg30[%c4_95, %c48_96] : memref<8x192xf32, #tpu.memory_space<vmem>>, vector<4x16xf32>
    %c4_97 = arith.constant 4 : index
    %c112_98 = arith.constant 112 : index
    %165 = vector.load %arg30[%c4_97, %c112_98] : memref<8x192xf32, #tpu.memory_space<vmem>>, vector<4x16xf32>
    %c4_99 = arith.constant 4 : index
    %c176_100 = arith.constant 176 : index
    %166 = vector.load %arg30[%c4_99, %c176_100] : memref<8x192xf32, #tpu.memory_space<vmem>>, vector<4x16xf32>
    %167 = tpu.transpose %165, [1, 0] : vector<4x16xf32> -> vector<16x4xf32>
    %cst_101 = arith.constant dense<0.000000e+00> : vector<4x4xf32>
    %168 = tpu.matmul %164, %167, %cst_101 {dimension_numbers = #tpu.dot_dimension_numbers<[1], [0], [0], [1], [0, 0, 1, 1], [], []>} : vector<4x16xf32>, vector<16x4xf32>, vector<4x4xf32> -> vector<4x4xf32>
    %cst_102 = arith.constant 2.500000e-01 : f32
    %169 = vector.broadcast %cst_102 : f32 to vector<4x4xf32>
    %170 = arith.mulf %168, %169 : vector<4x4xf32>
    %cst_103 = arith.constant dense<0xFF800000> : vector<4xf32>
    %171 = vector.multi_reduction <maximumf>, %170, %cst_103 [1] : vector<4x4xf32> to vector<4xf32>
    %172 = vector.shape_cast %171 : vector<4xf32> to vector<4x1xf32>
    %173 = vector.broadcast %172 : vector<4x1xf32> to vector<4x4xf32>
    %174 = arith.subf %170, %173 : vector<4x4xf32>
    %175 = math.exp %174 : vector<4x4xf32>
    %cst_104 = arith.constant dense<0.000000e+00> : vector<4xf32>
    %176 = vector.multi_reduction <add>, %175, %cst_104 [1] : vector<4x4xf32> to vector<4xf32>
    %177 = vector.shape_cast %176 : vector<4xf32> to vector<4x1xf32>
    %178 = tpu.reciprocal %177 {approx = true} : vector<4x1xf32> -> vector<4x1xf32>
    %179 = vector.broadcast %178 : vector<4x1xf32> to vector<4x4xf32>
    %180 = arith.mulf %175, %179 : vector<4x4xf32>
    %cst_105 = arith.constant dense<0.000000e+00> : vector<4x16xf32>
    %181 = tpu.matmul %180, %166, %cst_105 {dimension_numbers = #tpu.dot_dimension_numbers<[1], [0], [0], [1], [0, 0, 1, 1], [], []>} : vector<4x4xf32>, vector<4x16xf32>, vector<4x16xf32> -> vector<4x16xf32>
    %c4_106 = arith.constant 4 : index
    %c48_107 = arith.constant 48 : index
    %182 = vector.load %arg31[%c4_106, %c48_107] : memref<8x64xf32, #tpu.memory_space<vmem>>, vector<4x16xf32>
    tpu.vector_store %arg31[%c4_106, %c48_107], %181 {strides = array<i32>} : memref<8x64xf32, #tpu.memory_space<vmem>>, vector<4x16xf32>,
    %c0_108 = arith.constant 0 : index
    %c0_109 = arith.constant 0 : index
    %183 = vector.load %arg31[%c0_108, %c0_109] : memref<8x64xf32, #tpu.memory_space<vmem>>, vector<8x64xf32>
    %c0_110 = arith.constant 0 : index
    %c0_111 = arith.constant 0 : index
    %184 = vector.load %arg5[%c0_110, %c0_111] : memref<64x32xf32, #tpu.memory_space<vmem>>, vector<64x32xf32>
    %cst_112 = arith.constant dense<0.000000e+00> : vector<8x32xf32>
    %185 = tpu.matmul %183, %184, %cst_112 {dimension_numbers = #tpu.dot_dimension_numbers<[1], [0], [0], [1], [0, 0, 1, 1], [], []>} : vector<8x64xf32>, vector<64x32xf32>, vector<8x32xf32> -> vector<8x32xf32>
    %c0_113 = arith.constant 0 : index
    %c0_114 = arith.constant 0 : index
    %186 = vector.load %arg6[%c0_113, %c0_114] : memref<1x32xf32, #tpu.memory_space<vmem>>, vector<1x32xf32>
    %187 = vector.broadcast %186 : vector<1x32xf32> to vector<8x32xf32>
    %188 = arith.addf %185, %187 : vector<8x32xf32>
    %189 = arith.addf %0, %188 : vector<8x32xf32>
    %c0_115 = arith.constant 0 : index
    %c0_116 = arith.constant 0 : index
    %190 = vector.load %arg7[%c0_115, %c0_116] : memref<1x32xf32, #tpu.memory_space<vmem>>, vector<1x32xf32>
    %c0_117 = arith.constant 0 : index
    %c0_118 = arith.constant 0 : index
    %191 = vector.load %arg8[%c0_117, %c0_118] : memref<1x32xf32, #tpu.memory_space<vmem>>, vector<1x32xf32>
    %cst_119 = arith.constant dense<0.000000e+00> : vector<8xf32>
    %192 = vector.multi_reduction <add>, %189, %cst_119 [1] : vector<8x32xf32> to vector<8xf32>
    %193 = vector.shape_cast %192 : vector<8xf32> to vector<8x1xf32>
    %cst_120 = arith.constant 3.200000e+01 : f32
    %194 = vector.broadcast %cst_120 : f32 to vector<8x1xf32>
    %195 = arith.divf %193, %194 : vector<8x1xf32>
    %196 = vector.broadcast %195 : vector<8x1xf32> to vector<8x32xf32>
    %197 = arith.subf %189, %196 : vector<8x32xf32>
    %198 = arith.mulf %197, %197 : vector<8x32xf32>
    %cst_121 = arith.constant dense<0.000000e+00> : vector<8xf32>
    %199 = vector.multi_reduction <add>, %198, %cst_121 [1] : vector<8x32xf32> to vector<8xf32>
    %200 = vector.shape_cast %199 : vector<8xf32> to vector<8x1xf32>
    %cst_122 = arith.constant 3.200000e+01 : f32
    %201 = vector.broadcast %cst_122 : f32 to vector<8x1xf32>
    %202 = arith.divf %200, %201 : vector<8x1xf32>
    %203 = vector.broadcast %195 : vector<8x1xf32> to vector<8x32xf32>
    %204 = arith.subf %189, %203 : vector<8x32xf32>
    %cst_123 = arith.constant 9.99999974E-6 : f32
    %205 = vector.broadcast %cst_123 : f32 to vector<8x1xf32>
    %206 = arith.addf %202, %205 : vector<8x1xf32>
    %207 = math.rsqrt %206 : vector<8x1xf32>
    %208 = vector.broadcast %207 : vector<8x1xf32> to vector<8x32xf32>
    %209 = arith.mulf %204, %208 : vector<8x32xf32>
    %210 = vector.broadcast %190 : vector<1x32xf32> to vector<8x32xf32>
    %211 = arith.mulf %209, %210 : vector<8x32xf32>
    %212 = vector.broadcast %191 : vector<1x32xf32> to vector<8x32xf32>
    %213 = arith.addf %211, %212 : vector<8x32xf32>
    %c0_124 = arith.constant 0 : index
    %c0_125 = arith.constant 0 : index
    %214 = vector.load %arg9[%c0_124, %c0_125] : memref<32x128xf32, #tpu.memory_space<vmem>>, vector<32x128xf32>
    %cst_126 = arith.constant dense<0.000000e+00> : vector<8x128xf32>
    %215 = tpu.matmul %213, %214, %cst_126 {dimension_numbers = #tpu.dot_dimension_numbers<[1], [0], [0], [1], [0, 0, 1, 1], [], []>} : vector<8x32xf32>, vector<32x128xf32>, vector<8x128xf32> -> vector<8x128xf32>
    %c0_127 = arith.constant 0 : index
    %c0_128 = arith.constant 0 : index
    %216 = vector.load %arg10[%c0_127, %c0_128] : memref<1x128xf32, #tpu.memory_space<vmem>>, vector<1x128xf32>
    %217 = vector.broadcast %216 : vector<1x128xf32> to vector<8x128xf32>
    %218 = arith.addf %215, %217 : vector<8x128xf32>
    %cst_129 = arith.constant 5.000000e-01 : f32
    %219 = vector.broadcast %cst_129 : f32 to vector<8x128xf32>
    %220 = arith.mulf %219, %218 : vector<8x128xf32>
    %cst_130 = arith.constant 4.471500e-02 : f32
    %221 = vector.broadcast %cst_130 : f32 to vector<8x128xf32>
    %222 = arith.mulf %221, %218 : vector<8x128xf32>
    %223 = arith.mulf %222, %218 : vector<8x128xf32>
    %224 = arith.mulf %223, %218 : vector<8x128xf32>
    %225 = arith.addf %218, %224 : vector<8x128xf32>
    %cst_131 = arith.constant 0.797884583 : f32
    %226 = vector.broadcast %cst_131 : f32 to vector<8x128xf32>
    %227 = arith.mulf %226, %225 : vector<8x128xf32>
    %228 = math.tanh %227 : vector<8x128xf32>
    %cst_132 = arith.constant 1.000000e+00 : f32
    %229 = vector.broadcast %cst_132 : f32 to vector<8x128xf32>
    %230 = arith.addf %229, %228 : vector<8x128xf32>
    %231 = arith.mulf %220, %230 : vector<8x128xf32>
    %c0_133 = arith.constant 0 : index
    %c0_134 = arith.constant 0 : index
    %232 = vector.load %arg11[%c0_133, %c0_134] : memref<128x32xf32, #tpu.memory_space<vmem>>, vector<128x32xf32>
    %cst_135 = arith.constant dense<0.000000e+00> : vector<8x32xf32>
    %233 = tpu.matmul %231, %232, %cst_135 {dimension_numbers = #tpu.dot_dimension_numbers<[1], [0], [0], [1], [0, 0, 1, 1], [], []>} : vector<8x128xf32>, vector<128x32xf32>, vector<8x32xf32> -> vector<8x32xf32>
    %c0_136 = arith.constant 0 : index
    %c0_137 = arith.constant 0 : index
    %234 = vector.load %arg12[%c0_136, %c0_137] : memref<1x32xf32, #tpu.memory_space<vmem>>, vector<1x32xf32>
    %235 = vector.broadcast %234 : vector<1x32xf32> to vector<8x32xf32>
    %236 = arith.addf %233, %235 : vector<8x32xf32>
    %237 = arith.addf %189, %236 : vector<8x32xf32>
    %c0_138 = arith.constant 0 : index
    %c0_139 = arith.constant 0 : index
    %238 = vector.load %arg13[%c0_138, %c0_139] : memref<1x32xf32, #tpu.memory_space<vmem>>, vector<1x32xf32>
    %c0_140 = arith.constant 0 : index
    %c0_141 = arith.constant 0 : index
    %239 = vector.load %arg14[%c0_140, %c0_141] : memref<1x32xf32, #tpu.memory_space<vmem>>, vector<1x32xf32>
    %cst_142 = arith.constant dense<0.000000e+00> : vector<8xf32>
    %240 = vector.multi_reduction <add>, %237, %cst_142 [1] : vector<8x32xf32> to vector<8xf32>
    %241 = vector.shape_cast %240 : vector<8xf32> to vector<8x1xf32>
    %cst_143 = arith.constant 3.200000e+01 : f32
    %242 = vector.broadcast %cst_143 : f32 to vector<8x1xf32>
    %243 = arith.divf %241, %242 : vector<8x1xf32>
    %244 = vector.broadcast %243 : vector<8x1xf32> to vector<8x32xf32>
    %245 = arith.subf %237, %244 : vector<8x32xf32>
    %246 = arith.mulf %245, %245 : vector<8x32xf32>
    %cst_144 = arith.constant dense<0.000000e+00> : vector<8xf32>
    %247 = vector.multi_reduction <add>, %246, %cst_144 [1] : vector<8x32xf32> to vector<8xf32>
    %248 = vector.shape_cast %247 : vector<8xf32> to vector<8x1xf32>
    %cst_145 = arith.constant 3.200000e+01 : f32
    %249 = vector.broadcast %cst_145 : f32 to vector<8x1xf32>
    %250 = arith.divf %248, %249 : vector<8x1xf32>
    %251 = vector.broadcast %243 : vector<8x1xf32> to vector<8x32xf32>
    %252 = arith.subf %237, %251 : vector<8x32xf32>
    %cst_146 = arith.constant 9.99999974E-6 : f32
    %253 = vector.broadcast %cst_146 : f32 to vector<8x1xf32>
    %254 = arith.addf %250, %253 : vector<8x1xf32>
    %255 = math.rsqrt %254 : vector<8x1xf32>
    %256 = vector.broadcast %255 : vector<8x1xf32> to vector<8x32xf32>
    %257 = arith.mulf %252, %256 : vector<8x32xf32>
    %258 = vector.broadcast %238 : vector<1x32xf32> to vector<8x32xf32>
    %259 = arith.mulf %257, %258 : vector<8x32xf32>
    %260 = vector.broadcast %239 : vector<1x32xf32> to vector<8x32xf32>
    %261 = arith.addf %259, %260 : vector<8x32xf32>
    %c0_147 = arith.constant 0 : index
    %c0_148 = arith.constant 0 : index
    %262 = vector.load %arg15[%c0_147, %c0_148] : memref<32x192xf32, #tpu.memory_space<vmem>>, vector<32x192xf32>
    %cst_149 = arith.constant dense<0.000000e+00> : vector<8x192xf32>
    %263 = tpu.matmul %261, %262, %cst_149 {dimension_numbers = #tpu.dot_dimension_numbers<[1], [0], [0], [1], [0, 0, 1, 1], [], []>} : vector<8x32xf32>, vector<32x192xf32>, vector<8x192xf32> -> vector<8x192xf32>
    %c0_150 = arith.constant 0 : index
    %c0_151 = arith.constant 0 : index
    %264 = vector.load %arg16[%c0_150, %c0_151] : memref<1x192xf32, #tpu.memory_space<vmem>>, vector<1x192xf32>
    %265 = vector.broadcast %264 : vector<1x192xf32> to vector<8x192xf32>
    %266 = arith.addf %263, %265 : vector<8x192xf32>
    %c0_152 = arith.constant 0 : index
    %c0_153 = arith.constant 0 : index
    %267 = vector.load %arg30[%c0_152, %c0_153] : memref<8x192xf32, #tpu.memory_space<vmem>>, vector<8x192xf32>
    tpu.vector_store %arg30[%c0_152, %c0_153], %266 {strides = array<i32>} : memref<8x192xf32, #tpu.memory_space<vmem>>, vector<8x192xf32>,
    %c0_154 = arith.constant 0 : index
    %c0_155 = arith.constant 0 : index
    %268 = vector.load %arg30[%c0_154, %c0_155] : memref<8x192xf32, #tpu.memory_space<vmem>>, vector<4x16xf32>
    %c0_156 = arith.constant 0 : index
    %c64_157 = arith.constant 64 : index
    %269 = vector.load %arg30[%c0_156, %c64_157] : memref<8x192xf32, #tpu.memory_space<vmem>>, vector<4x16xf32>
    %c0_158 = arith.constant 0 : index
    %c128_159 = arith.constant 128 : index
    %270 = vector.load %arg30[%c0_158, %c128_159] : memref<8x192xf32, #tpu.memory_space<vmem>>, vector<4x16xf32>
    %271 = tpu.transpose %269, [1, 0] : vector<4x16xf32> -> vector<16x4xf32>
    %cst_160 = arith.constant dense<0.000000e+00> : vector<4x4xf32>
    %272 = tpu.matmul %268, %271, %cst_160 {dimension_numbers = #tpu.dot_dimension_numbers<[1], [0], [0], [1], [0, 0, 1, 1], [], []>} : vector<4x16xf32>, vector<16x4xf32>, vector<4x4xf32> -> vector<4x4xf32>
    %cst_161 = arith.constant 2.500000e-01 : f32
    %273 = vector.broadcast %cst_161 : f32 to vector<4x4xf32>
    %274 = arith.mulf %272, %273 : vector<4x4xf32>
    %cst_162 = arith.constant dense<0xFF800000> : vector<4xf32>
    %275 = vector.multi_reduction <maximumf>, %274, %cst_162 [1] : vector<4x4xf32> to vector<4xf32>
    %276 = vector.shape_cast %275 : vector<4xf32> to vector<4x1xf32>
    %277 = vector.broadcast %276 : vector<4x1xf32> to vector<4x4xf32>
    %278 = arith.subf %274, %277 : vector<4x4xf32>
    %279 = math.exp %278 : vector<4x4xf32>
    %cst_163 = arith.constant dense<0.000000e+00> : vector<4xf32>
    %280 = vector.multi_reduction <add>, %279, %cst_163 [1] : vector<4x4xf32> to vector<4xf32>
    %281 = vector.shape_cast %280 : vector<4xf32> to vector<4x1xf32>
    %282 = tpu.reciprocal %281 {approx = true} : vector<4x1xf32> -> vector<4x1xf32>
    %283 = vector.broadcast %282 : vector<4x1xf32> to vector<4x4xf32>
    %284 = arith.mulf %279, %283 : vector<4x4xf32>
    %cst_164 = arith.constant dense<0.000000e+00> : vector<4x16xf32>
    %285 = tpu.matmul %284, %270, %cst_164 {dimension_numbers = #tpu.dot_dimension_numbers<[1], [0], [0], [1], [0, 0, 1, 1], [], []>} : vector<4x4xf32>, vector<4x16xf32>, vector<4x16xf32> -> vector<4x16xf32>
    %c0_165 = arith.constant 0 : index
    %c0_166 = arith.constant 0 : index
    %286 = vector.load %arg31[%c0_165, %c0_166] : memref<8x64xf32, #tpu.memory_space<vmem>>, vector<4x16xf32>
    tpu.vector_store %arg31[%c0_165, %c0_166], %285 {strides = array<i32>} : memref<8x64xf32, #tpu.memory_space<vmem>>, vector<4x16xf32>,
    %c0_167 = arith.constant 0 : index
    %c16_168 = arith.constant 16 : index
    %287 = vector.load %arg30[%c0_167, %c16_168] : memref<8x192xf32, #tpu.memory_space<vmem>>, vector<4x16xf32>
    %c0_169 = arith.constant 0 : index
    %c80_170 = arith.constant 80 : index
    %288 = vector.load %arg30[%c0_169, %c80_170] : memref<8x192xf32, #tpu.memory_space<vmem>>, vector<4x16xf32>
    %c0_171 = arith.constant 0 : index
    %c144_172 = arith.constant 144 : index
    %289 = vector.load %arg30[%c0_171, %c144_172] : memref<8x192xf32, #tpu.memory_space<vmem>>, vector<4x16xf32>
    %290 = tpu.transpose %288, [1, 0] : vector<4x16xf32> -> vector<16x4xf32>
    %cst_173 = arith.constant dense<0.000000e+00> : vector<4x4xf32>
    %291 = tpu.matmul %287, %290, %cst_173 {dimension_numbers = #tpu.dot_dimension_numbers<[1], [0], [0], [1], [0, 0, 1, 1], [], []>} : vector<4x16xf32>, vector<16x4xf32>, vector<4x4xf32> -> vector<4x4xf32>
    %cst_174 = arith.constant 2.500000e-01 : f32
    %292 = vector.broadcast %cst_174 : f32 to vector<4x4xf32>
    %293 = arith.mulf %291, %292 : vector<4x4xf32>
    %cst_175 = arith.constant dense<0xFF800000> : vector<4xf32>
    %294 = vector.multi_reduction <maximumf>, %293, %cst_175 [1] : vector<4x4xf32> to vector<4xf32>
    %295 = vector.shape_cast %294 : vector<4xf32> to vector<4x1xf32>
    %296 = vector.broadcast %295 : vector<4x1xf32> to vector<4x4xf32>
    %297 = arith.subf %293, %296 : vector<4x4xf32>
    %298 = math.exp %297 : vector<4x4xf32>
    %cst_176 = arith.constant dense<0.000000e+00> : vector<4xf32>
    %299 = vector.multi_reduction <add>, %298, %cst_176 [1] : vector<4x4xf32> to vector<4xf32>
    %300 = vector.shape_cast %299 : vector<4xf32> to vector<4x1xf32>
    %301 = tpu.reciprocal %300 {approx = true} : vector<4x1xf32> -> vector<4x1xf32>
    %302 = vector.broadcast %301 : vector<4x1xf32> to vector<4x4xf32>
    %303 = arith.mulf %298, %302 : vector<4x4xf32>
    %cst_177 = arith.constant dense<0.000000e+00> : vector<4x16xf32>
    %304 = tpu.matmul %303, %289, %cst_177 {dimension_numbers = #tpu.dot_dimension_numbers<[1], [0], [0], [1], [0, 0, 1, 1], [], []>} : vector<4x4xf32>, vector<4x16xf32>, vector<4x16xf32> -> vector<4x16xf32>
    %c0_178 = arith.constant 0 : index
    %c16_179 = arith.constant 16 : index
    %305 = vector.load %arg31[%c0_178, %c16_179] : memref<8x64xf32, #tpu.memory_space<vmem>>, vector<4x16xf32>
    tpu.vector_store %arg31[%c0_178, %c16_179], %304 {strides = array<i32>} : memref<8x64xf32, #tpu.memory_space<vmem>>, vector<4x16xf32>,
    %c0_180 = arith.constant 0 : index
    %c32_181 = arith.constant 32 : index
    %306 = vector.load %arg30[%c0_180, %c32_181] : memref<8x192xf32, #tpu.memory_space<vmem>>, vector<4x16xf32>
    %c0_182 = arith.constant 0 : index
    %c96_183 = arith.constant 96 : index
    %307 = vector.load %arg30[%c0_182, %c96_183] : memref<8x192xf32, #tpu.memory_space<vmem>>, vector<4x16xf32>
    %c0_184 = arith.constant 0 : index
    %c160_185 = arith.constant 160 : index
    %308 = vector.load %arg30[%c0_184, %c160_185] : memref<8x192xf32, #tpu.memory_space<vmem>>, vector<4x16xf32>
    %309 = tpu.transpose %307, [1, 0] : vector<4x16xf32> -> vector<16x4xf32>
    %cst_186 = arith.constant dense<0.000000e+00> : vector<4x4xf32>
    %310 = tpu.matmul %306, %309, %cst_186 {dimension_numbers = #tpu.dot_dimension_numbers<[1], [0], [0], [1], [0, 0, 1, 1], [], []>} : vector<4x16xf32>, vector<16x4xf32>, vector<4x4xf32> -> vector<4x4xf32>
    %cst_187 = arith.constant 2.500000e-01 : f32
    %311 = vector.broadcast %cst_187 : f32 to vector<4x4xf32>
    %312 = arith.mulf %310, %311 : vector<4x4xf32>
    %cst_188 = arith.constant dense<0xFF800000> : vector<4xf32>
    %313 = vector.multi_reduction <maximumf>, %312, %cst_188 [1] : vector<4x4xf32> to vector<4xf32>
    %314 = vector.shape_cast %313 : vector<4xf32> to vector<4x1xf32>
    %315 = vector.broadcast %314 : vector<4x1xf32> to vector<4x4xf32>
    %316 = arith.subf %312, %315 : vector<4x4xf32>
    %317 = math.exp %316 : vector<4x4xf32>
    %cst_189 = arith.constant dense<0.000000e+00> : vector<4xf32>
    %318 = vector.multi_reduction <add>, %317, %cst_189 [1] : vector<4x4xf32> to vector<4xf32>
    %319 = vector.shape_cast %318 : vector<4xf32> to vector<4x1xf32>
    %320 = tpu.reciprocal %319 {approx = true} : vector<4x1xf32> -> vector<4x1xf32>
    %321 = vector.broadcast %320 : vector<4x1xf32> to vector<4x4xf32>
    %322 = arith.mulf %317, %321 : vector<4x4xf32>
    %cst_190 = arith.constant dense<0.000000e+00> : vector<4x16xf32>
    %323 = tpu.matmul %322, %308, %cst_190 {dimension_numbers = #tpu.dot_dimension_numbers<[1], [0], [0], [1], [0, 0, 1, 1], [], []>} : vector<4x4xf32>, vector<4x16xf32>, vector<4x16xf32> -> vector<4x16xf32>
    %c0_191 = arith.constant 0 : index
    %c32_192 = arith.constant 32 : index
    %324 = vector.load %arg31[%c0_191, %c32_192] : memref<8x64xf32, #tpu.memory_space<vmem>>, vector<4x16xf32>
    tpu.vector_store %arg31[%c0_191, %c32_192], %323 {strides = array<i32>} : memref<8x64xf32, #tpu.memory_space<vmem>>, vector<4x16xf32>,
    %c0_193 = arith.constant 0 : index
    %c48_194 = arith.constant 48 : index
    %325 = vector.load %arg30[%c0_193, %c48_194] : memref<8x192xf32, #tpu.memory_space<vmem>>, vector<4x16xf32>
    %c0_195 = arith.constant 0 : index
    %c112_196 = arith.constant 112 : index
    %326 = vector.load %arg30[%c0_195, %c112_196] : memref<8x192xf32, #tpu.memory_space<vmem>>, vector<4x16xf32>
    %c0_197 = arith.constant 0 : index
    %c176_198 = arith.constant 176 : index
    %327 = vector.load %arg30[%c0_197, %c176_198] : memref<8x192xf32, #tpu.memory_space<vmem>>, vector<4x16xf32>
    %328 = tpu.transpose %326, [1, 0] : vector<4x16xf32> -> vector<16x4xf32>
    %cst_199 = arith.constant dense<0.000000e+00> : vector<4x4xf32>
    %329 = tpu.matmul %325, %328, %cst_199 {dimension_numbers = #tpu.dot_dimension_numbers<[1], [0], [0], [1], [0, 0, 1, 1], [], []>} : vector<4x16xf32>, vector<16x4xf32>, vector<4x4xf32> -> vector<4x4xf32>
    %cst_200 = arith.constant 2.500000e-01 : f32
    %330 = vector.broadcast %cst_200 : f32 to vector<4x4xf32>
    %331 = arith.mulf %329, %330 : vector<4x4xf32>
    %cst_201 = arith.constant dense<0xFF800000> : vector<4xf32>
    %332 = vector.multi_reduction <maximumf>, %331, %cst_201 [1] : vector<4x4xf32> to vector<4xf32>
    %333 = vector.shape_cast %332 : vector<4xf32> to vector<4x1xf32>
    %334 = vector.broadcast %333 : vector<4x1xf32> to vector<4x4xf32>
    %335 = arith.subf %331, %334 : vector<4x4xf32>
    %336 = math.exp %335 : vector<4x4xf32>
    %cst_202 = arith.constant dense<0.000000e+00> : vector<4xf32>
    %337 = vector.multi_reduction <add>, %336, %cst_202 [1] : vector<4x4xf32> to vector<4xf32>
    %338 = vector.shape_cast %337 : vector<4xf32> to vector<4x1xf32>
    %339 = tpu.reciprocal %338 {approx = true} : vector<4x1xf32> -> vector<4x1xf32>
    %340 = vector.broadcast %339 : vector<4x1xf32> to vector<4x4xf32>
    %341 = arith.mulf %336, %340 : vector<4x4xf32>
    %cst_203 = arith.constant dense<0.000000e+00> : vector<4x16xf32>
    %342 = tpu.matmul %341, %327, %cst_203 {dimension_numbers = #tpu.dot_dimension_numbers<[1], [0], [0], [1], [0, 0, 1, 1], [], []>} : vector<4x4xf32>, vector<4x16xf32>, vector<4x16xf32> -> vector<4x16xf32>
    %c0_204 = arith.constant 0 : index
    %c48_205 = arith.constant 48 : index
    %343 = vector.load %arg31[%c0_204, %c48_205] : memref<8x64xf32, #tpu.memory_space<vmem>>, vector<4x16xf32>
    tpu.vector_store %arg31[%c0_204, %c48_205], %342 {strides = array<i32>} : memref<8x64xf32, #tpu.memory_space<vmem>>, vector<4x16xf32>,
    %c4_206 = arith.constant 4 : index
    %c0_207 = arith.constant 0 : index
    %344 = vector.load %arg30[%c4_206, %c0_207] : memref<8x192xf32, #tpu.memory_space<vmem>>, vector<4x16xf32>
    %c4_208 = arith.constant 4 : index
    %c64_209 = arith.constant 64 : index
    %345 = vector.load %arg30[%c4_208, %c64_209] : memref<8x192xf32, #tpu.memory_space<vmem>>, vector<4x16xf32>
    %c4_210 = arith.constant 4 : index
    %c128_211 = arith.constant 128 : index
    %346 = vector.load %arg30[%c4_210, %c128_211] : memref<8x192xf32, #tpu.memory_space<vmem>>, vector<4x16xf32>
    %347 = tpu.transpose %345, [1, 0] : vector<4x16xf32> -> vector<16x4xf32>
    %cst_212 = arith.constant dense<0.000000e+00> : vector<4x4xf32>
    %348 = tpu.matmul %344, %347, %cst_212 {dimension_numbers = #tpu.dot_dimension_numbers<[1], [0], [0], [1], [0, 0, 1, 1], [], []>} : vector<4x16xf32>, vector<16x4xf32>, vector<4x4xf32> -> vector<4x4xf32>
    %cst_213 = arith.constant 2.500000e-01 : f32
    %349 = vector.broadcast %cst_213 : f32 to vector<4x4xf32>
    %350 = arith.mulf %348, %349 : vector<4x4xf32>
    %cst_214 = arith.constant dense<0xFF800000> : vector<4xf32>
    %351 = vector.multi_reduction <maximumf>, %350, %cst_214 [1] : vector<4x4xf32> to vector<4xf32>
    %352 = vector.shape_cast %351 : vector<4xf32> to vector<4x1xf32>
    %353 = vector.broadcast %352 : vector<4x1xf32> to vector<4x4xf32>
    %354 = arith.subf %350, %353 : vector<4x4xf32>
    %355 = math.exp %354 : vector<4x4xf32>
    %cst_215 = arith.constant dense<0.000000e+00> : vector<4xf32>
    %356 = vector.multi_reduction <add>, %355, %cst_215 [1] : vector<4x4xf32> to vector<4xf32>
    %357 = vector.shape_cast %356 : vector<4xf32> to vector<4x1xf32>
    %358 = tpu.reciprocal %357 {approx = true} : vector<4x1xf32> -> vector<4x1xf32>
    %359 = vector.broadcast %358 : vector<4x1xf32> to vector<4x4xf32>
    %360 = arith.mulf %355, %359 : vector<4x4xf32>
    %cst_216 = arith.constant dense<0.000000e+00> : vector<4x16xf32>
    %361 = tpu.matmul %360, %346, %cst_216 {dimension_numbers = #tpu.dot_dimension_numbers<[1], [0], [0], [1], [0, 0, 1, 1], [], []>} : vector<4x4xf32>, vector<4x16xf32>, vector<4x16xf32> -> vector<4x16xf32>
    %c4_217 = arith.constant 4 : index
    %c0_218 = arith.constant 0 : index
    %362 = vector.load %arg31[%c4_217, %c0_218] : memref<8x64xf32, #tpu.memory_space<vmem>>, vector<4x16xf32>
    tpu.vector_store %arg31[%c4_217, %c0_218], %361 {strides = array<i32>} : memref<8x64xf32, #tpu.memory_space<vmem>>, vector<4x16xf32>,
    %c4_219 = arith.constant 4 : index
    %c16_220 = arith.constant 16 : index
    %363 = vector.load %arg30[%c4_219, %c16_220] : memref<8x192xf32, #tpu.memory_space<vmem>>, vector<4x16xf32>
    %c4_221 = arith.constant 4 : index
    %c80_222 = arith.constant 80 : index
    %364 = vector.load %arg30[%c4_221, %c80_222] : memref<8x192xf32, #tpu.memory_space<vmem>>, vector<4x16xf32>
    %c4_223 = arith.constant 4 : index
    %c144_224 = arith.constant 144 : index
    %365 = vector.load %arg30[%c4_223, %c144_224] : memref<8x192xf32, #tpu.memory_space<vmem>>, vector<4x16xf32>
    %366 = tpu.transpose %364, [1, 0] : vector<4x16xf32> -> vector<16x4xf32>
    %cst_225 = arith.constant dense<0.000000e+00> : vector<4x4xf32>
    %367 = tpu.matmul %363, %366, %cst_225 {dimension_numbers = #tpu.dot_dimension_numbers<[1], [0], [0], [1], [0, 0, 1, 1], [], []>} : vector<4x16xf32>, vector<16x4xf32>, vector<4x4xf32> -> vector<4x4xf32>
    %cst_226 = arith.constant 2.500000e-01 : f32
    %368 = vector.broadcast %cst_226 : f32 to vector<4x4xf32>
    %369 = arith.mulf %367, %368 : vector<4x4xf32>
    %cst_227 = arith.constant dense<0xFF800000> : vector<4xf32>
    %370 = vector.multi_reduction <maximumf>, %369, %cst_227 [1] : vector<4x4xf32> to vector<4xf32>
    %371 = vector.shape_cast %370 : vector<4xf32> to vector<4x1xf32>
    %372 = vector.broadcast %371 : vector<4x1xf32> to vector<4x4xf32>
    %373 = arith.subf %369, %372 : vector<4x4xf32>
    %374 = math.exp %373 : vector<4x4xf32>
    %cst_228 = arith.constant dense<0.000000e+00> : vector<4xf32>
    %375 = vector.multi_reduction <add>, %374, %cst_228 [1] : vector<4x4xf32> to vector<4xf32>
    %376 = vector.shape_cast %375 : vector<4xf32> to vector<4x1xf32>
    %377 = tpu.reciprocal %376 {approx = true} : vector<4x1xf32> -> vector<4x1xf32>
    %378 = vector.broadcast %377 : vector<4x1xf32> to vector<4x4xf32>
    %379 = arith.mulf %374, %378 : vector<4x4xf32>
    %cst_229 = arith.constant dense<0.000000e+00> : vector<4x16xf32>
    %380 = tpu.matmul %379, %365, %cst_229 {dimension_numbers = #tpu.dot_dimension_numbers<[1], [0], [0], [1], [0, 0, 1, 1], [], []>} : vector<4x4xf32>, vector<4x16xf32>, vector<4x16xf32> -> vector<4x16xf32>
    %c4_230 = arith.constant 4 : index
    %c16_231 = arith.constant 16 : index
    %381 = vector.load %arg31[%c4_230, %c16_231] : memref<8x64xf32, #tpu.memory_space<vmem>>, vector<4x16xf32>
    tpu.vector_store %arg31[%c4_230, %c16_231], %380 {strides = array<i32>} : memref<8x64xf32, #tpu.memory_space<vmem>>, vector<4x16xf32>,
    %c4_232 = arith.constant 4 : index
    %c32_233 = arith.constant 32 : index
    %382 = vector.load %arg30[%c4_232, %c32_233] : memref<8x192xf32, #tpu.memory_space<vmem>>, vector<4x16xf32>
    %c4_234 = arith.constant 4 : index
    %c96_235 = arith.constant 96 : index
    %383 = vector.load %arg30[%c4_234, %c96_235] : memref<8x192xf32, #tpu.memory_space<vmem>>, vector<4x16xf32>
    %c4_236 = arith.constant 4 : index
    %c160_237 = arith.constant 160 : index
    %384 = vector.load %arg30[%c4_236, %c160_237] : memref<8x192xf32, #tpu.memory_space<vmem>>, vector<4x16xf32>
    %385 = tpu.transpose %383, [1, 0] : vector<4x16xf32> -> vector<16x4xf32>
    %cst_238 = arith.constant dense<0.000000e+00> : vector<4x4xf32>
    %386 = tpu.matmul %382, %385, %cst_238 {dimension_numbers = #tpu.dot_dimension_numbers<[1], [0], [0], [1], [0, 0, 1, 1], [], []>} : vector<4x16xf32>, vector<16x4xf32>, vector<4x4xf32> -> vector<4x4xf32>
    %cst_239 = arith.constant 2.500000e-01 : f32
    %387 = vector.broadcast %cst_239 : f32 to vector<4x4xf32>
    %388 = arith.mulf %386, %387 : vector<4x4xf32>
    %cst_240 = arith.constant dense<0xFF800000> : vector<4xf32>
    %389 = vector.multi_reduction <maximumf>, %388, %cst_240 [1] : vector<4x4xf32> to vector<4xf32>
    %390 = vector.shape_cast %389 : vector<4xf32> to vector<4x1xf32>
    %391 = vector.broadcast %390 : vector<4x1xf32> to vector<4x4xf32>
    %392 = arith.subf %388, %391 : vector<4x4xf32>
    %393 = math.exp %392 : vector<4x4xf32>
    %cst_241 = arith.constant dense<0.000000e+00> : vector<4xf32>
    %394 = vector.multi_reduction <add>, %393, %cst_241 [1] : vector<4x4xf32> to vector<4xf32>
    %395 = vector.shape_cast %394 : vector<4xf32> to vector<4x1xf32>
    %396 = tpu.reciprocal %395 {approx = true} : vector<4x1xf32> -> vector<4x1xf32>
    %397 = vector.broadcast %396 : vector<4x1xf32> to vector<4x4xf32>
    %398 = arith.mulf %393, %397 : vector<4x4xf32>
    %cst_242 = arith.constant dense<0.000000e+00> : vector<4x16xf32>
    %399 = tpu.matmul %398, %384, %cst_242 {dimension_numbers = #tpu.dot_dimension_numbers<[1], [0], [0], [1], [0, 0, 1, 1], [], []>} : vector<4x4xf32>, vector<4x16xf32>, vector<4x16xf32> -> vector<4x16xf32>
    %c4_243 = arith.constant 4 : index
    %c32_244 = arith.constant 32 : index
    %400 = vector.load %arg31[%c4_243, %c32_244] : memref<8x64xf32, #tpu.memory_space<vmem>>, vector<4x16xf32>
    tpu.vector_store %arg31[%c4_243, %c32_244], %399 {strides = array<i32>} : memref<8x64xf32, #tpu.memory_space<vmem>>, vector<4x16xf32>,
    %c4_245 = arith.constant 4 : index
    %c48_246 = arith.constant 48 : index
    %401 = vector.load %arg30[%c4_245, %c48_246] : memref<8x192xf32, #tpu.memory_space<vmem>>, vector<4x16xf32>
    %c4_247 = arith.constant 4 : index
    %c112_248 = arith.constant 112 : index
    %402 = vector.load %arg30[%c4_247, %c112_248] : memref<8x192xf32, #tpu.memory_space<vmem>>, vector<4x16xf32>
    %c4_249 = arith.constant 4 : index
    %c176_250 = arith.constant 176 : index
    %403 = vector.load %arg30[%c4_249, %c176_250] : memref<8x192xf32, #tpu.memory_space<vmem>>, vector<4x16xf32>
    %404 = tpu.transpose %402, [1, 0] : vector<4x16xf32> -> vector<16x4xf32>
    %cst_251 = arith.constant dense<0.000000e+00> : vector<4x4xf32>
    %405 = tpu.matmul %401, %404, %cst_251 {dimension_numbers = #tpu.dot_dimension_numbers<[1], [0], [0], [1], [0, 0, 1, 1], [], []>} : vector<4x16xf32>, vector<16x4xf32>, vector<4x4xf32> -> vector<4x4xf32>
    %cst_252 = arith.constant 2.500000e-01 : f32
    %406 = vector.broadcast %cst_252 : f32 to vector<4x4xf32>
    %407 = arith.mulf %405, %406 : vector<4x4xf32>
    %cst_253 = arith.constant dense<0xFF800000> : vector<4xf32>
    %408 = vector.multi_reduction <maximumf>, %407, %cst_253 [1] : vector<4x4xf32> to vector<4xf32>
    %409 = vector.shape_cast %408 : vector<4xf32> to vector<4x1xf32>
    %410 = vector.broadcast %409 : vector<4x1xf32> to vector<4x4xf32>
    %411 = arith.subf %407, %410 : vector<4x4xf32>
    %412 = math.exp %411 : vector<4x4xf32>
    %cst_254 = arith.constant dense<0.000000e+00> : vector<4xf32>
    %413 = vector.multi_reduction <add>, %412, %cst_254 [1] : vector<4x4xf32> to vector<4xf32>
    %414 = vector.shape_cast %413 : vector<4xf32> to vector<4x1xf32>
    %415 = tpu.reciprocal %414 {approx = true} : vector<4x1xf32> -> vector<4x1xf32>
    %416 = vector.broadcast %415 : vector<4x1xf32> to vector<4x4xf32>
    %417 = arith.mulf %412, %416 : vector<4x4xf32>
    %cst_255 = arith.constant dense<0.000000e+00> : vector<4x16xf32>
    %418 = tpu.matmul %417, %403, %cst_255 {dimension_numbers = #tpu.dot_dimension_numbers<[1], [0], [0], [1], [0, 0, 1, 1], [], []>} : vector<4x4xf32>, vector<4x16xf32>, vector<4x16xf32> -> vector<4x16xf32>
    %c4_256 = arith.constant 4 : index
    %c48_257 = arith.constant 48 : index
    %419 = vector.load %arg31[%c4_256, %c48_257] : memref<8x64xf32, #tpu.memory_space<vmem>>, vector<4x16xf32>
    tpu.vector_store %arg31[%c4_256, %c48_257], %418 {strides = array<i32>} : memref<8x64xf32, #tpu.memory_space<vmem>>, vector<4x16xf32>,
    %c0_258 = arith.constant 0 : index
    %c0_259 = arith.constant 0 : index
    %420 = vector.load %arg31[%c0_258, %c0_259] : memref<8x64xf32, #tpu.memory_space<vmem>>, vector<8x64xf32>
    %c0_260 = arith.constant 0 : index
    %c0_261 = arith.constant 0 : index
    %421 = vector.load %arg17[%c0_260, %c0_261] : memref<64x32xf32, #tpu.memory_space<vmem>>, vector<64x32xf32>
    %cst_262 = arith.constant dense<0.000000e+00> : vector<8x32xf32>
    %422 = tpu.matmul %420, %421, %cst_262 {dimension_numbers = #tpu.dot_dimension_numbers<[1], [0], [0], [1], [0, 0, 1, 1], [], []>} : vector<8x64xf32>, vector<64x32xf32>, vector<8x32xf32> -> vector<8x32xf32>
    %c0_263 = arith.constant 0 : index
    %c0_264 = arith.constant 0 : index
    %423 = vector.load %arg18[%c0_263, %c0_264] : memref<1x32xf32, #tpu.memory_space<vmem>>, vector<1x32xf32>
    %424 = vector.broadcast %423 : vector<1x32xf32> to vector<8x32xf32>
    %425 = arith.addf %422, %424 : vector<8x32xf32>
    %426 = arith.addf %237, %425 : vector<8x32xf32>
    %c0_265 = arith.constant 0 : index
    %c0_266 = arith.constant 0 : index
    %427 = vector.load %arg19[%c0_265, %c0_266] : memref<1x32xf32, #tpu.memory_space<vmem>>, vector<1x32xf32>
    %c0_267 = arith.constant 0 : index
    %c0_268 = arith.constant 0 : index
    %428 = vector.load %arg20[%c0_267, %c0_268] : memref<1x32xf32, #tpu.memory_space<vmem>>, vector<1x32xf32>
    %cst_269 = arith.constant dense<0.000000e+00> : vector<8xf32>
    %429 = vector.multi_reduction <add>, %426, %cst_269 [1] : vector<8x32xf32> to vector<8xf32>
    %430 = vector.shape_cast %429 : vector<8xf32> to vector<8x1xf32>
    %cst_270 = arith.constant 3.200000e+01 : f32
    %431 = vector.broadcast %cst_270 : f32 to vector<8x1xf32>
    %432 = arith.divf %430, %431 : vector<8x1xf32>
    %433 = vector.broadcast %432 : vector<8x1xf32> to vector<8x32xf32>
    %434 = arith.subf %426, %433 : vector<8x32xf32>
    %435 = arith.mulf %434, %434 : vector<8x32xf32>
    %cst_271 = arith.constant dense<0.000000e+00> : vector<8xf32>
    %436 = vector.multi_reduction <add>, %435, %cst_271 [1] : vector<8x32xf32> to vector<8xf32>
    %437 = vector.shape_cast %436 : vector<8xf32> to vector<8x1xf32>
    %cst_272 = arith.constant 3.200000e+01 : f32
    %438 = vector.broadcast %cst_272 : f32 to vector<8x1xf32>
    %439 = arith.divf %437, %438 : vector<8x1xf32>
    %440 = vector.broadcast %432 : vector<8x1xf32> to vector<8x32xf32>
    %441 = arith.subf %426, %440 : vector<8x32xf32>
    %cst_273 = arith.constant 9.99999974E-6 : f32
    %442 = vector.broadcast %cst_273 : f32 to vector<8x1xf32>
    %443 = arith.addf %439, %442 : vector<8x1xf32>
    %444 = math.rsqrt %443 : vector<8x1xf32>
    %445 = vector.broadcast %444 : vector<8x1xf32> to vector<8x32xf32>
    %446 = arith.mulf %441, %445 : vector<8x32xf32>
    %447 = vector.broadcast %427 : vector<1x32xf32> to vector<8x32xf32>
    %448 = arith.mulf %446, %447 : vector<8x32xf32>
    %449 = vector.broadcast %428 : vector<1x32xf32> to vector<8x32xf32>
    %450 = arith.addf %448, %449 : vector<8x32xf32>
    %c0_274 = arith.constant 0 : index
    %c0_275 = arith.constant 0 : index
    %451 = vector.load %arg21[%c0_274, %c0_275] : memref<32x128xf32, #tpu.memory_space<vmem>>, vector<32x128xf32>
    %cst_276 = arith.constant dense<0.000000e+00> : vector<8x128xf32>
    %452 = tpu.matmul %450, %451, %cst_276 {dimension_numbers = #tpu.dot_dimension_numbers<[1], [0], [0], [1], [0, 0, 1, 1], [], []>} : vector<8x32xf32>, vector<32x128xf32>, vector<8x128xf32> -> vector<8x128xf32>
    %c0_277 = arith.constant 0 : index
    %c0_278 = arith.constant 0 : index
    %453 = vector.load %arg22[%c0_277, %c0_278] : memref<1x128xf32, #tpu.memory_space<vmem>>, vector<1x128xf32>
    %454 = vector.broadcast %453 : vector<1x128xf32> to vector<8x128xf32>
    %455 = arith.addf %452, %454 : vector<8x128xf32>
    %cst_279 = arith.constant 5.000000e-01 : f32
    %456 = vector.broadcast %cst_279 : f32 to vector<8x128xf32>
    %457 = arith.mulf %456, %455 : vector<8x128xf32>
    %cst_280 = arith.constant 4.471500e-02 : f32
    %458 = vector.broadcast %cst_280 : f32 to vector<8x128xf32>
    %459 = arith.mulf %458, %455 : vector<8x128xf32>
    %460 = arith.mulf %459, %455 : vector<8x128xf32>
    %461 = arith.mulf %460, %455 : vector<8x128xf32>
    %462 = arith.addf %455, %461 : vector<8x128xf32>
    %cst_281 = arith.constant 0.797884583 : f32
    %463 = vector.broadcast %cst_281 : f32 to vector<8x128xf32>
    %464 = arith.mulf %463, %462 : vector<8x128xf32>
    %465 = math.tanh %464 : vector<8x128xf32>
    %cst_282 = arith.constant 1.000000e+00 : f32
    %466 = vector.broadcast %cst_282 : f32 to vector<8x128xf32>
    %467 = arith.addf %466, %465 : vector<8x128xf32>
    %468 = arith.mulf %457, %467 : vector<8x128xf32>
    %c0_283 = arith.constant 0 : index
    %c0_284 = arith.constant 0 : index
    %469 = vector.load %arg23[%c0_283, %c0_284] : memref<128x32xf32, #tpu.memory_space<vmem>>, vector<128x32xf32>
    %cst_285 = arith.constant dense<0.000000e+00> : vector<8x32xf32>
    %470 = tpu.matmul %468, %469, %cst_285 {dimension_numbers = #tpu.dot_dimension_numbers<[1], [0], [0], [1], [0, 0, 1, 1], [], []>} : vector<8x128xf32>, vector<128x32xf32>, vector<8x32xf32> -> vector<8x32xf32>
    %c0_286 = arith.constant 0 : index
    %c0_287 = arith.constant 0 : index
    %471 = vector.load %arg24[%c0_286, %c0_287] : memref<1x32xf32, #tpu.memory_space<vmem>>, vector<1x32xf32>
    %472 = vector.broadcast %471 : vector<1x32xf32> to vector<8x32xf32>
    %473 = arith.addf %470, %472 : vector<8x32xf32>
    %474 = arith.addf %426, %473 : vector<8x32xf32>
    %c0_288 = arith.constant 0 : index
    %c0_289 = arith.constant 0 : index
    %475 = vector.load %arg25[%c0_288, %c0_289] : memref<1x32xf32, #tpu.memory_space<vmem>>, vector<1x32xf32>
    %c0_290 = arith.constant 0 : index
    %c0_291 = arith.constant 0 : index
    %476 = vector.load %arg26[%c0_290, %c0_291] : memref<1x32xf32, #tpu.memory_space<vmem>>, vector<1x32xf32>
    %cst_292 = arith.constant dense<0.000000e+00> : vector<8xf32>
    %477 = vector.multi_reduction <add>, %474, %cst_292 [1] : vector<8x32xf32> to vector<8xf32>
    %478 = vector.shape_cast %477 : vector<8xf32> to vector<8x1xf32>
    %cst_293 = arith.constant 3.200000e+01 : f32
    %479 = vector.broadcast %cst_293 : f32 to vector<8x1xf32>
    %480 = arith.divf %478, %479 : vector<8x1xf32>
    %481 = vector.broadcast %480 : vector<8x1xf32> to vector<8x32xf32>
    %482 = arith.subf %474, %481 : vector<8x32xf32>
    %483 = arith.mulf %482, %482 : vector<8x32xf32>
    %cst_294 = arith.constant dense<0.000000e+00> : vector<8xf32>
    %484 = vector.multi_reduction <add>, %483, %cst_294 [1] : vector<8x32xf32> to vector<8xf32>
    %485 = vector.shape_cast %484 : vector<8xf32> to vector<8x1xf32>
    %cst_295 = arith.constant 3.200000e+01 : f32
    %486 = vector.broadcast %cst_295 : f32 to vector<8x1xf32>
    %487 = arith.divf %485, %486 : vector<8x1xf32>
    %488 = vector.broadcast %480 : vector<8x1xf32> to vector<8x32xf32>
    %489 = arith.subf %474, %488 : vector<8x32xf32>
    %cst_296 = arith.constant 9.99999974E-6 : f32
    %490 = vector.broadcast %cst_296 : f32 to vector<8x1xf32>
    %491 = arith.addf %487, %490 : vector<8x1xf32>
    %492 = math.rsqrt %491 : vector<8x1xf32>
    %493 = vector.broadcast %492 : vector<8x1xf32> to vector<8x32xf32>
    %494 = arith.mulf %489, %493 : vector<8x32xf32>
    %495 = vector.broadcast %475 : vector<1x32xf32> to vector<8x32xf32>
    %496 = arith.mulf %494, %495 : vector<8x32xf32>
    %497 = vector.broadcast %476 : vector<1x32xf32> to vector<8x32xf32>
    %498 = arith.addf %496, %497 : vector<8x32xf32>
    %c0_297 = arith.constant 0 : index
    %c0_298 = arith.constant 0 : index
    %499 = vector.load %arg27[%c0_297, %c0_298] : memref<32x64xf32, #tpu.memory_space<vmem>>, vector<32x64xf32>
    %cst_299 = arith.constant dense<0.000000e+00> : vector<8x64xf32>
    %500 = tpu.matmul %498, %499, %cst_299 {dimension_numbers = #tpu.dot_dimension_numbers<[1], [0], [0], [1], [0, 0, 1, 1], [], []>} : vector<8x32xf32>, vector<32x64xf32>, vector<8x64xf32> -> vector<8x64xf32>
    %c0_300 = arith.constant 0 : index
    %c0_301 = arith.constant 0 : index
    %501 = vector.load %arg28[%c0_300, %c0_301] : memref<1x64xf32, #tpu.memory_space<vmem>>, vector<1x64xf32>
    %502 = vector.broadcast %501 : vector<1x64xf32> to vector<8x64xf32>
    %503 = arith.addf %500, %502 : vector<8x64xf32>
    %c0_302 = arith.constant 0 : index
    %c0_303 = arith.constant 0 : index
    %504 = vector.load %arg29[%c0_302, %c0_303] : memref<8x64xf32, #tpu.memory_space<vmem>>, vector<8x64xf32>
    tpu.vector_store %arg29[%c0_302, %c0_303], %503 {strides = array<i32>} : memref<8x64xf32, #tpu.memory_space<vmem>>, vector<8x64xf32>,
    return
  }
}

module attributes {stable_mosaic.version = 11 : i64} {
  func.func @_decoder_loss_kernel(%arg0: memref<32x64xf32, #tpu.memory_space<vmem>>, %arg1: memref<32x192xf32, #tpu.memory_space<vmem>>, %arg2: memref<32x1xf32, #tpu.memory_space<vmem>>, %arg3: memref<1x64xf32, #tpu.memory_space<vmem>>, %arg4: memref<1x64xf32, #tpu.memory_space<vmem>>, %arg5: memref<64x1536xf32, #tpu.memory_space<vmem>>, %arg6: memref<1x1536xf32, #tpu.memory_space<vmem>>, %arg7: memref<512x64xf32, #tpu.memory_space<vmem>>, %arg8: memref<1x64xf32, #tpu.memory_space<vmem>>, %arg9: memref<1x64xf32, #tpu.memory_space<vmem>>, %arg10: memref<1x64xf32, #tpu.memory_space<vmem>>, %arg11: memref<64x256xf32, #tpu.memory_space<vmem>>, %arg12: memref<1x256xf32, #tpu.memory_space<vmem>>, %arg13: memref<256x64xf32, #tpu.memory_space<vmem>>, %arg14: memref<1x64xf32, #tpu.memory_space<vmem>>, %arg15: memref<1x64xf32, #tpu.memory_space<vmem>>, %arg16: memref<1x64xf32, #tpu.memory_space<vmem>>, %arg17: memref<64x192xf32, #tpu.memory_space<vmem>>, %arg18: memref<1x192xf32, #tpu.memory_space<vmem>>, %arg19: memref<1x1xf32, #tpu.memory_space<vmem>>, %arg20: memref<32x1536xf32, #tpu.memory_space<vmem>>, %arg21: memref<32x512xf32, #tpu.memory_space<vmem>>) attributes {dimension_semantics = [], scalar_prefetch = 0 : i64, scratch_operands = 2 : i64, tpu.core_type = #tpu.core_type<tc>} {
    %c0 = arith.constant 0 : index
    %c0_0 = arith.constant 0 : index
    %0 = vector.load %arg0[%c0, %c0_0] : memref<32x64xf32, #tpu.memory_space<vmem>>, vector<32x64xf32>
    %c0_1 = arith.constant 0 : index
    %c0_2 = arith.constant 0 : index
    %1 = vector.load %arg3[%c0_1, %c0_2] : memref<1x64xf32, #tpu.memory_space<vmem>>, vector<1x64xf32>
    %c0_3 = arith.constant 0 : index
    %c0_4 = arith.constant 0 : index
    %2 = vector.load %arg4[%c0_3, %c0_4] : memref<1x64xf32, #tpu.memory_space<vmem>>, vector<1x64xf32>
    %cst = arith.constant dense<0.000000e+00> : vector<32xf32>
    %3 = vector.multi_reduction <add>, %0, %cst [1] : vector<32x64xf32> to vector<32xf32>
    %4 = vector.shape_cast %3 : vector<32xf32> to vector<32x1xf32>
    %cst_5 = arith.constant 6.400000e+01 : f32
    %5 = vector.broadcast %cst_5 : f32 to vector<32x1xf32>
    %6 = arith.divf %4, %5 : vector<32x1xf32>
    %7 = vector.broadcast %6 : vector<32x1xf32> to vector<32x64xf32>
    %8 = arith.subf %0, %7 : vector<32x64xf32>
    %9 = arith.mulf %8, %8 : vector<32x64xf32>
    %cst_6 = arith.constant dense<0.000000e+00> : vector<32xf32>
    %10 = vector.multi_reduction <add>, %9, %cst_6 [1] : vector<32x64xf32> to vector<32xf32>
    %11 = vector.shape_cast %10 : vector<32xf32> to vector<32x1xf32>
    %cst_7 = arith.constant 6.400000e+01 : f32
    %12 = vector.broadcast %cst_7 : f32 to vector<32x1xf32>
    %13 = arith.divf %11, %12 : vector<32x1xf32>
    %14 = vector.broadcast %6 : vector<32x1xf32> to vector<32x64xf32>
    %15 = arith.subf %0, %14 : vector<32x64xf32>
    %cst_8 = arith.constant 9.99999974E-6 : f32
    %16 = vector.broadcast %cst_8 : f32 to vector<32x1xf32>
    %17 = arith.addf %13, %16 : vector<32x1xf32>
    %18 = math.rsqrt %17 : vector<32x1xf32>
    %19 = vector.broadcast %18 : vector<32x1xf32> to vector<32x64xf32>
    %20 = arith.mulf %15, %19 : vector<32x64xf32>
    %21 = vector.broadcast %1 : vector<1x64xf32> to vector<32x64xf32>
    %22 = arith.mulf %20, %21 : vector<32x64xf32>
    %23 = vector.broadcast %2 : vector<1x64xf32> to vector<32x64xf32>
    %24 = arith.addf %22, %23 : vector<32x64xf32>
    %c0_9 = arith.constant 0 : index
    %c0_10 = arith.constant 0 : index
    %25 = vector.load %arg5[%c0_9, %c0_10] : memref<64x1536xf32, #tpu.memory_space<vmem>>, vector<64x1536xf32>
    %cst_11 = arith.constant dense<0.000000e+00> : vector<32x1536xf32>
    %26 = tpu.matmul %24, %25, %cst_11 {dimension_numbers = #tpu.dot_dimension_numbers<[1], [0], [0], [1], [0, 0, 1, 1], [], []>} : vector<32x64xf32>, vector<64x1536xf32>, vector<32x1536xf32> -> vector<32x1536xf32>
    %c0_12 = arith.constant 0 : index
    %c0_13 = arith.constant 0 : index
    %27 = vector.load %arg6[%c0_12, %c0_13] : memref<1x1536xf32, #tpu.memory_space<vmem>>, vector<1x1536xf32>
    %28 = vector.broadcast %27 : vector<1x1536xf32> to vector<32x1536xf32>
    %29 = arith.addf %26, %28 : vector<32x1536xf32>
    %c0_14 = arith.constant 0 : index
    %c0_15 = arith.constant 0 : index
    %30 = vector.load %arg20[%c0_14, %c0_15] : memref<32x1536xf32, #tpu.memory_space<vmem>>, vector<32x1536xf32>
    tpu.vector_store %arg20[%c0_14, %c0_15], %29 {strides = array<i32>} : memref<32x1536xf32, #tpu.memory_space<vmem>>, vector<32x1536xf32>,
    %c0_16 = arith.constant 0 : index
    %c0_17 = arith.constant 0 : index
    %31 = vector.load %arg20[%c0_16, %c0_17] : memref<32x1536xf32, #tpu.memory_space<vmem>>, vector<16x64xf32>
    %c0_18 = arith.constant 0 : index
    %c512 = arith.constant 512 : index
    %32 = vector.load %arg20[%c0_18, %c512] : memref<32x1536xf32, #tpu.memory_space<vmem>>, vector<16x64xf32>
    %c0_19 = arith.constant 0 : index
    %c1024 = arith.constant 1024 : index
    %33 = vector.load %arg20[%c0_19, %c1024] : memref<32x1536xf32, #tpu.memory_space<vmem>>, vector<16x64xf32>
    %34 = tpu.transpose %32, [1, 0] : vector<16x64xf32> -> vector<64x16xf32>
    %cst_20 = arith.constant dense<0.000000e+00> : vector<16x16xf32>
    %35 = tpu.matmul %31, %34, %cst_20 {dimension_numbers = #tpu.dot_dimension_numbers<[1], [0], [0], [1], [0, 0, 1, 1], [], []>} : vector<16x64xf32>, vector<64x16xf32>, vector<16x16xf32> -> vector<16x16xf32>
    %cst_21 = arith.constant 1.250000e-01 : f32
    %36 = vector.broadcast %cst_21 : f32 to vector<16x16xf32>
    %37 = arith.mulf %35, %36 : vector<16x16xf32>
    %cst_22 = arith.constant dense<0xFF800000> : vector<16xf32>
    %38 = vector.multi_reduction <maximumf>, %37, %cst_22 [1] : vector<16x16xf32> to vector<16xf32>
    %39 = vector.shape_cast %38 : vector<16xf32> to vector<16x1xf32>
    %40 = vector.broadcast %39 : vector<16x1xf32> to vector<16x16xf32>
    %41 = arith.subf %37, %40 : vector<16x16xf32>
    %42 = math.exp %41 : vector<16x16xf32>
    %cst_23 = arith.constant dense<0.000000e+00> : vector<16xf32>
    %43 = vector.multi_reduction <add>, %42, %cst_23 [1] : vector<16x16xf32> to vector<16xf32>
    %44 = vector.shape_cast %43 : vector<16xf32> to vector<16x1xf32>
    %45 = tpu.reciprocal %44 {approx = true} : vector<16x1xf32> -> vector<16x1xf32>
    %46 = vector.broadcast %45 : vector<16x1xf32> to vector<16x16xf32>
    %47 = arith.mulf %42, %46 : vector<16x16xf32>
    %cst_24 = arith.constant dense<0.000000e+00> : vector<16x64xf32>
    %48 = tpu.matmul %47, %33, %cst_24 {dimension_numbers = #tpu.dot_dimension_numbers<[1], [0], [0], [1], [0, 0, 1, 1], [], []>} : vector<16x16xf32>, vector<16x64xf32>, vector<16x64xf32> -> vector<16x64xf32>
    %c0_25 = arith.constant 0 : index
    %c0_26 = arith.constant 0 : index
    %49 = vector.load %arg21[%c0_25, %c0_26] : memref<32x512xf32, #tpu.memory_space<vmem>>, vector<16x64xf32>
    tpu.vector_store %arg21[%c0_25, %c0_26], %48 {strides = array<i32>} : memref<32x512xf32, #tpu.memory_space<vmem>>, vector<16x64xf32>,
    %c0_27 = arith.constant 0 : index
    %c64 = arith.constant 64 : index
    %50 = vector.load %arg20[%c0_27, %c64] : memref<32x1536xf32, #tpu.memory_space<vmem>>, vector<16x64xf32>
    %c0_28 = arith.constant 0 : index
    %c576 = arith.constant 576 : index
    %51 = vector.load %arg20[%c0_28, %c576] : memref<32x1536xf32, #tpu.memory_space<vmem>>, vector<16x64xf32>
    %c0_29 = arith.constant 0 : index
    %c1088 = arith.constant 1088 : index
    %52 = vector.load %arg20[%c0_29, %c1088] : memref<32x1536xf32, #tpu.memory_space<vmem>>, vector<16x64xf32>
    %53 = tpu.transpose %51, [1, 0] : vector<16x64xf32> -> vector<64x16xf32>
    %cst_30 = arith.constant dense<0.000000e+00> : vector<16x16xf32>
    %54 = tpu.matmul %50, %53, %cst_30 {dimension_numbers = #tpu.dot_dimension_numbers<[1], [0], [0], [1], [0, 0, 1, 1], [], []>} : vector<16x64xf32>, vector<64x16xf32>, vector<16x16xf32> -> vector<16x16xf32>
    %cst_31 = arith.constant 1.250000e-01 : f32
    %55 = vector.broadcast %cst_31 : f32 to vector<16x16xf32>
    %56 = arith.mulf %54, %55 : vector<16x16xf32>
    %cst_32 = arith.constant dense<0xFF800000> : vector<16xf32>
    %57 = vector.multi_reduction <maximumf>, %56, %cst_32 [1] : vector<16x16xf32> to vector<16xf32>
    %58 = vector.shape_cast %57 : vector<16xf32> to vector<16x1xf32>
    %59 = vector.broadcast %58 : vector<16x1xf32> to vector<16x16xf32>
    %60 = arith.subf %56, %59 : vector<16x16xf32>
    %61 = math.exp %60 : vector<16x16xf32>
    %cst_33 = arith.constant dense<0.000000e+00> : vector<16xf32>
    %62 = vector.multi_reduction <add>, %61, %cst_33 [1] : vector<16x16xf32> to vector<16xf32>
    %63 = vector.shape_cast %62 : vector<16xf32> to vector<16x1xf32>
    %64 = tpu.reciprocal %63 {approx = true} : vector<16x1xf32> -> vector<16x1xf32>
    %65 = vector.broadcast %64 : vector<16x1xf32> to vector<16x16xf32>
    %66 = arith.mulf %61, %65 : vector<16x16xf32>
    %cst_34 = arith.constant dense<0.000000e+00> : vector<16x64xf32>
    %67 = tpu.matmul %66, %52, %cst_34 {dimension_numbers = #tpu.dot_dimension_numbers<[1], [0], [0], [1], [0, 0, 1, 1], [], []>} : vector<16x16xf32>, vector<16x64xf32>, vector<16x64xf32> -> vector<16x64xf32>
    %c0_35 = arith.constant 0 : index
    %c64_36 = arith.constant 64 : index
    %68 = vector.load %arg21[%c0_35, %c64_36] : memref<32x512xf32, #tpu.memory_space<vmem>>, vector<16x64xf32>
    tpu.vector_store %arg21[%c0_35, %c64_36], %67 {strides = array<i32>} : memref<32x512xf32, #tpu.memory_space<vmem>>, vector<16x64xf32>,
    %c0_37 = arith.constant 0 : index
    %c128 = arith.constant 128 : index
    %69 = vector.load %arg20[%c0_37, %c128] : memref<32x1536xf32, #tpu.memory_space<vmem>>, vector<16x64xf32>
    %c0_38 = arith.constant 0 : index
    %c640 = arith.constant 640 : index
    %70 = vector.load %arg20[%c0_38, %c640] : memref<32x1536xf32, #tpu.memory_space<vmem>>, vector<16x64xf32>
    %c0_39 = arith.constant 0 : index
    %c1152 = arith.constant 1152 : index
    %71 = vector.load %arg20[%c0_39, %c1152] : memref<32x1536xf32, #tpu.memory_space<vmem>>, vector<16x64xf32>
    %72 = tpu.transpose %70, [1, 0] : vector<16x64xf32> -> vector<64x16xf32>
    %cst_40 = arith.constant dense<0.000000e+00> : vector<16x16xf32>
    %73 = tpu.matmul %69, %72, %cst_40 {dimension_numbers = #tpu.dot_dimension_numbers<[1], [0], [0], [1], [0, 0, 1, 1], [], []>} : vector<16x64xf32>, vector<64x16xf32>, vector<16x16xf32> -> vector<16x16xf32>
    %cst_41 = arith.constant 1.250000e-01 : f32
    %74 = vector.broadcast %cst_41 : f32 to vector<16x16xf32>
    %75 = arith.mulf %73, %74 : vector<16x16xf32>
    %cst_42 = arith.constant dense<0xFF800000> : vector<16xf32>
    %76 = vector.multi_reduction <maximumf>, %75, %cst_42 [1] : vector<16x16xf32> to vector<16xf32>
    %77 = vector.shape_cast %76 : vector<16xf32> to vector<16x1xf32>
    %78 = vector.broadcast %77 : vector<16x1xf32> to vector<16x16xf32>
    %79 = arith.subf %75, %78 : vector<16x16xf32>
    %80 = math.exp %79 : vector<16x16xf32>
    %cst_43 = arith.constant dense<0.000000e+00> : vector<16xf32>
    %81 = vector.multi_reduction <add>, %80, %cst_43 [1] : vector<16x16xf32> to vector<16xf32>
    %82 = vector.shape_cast %81 : vector<16xf32> to vector<16x1xf32>
    %83 = tpu.reciprocal %82 {approx = true} : vector<16x1xf32> -> vector<16x1xf32>
    %84 = vector.broadcast %83 : vector<16x1xf32> to vector<16x16xf32>
    %85 = arith.mulf %80, %84 : vector<16x16xf32>
    %cst_44 = arith.constant dense<0.000000e+00> : vector<16x64xf32>
    %86 = tpu.matmul %85, %71, %cst_44 {dimension_numbers = #tpu.dot_dimension_numbers<[1], [0], [0], [1], [0, 0, 1, 1], [], []>} : vector<16x16xf32>, vector<16x64xf32>, vector<16x64xf32> -> vector<16x64xf32>
    %c0_45 = arith.constant 0 : index
    %c128_46 = arith.constant 128 : index
    %87 = vector.load %arg21[%c0_45, %c128_46] : memref<32x512xf32, #tpu.memory_space<vmem>>, vector<16x64xf32>
    tpu.vector_store %arg21[%c0_45, %c128_46], %86 {strides = array<i32>} : memref<32x512xf32, #tpu.memory_space<vmem>>, vector<16x64xf32>,
    %c0_47 = arith.constant 0 : index
    %c192 = arith.constant 192 : index
    %88 = vector.load %arg20[%c0_47, %c192] : memref<32x1536xf32, #tpu.memory_space<vmem>>, vector<16x64xf32>
    %c0_48 = arith.constant 0 : index
    %c704 = arith.constant 704 : index
    %89 = vector.load %arg20[%c0_48, %c704] : memref<32x1536xf32, #tpu.memory_space<vmem>>, vector<16x64xf32>
    %c0_49 = arith.constant 0 : index
    %c1216 = arith.constant 1216 : index
    %90 = vector.load %arg20[%c0_49, %c1216] : memref<32x1536xf32, #tpu.memory_space<vmem>>, vector<16x64xf32>
    %91 = tpu.transpose %89, [1, 0] : vector<16x64xf32> -> vector<64x16xf32>
    %cst_50 = arith.constant dense<0.000000e+00> : vector<16x16xf32>
    %92 = tpu.matmul %88, %91, %cst_50 {dimension_numbers = #tpu.dot_dimension_numbers<[1], [0], [0], [1], [0, 0, 1, 1], [], []>} : vector<16x64xf32>, vector<64x16xf32>, vector<16x16xf32> -> vector<16x16xf32>
    %cst_51 = arith.constant 1.250000e-01 : f32
    %93 = vector.broadcast %cst_51 : f32 to vector<16x16xf32>
    %94 = arith.mulf %92, %93 : vector<16x16xf32>
    %cst_52 = arith.constant dense<0xFF800000> : vector<16xf32>
    %95 = vector.multi_reduction <maximumf>, %94, %cst_52 [1] : vector<16x16xf32> to vector<16xf32>
    %96 = vector.shape_cast %95 : vector<16xf32> to vector<16x1xf32>
    %97 = vector.broadcast %96 : vector<16x1xf32> to vector<16x16xf32>
    %98 = arith.subf %94, %97 : vector<16x16xf32>
    %99 = math.exp %98 : vector<16x16xf32>
    %cst_53 = arith.constant dense<0.000000e+00> : vector<16xf32>
    %100 = vector.multi_reduction <add>, %99, %cst_53 [1] : vector<16x16xf32> to vector<16xf32>
    %101 = vector.shape_cast %100 : vector<16xf32> to vector<16x1xf32>
    %102 = tpu.reciprocal %101 {approx = true} : vector<16x1xf32> -> vector<16x1xf32>
    %103 = vector.broadcast %102 : vector<16x1xf32> to vector<16x16xf32>
    %104 = arith.mulf %99, %103 : vector<16x16xf32>
    %cst_54 = arith.constant dense<0.000000e+00> : vector<16x64xf32>
    %105 = tpu.matmul %104, %90, %cst_54 {dimension_numbers = #tpu.dot_dimension_numbers<[1], [0], [0], [1], [0, 0, 1, 1], [], []>} : vector<16x16xf32>, vector<16x64xf32>, vector<16x64xf32> -> vector<16x64xf32>
    %c0_55 = arith.constant 0 : index
    %c192_56 = arith.constant 192 : index
    %106 = vector.load %arg21[%c0_55, %c192_56] : memref<32x512xf32, #tpu.memory_space<vmem>>, vector<16x64xf32>
    tpu.vector_store %arg21[%c0_55, %c192_56], %105 {strides = array<i32>} : memref<32x512xf32, #tpu.memory_space<vmem>>, vector<16x64xf32>,
    %c0_57 = arith.constant 0 : index
    %c256 = arith.constant 256 : index
    %107 = vector.load %arg20[%c0_57, %c256] : memref<32x1536xf32, #tpu.memory_space<vmem>>, vector<16x64xf32>
    %c0_58 = arith.constant 0 : index
    %c768 = arith.constant 768 : index
    %108 = vector.load %arg20[%c0_58, %c768] : memref<32x1536xf32, #tpu.memory_space<vmem>>, vector<16x64xf32>
    %c0_59 = arith.constant 0 : index
    %c1280 = arith.constant 1280 : index
    %109 = vector.load %arg20[%c0_59, %c1280] : memref<32x1536xf32, #tpu.memory_space<vmem>>, vector<16x64xf32>
    %110 = tpu.transpose %108, [1, 0] : vector<16x64xf32> -> vector<64x16xf32>
    %cst_60 = arith.constant dense<0.000000e+00> : vector<16x16xf32>
    %111 = tpu.matmul %107, %110, %cst_60 {dimension_numbers = #tpu.dot_dimension_numbers<[1], [0], [0], [1], [0, 0, 1, 1], [], []>} : vector<16x64xf32>, vector<64x16xf32>, vector<16x16xf32> -> vector<16x16xf32>
    %cst_61 = arith.constant 1.250000e-01 : f32
    %112 = vector.broadcast %cst_61 : f32 to vector<16x16xf32>
    %113 = arith.mulf %111, %112 : vector<16x16xf32>
    %cst_62 = arith.constant dense<0xFF800000> : vector<16xf32>
    %114 = vector.multi_reduction <maximumf>, %113, %cst_62 [1] : vector<16x16xf32> to vector<16xf32>
    %115 = vector.shape_cast %114 : vector<16xf32> to vector<16x1xf32>
    %116 = vector.broadcast %115 : vector<16x1xf32> to vector<16x16xf32>
    %117 = arith.subf %113, %116 : vector<16x16xf32>
    %118 = math.exp %117 : vector<16x16xf32>
    %cst_63 = arith.constant dense<0.000000e+00> : vector<16xf32>
    %119 = vector.multi_reduction <add>, %118, %cst_63 [1] : vector<16x16xf32> to vector<16xf32>
    %120 = vector.shape_cast %119 : vector<16xf32> to vector<16x1xf32>
    %121 = tpu.reciprocal %120 {approx = true} : vector<16x1xf32> -> vector<16x1xf32>
    %122 = vector.broadcast %121 : vector<16x1xf32> to vector<16x16xf32>
    %123 = arith.mulf %118, %122 : vector<16x16xf32>
    %cst_64 = arith.constant dense<0.000000e+00> : vector<16x64xf32>
    %124 = tpu.matmul %123, %109, %cst_64 {dimension_numbers = #tpu.dot_dimension_numbers<[1], [0], [0], [1], [0, 0, 1, 1], [], []>} : vector<16x16xf32>, vector<16x64xf32>, vector<16x64xf32> -> vector<16x64xf32>
    %c0_65 = arith.constant 0 : index
    %c256_66 = arith.constant 256 : index
    %125 = vector.load %arg21[%c0_65, %c256_66] : memref<32x512xf32, #tpu.memory_space<vmem>>, vector<16x64xf32>
    tpu.vector_store %arg21[%c0_65, %c256_66], %124 {strides = array<i32>} : memref<32x512xf32, #tpu.memory_space<vmem>>, vector<16x64xf32>,
    %c0_67 = arith.constant 0 : index
    %c320 = arith.constant 320 : index
    %126 = vector.load %arg20[%c0_67, %c320] : memref<32x1536xf32, #tpu.memory_space<vmem>>, vector<16x64xf32>
    %c0_68 = arith.constant 0 : index
    %c832 = arith.constant 832 : index
    %127 = vector.load %arg20[%c0_68, %c832] : memref<32x1536xf32, #tpu.memory_space<vmem>>, vector<16x64xf32>
    %c0_69 = arith.constant 0 : index
    %c1344 = arith.constant 1344 : index
    %128 = vector.load %arg20[%c0_69, %c1344] : memref<32x1536xf32, #tpu.memory_space<vmem>>, vector<16x64xf32>
    %129 = tpu.transpose %127, [1, 0] : vector<16x64xf32> -> vector<64x16xf32>
    %cst_70 = arith.constant dense<0.000000e+00> : vector<16x16xf32>
    %130 = tpu.matmul %126, %129, %cst_70 {dimension_numbers = #tpu.dot_dimension_numbers<[1], [0], [0], [1], [0, 0, 1, 1], [], []>} : vector<16x64xf32>, vector<64x16xf32>, vector<16x16xf32> -> vector<16x16xf32>
    %cst_71 = arith.constant 1.250000e-01 : f32
    %131 = vector.broadcast %cst_71 : f32 to vector<16x16xf32>
    %132 = arith.mulf %130, %131 : vector<16x16xf32>
    %cst_72 = arith.constant dense<0xFF800000> : vector<16xf32>
    %133 = vector.multi_reduction <maximumf>, %132, %cst_72 [1] : vector<16x16xf32> to vector<16xf32>
    %134 = vector.shape_cast %133 : vector<16xf32> to vector<16x1xf32>
    %135 = vector.broadcast %134 : vector<16x1xf32> to vector<16x16xf32>
    %136 = arith.subf %132, %135 : vector<16x16xf32>
    %137 = math.exp %136 : vector<16x16xf32>
    %cst_73 = arith.constant dense<0.000000e+00> : vector<16xf32>
    %138 = vector.multi_reduction <add>, %137, %cst_73 [1] : vector<16x16xf32> to vector<16xf32>
    %139 = vector.shape_cast %138 : vector<16xf32> to vector<16x1xf32>
    %140 = tpu.reciprocal %139 {approx = true} : vector<16x1xf32> -> vector<16x1xf32>
    %141 = vector.broadcast %140 : vector<16x1xf32> to vector<16x16xf32>
    %142 = arith.mulf %137, %141 : vector<16x16xf32>
    %cst_74 = arith.constant dense<0.000000e+00> : vector<16x64xf32>
    %143 = tpu.matmul %142, %128, %cst_74 {dimension_numbers = #tpu.dot_dimension_numbers<[1], [0], [0], [1], [0, 0, 1, 1], [], []>} : vector<16x16xf32>, vector<16x64xf32>, vector<16x64xf32> -> vector<16x64xf32>
    %c0_75 = arith.constant 0 : index
    %c320_76 = arith.constant 320 : index
    %144 = vector.load %arg21[%c0_75, %c320_76] : memref<32x512xf32, #tpu.memory_space<vmem>>, vector<16x64xf32>
    tpu.vector_store %arg21[%c0_75, %c320_76], %143 {strides = array<i32>} : memref<32x512xf32, #tpu.memory_space<vmem>>, vector<16x64xf32>,
    %c0_77 = arith.constant 0 : index
    %c384 = arith.constant 384 : index
    %145 = vector.load %arg20[%c0_77, %c384] : memref<32x1536xf32, #tpu.memory_space<vmem>>, vector<16x64xf32>
    %c0_78 = arith.constant 0 : index
    %c896 = arith.constant 896 : index
    %146 = vector.load %arg20[%c0_78, %c896] : memref<32x1536xf32, #tpu.memory_space<vmem>>, vector<16x64xf32>
    %c0_79 = arith.constant 0 : index
    %c1408 = arith.constant 1408 : index
    %147 = vector.load %arg20[%c0_79, %c1408] : memref<32x1536xf32, #tpu.memory_space<vmem>>, vector<16x64xf32>
    %148 = tpu.transpose %146, [1, 0] : vector<16x64xf32> -> vector<64x16xf32>
    %cst_80 = arith.constant dense<0.000000e+00> : vector<16x16xf32>
    %149 = tpu.matmul %145, %148, %cst_80 {dimension_numbers = #tpu.dot_dimension_numbers<[1], [0], [0], [1], [0, 0, 1, 1], [], []>} : vector<16x64xf32>, vector<64x16xf32>, vector<16x16xf32> -> vector<16x16xf32>
    %cst_81 = arith.constant 1.250000e-01 : f32
    %150 = vector.broadcast %cst_81 : f32 to vector<16x16xf32>
    %151 = arith.mulf %149, %150 : vector<16x16xf32>
    %cst_82 = arith.constant dense<0xFF800000> : vector<16xf32>
    %152 = vector.multi_reduction <maximumf>, %151, %cst_82 [1] : vector<16x16xf32> to vector<16xf32>
    %153 = vector.shape_cast %152 : vector<16xf32> to vector<16x1xf32>
    %154 = vector.broadcast %153 : vector<16x1xf32> to vector<16x16xf32>
    %155 = arith.subf %151, %154 : vector<16x16xf32>
    %156 = math.exp %155 : vector<16x16xf32>
    %cst_83 = arith.constant dense<0.000000e+00> : vector<16xf32>
    %157 = vector.multi_reduction <add>, %156, %cst_83 [1] : vector<16x16xf32> to vector<16xf32>
    %158 = vector.shape_cast %157 : vector<16xf32> to vector<16x1xf32>
    %159 = tpu.reciprocal %158 {approx = true} : vector<16x1xf32> -> vector<16x1xf32>
    %160 = vector.broadcast %159 : vector<16x1xf32> to vector<16x16xf32>
    %161 = arith.mulf %156, %160 : vector<16x16xf32>
    %cst_84 = arith.constant dense<0.000000e+00> : vector<16x64xf32>
    %162 = tpu.matmul %161, %147, %cst_84 {dimension_numbers = #tpu.dot_dimension_numbers<[1], [0], [0], [1], [0, 0, 1, 1], [], []>} : vector<16x16xf32>, vector<16x64xf32>, vector<16x64xf32> -> vector<16x64xf32>
    %c0_85 = arith.constant 0 : index
    %c384_86 = arith.constant 384 : index
    %163 = vector.load %arg21[%c0_85, %c384_86] : memref<32x512xf32, #tpu.memory_space<vmem>>, vector<16x64xf32>
    tpu.vector_store %arg21[%c0_85, %c384_86], %162 {strides = array<i32>} : memref<32x512xf32, #tpu.memory_space<vmem>>, vector<16x64xf32>,
    %c0_87 = arith.constant 0 : index
    %c448 = arith.constant 448 : index
    %164 = vector.load %arg20[%c0_87, %c448] : memref<32x1536xf32, #tpu.memory_space<vmem>>, vector<16x64xf32>
    %c0_88 = arith.constant 0 : index
    %c960 = arith.constant 960 : index
    %165 = vector.load %arg20[%c0_88, %c960] : memref<32x1536xf32, #tpu.memory_space<vmem>>, vector<16x64xf32>
    %c0_89 = arith.constant 0 : index
    %c1472 = arith.constant 1472 : index
    %166 = vector.load %arg20[%c0_89, %c1472] : memref<32x1536xf32, #tpu.memory_space<vmem>>, vector<16x64xf32>
    %167 = tpu.transpose %165, [1, 0] : vector<16x64xf32> -> vector<64x16xf32>
    %cst_90 = arith.constant dense<0.000000e+00> : vector<16x16xf32>
    %168 = tpu.matmul %164, %167, %cst_90 {dimension_numbers = #tpu.dot_dimension_numbers<[1], [0], [0], [1], [0, 0, 1, 1], [], []>} : vector<16x64xf32>, vector<64x16xf32>, vector<16x16xf32> -> vector<16x16xf32>
    %cst_91 = arith.constant 1.250000e-01 : f32
    %169 = vector.broadcast %cst_91 : f32 to vector<16x16xf32>
    %170 = arith.mulf %168, %169 : vector<16x16xf32>
    %cst_92 = arith.constant dense<0xFF800000> : vector<16xf32>
    %171 = vector.multi_reduction <maximumf>, %170, %cst_92 [1] : vector<16x16xf32> to vector<16xf32>
    %172 = vector.shape_cast %171 : vector<16xf32> to vector<16x1xf32>
    %173 = vector.broadcast %172 : vector<16x1xf32> to vector<16x16xf32>
    %174 = arith.subf %170, %173 : vector<16x16xf32>
    %175 = math.exp %174 : vector<16x16xf32>
    %cst_93 = arith.constant dense<0.000000e+00> : vector<16xf32>
    %176 = vector.multi_reduction <add>, %175, %cst_93 [1] : vector<16x16xf32> to vector<16xf32>
    %177 = vector.shape_cast %176 : vector<16xf32> to vector<16x1xf32>
    %178 = tpu.reciprocal %177 {approx = true} : vector<16x1xf32> -> vector<16x1xf32>
    %179 = vector.broadcast %178 : vector<16x1xf32> to vector<16x16xf32>
    %180 = arith.mulf %175, %179 : vector<16x16xf32>
    %cst_94 = arith.constant dense<0.000000e+00> : vector<16x64xf32>
    %181 = tpu.matmul %180, %166, %cst_94 {dimension_numbers = #tpu.dot_dimension_numbers<[1], [0], [0], [1], [0, 0, 1, 1], [], []>} : vector<16x16xf32>, vector<16x64xf32>, vector<16x64xf32> -> vector<16x64xf32>
    %c0_95 = arith.constant 0 : index
    %c448_96 = arith.constant 448 : index
    %182 = vector.load %arg21[%c0_95, %c448_96] : memref<32x512xf32, #tpu.memory_space<vmem>>, vector<16x64xf32>
    tpu.vector_store %arg21[%c0_95, %c448_96], %181 {strides = array<i32>} : memref<32x512xf32, #tpu.memory_space<vmem>>, vector<16x64xf32>,
    %c16 = arith.constant 16 : index
    %c0_97 = arith.constant 0 : index
    %183 = vector.load %arg20[%c16, %c0_97] : memref<32x1536xf32, #tpu.memory_space<vmem>>, vector<16x64xf32>
    %c16_98 = arith.constant 16 : index
    %c512_99 = arith.constant 512 : index
    %184 = vector.load %arg20[%c16_98, %c512_99] : memref<32x1536xf32, #tpu.memory_space<vmem>>, vector<16x64xf32>
    %c16_100 = arith.constant 16 : index
    %c1024_101 = arith.constant 1024 : index
    %185 = vector.load %arg20[%c16_100, %c1024_101] : memref<32x1536xf32, #tpu.memory_space<vmem>>, vector<16x64xf32>
    %186 = tpu.transpose %184, [1, 0] : vector<16x64xf32> -> vector<64x16xf32>
    %cst_102 = arith.constant dense<0.000000e+00> : vector<16x16xf32>
    %187 = tpu.matmul %183, %186, %cst_102 {dimension_numbers = #tpu.dot_dimension_numbers<[1], [0], [0], [1], [0, 0, 1, 1], [], []>} : vector<16x64xf32>, vector<64x16xf32>, vector<16x16xf32> -> vector<16x16xf32>
    %cst_103 = arith.constant 1.250000e-01 : f32
    %188 = vector.broadcast %cst_103 : f32 to vector<16x16xf32>
    %189 = arith.mulf %187, %188 : vector<16x16xf32>
    %cst_104 = arith.constant dense<0xFF800000> : vector<16xf32>
    %190 = vector.multi_reduction <maximumf>, %189, %cst_104 [1] : vector<16x16xf32> to vector<16xf32>
    %191 = vector.shape_cast %190 : vector<16xf32> to vector<16x1xf32>
    %192 = vector.broadcast %191 : vector<16x1xf32> to vector<16x16xf32>
    %193 = arith.subf %189, %192 : vector<16x16xf32>
    %194 = math.exp %193 : vector<16x16xf32>
    %cst_105 = arith.constant dense<0.000000e+00> : vector<16xf32>
    %195 = vector.multi_reduction <add>, %194, %cst_105 [1] : vector<16x16xf32> to vector<16xf32>
    %196 = vector.shape_cast %195 : vector<16xf32> to vector<16x1xf32>
    %197 = tpu.reciprocal %196 {approx = true} : vector<16x1xf32> -> vector<16x1xf32>
    %198 = vector.broadcast %197 : vector<16x1xf32> to vector<16x16xf32>
    %199 = arith.mulf %194, %198 : vector<16x16xf32>
    %cst_106 = arith.constant dense<0.000000e+00> : vector<16x64xf32>
    %200 = tpu.matmul %199, %185, %cst_106 {dimension_numbers = #tpu.dot_dimension_numbers<[1], [0], [0], [1], [0, 0, 1, 1], [], []>} : vector<16x16xf32>, vector<16x64xf32>, vector<16x64xf32> -> vector<16x64xf32>
    %c16_107 = arith.constant 16 : index
    %c0_108 = arith.constant 0 : index
    %201 = vector.load %arg21[%c16_107, %c0_108] : memref<32x512xf32, #tpu.memory_space<vmem>>, vector<16x64xf32>
    tpu.vector_store %arg21[%c16_107, %c0_108], %200 {strides = array<i32>} : memref<32x512xf32, #tpu.memory_space<vmem>>, vector<16x64xf32>,
    %c16_109 = arith.constant 16 : index
    %c64_110 = arith.constant 64 : index
    %202 = vector.load %arg20[%c16_109, %c64_110] : memref<32x1536xf32, #tpu.memory_space<vmem>>, vector<16x64xf32>
    %c16_111 = arith.constant 16 : index
    %c576_112 = arith.constant 576 : index
    %203 = vector.load %arg20[%c16_111, %c576_112] : memref<32x1536xf32, #tpu.memory_space<vmem>>, vector<16x64xf32>
    %c16_113 = arith.constant 16 : index
    %c1088_114 = arith.constant 1088 : index
    %204 = vector.load %arg20[%c16_113, %c1088_114] : memref<32x1536xf32, #tpu.memory_space<vmem>>, vector<16x64xf32>
    %205 = tpu.transpose %203, [1, 0] : vector<16x64xf32> -> vector<64x16xf32>
    %cst_115 = arith.constant dense<0.000000e+00> : vector<16x16xf32>
    %206 = tpu.matmul %202, %205, %cst_115 {dimension_numbers = #tpu.dot_dimension_numbers<[1], [0], [0], [1], [0, 0, 1, 1], [], []>} : vector<16x64xf32>, vector<64x16xf32>, vector<16x16xf32> -> vector<16x16xf32>
    %cst_116 = arith.constant 1.250000e-01 : f32
    %207 = vector.broadcast %cst_116 : f32 to vector<16x16xf32>
    %208 = arith.mulf %206, %207 : vector<16x16xf32>
    %cst_117 = arith.constant dense<0xFF800000> : vector<16xf32>
    %209 = vector.multi_reduction <maximumf>, %208, %cst_117 [1] : vector<16x16xf32> to vector<16xf32>
    %210 = vector.shape_cast %209 : vector<16xf32> to vector<16x1xf32>
    %211 = vector.broadcast %210 : vector<16x1xf32> to vector<16x16xf32>
    %212 = arith.subf %208, %211 : vector<16x16xf32>
    %213 = math.exp %212 : vector<16x16xf32>
    %cst_118 = arith.constant dense<0.000000e+00> : vector<16xf32>
    %214 = vector.multi_reduction <add>, %213, %cst_118 [1] : vector<16x16xf32> to vector<16xf32>
    %215 = vector.shape_cast %214 : vector<16xf32> to vector<16x1xf32>
    %216 = tpu.reciprocal %215 {approx = true} : vector<16x1xf32> -> vector<16x1xf32>
    %217 = vector.broadcast %216 : vector<16x1xf32> to vector<16x16xf32>
    %218 = arith.mulf %213, %217 : vector<16x16xf32>
    %cst_119 = arith.constant dense<0.000000e+00> : vector<16x64xf32>
    %219 = tpu.matmul %218, %204, %cst_119 {dimension_numbers = #tpu.dot_dimension_numbers<[1], [0], [0], [1], [0, 0, 1, 1], [], []>} : vector<16x16xf32>, vector<16x64xf32>, vector<16x64xf32> -> vector<16x64xf32>
    %c16_120 = arith.constant 16 : index
    %c64_121 = arith.constant 64 : index
    %220 = vector.load %arg21[%c16_120, %c64_121] : memref<32x512xf32, #tpu.memory_space<vmem>>, vector<16x64xf32>
    tpu.vector_store %arg21[%c16_120, %c64_121], %219 {strides = array<i32>} : memref<32x512xf32, #tpu.memory_space<vmem>>, vector<16x64xf32>,
    %c16_122 = arith.constant 16 : index
    %c128_123 = arith.constant 128 : index
    %221 = vector.load %arg20[%c16_122, %c128_123] : memref<32x1536xf32, #tpu.memory_space<vmem>>, vector<16x64xf32>
    %c16_124 = arith.constant 16 : index
    %c640_125 = arith.constant 640 : index
    %222 = vector.load %arg20[%c16_124, %c640_125] : memref<32x1536xf32, #tpu.memory_space<vmem>>, vector<16x64xf32>
    %c16_126 = arith.constant 16 : index
    %c1152_127 = arith.constant 1152 : index
    %223 = vector.load %arg20[%c16_126, %c1152_127] : memref<32x1536xf32, #tpu.memory_space<vmem>>, vector<16x64xf32>
    %224 = tpu.transpose %222, [1, 0] : vector<16x64xf32> -> vector<64x16xf32>
    %cst_128 = arith.constant dense<0.000000e+00> : vector<16x16xf32>
    %225 = tpu.matmul %221, %224, %cst_128 {dimension_numbers = #tpu.dot_dimension_numbers<[1], [0], [0], [1], [0, 0, 1, 1], [], []>} : vector<16x64xf32>, vector<64x16xf32>, vector<16x16xf32> -> vector<16x16xf32>
    %cst_129 = arith.constant 1.250000e-01 : f32
    %226 = vector.broadcast %cst_129 : f32 to vector<16x16xf32>
    %227 = arith.mulf %225, %226 : vector<16x16xf32>
    %cst_130 = arith.constant dense<0xFF800000> : vector<16xf32>
    %228 = vector.multi_reduction <maximumf>, %227, %cst_130 [1] : vector<16x16xf32> to vector<16xf32>
    %229 = vector.shape_cast %228 : vector<16xf32> to vector<16x1xf32>
    %230 = vector.broadcast %229 : vector<16x1xf32> to vector<16x16xf32>
    %231 = arith.subf %227, %230 : vector<16x16xf32>
    %232 = math.exp %231 : vector<16x16xf32>
    %cst_131 = arith.constant dense<0.000000e+00> : vector<16xf32>
    %233 = vector.multi_reduction <add>, %232, %cst_131 [1] : vector<16x16xf32> to vector<16xf32>
    %234 = vector.shape_cast %233 : vector<16xf32> to vector<16x1xf32>
    %235 = tpu.reciprocal %234 {approx = true} : vector<16x1xf32> -> vector<16x1xf32>
    %236 = vector.broadcast %235 : vector<16x1xf32> to vector<16x16xf32>
    %237 = arith.mulf %232, %236 : vector<16x16xf32>
    %cst_132 = arith.constant dense<0.000000e+00> : vector<16x64xf32>
    %238 = tpu.matmul %237, %223, %cst_132 {dimension_numbers = #tpu.dot_dimension_numbers<[1], [0], [0], [1], [0, 0, 1, 1], [], []>} : vector<16x16xf32>, vector<16x64xf32>, vector<16x64xf32> -> vector<16x64xf32>
    %c16_133 = arith.constant 16 : index
    %c128_134 = arith.constant 128 : index
    %239 = vector.load %arg21[%c16_133, %c128_134] : memref<32x512xf32, #tpu.memory_space<vmem>>, vector<16x64xf32>
    tpu.vector_store %arg21[%c16_133, %c128_134], %238 {strides = array<i32>} : memref<32x512xf32, #tpu.memory_space<vmem>>, vector<16x64xf32>,
    %c16_135 = arith.constant 16 : index
    %c192_136 = arith.constant 192 : index
    %240 = vector.load %arg20[%c16_135, %c192_136] : memref<32x1536xf32, #tpu.memory_space<vmem>>, vector<16x64xf32>
    %c16_137 = arith.constant 16 : index
    %c704_138 = arith.constant 704 : index
    %241 = vector.load %arg20[%c16_137, %c704_138] : memref<32x1536xf32, #tpu.memory_space<vmem>>, vector<16x64xf32>
    %c16_139 = arith.constant 16 : index
    %c1216_140 = arith.constant 1216 : index
    %242 = vector.load %arg20[%c16_139, %c1216_140] : memref<32x1536xf32, #tpu.memory_space<vmem>>, vector<16x64xf32>
    %243 = tpu.transpose %241, [1, 0] : vector<16x64xf32> -> vector<64x16xf32>
    %cst_141 = arith.constant dense<0.000000e+00> : vector<16x16xf32>
    %244 = tpu.matmul %240, %243, %cst_141 {dimension_numbers = #tpu.dot_dimension_numbers<[1], [0], [0], [1], [0, 0, 1, 1], [], []>} : vector<16x64xf32>, vector<64x16xf32>, vector<16x16xf32> -> vector<16x16xf32>
    %cst_142 = arith.constant 1.250000e-01 : f32
    %245 = vector.broadcast %cst_142 : f32 to vector<16x16xf32>
    %246 = arith.mulf %244, %245 : vector<16x16xf32>
    %cst_143 = arith.constant dense<0xFF800000> : vector<16xf32>
    %247 = vector.multi_reduction <maximumf>, %246, %cst_143 [1] : vector<16x16xf32> to vector<16xf32>
    %248 = vector.shape_cast %247 : vector<16xf32> to vector<16x1xf32>
    %249 = vector.broadcast %248 : vector<16x1xf32> to vector<16x16xf32>
    %250 = arith.subf %246, %249 : vector<16x16xf32>
    %251 = math.exp %250 : vector<16x16xf32>
    %cst_144 = arith.constant dense<0.000000e+00> : vector<16xf32>
    %252 = vector.multi_reduction <add>, %251, %cst_144 [1] : vector<16x16xf32> to vector<16xf32>
    %253 = vector.shape_cast %252 : vector<16xf32> to vector<16x1xf32>
    %254 = tpu.reciprocal %253 {approx = true} : vector<16x1xf32> -> vector<16x1xf32>
    %255 = vector.broadcast %254 : vector<16x1xf32> to vector<16x16xf32>
    %256 = arith.mulf %251, %255 : vector<16x16xf32>
    %cst_145 = arith.constant dense<0.000000e+00> : vector<16x64xf32>
    %257 = tpu.matmul %256, %242, %cst_145 {dimension_numbers = #tpu.dot_dimension_numbers<[1], [0], [0], [1], [0, 0, 1, 1], [], []>} : vector<16x16xf32>, vector<16x64xf32>, vector<16x64xf32> -> vector<16x64xf32>
    %c16_146 = arith.constant 16 : index
    %c192_147 = arith.constant 192 : index
    %258 = vector.load %arg21[%c16_146, %c192_147] : memref<32x512xf32, #tpu.memory_space<vmem>>, vector<16x64xf32>
    tpu.vector_store %arg21[%c16_146, %c192_147], %257 {strides = array<i32>} : memref<32x512xf32, #tpu.memory_space<vmem>>, vector<16x64xf32>,
    %c16_148 = arith.constant 16 : index
    %c256_149 = arith.constant 256 : index
    %259 = vector.load %arg20[%c16_148, %c256_149] : memref<32x1536xf32, #tpu.memory_space<vmem>>, vector<16x64xf32>
    %c16_150 = arith.constant 16 : index
    %c768_151 = arith.constant 768 : index
    %260 = vector.load %arg20[%c16_150, %c768_151] : memref<32x1536xf32, #tpu.memory_space<vmem>>, vector<16x64xf32>
    %c16_152 = arith.constant 16 : index
    %c1280_153 = arith.constant 1280 : index
    %261 = vector.load %arg20[%c16_152, %c1280_153] : memref<32x1536xf32, #tpu.memory_space<vmem>>, vector<16x64xf32>
    %262 = tpu.transpose %260, [1, 0] : vector<16x64xf32> -> vector<64x16xf32>
    %cst_154 = arith.constant dense<0.000000e+00> : vector<16x16xf32>
    %263 = tpu.matmul %259, %262, %cst_154 {dimension_numbers = #tpu.dot_dimension_numbers<[1], [0], [0], [1], [0, 0, 1, 1], [], []>} : vector<16x64xf32>, vector<64x16xf32>, vector<16x16xf32> -> vector<16x16xf32>
    %cst_155 = arith.constant 1.250000e-01 : f32
    %264 = vector.broadcast %cst_155 : f32 to vector<16x16xf32>
    %265 = arith.mulf %263, %264 : vector<16x16xf32>
    %cst_156 = arith.constant dense<0xFF800000> : vector<16xf32>
    %266 = vector.multi_reduction <maximumf>, %265, %cst_156 [1] : vector<16x16xf32> to vector<16xf32>
    %267 = vector.shape_cast %266 : vector<16xf32> to vector<16x1xf32>
    %268 = vector.broadcast %267 : vector<16x1xf32> to vector<16x16xf32>
    %269 = arith.subf %265, %268 : vector<16x16xf32>
    %270 = math.exp %269 : vector<16x16xf32>
    %cst_157 = arith.constant dense<0.000000e+00> : vector<16xf32>
    %271 = vector.multi_reduction <add>, %270, %cst_157 [1] : vector<16x16xf32> to vector<16xf32>
    %272 = vector.shape_cast %271 : vector<16xf32> to vector<16x1xf32>
    %273 = tpu.reciprocal %272 {approx = true} : vector<16x1xf32> -> vector<16x1xf32>
    %274 = vector.broadcast %273 : vector<16x1xf32> to vector<16x16xf32>
    %275 = arith.mulf %270, %274 : vector<16x16xf32>
    %cst_158 = arith.constant dense<0.000000e+00> : vector<16x64xf32>
    %276 = tpu.matmul %275, %261, %cst_158 {dimension_numbers = #tpu.dot_dimension_numbers<[1], [0], [0], [1], [0, 0, 1, 1], [], []>} : vector<16x16xf32>, vector<16x64xf32>, vector<16x64xf32> -> vector<16x64xf32>
    %c16_159 = arith.constant 16 : index
    %c256_160 = arith.constant 256 : index
    %277 = vector.load %arg21[%c16_159, %c256_160] : memref<32x512xf32, #tpu.memory_space<vmem>>, vector<16x64xf32>
    tpu.vector_store %arg21[%c16_159, %c256_160], %276 {strides = array<i32>} : memref<32x512xf32, #tpu.memory_space<vmem>>, vector<16x64xf32>,
    %c16_161 = arith.constant 16 : index
    %c320_162 = arith.constant 320 : index
    %278 = vector.load %arg20[%c16_161, %c320_162] : memref<32x1536xf32, #tpu.memory_space<vmem>>, vector<16x64xf32>
    %c16_163 = arith.constant 16 : index
    %c832_164 = arith.constant 832 : index
    %279 = vector.load %arg20[%c16_163, %c832_164] : memref<32x1536xf32, #tpu.memory_space<vmem>>, vector<16x64xf32>
    %c16_165 = arith.constant 16 : index
    %c1344_166 = arith.constant 1344 : index
    %280 = vector.load %arg20[%c16_165, %c1344_166] : memref<32x1536xf32, #tpu.memory_space<vmem>>, vector<16x64xf32>
    %281 = tpu.transpose %279, [1, 0] : vector<16x64xf32> -> vector<64x16xf32>
    %cst_167 = arith.constant dense<0.000000e+00> : vector<16x16xf32>
    %282 = tpu.matmul %278, %281, %cst_167 {dimension_numbers = #tpu.dot_dimension_numbers<[1], [0], [0], [1], [0, 0, 1, 1], [], []>} : vector<16x64xf32>, vector<64x16xf32>, vector<16x16xf32> -> vector<16x16xf32>
    %cst_168 = arith.constant 1.250000e-01 : f32
    %283 = vector.broadcast %cst_168 : f32 to vector<16x16xf32>
    %284 = arith.mulf %282, %283 : vector<16x16xf32>
    %cst_169 = arith.constant dense<0xFF800000> : vector<16xf32>
    %285 = vector.multi_reduction <maximumf>, %284, %cst_169 [1] : vector<16x16xf32> to vector<16xf32>
    %286 = vector.shape_cast %285 : vector<16xf32> to vector<16x1xf32>
    %287 = vector.broadcast %286 : vector<16x1xf32> to vector<16x16xf32>
    %288 = arith.subf %284, %287 : vector<16x16xf32>
    %289 = math.exp %288 : vector<16x16xf32>
    %cst_170 = arith.constant dense<0.000000e+00> : vector<16xf32>
    %290 = vector.multi_reduction <add>, %289, %cst_170 [1] : vector<16x16xf32> to vector<16xf32>
    %291 = vector.shape_cast %290 : vector<16xf32> to vector<16x1xf32>
    %292 = tpu.reciprocal %291 {approx = true} : vector<16x1xf32> -> vector<16x1xf32>
    %293 = vector.broadcast %292 : vector<16x1xf32> to vector<16x16xf32>
    %294 = arith.mulf %289, %293 : vector<16x16xf32>
    %cst_171 = arith.constant dense<0.000000e+00> : vector<16x64xf32>
    %295 = tpu.matmul %294, %280, %cst_171 {dimension_numbers = #tpu.dot_dimension_numbers<[1], [0], [0], [1], [0, 0, 1, 1], [], []>} : vector<16x16xf32>, vector<16x64xf32>, vector<16x64xf32> -> vector<16x64xf32>
    %c16_172 = arith.constant 16 : index
    %c320_173 = arith.constant 320 : index
    %296 = vector.load %arg21[%c16_172, %c320_173] : memref<32x512xf32, #tpu.memory_space<vmem>>, vector<16x64xf32>
    tpu.vector_store %arg21[%c16_172, %c320_173], %295 {strides = array<i32>} : memref<32x512xf32, #tpu.memory_space<vmem>>, vector<16x64xf32>,
    %c16_174 = arith.constant 16 : index
    %c384_175 = arith.constant 384 : index
    %297 = vector.load %arg20[%c16_174, %c384_175] : memref<32x1536xf32, #tpu.memory_space<vmem>>, vector<16x64xf32>
    %c16_176 = arith.constant 16 : index
    %c896_177 = arith.constant 896 : index
    %298 = vector.load %arg20[%c16_176, %c896_177] : memref<32x1536xf32, #tpu.memory_space<vmem>>, vector<16x64xf32>
    %c16_178 = arith.constant 16 : index
    %c1408_179 = arith.constant 1408 : index
    %299 = vector.load %arg20[%c16_178, %c1408_179] : memref<32x1536xf32, #tpu.memory_space<vmem>>, vector<16x64xf32>
    %300 = tpu.transpose %298, [1, 0] : vector<16x64xf32> -> vector<64x16xf32>
    %cst_180 = arith.constant dense<0.000000e+00> : vector<16x16xf32>
    %301 = tpu.matmul %297, %300, %cst_180 {dimension_numbers = #tpu.dot_dimension_numbers<[1], [0], [0], [1], [0, 0, 1, 1], [], []>} : vector<16x64xf32>, vector<64x16xf32>, vector<16x16xf32> -> vector<16x16xf32>
    %cst_181 = arith.constant 1.250000e-01 : f32
    %302 = vector.broadcast %cst_181 : f32 to vector<16x16xf32>
    %303 = arith.mulf %301, %302 : vector<16x16xf32>
    %cst_182 = arith.constant dense<0xFF800000> : vector<16xf32>
    %304 = vector.multi_reduction <maximumf>, %303, %cst_182 [1] : vector<16x16xf32> to vector<16xf32>
    %305 = vector.shape_cast %304 : vector<16xf32> to vector<16x1xf32>
    %306 = vector.broadcast %305 : vector<16x1xf32> to vector<16x16xf32>
    %307 = arith.subf %303, %306 : vector<16x16xf32>
    %308 = math.exp %307 : vector<16x16xf32>
    %cst_183 = arith.constant dense<0.000000e+00> : vector<16xf32>
    %309 = vector.multi_reduction <add>, %308, %cst_183 [1] : vector<16x16xf32> to vector<16xf32>
    %310 = vector.shape_cast %309 : vector<16xf32> to vector<16x1xf32>
    %311 = tpu.reciprocal %310 {approx = true} : vector<16x1xf32> -> vector<16x1xf32>
    %312 = vector.broadcast %311 : vector<16x1xf32> to vector<16x16xf32>
    %313 = arith.mulf %308, %312 : vector<16x16xf32>
    %cst_184 = arith.constant dense<0.000000e+00> : vector<16x64xf32>
    %314 = tpu.matmul %313, %299, %cst_184 {dimension_numbers = #tpu.dot_dimension_numbers<[1], [0], [0], [1], [0, 0, 1, 1], [], []>} : vector<16x16xf32>, vector<16x64xf32>, vector<16x64xf32> -> vector<16x64xf32>
    %c16_185 = arith.constant 16 : index
    %c384_186 = arith.constant 384 : index
    %315 = vector.load %arg21[%c16_185, %c384_186] : memref<32x512xf32, #tpu.memory_space<vmem>>, vector<16x64xf32>
    tpu.vector_store %arg21[%c16_185, %c384_186], %314 {strides = array<i32>} : memref<32x512xf32, #tpu.memory_space<vmem>>, vector<16x64xf32>,
    %c16_187 = arith.constant 16 : index
    %c448_188 = arith.constant 448 : index
    %316 = vector.load %arg20[%c16_187, %c448_188] : memref<32x1536xf32, #tpu.memory_space<vmem>>, vector<16x64xf32>
    %c16_189 = arith.constant 16 : index
    %c960_190 = arith.constant 960 : index
    %317 = vector.load %arg20[%c16_189, %c960_190] : memref<32x1536xf32, #tpu.memory_space<vmem>>, vector<16x64xf32>
    %c16_191 = arith.constant 16 : index
    %c1472_192 = arith.constant 1472 : index
    %318 = vector.load %arg20[%c16_191, %c1472_192] : memref<32x1536xf32, #tpu.memory_space<vmem>>, vector<16x64xf32>
    %319 = tpu.transpose %317, [1, 0] : vector<16x64xf32> -> vector<64x16xf32>
    %cst_193 = arith.constant dense<0.000000e+00> : vector<16x16xf32>
    %320 = tpu.matmul %316, %319, %cst_193 {dimension_numbers = #tpu.dot_dimension_numbers<[1], [0], [0], [1], [0, 0, 1, 1], [], []>} : vector<16x64xf32>, vector<64x16xf32>, vector<16x16xf32> -> vector<16x16xf32>
    %cst_194 = arith.constant 1.250000e-01 : f32
    %321 = vector.broadcast %cst_194 : f32 to vector<16x16xf32>
    %322 = arith.mulf %320, %321 : vector<16x16xf32>
    %cst_195 = arith.constant dense<0xFF800000> : vector<16xf32>
    %323 = vector.multi_reduction <maximumf>, %322, %cst_195 [1] : vector<16x16xf32> to vector<16xf32>
    %324 = vector.shape_cast %323 : vector<16xf32> to vector<16x1xf32>
    %325 = vector.broadcast %324 : vector<16x1xf32> to vector<16x16xf32>
    %326 = arith.subf %322, %325 : vector<16x16xf32>
    %327 = math.exp %326 : vector<16x16xf32>
    %cst_196 = arith.constant dense<0.000000e+00> : vector<16xf32>
    %328 = vector.multi_reduction <add>, %327, %cst_196 [1] : vector<16x16xf32> to vector<16xf32>
    %329 = vector.shape_cast %328 : vector<16xf32> to vector<16x1xf32>
    %330 = tpu.reciprocal %329 {approx = true} : vector<16x1xf32> -> vector<16x1xf32>
    %331 = vector.broadcast %330 : vector<16x1xf32> to vector<16x16xf32>
    %332 = arith.mulf %327, %331 : vector<16x16xf32>
    %cst_197 = arith.constant dense<0.000000e+00> : vector<16x64xf32>
    %333 = tpu.matmul %332, %318, %cst_197 {dimension_numbers = #tpu.dot_dimension_numbers<[1], [0], [0], [1], [0, 0, 1, 1], [], []>} : vector<16x16xf32>, vector<16x64xf32>, vector<16x64xf32> -> vector<16x64xf32>
    %c16_198 = arith.constant 16 : index
    %c448_199 = arith.constant 448 : index
    %334 = vector.load %arg21[%c16_198, %c448_199] : memref<32x512xf32, #tpu.memory_space<vmem>>, vector<16x64xf32>
    tpu.vector_store %arg21[%c16_198, %c448_199], %333 {strides = array<i32>} : memref<32x512xf32, #tpu.memory_space<vmem>>, vector<16x64xf32>,
    %c0_200 = arith.constant 0 : index
    %c0_201 = arith.constant 0 : index
    %335 = vector.load %arg21[%c0_200, %c0_201] : memref<32x512xf32, #tpu.memory_space<vmem>>, vector<32x512xf32>
    %c0_202 = arith.constant 0 : index
    %c0_203 = arith.constant 0 : index
    %336 = vector.load %arg7[%c0_202, %c0_203] : memref<512x64xf32, #tpu.memory_space<vmem>>, vector<512x64xf32>
    %cst_204 = arith.constant dense<0.000000e+00> : vector<32x64xf32>
    %337 = tpu.matmul %335, %336, %cst_204 {dimension_numbers = #tpu.dot_dimension_numbers<[1], [0], [0], [1], [0, 0, 1, 1], [], []>} : vector<32x512xf32>, vector<512x64xf32>, vector<32x64xf32> -> vector<32x64xf32>
    %c0_205 = arith.constant 0 : index
    %c0_206 = arith.constant 0 : index
    %338 = vector.load %arg8[%c0_205, %c0_206] : memref<1x64xf32, #tpu.memory_space<vmem>>, vector<1x64xf32>
    %339 = vector.broadcast %338 : vector<1x64xf32> to vector<32x64xf32>
    %340 = arith.addf %337, %339 : vector<32x64xf32>
    %341 = arith.addf %0, %340 : vector<32x64xf32>
    %c0_207 = arith.constant 0 : index
    %c0_208 = arith.constant 0 : index
    %342 = vector.load %arg9[%c0_207, %c0_208] : memref<1x64xf32, #tpu.memory_space<vmem>>, vector<1x64xf32>
    %c0_209 = arith.constant 0 : index
    %c0_210 = arith.constant 0 : index
    %343 = vector.load %arg10[%c0_209, %c0_210] : memref<1x64xf32, #tpu.memory_space<vmem>>, vector<1x64xf32>
    %cst_211 = arith.constant dense<0.000000e+00> : vector<32xf32>
    %344 = vector.multi_reduction <add>, %341, %cst_211 [1] : vector<32x64xf32> to vector<32xf32>
    %345 = vector.shape_cast %344 : vector<32xf32> to vector<32x1xf32>
    %cst_212 = arith.constant 6.400000e+01 : f32
    %346 = vector.broadcast %cst_212 : f32 to vector<32x1xf32>
    %347 = arith.divf %345, %346 : vector<32x1xf32>
    %348 = vector.broadcast %347 : vector<32x1xf32> to vector<32x64xf32>
    %349 = arith.subf %341, %348 : vector<32x64xf32>
    %350 = arith.mulf %349, %349 : vector<32x64xf32>
    %cst_213 = arith.constant dense<0.000000e+00> : vector<32xf32>
    %351 = vector.multi_reduction <add>, %350, %cst_213 [1] : vector<32x64xf32> to vector<32xf32>
    %352 = vector.shape_cast %351 : vector<32xf32> to vector<32x1xf32>
    %cst_214 = arith.constant 6.400000e+01 : f32
    %353 = vector.broadcast %cst_214 : f32 to vector<32x1xf32>
    %354 = arith.divf %352, %353 : vector<32x1xf32>
    %355 = vector.broadcast %347 : vector<32x1xf32> to vector<32x64xf32>
    %356 = arith.subf %341, %355 : vector<32x64xf32>
    %cst_215 = arith.constant 9.99999974E-6 : f32
    %357 = vector.broadcast %cst_215 : f32 to vector<32x1xf32>
    %358 = arith.addf %354, %357 : vector<32x1xf32>
    %359 = math.rsqrt %358 : vector<32x1xf32>
    %360 = vector.broadcast %359 : vector<32x1xf32> to vector<32x64xf32>
    %361 = arith.mulf %356, %360 : vector<32x64xf32>
    %362 = vector.broadcast %342 : vector<1x64xf32> to vector<32x64xf32>
    %363 = arith.mulf %361, %362 : vector<32x64xf32>
    %364 = vector.broadcast %343 : vector<1x64xf32> to vector<32x64xf32>
    %365 = arith.addf %363, %364 : vector<32x64xf32>
    %c0_216 = arith.constant 0 : index
    %c0_217 = arith.constant 0 : index
    %366 = vector.load %arg11[%c0_216, %c0_217] : memref<64x256xf32, #tpu.memory_space<vmem>>, vector<64x256xf32>
    %cst_218 = arith.constant dense<0.000000e+00> : vector<32x256xf32>
    %367 = tpu.matmul %365, %366, %cst_218 {dimension_numbers = #tpu.dot_dimension_numbers<[1], [0], [0], [1], [0, 0, 1, 1], [], []>} : vector<32x64xf32>, vector<64x256xf32>, vector<32x256xf32> -> vector<32x256xf32>
    %c0_219 = arith.constant 0 : index
    %c0_220 = arith.constant 0 : index
    %368 = vector.load %arg12[%c0_219, %c0_220] : memref<1x256xf32, #tpu.memory_space<vmem>>, vector<1x256xf32>
    %369 = vector.broadcast %368 : vector<1x256xf32> to vector<32x256xf32>
    %370 = arith.addf %367, %369 : vector<32x256xf32>
    %cst_221 = arith.constant 5.000000e-01 : f32
    %371 = vector.broadcast %cst_221 : f32 to vector<32x256xf32>
    %372 = arith.mulf %371, %370 : vector<32x256xf32>
    %cst_222 = arith.constant 4.471500e-02 : f32
    %373 = vector.broadcast %cst_222 : f32 to vector<32x256xf32>
    %374 = arith.mulf %373, %370 : vector<32x256xf32>
    %375 = arith.mulf %374, %370 : vector<32x256xf32>
    %376 = arith.mulf %375, %370 : vector<32x256xf32>
    %377 = arith.addf %370, %376 : vector<32x256xf32>
    %cst_223 = arith.constant 0.797884583 : f32
    %378 = vector.broadcast %cst_223 : f32 to vector<32x256xf32>
    %379 = arith.mulf %378, %377 : vector<32x256xf32>
    %380 = math.tanh %379 : vector<32x256xf32>
    %cst_224 = arith.constant 1.000000e+00 : f32
    %381 = vector.broadcast %cst_224 : f32 to vector<32x256xf32>
    %382 = arith.addf %381, %380 : vector<32x256xf32>
    %383 = arith.mulf %372, %382 : vector<32x256xf32>
    %c0_225 = arith.constant 0 : index
    %c0_226 = arith.constant 0 : index
    %384 = vector.load %arg13[%c0_225, %c0_226] : memref<256x64xf32, #tpu.memory_space<vmem>>, vector<256x64xf32>
    %cst_227 = arith.constant dense<0.000000e+00> : vector<32x64xf32>
    %385 = tpu.matmul %383, %384, %cst_227 {dimension_numbers = #tpu.dot_dimension_numbers<[1], [0], [0], [1], [0, 0, 1, 1], [], []>} : vector<32x256xf32>, vector<256x64xf32>, vector<32x64xf32> -> vector<32x64xf32>
    %c0_228 = arith.constant 0 : index
    %c0_229 = arith.constant 0 : index
    %386 = vector.load %arg14[%c0_228, %c0_229] : memref<1x64xf32, #tpu.memory_space<vmem>>, vector<1x64xf32>
    %387 = vector.broadcast %386 : vector<1x64xf32> to vector<32x64xf32>
    %388 = arith.addf %385, %387 : vector<32x64xf32>
    %389 = arith.addf %341, %388 : vector<32x64xf32>
    %c0_230 = arith.constant 0 : index
    %c0_231 = arith.constant 0 : index
    %390 = vector.load %arg15[%c0_230, %c0_231] : memref<1x64xf32, #tpu.memory_space<vmem>>, vector<1x64xf32>
    %c0_232 = arith.constant 0 : index
    %c0_233 = arith.constant 0 : index
    %391 = vector.load %arg16[%c0_232, %c0_233] : memref<1x64xf32, #tpu.memory_space<vmem>>, vector<1x64xf32>
    %cst_234 = arith.constant dense<0.000000e+00> : vector<32xf32>
    %392 = vector.multi_reduction <add>, %389, %cst_234 [1] : vector<32x64xf32> to vector<32xf32>
    %393 = vector.shape_cast %392 : vector<32xf32> to vector<32x1xf32>
    %cst_235 = arith.constant 6.400000e+01 : f32
    %394 = vector.broadcast %cst_235 : f32 to vector<32x1xf32>
    %395 = arith.divf %393, %394 : vector<32x1xf32>
    %396 = vector.broadcast %395 : vector<32x1xf32> to vector<32x64xf32>
    %397 = arith.subf %389, %396 : vector<32x64xf32>
    %398 = arith.mulf %397, %397 : vector<32x64xf32>
    %cst_236 = arith.constant dense<0.000000e+00> : vector<32xf32>
    %399 = vector.multi_reduction <add>, %398, %cst_236 [1] : vector<32x64xf32> to vector<32xf32>
    %400 = vector.shape_cast %399 : vector<32xf32> to vector<32x1xf32>
    %cst_237 = arith.constant 6.400000e+01 : f32
    %401 = vector.broadcast %cst_237 : f32 to vector<32x1xf32>
    %402 = arith.divf %400, %401 : vector<32x1xf32>
    %403 = vector.broadcast %395 : vector<32x1xf32> to vector<32x64xf32>
    %404 = arith.subf %389, %403 : vector<32x64xf32>
    %cst_238 = arith.constant 9.99999974E-6 : f32
    %405 = vector.broadcast %cst_238 : f32 to vector<32x1xf32>
    %406 = arith.addf %402, %405 : vector<32x1xf32>
    %407 = math.rsqrt %406 : vector<32x1xf32>
    %408 = vector.broadcast %407 : vector<32x1xf32> to vector<32x64xf32>
    %409 = arith.mulf %404, %408 : vector<32x64xf32>
    %410 = vector.broadcast %390 : vector<1x64xf32> to vector<32x64xf32>
    %411 = arith.mulf %409, %410 : vector<32x64xf32>
    %412 = vector.broadcast %391 : vector<1x64xf32> to vector<32x64xf32>
    %413 = arith.addf %411, %412 : vector<32x64xf32>
    %c0_239 = arith.constant 0 : index
    %c0_240 = arith.constant 0 : index
    %414 = vector.load %arg17[%c0_239, %c0_240] : memref<64x192xf32, #tpu.memory_space<vmem>>, vector<64x192xf32>
    %cst_241 = arith.constant dense<0.000000e+00> : vector<32x192xf32>
    %415 = tpu.matmul %413, %414, %cst_241 {dimension_numbers = #tpu.dot_dimension_numbers<[1], [0], [0], [1], [0, 0, 1, 1], [], []>} : vector<32x64xf32>, vector<64x192xf32>, vector<32x192xf32> -> vector<32x192xf32>
    %c0_242 = arith.constant 0 : index
    %c0_243 = arith.constant 0 : index
    %416 = vector.load %arg18[%c0_242, %c0_243] : memref<1x192xf32, #tpu.memory_space<vmem>>, vector<1x192xf32>
    %417 = vector.broadcast %416 : vector<1x192xf32> to vector<32x192xf32>
    %418 = arith.addf %415, %417 : vector<32x192xf32>
    %c0_244 = arith.constant 0 : index
    %c0_245 = arith.constant 0 : index
    %419 = vector.load %arg1[%c0_244, %c0_245] : memref<32x192xf32, #tpu.memory_space<vmem>>, vector<32x192xf32>
    %cst_246 = arith.constant 0.000000e+00 : f32
    %420 = vector.broadcast %cst_246 : f32 to vector<32x192xf32>
    %421 = arith.addf %419, %420 : vector<32x192xf32>
    %cst_247 = arith.constant 1.000000e+00 : f32
    %422 = vector.broadcast %cst_247 : f32 to vector<32x192xf32>
    %423 = arith.mulf %421, %422 : vector<32x192xf32>
    %c0_248 = arith.constant 0 : index
    %c0_249 = arith.constant 0 : index
    %424 = vector.load %arg2[%c0_248, %c0_249] : memref<32x1xf32, #tpu.memory_space<vmem>>, vector<32x1xf32>
    %425 = vector.broadcast %424 : vector<32x1xf32> to vector<32x192xf32>
    %426 = arith.mulf %423, %425 : vector<32x192xf32>
    %427 = arith.subf %418, %419 : vector<32x192xf32>
    %428 = arith.mulf %427, %427 : vector<32x192xf32>
    %429 = arith.mulf %428, %426 : vector<32x192xf32>
    %cst_250 = arith.constant dense<0.000000e+00> : vector<32xf32>
    %430 = vector.multi_reduction <add>, %429, %cst_250 [1] : vector<32x192xf32> to vector<32xf32>
    %431 = vector.shape_cast %430 : vector<32xf32> to vector<32x1xf32>
    %cst_251 = arith.constant dense<0.000000e+00> : vector<1xf32>
    %432 = vector.multi_reduction <add>, %431, %cst_251 [0] : vector<32x1xf32> to vector<1xf32>
    %433 = vector.shape_cast %432 : vector<1xf32> to vector<1x1xf32>
    %cst_252 = arith.constant 0.00217013899 : f32
    %434 = vector.broadcast %cst_252 : f32 to vector<1x1xf32>
    %435 = arith.mulf %433, %434 : vector<1x1xf32>
    %c0_253 = arith.constant 0 : index
    %c0_254 = arith.constant 0 : index
    %436 = vector.load %arg19[%c0_253, %c0_254] : memref<1x1xf32, #tpu.memory_space<vmem>>, vector<1x1xf32>
    tpu.vector_store %arg19[%c0_253, %c0_254], %435 {strides = array<i32>} : memref<1x1xf32, #tpu.memory_space<vmem>>, vector<1x1xf32>,
    return
  }
}

</mosaic_0001>

<bundles_post_ra>
// kernel: mae_forward.3
= control target key start
LH: loop header
LB: loop body
LE: loop exit
PB: predicated region body
PF: predicated region fallthrough
CT: control target
= control target key end

     0   :  { %vm39_vm0 = vcmask 523264   ;;  %v453_v16 = vmov 0.0|0.0   ;;  %vm281_vm1 = vcmask 261120   ;;  %s748_s0 = inlined_call_operand.vmem [shape: f32[32,192], index: 0, kind: input, shape index: {}]   ;;  %s749_s3 = inlined_call_operand.vmem [shape: f32[192,32], index: 3, kind: input, shape index: {}]   ;;  %s750_s1 = inlined_call_operand.vmem [shape: f32[1,192], index: 1, kind: input, shape index: {}]   ;;  %s751_s2 = inlined_call_operand.vmem [shape: f32[1,192], index: 2, kind: input, shape index: {}]   ;;  %s752_s4 = inlined_call_operand.vmem [shape: f32[1,32], index: 4, kind: input, shape index: {}]   ;;  %s753_s5 = inlined_call_operand.vmem [shape: f32[1,32], index: 5, kind: input, shape index: {}]   ;;  %s754_s6 = inlined_call_operand.vmem [shape: f32[1,32], index: 6, kind: input, shape index: {}]   ;;  %s755_s7 = inlined_call_operand.vmem [shape: f32[16,32], index: 7, kind: input, shape index: {}]   ;;  %s756_s8 = inlined_call_operand.vmem [shape: f32[32,32], index: 8, kind: output, shape index: {}]  }
   0x1   :  { %v502_v0 = vld [vmem:[%s748_s0] sm:$0xff]  ;;  %v507_v1 = vld [vmem:[%s748_s0 + $0x8] sm:$0xff]  ;;  %v512_v2 = vld [vmem:[%s748_s0 + $0x10] sm:$0xff]  ;;  %376 = vmatprep.subr.bf16.mxu0 %v453_v16  ;;  %412 = vmatprep.subr.bf16.mxu1 %v453_v16 }
   0x2   :  { %v40_v3 = vsel %vm39_vm0, %v507_v1, 0.0  ;;  %v519_v4 = vld [vmem:[%s748_s0 + $0x18] sm:$0xff]  ;;  %v524_v5 = vld [vmem:[%s748_s0 + $0x20] sm:$0xff]  ;;  %v529_v6 = vld [vmem:[%s748_s0 + $0x28] sm:$0xff] }
   0x3   :  { %v41_v7 = vadd.f32 %v40_v3, %v502_v0  ;;  %v44_v8 = vsel %vm39_vm0, %v519_v4, 0.0  ;;  %v48_v9 = vsel %vm39_vm0, %v529_v6, 0.0  ;;  %v539_v10 = vld [vmem:[%s748_s0 + $0x30] sm:$0xff]  ;;  %v544_v11 = vld [vmem:[%s748_s0 + $0x38] sm:$0xff]  ;;  %v151_v17 = vld [vmem:[%s749_s3] sm:$0xff] }
   0x4   :  { %v45_v12 = vadd.f32 %v44_v8, %v512_v2  ;;  %v52_v13 = vsel %vm39_vm0, %v544_v11, 0.0  ;;  %v49_v14 = vadd.f32 %v48_v9, %v524_v5  ;;  %v152_v18 = vld [vmem:[%s749_s3 + $0x8] sm:$0xff]  ;;  %v153_v19 = vld [vmem:[%s749_s3 + $0x10] sm:$0xff]  ;;  %v154_v21 = vld [vmem:[%s749_s3 + $0x18] sm:$0xff] }
   0x5   :  { %42 = vadd.xlane.f32.xlu0 %v41_v7  ;;  %v53_v15 = vadd.f32 %v52_v13, %v539_v10  ;;  %v377_v20 = vpack.c.bf16 %v152_v18, %v151_v17  ;;  %v380_v22 = vpack.c.bf16 %v154_v21, %v153_v19  ;;  %v155_v23 = vld [vmem:[%s749_s3 + $0x20] sm:$0xff]  ;;  %v156_v24 = vld [vmem:[%s749_s3 + $0x28] sm:$0xff]  ;;  %v157_v26 = vld [vmem:[%s749_s3 + $0x30] sm:$0xff] }
   0x6   :  { %46 = vadd.xlane.f32.xlu1 %v45_v12  ;;  %v383_v25 = vpack.c.bf16 %v156_v24, %v155_v23  ;;  %v158_v27 = vld [vmem:[%s749_s3 + $0x38] sm:$0xff]  ;;  %v159_v29 = vld [vmem:[%s749_s3 + $0x40] sm:$0xff]  ;;  %v160_v30 = vld [vmem:[%s749_s3 + $0x48] sm:$0xff]  ;;  %v114_v24 = vlaneseq }
   0x7   :  { %378 = vmatpush1.bf16.msra.mxu0 %v377_v20  ;;  %424 = vmatpush1.bf16.msra.mxu1 %v377_v20  ;;  %v386_v28 = vpack.c.bf16 %v158_v27, %v157_v26  ;;  %v389_v31 = vpack.c.bf16 %v160_v30, %v159_v29  ;;  %v161_v32 = vld [vmem:[%s749_s3 + $0x50] sm:$0xff]  ;;  %v162_v33 = vld [vmem:[%s749_s3 + $0x58] sm:$0xff]  ;;  %v163_v35 = vld [vmem:[%s749_s3 + $0x60] sm:$0xff] }
   0x8   :  { %379 = vmatprep.subr.bf16.mxu0 %v453_v16  ;;  %413 = vmatprep.subr.bf16.mxu1 %v453_v16  ;;  %v392_v34 = vpack.c.bf16 %v162_v33, %v161_v32  ;;  %v164_v36 = vld [vmem:[%s749_s3 + $0x68] sm:$0xff]  ;;  %v166_v7 = vld [vmem:[%s749_s3 + $0x78] sm:$0xff]  ;;  %v167_v9 = vld [vmem:[%s749_s3 + $0x80] sm:$0xff]  ;;  %v115_v30 = vshrl.u32 %v114_v24, 7 }
   0x9   :  { %50 = vadd.xlane.f32.xlu0 %v49_v14  ;;  %v395_v37 = vpack.c.bf16 %v164_v36, %v163_v35  ;;  %v169_v12 = vld [vmem:[%s749_s3 + $0x90] sm:$0xff]  ;;  %v170_v13 = vld [vmem:[%s749_s3 + $0x98] sm:$0xff]  ;;  %v172_v17 = vld [vmem:[%s749_s3 + $0xa8] sm:$0xff] }
   0xa   :  { %54 = vadd.xlane.f32.xlu1 %v53_v15  ;;  %v404_v14 = vpack.c.bf16 %v170_v13, %v169_v12  ;;  %v171_v15 = vld [vmem:[%s749_s3 + $0xa0] sm:$0xff]  ;;  %v173_v19 = vld [vmem:[%s749_s3 + $0xb0] sm:$0xff]  ;;  %v174_v20 = vld [vmem:[%s749_s3 + $0xb8] sm:$0xff]  ;;  %v116_v35 = vsub.s32 0, %v115_v30 }
   0xb   :  { %381 = vmatpush1.bf16.msra.mxu0 %v380_v22  ;;  %425 = vmatpush1.bf16.msra.mxu1 %v380_v22  ;;  %v407_v18 = vpack.c.bf16 %v172_v17, %v171_v15  ;;  %v410_v21 = vpack.c.bf16 %v174_v20, %v173_v19 }
   0xc   :  { %382 = vmatprep.subr.bf16.mxu0 %v453_v16  ;;  %414 = vmatprep.subr.bf16.mxu1 %v453_v16 }
   0xf   :  { %384 = vmatpush1.bf16.msra.mxu0 %v383_v25  ;;  %426 = vmatpush1.bf16.msra.mxu1 %v383_v25 }
  0x10   :  { %385 = vmatprep.subr.bf16.mxu0 %v453_v16  ;;  %415 = vmatprep.subr.bf16.mxu1 %v453_v16 }
  0x13   :  { %387 = vmatpush1.bf16.msra.mxu0 %v386_v28  ;;  %427 = vmatpush1.bf16.msra.mxu1 %v386_v28 }
  0x14   :  { %388 = vmatprep.subr.bf16.mxu0 %v453_v16  ;;  %416 = vmatprep.subr.bf16.mxu1 %v453_v16 }
  0x17   :  { %390 = vmatpush1.bf16.msra.mxu0 %v389_v31  ;;  %428 = vmatpush1.bf16.msra.mxu1 %v389_v31 }
  0x18   :  { %391 = vmatprep.subr.bf16.mxu0 %v453_v16  ;;  %417 = vmatprep.subr.bf16.mxu1 %v453_v16 }
  0x1b   :  { %393 = vmatpush1.bf16.msra.mxu0 %v392_v34  ;;  %429 = vmatpush1.bf16.msra.mxu1 %v392_v34 }
  0x1c   :  { %394 = vmatprep.subr.bf16.mxu0 %v453_v16  ;;  %418 = vmatprep.subr.bf16.mxu1 %v453_v16 }
  0x1f   :  { %396 = vmatpush1.bf16.msra.mxu0 %v395_v37  ;;  %430 = vmatpush1.bf16.msra.mxu1 %v395_v37  ;;  %v37_v37 = vld [vmem:[%s750_s1] sm:$0x3] }
  0x20   :  { %397 = vmatprep.subr.bf16.mxu0 %v453_v16  ;;  %419 = vmatprep.subr.bf16.mxu1 %v453_v16 }
  0x92   :  { %v43_v38 = vpop.xlane.xlu0 %42 }
  0x93   :  { %v57_v39 = vmul.f32 0.0052083335, %v43_v38  ;;  %v47_v40 = vpop.xlane.xlu1 %46  ;;  %v38_v38 = vld [vmem:[%s751_s2] sm:$0x3] }
  0x94   :  { %v58_v41 = vmul.f32 0.0052083335, %v47_v40 }
  0x95   :  { %v610_v42 = vsub.f32 %v502_v0, %v57_v39  ;;  %v613_v43 = vsub.f32 %v507_v1, %v57_v39  ;;  %v117_v39 = vrot.slane %v37_v37, %v116_v35 }
  0x96   :  { %v616_v44 = vsub.f32 %v512_v2, %v58_v41  ;;  %v619_v45 = vsub.f32 %v519_v4, %v58_v41  ;;  %v51_v46 = vpop.xlane.xlu0 %50 }
  0x97   :  { %v59_v47 = vmul.f32 0.0052083335, %v51_v46  ;;  %v55_v48 = vpop.xlane.xlu1 %54  ;;  %v69_v49 = vmul.f32 %v610_v42, %v610_v42  ;;  %v70_v50 = vmul.f32 %v613_v43, %v613_v43 }
  0x98   :  { %v60_v51 = vmul.f32 0.0052083335, %v55_v48  ;;  %v71_v52 = vmul.f32 %v616_v44, %v616_v44  ;;  %v72_v53 = vmul.f32 %v619_v45, %v619_v45 }
  0x99   :  { %v630_v54 = vsub.f32 %v524_v5, %v59_v47  ;;  %v633_v55 = vsub.f32 %v529_v6, %v59_v47  ;;  %v77_v56 = vsel %vm39_vm0, %v70_v50, 0.0  ;;  %v165_v6 = vld [vmem:[%s749_s3 + $0x70] sm:$0xff]  ;;  %v136_v47 = vrot.slane %v38_v38, %v116_v35 }
  0x9a   :  { %v637_v57 = vsub.f32 %v539_v10, %v60_v51  ;;  %v640_v58 = vsub.f32 %v544_v11, %v60_v51  ;;  %v78_v59 = vadd.f32 %v77_v56, %v69_v49  ;;  %v81_v60 = vsel %vm39_vm0, %v72_v53, 0.0  ;;  %v168_v10 = vld [vmem:[%s749_s3 + $0x88] sm:$0xff] }
  0x9b   :  { %v73_v61 = vmul.f32 %v630_v54, %v630_v54  ;;  %v74_v62 = vmul.f32 %v633_v55, %v633_v55  ;;  %v82_v63 = vadd.f32 %v81_v60, %v71_v52  ;;  %v398_v8 = vpack.c.bf16 %v166_v7, %v165_v6 }
  0x9c   :  { %79 = vadd.xlane.f32.xlu0 %v78_v59  ;;  %v75_v0 = vmul.f32 %v637_v57, %v637_v57  ;;  %v76_v1 = vmul.f32 %v640_v58, %v640_v58  ;;  %v401_v11 = vpack.c.bf16 %v168_v10, %v167_v9 }
  0x9d   :  { %v85_v2 = vsel %vm39_vm0, %v74_v62, 0.0  ;;  %399 = vmatpush1.bf16.msra.mxu0 %v398_v8  ;;  %431 = vmatpush1.bf16.msra.mxu1 %v398_v8 }
  0x9e   :  { %v86_v3 = vadd.f32 %v85_v2, %v73_v61  ;;  %v89_v4 = vsel %vm39_vm0, %v76_v1, 0.0  ;;  %400 = vmatprep.subr.bf16.mxu0 %v453_v16  ;;  %420 = vmatprep.subr.bf16.mxu1 %v453_v16 }
  0x9f   :  { %v90_v5 = vadd.f32 %v89_v4, %v75_v0 }
  0xa0   :  { %83 = vadd.xlane.f32.xlu0 %v82_v63  ;;  %87 = vadd.xlane.f32.xlu1 %v86_v3 }
  0xa1   :  { %402 = vmatpush1.bf16.msra.mxu0 %v401_v11  ;;  %432 = vmatpush1.bf16.msra.mxu1 %v401_v11 }
  0xa2   :  { %403 = vmatprep.subr.bf16.mxu0 %v453_v16  ;;  %421 = vmatprep.subr.bf16.mxu1 %v453_v16 }
  0xa4   :  { %91 = vadd.xlane.f32.xlu1 %v90_v5 }
  0xa5   :  { %405 = vmatpush1.bf16.msra.mxu0 %v404_v14  ;;  %433 = vmatpush1.bf16.msra.mxu1 %v404_v14 }
  0xa6   :  { %406 = vmatprep.subr.bf16.mxu0 %v453_v16  ;;  %422 = vmatprep.subr.bf16.mxu1 %v453_v16 }
  0xa9   :  { %408 = vmatpush1.bf16.msra.mxu0 %v407_v18  ;;  %434 = vmatpush1.bf16.msra.mxu1 %v407_v18 }
  0xaa   :  { %409 = vmatprep.subr.bf16.mxu0 %v453_v16  ;;  %423 = vmatprep.subr.bf16.mxu1 %v453_v16  ;;  %v120_v16 = vsub.s32 1, %v115_v30 }
  0xac   :  { %v121_v40 = vrot.slane %v37_v37, %v120_v16  ;;  %v140_v48 = vrot.slane %v38_v38, %v120_v16 }
  0xad   :  { %411 = vmatpush1.bf16.msra.mxu0 %v410_v21  ;;  %435 = vmatpush1.bf16.msra.mxu1 %v410_v21 }
 0x129   :  { %v80_v22 = vpop.xlane.xlu0 %79 }
 0x12a   :  { %v93_v23 = vmul.f32 0.0052083335, %v80_v22 }
 0x12c   :  { %v97_v25 = vadd.f32 1e-05, %v93_v23 }
 0x12d   :  { %v88_v26 = vpop.xlane.xlu1 %87  ;;  %v84_v27 = vpop.xlane.xlu0 %83 }
 0x12e   :  { %437 = vrsqrt.f32 %v97_v25  ;;  %v95_v28 = vmul.f32 0.0052083335, %v88_v26  ;;  %v94_v29 = vmul.f32 0.0052083335, %v84_v27 }
 0x130   :  { %v99_v31 = vadd.f32 1e-05, %v95_v28  ;;  %v98_v32 = vadd.f32 1e-05, %v94_v29 }
 0x131   :  { %v92_v33 = vpop.xlane.xlu1 %91 }
 0x132   :  { %439 = vrsqrt.f32 %v99_v31  ;;  %v96_v34 = vmul.f32 0.0052083335, %v92_v33 }
 0x133   :  { %441 = vrsqrt.f32 %v98_v32 }
 0x134   :  { %v100_v36 = vadd.f32 1e-05, %v96_v34 }
 0x136   :  { %443 = vrsqrt.f32 %v100_v36 }
 0x138   :  { %v438_v41 = vpop.eup %437 }
 0x139   :  { %v106_v46 = vmul.f32 %v438_v41, %v613_v43  ;;  %v105_v49 = vmul.f32 %v438_v41, %v610_v42 }
 0x13b   :  { %v125_v50 = vmul.f32 %v121_v40, %v106_v46  ;;  %v124_v51 = vmul.f32 %v117_v39, %v105_v49 }
 0x13c   :  { %v440_v52 = vpop.eup %439 }
 0x13d   :  { %v442_v53 = vpop.eup %441  ;;  %v144_v56 = vadd.f32 %v140_v48, %v125_v50  ;;  %v143_v59 = vadd.f32 %v136_v47, %v124_v51  ;;  %v110_v60 = vmul.f32 %v440_v52, %v633_v55  ;;  %v109_v61 = vmul.f32 %v440_v52, %v630_v54 }
 0x13e   :  { %v108_v62 = vmul.f32 %v442_v53, %v619_v45  ;;  %v107_v63 = vmul.f32 %v442_v53, %v616_v44 }
 0x13f   :  { %370 = vmatprep.mubr.msk.f32.mxu0 %vm39_vm0, %v144_v56  ;;  %v129_v43 = vmul.f32 %v121_v40, %v110_v60  ;;  %v128_v0 = vmul.f32 %v117_v39, %v109_v61 }
 0x140   :  { %v444_v1 = vpop.eup %443  ;;  %259 = vmatmul.mubr.f32.vlgmr.msra.gmra.mrb[0].mxu0 %v143_v59  ;;  %v127_v42 = vmul.f32 %v121_v40, %v108_v62  ;;  %v126_v2 = vmul.f32 %v117_v39, %v107_v63 }
 0x141   :  { %v148_v3 = vadd.f32 %v140_v48, %v129_v43  ;;  %v147_v4 = vadd.f32 %v136_v47, %v128_v0  ;;  %v112_v5 = vmul.f32 %v444_v1, %v640_v58  ;;  %v111_v55 = vmul.f32 %v444_v1, %v637_v57  ;;  %v369_v58 = vld [vmem:[%s752_s4] ss:$0 sm:$0xff] }
 0x142   :  { %v146_v6 = vadd.f32 %v140_v48, %v127_v42  ;;  %v145_v54 = vadd.f32 %v136_v47, %v126_v2  ;;  %v374_v0 = vld [vmem:[%s753_s5] ss:$0 sm:$0xff] }
 0x143   :  { %372 = vmatprep.mubr.msk.f32.mxu1 %vm39_vm0, %v148_v3  ;;  %v131_v45 = vmul.f32 %v121_v40, %v112_v5  ;;  %v130_v44 = vmul.f32 %v117_v39, %v111_v55  ;;  %v375_v42 = vld [vmem:[%s754_s6] ss:$0 sm:$0xff] }
 0x144   :  { %371 = vmatprep.mubr.msk.f32.mxu0 %vm39_vm0, %v146_v6  ;;  %269 = vmatmul.mubr.f32.vlgmr.msra.gmra.mrb[0].mxu1 %v147_v4  ;;  %v355_v4 = vld [vmem:[%s755_s7] sm:$0xff] }
 0x145   :  { %264 = vmatmul.mubr.f32.gmra.mrb[2].mxu0 %v145_v54  ;;  %v150_v7 = vadd.f32 %v140_v48, %v131_v45  ;;  %v149_v8 = vadd.f32 %v136_v47, %v130_v44 }
 0x147   :  { %373 = vmatprep.mubr.msk.f32.mxu1 %vm39_vm0, %v150_v7 }
 0x148   :  { %274 = vmatmul.mubr.f32.gmra.mrb[2].mxu1 %v149_v8 }
 0x213   :  { %v260_v57 = vpop.f32.mrb[0].mxu0 }
 0x214   :  { %v261_v9 = vadd.f32 %v369_v58, %v260_v57  ;;  %v262_v10 = vpop.f32.mrb[1].mxu0 }
 0x216   :  { %v282_v11 = vsel %vm281_vm1, %v261_v9, 0.0 }
 0x217   :  { %v270_v12 = vpop.f32.mrb[0].mxu1  ;;  %283 = vadd.xlane.f32.xlu0 %v282_v11 }
 0x218   :  { %v271_v13 = vadd.f32 %v369_v58, %v270_v12  ;;  %v265_v14 = vpop.f32.mrb[2].mxu0  ;;  %v272_v15 = vpop.f32.mrb[1].mxu1 }
 0x219   :  { %v266_v17 = vadd.f32 %v369_v58, %v265_v14  ;;  %v267_v18 = vpop.f32.mrb[3].mxu0 }
 0x21a   :  { %v288_v19 = vsel %vm281_vm1, %v271_v13, 0.0 }
 0x21b   :  { %v275_v20 = vpop.f32.mrb[2].mxu1  ;;  %289 = vadd.xlane.f32.xlu0 %v288_v19  ;;  %v285_v21 = vsel %vm281_vm1, %v266_v17, 0.0 }
 0x21c   :  { %v276_v22 = vadd.f32 %v369_v58, %v275_v20  ;;  %286 = vadd.xlane.f32.xlu1 %v285_v21  ;;  %v277_v23 = vpop.f32.mrb[3].mxu1  ;;  %v356_v58 = vld [vmem:[%s755_s7 + $0x8] sm:$0xff] }
 0x21e   :  { %v291_v24 = vsel %vm281_vm1, %v276_v22, 0.0 }
 0x220   :  { %292 = vadd.xlane.f32.xlu1 %v291_v24 }
 0x2a4   :  { %v284_v25 = vpop.xlane.xlu0 %283 }
 0x2a5   :  { %v295_v26 = vmul.f32 0.03125, %v284_v25 }
 0x2a7   :  { %v299_v27 = vsub.f32 %v261_v9, %v295_v26 }
 0x2a8   :  { %v290_v28 = vpop.xlane.xlu0 %289 }
 0x2a9   :  { %v287_v29 = vpop.xlane.xlu1 %286  ;;  %v297_v30 = vmul.f32 0.03125, %v290_v28  ;;  %v303_v31 = vmul.f32 %v299_v27, %v299_v27 }
 0x2aa   :  { %v296_v32 = vmul.f32 0.03125, %v287_v29 }
 0x2ab   :  { %v301_v33 = vsub.f32 %v271_v13, %v297_v30  ;;  %v307_v34 = vsel %vm281_vm1, %v303_v31, 0.0 }
 0x2ac   :  { %v300_v35 = vsub.f32 %v266_v17, %v296_v32  ;;  %308 = vadd.xlane.f32.xlu0 %v307_v34 }
 0x2ad   :  { %v293_v16 = vpop.xlane.xlu1 %292  ;;  %v305_v36 = vmul.f32 %v301_v33, %v301_v33 }
 0x2ae   :  { %v298_v37 = vmul.f32 0.03125, %v293_v16  ;;  %v304_v38 = vmul.f32 %v300_v35, %v300_v35 }
 0x2af   :  { %v313_v39 = vsel %vm281_vm1, %v305_v36, 0.0 }
 0x2b0   :  { %v302_v40 = vsub.f32 %v276_v22, %v298_v37  ;;  %v310_v41 = vsel %vm281_vm1, %v304_v38, 0.0  ;;  %314 = vadd.xlane.f32.xlu0 %v313_v39 }
 0x2b1   :  { %311 = vadd.xlane.f32.xlu1 %v310_v41 }
 0x2b2   :  { %v306_v46 = vmul.f32 %v302_v40, %v302_v40 }
 0x2b4   :  { %v316_v47 = vsel %vm281_vm1, %v306_v46, 0.0 }
 0x2b5   :  { %317 = vadd.xlane.f32.xlu1 %v316_v47 }
 0x339   :  { %v309_v48 = vpop.xlane.xlu0 %308 }
 0x33a   :  { %v319_v49 = vmul.f32 0.03125, %v309_v48 }
 0x33c   :  { %v323_v50 = vadd.f32 1e-05, %v319_v49 }
 0x33d   :  { %v315_v51 = vpop.xlane.xlu0 %314 }
 0x33e   :  { %445 = vrsqrt.f32 %v323_v50  ;;  %v312_v52 = vpop.xlane.xlu1 %311  ;;  %v321_v53 = vmul.f32 0.03125, %v315_v51 }
 0x33f   :  { %v320_v56 = vmul.f32 0.03125, %v312_v52 }
 0x340   :  { %v325_v59 = vadd.f32 1e-05, %v321_v53 }
 0x341   :  { %v324_v60 = vadd.f32 1e-05, %v320_v56 }
 0x342   :  { %447 = vrsqrt.f32 %v325_v59  ;;  %v318_v61 = vpop.xlane.xlu1 %317 }
 0x343   :  { %449 = vrsqrt.f32 %v324_v60  ;;  %v322_v62 = vmul.f32 0.03125, %v318_v61 }
 0x345   :  { %v326_v63 = vadd.f32 1e-05, %v322_v62 }
 0x347   :  { %451 = vrsqrt.f32 %v326_v63 }
 0x348   :  { %v446_v43 = vpop.eup %445 }
 0x349   :  { %v331_v1 = vmul.f32 %v446_v43, %v299_v27 }
 0x34b   :  { %v341_v2 = vmul.f32 %v374_v0, %v331_v1 }
 0x34c   :  { %v448_v3 = vpop.eup %447 }
 0x34d   :  { %v450_v5 = vpop.eup %449  ;;  %v351_v55 = vadd.f32 %v375_v42, %v341_v2  ;;  %v333_v6 = vmul.f32 %v448_v3, %v301_v33 }
 0x34e   :  { %v332_v54 = vmul.f32 %v450_v5, %v300_v35 }
 0x34f   :  { %v357_v45 = vadd.f32 %v355_v4, %v351_v55  ;;  %v343_v44 = vmul.f32 %v374_v0, %v333_v6 }
 0x350   :  { %v342_v7 = vmul.f32 %v374_v0, %v332_v54 }
 0x351   :  { %v452_v8 = vpop.eup %451  ;;  %359 = vst.msk [vmem:[%s756_s8] sm:$0xff] %vm281_vm1, %v357_v45  ;;  %v353_v57 = vadd.f32 %v375_v42, %v343_v44 }
 0x352   :  { %v352_v9 = vadd.f32 %v375_v42, %v342_v7  ;;  %v334_v10 = vmul.f32 %v452_v8, %v302_v40 }
 0x353   :  { %v361_v11 = vadd.f32 %v355_v4, %v353_v57 }
 0x354   :  { %v358_v12 = vadd.f32 %v356_v58, %v352_v9  ;;  %v344_v13 = vmul.f32 %v374_v0, %v334_v10 }
 0x355   :  { %363 = vst.msk [vmem:[%s756_s8 + $0x10] sm:$0xff] %vm281_vm1, %v361_v11 }
 0x356   :  { %360 = vst.msk [vmem:[%s756_s8 + $0x8] sm:$0xff] %vm281_vm1, %v358_v12  ;;  %v354_v14 = vadd.f32 %v375_v42, %v344_v13 }
 0x358   :  { %v362_v15 = vadd.f32 %v356_v58, %v354_v14 }
 0x35a   :  { %364 = vst.msk [vmem:[%s756_s8 + $0x18] sm:$0xff] %vm281_vm1, %v362_v15 }

// kernel: mae_forward.4
= control target key start
LH: loop header
LB: loop body
LE: loop exit
PB: predicated region body
PF: predicated region fallthrough
CT: control target
= control target key end

     0   :  { %vm125_vm0 = vcmask 261120   ;;  %s4685_s6 = smov 3   ;;  %v4686_v7 = vmov 0.0   ;;  %s4687_s10 = smov 1   ;;  %v164_v29 = vlaneseq  ;;  %vm4690_vm1 = vmmov 0   ;;  %s5252_s0 = inlined_call_operand.smem [shape: u32[30], index: -1, kind: input, shape index: {}] }
   0x1   :  { %s1_s5 = sld [smem:[%s5252_s0]]   ;;  %241 = vmatprep.mubr.f32.mxu0 %v4686_v7  ;;  %4162 = vmatprep.subr.mxu1 %v4686_v7  ;;  %s4688_s14 = smov 2   ;;  %vm249_vm2 = vcmask 523264   ;;  %vm256_vm3 = vcmask 130048   ;;  %vm348_vm4 = vcmask 1043456   ;;  %vm332_vm5 = vcmask 27648  }
   0x2   :  { %s3916_s9 = sld [smem:[%s5252_s0 + %s4685_s6]]   ;;  %s4689_s18 = smov 4   ;;  %v4753_v30 = vshrl.u32 %v164_v29, 7  ;;  %4164 = vmatprep.mubr.msk.f32.mxu1 %vm4690_vm1, %v4686_v7  ;;  %vm344_vm6 = vcmask 31744   ;;  %vm422_vm7 = vcmask 125952   ;;  %vm599_vm8 = vcmask 257152  }
   0x3   :  { %s3914_s13 = sld [smem:[%s5252_s0 + %s4687_s10]]   ;;  %s4691_s22 = smov 112   ;;  %vm776_vm9 = vcmask 388352   ;;  %vm953_vm10 = vcmask 519552  }
   0x4   :  { %s3915_s17 = sld [smem:[%s5252_s0 + %s4688_s14]]   ;;  %v166_v31 = vsub.s32 0, %v4753_v30  ;;  %v170_v33 = vsub.s32 1, %v4753_v30  ;;  %s4692_s23 = smov 64  }
   0x5   :  { %s3917_s21 = sld [smem:[%s5252_s0 + %s4689_s18]]   ;;  %s4693_s24 = smov 48  }
   0x6   :  { %s4694_s25 = smov 96   ;;  %s4695_s26 = smov 32  }
   0x7   :  { %v4731_v0 = vld [vmem:[%s1_s5] sm:$0xff]  ;;  %s4696_s27 = smov 80   ;;  %s4697_s28 = smov 16  }
   0x8   :  { %v126_v1 = vsel %vm125_vm0, %v4731_v0, 0.0  ;;  %v155_v8 = vld [vmem:[%s3916_s9 + $0x8] sm:$0xff]  ;;  %v157_v9 = vld [vmem:[%s3916_s9 + $0x18] sm:$0xff]  ;;  %v154_v10 = vld [vmem:[%s3916_s9] sm:$0xff]  ;;  %s4699_s29 = smov 5   ;;  %s4700_s3 = smov 6  }
   0x9   :  { %127 = vadd.xlane.f32.xlu0 %v126_v1  ;;  %v4463_v11 = vpack.c.bf16 %v157_v9, %v155_v8  ;;  %v156_v12 = vld [vmem:[%s3916_s9 + $0x10] sm:$0xff]  ;;  %v159_v13 = vld [vmem:[%s3916_s9 + $0x28] sm:$0xff]  ;;  %v161_v14 = vld [vmem:[%s3916_s9 + $0x38] sm:$0xff]  ;;  %s3918_s2 = sld [smem:[%s5252_s0 + %s4699_s29]]   ;;  %s4701_s7 = smov 9  }
   0xa   :  { %v4465_v15 = vpack.c.bf16 %v156_v12, %v154_v10  ;;  %v4467_v16 = vpack.c.bf16 %v161_v14, %v159_v13  ;;  %v158_v17 = vld [vmem:[%s3916_s9 + $0x20] sm:$0xff]  ;;  %v160_v18 = vld [vmem:[%s3916_s9 + $0x30] sm:$0xff]  ;;  %s3919_s6 = sld [smem:[%s5252_s0 + %s4700_s3]]   ;;  %s4702_s11 = smov 11  }
   0xb   :  { %4464 = vmatprep.subr.bf16.mxu0 %v4463_v11  ;;  %v4469_v19 = vpack.c.bf16 %v160_v18, %v158_v17  ;;  %v3943_v24 = vld [vmem:[%s3914_s13] ss:$0 sm:$0xff]  ;;  %s3922_s10 = sld [smem:[%s5252_s0 + %s4701_s7]]   ;;  %s4703_s15 = smov 7  }
   0xc   :  { %4466 = vmatpush1.bf16.msra.mxu0 %v4465_v15  ;;  %v3944_v26 = vld [vmem:[%s3915_s17] ss:$0 sm:$0xff]  ;;  %s4959_s14 = sld [smem:[%s5252_s0 + %s4702_s11]]   ;;  %s4704_s19 = smov 8  }
   0xd   :  { %4468 = vmatprep.subr.bf16.mxu0 %v4467_v16  ;;  %v162_v32 = vld [vmem:[%s3917_s21] sm:$0x3]  ;;  %s3920_s18 = sld [smem:[%s5252_s0 + %s4703_s15]]   ;;  %s4705_s30 = smov 10  }
   0xe   :  { %v167_v34 = vrot.slane %v162_v32, %v166_v31  ;;  %v171_v35 = vrot.slane %v162_v32, %v170_v33  ;;  %s3921_s29 = sld [smem:[%s5252_s0 + %s4704_s19]]   ;;  %s4706_s4 = smov 12  }
   0xf   :  { %s3923_s3 = sld [smem:[%s5252_s0 + %s4705_s30]]   ;;  %s4707_s8 = smov 15  }
  0x10   :  { %4470 = vmatpush1.bf16.msra.mxu0 %v4469_v19  ;;  %s3925_s7 = sld [smem:[%s5252_s0 + %s4706_s4]]   ;;  %s4708_s12 = smov 13  }
  0x11   :  { %4172 = vmatprep.subr.mxu0 %v4686_v7  ;;  %s3928_s11 = sld [smem:[%s5252_s0 + %s4707_s8]]   ;;  %s4709_s16 = smov 14  }
  0x12   :  { %s3926_s15 = sld [smem:[%s5252_s0 + %s4708_s12]]   ;;  %s4712_s1 = smov 21  }
  0x13   :  { %s3927_s19 = sld [smem:[%s5252_s0 + %s4709_s16]]   ;;  %s4713_s5 = smov 19  }
  0x14   :  { %s3934_s4 = sld [smem:[%s5252_s0 + %s4712_s1]]   ;;  %s4714_s9 = smov 23  }
  0x15   :  { %s3932_s8 = sld [smem:[%s5252_s0 + %s4713_s5]]   ;;  %s4715_s13 = smov 20  }
  0x16   :  { %s5194_s12 = sld [smem:[%s5252_s0 + %s4714_s9]]   ;;  %s4716_s17 = smov 22  }
  0x17   :  { %s3933_s16 = sld [smem:[%s5252_s0 + %s4715_s13]]   ;;  %s4717_s21 = smov 24  }
  0x18   :  { %s3935_s20 = sld [smem:[%s5252_s0 + %s4716_s17]]  }
  0x96   :  { %v128_v2 = vpop.xlane.xlu0 %127 }
  0x97   :  { %v130_v3 = vmul.f32 0.03125, %v128_v2 }
  0x99   :  { %v131_v4 = vsub.f32 %v4731_v0, %v130_v3 }
  0x9b   :  { %v132_v5 = vmul.f32 %v131_v4, %v131_v4 }
  0x9d   :  { %v133_v6 = vsel %vm125_vm0, %v132_v5, 0.0 }
  0x9e   :  { %134 = vadd.xlane.f32.xlu0 %v133_v6 }
 0x12b   :  { %v135_v20 = vpop.xlane.xlu0 %134 }
 0x12c   :  { %v136_v21 = vmul.f32 0.03125, %v135_v20 }
 0x12e   :  { %v137_v22 = vadd.f32 1e-05, %v136_v21 }
 0x130   :  { %4607 = vrsqrt.f32 %v137_v22 }
 0x13a   :  { %v4608_v23 = vpop.eup %4607 }
 0x13b   :  { %v139_v25 = vmul.f32 %v4608_v23, %v131_v4 }
 0x13d   :  { %v146_v27 = vmul.f32 %v3943_v24, %v139_v25 }
 0x13f   :  { %v153_v28 = vadd.f32 %v3944_v26, %v146_v27 }
 0x141   :  { %3945 = vmatmul.mubr.msk.f32.vlgmr.msra.gmra.mrb[0].mxu0 %vm125_vm0, %v153_v28 }
 0x142   :  { %4174 = vmatprep.mubr.msk.f32.mxu0 %vm4690_vm1, %v4686_v7 }
 0x214   :  { %v243_v36 = vpop.f32.mrb[0].mxu0 }
 0x215   :  { %v244_v37 = vadd.f32 %v243_v36, %v167_v34  ;;  %v245_v38 = vpop.f32.mrb[1].mxu0 }
 0x216   :  { %v246_v39 = vadd.f32 %v245_v38, %v171_v35 }
 0x217   :  { %248 = vst [vmem:[#allocation2] sm:$0xff] %v244_v37 }
 0x218   :  { %250 = vst.msk [vmem:[#allocation2 + $0x8] sm:$0xff] %vm249_vm2, %v246_v39 }
 0x21e   :  { %v424_v40 = vld [vmem:[#allocation2] sm:$0xf]  ;;  %v1125_v42 = vld [vmem:[#allocation2] sm:$0xf0] }
 0x21f   :  { %v251_v41 = vld [vmem:[#allocation2] sm:$0xf]  ;;  %427 = vrot.lane.b32.xlu0 %v424_v40, %s4691_s22  ;;  %v1128_v43 = vrot.slane %v1125_v42, 4  ;;  %v1303_v44 = vld [vmem:[#allocation2] sm:$0xf0] }
 0x220   :  { %254 = vrot.lane.b32.xlu1 %v251_v41, %s4692_s23  ;;  %v1306_v45 = vrot.slane %v1303_v44, 4  ;;  %v601_v46 = vld [vmem:[#allocation2] sm:$0xf]  ;;  %v1481_v47 = vld [vmem:[#allocation2] sm:$0xf0] }
 0x221   :  { %v1484_v48 = vrot.slane %v1481_v47, 4  ;;  %v778_v49 = vld [vmem:[#allocation2] sm:$0xf]  ;;  %v955_v50 = vld [vmem:[#allocation2] sm:$0xf0] }
 0x222   :  { %v958_v51 = vrot.slane %v955_v50, 4  ;;  %v252_v54 = vld [vmem:[#allocation2 + $0x8] sm:$0xf] }
 0x223   :  { %1129 = vrot.lane.b32.xlu0 %v1128_v43, %s4691_s22  ;;  %v779_v42 = vld [vmem:[#allocation2 + $0x8] sm:$0xf] }
 0x224   :  { %429 = vrot.lane.b32.xlu1 %v424_v40, %s4693_s24  ;;  %v602_v40 = vld [vmem:[#allocation2 + $0x8] sm:$0xf] }
 0x227   :  { %1307 = vrot.lane.b32.xlu0 %v1306_v45, %s4694_s25 }
 0x228   :  { %606 = vrot.lane.b32.xlu1 %v601_v46, %s4695_s26 }
 0x22b   :  { %1485 = vrot.lane.b32.xlu0 %v1484_v48, %s4696_s27 }
 0x22c   :  { %604 = vrot.lane.b32.xlu1 %v601_v46, %s4694_s25 }
 0x230   :  { %783 = vrot.lane.b32.xlu1 %v778_v49, %s4697_s28 }
 0x234   :  { %781 = vrot.lane.b32.xlu1 %v778_v49, %s4696_s27 }
 0x238   :  { %959 = vrot.lane.b32.xlu1 %v958_v51, %s4692_s23 }
 0x23c   :  { %1131 = vrot.lane.b32.xlu1 %v1128_v43, %s4693_s24 }
 0x240   :  { %1309 = vrot.lane.b32.xlu1 %v1306_v45, %s4695_s26 }
 0x244   :  { %1487 = vrot.lane.b32.xlu1 %v1484_v48, %s4697_s28 }
 0x291   :  { %v428_v55 = vpop.permute.xlu0 %427 }
 0x292   :  { %v255_v52 = vpop.permute.xlu1 %254 }
 0x293   :  { %4163 = vmatpush3.xpose.msk.msra.mxu1 %vm256_vm3, %v255_v52 }
 0x294   :  { %4167 = vmatprep.subr.mxu1 %v4686_v7 }
 0x295   :  { %v1130_v61 = vpop.permute.xlu0 %1129 }
 0x296   :  { %4165 = vmatmul.mubr.msk.f32.vlgmr.msra.gmra.mrb[0].mxu1 %vm256_vm3, %v251_v41  ;;  %v430_v53 = vpop.permute.xlu1 %429  ;;  %v425_v41 = vld [vmem:[#allocation2 + $0x8] sm:$0xf] }
 0x297   :  { %4168 = vmatpush3.msk.msra.mxu1 %vm348_vm4, %v252_v54  ;;  %4173 = vmatpush3.xpose.msk.msra.mxu0 %vm256_vm3, %v430_v53 }
 0x298   :  { %4182 = vmatprep.subr.mxu0 %v4686_v7  ;;  %4169 = vmatprep.mubr.msk.f32.mxu1 %vm4690_vm1, %v4686_v7 }
 0x299   :  { %4177 = vmatprep.subr.mxu1 %v4686_v7  ;;  %v1308_v1 = vpop.permute.xlu0 %1307 }
 0x29a   :  { %4175 = vmatmul.mubr.msk.f32.vlgmr.msra.gmra.mrb[2].mxu0 %vm256_vm3, %v428_v55  ;;  %v607_v56 = vpop.permute.xlu1 %606 }
 0x29b   :  { %4183 = vmatpush3.xpose.msk.msra.mxu0 %vm256_vm3, %v607_v56  ;;  %4184 = vmatprep.mubr.msk.f32.mxu0 %vm4690_vm1, %v4686_v7 }
 0x29c   :  { %4192 = vmatprep.subr.mxu0 %v4686_v7 }
 0x29d   :  { %v1486_v3 = vpop.permute.xlu0 %1485 }
 0x29e   :  { %v605_v57 = vpop.permute.xlu1 %604 }
 0x29f   :  { %4185 = vmatmul.mubr.msk.f32.vlgmr.msra.gmra.mrb[4].mxu0 %vm256_vm3, %v605_v57 }
 0x2a0   :  { %4194 = vmatprep.mubr.msk.f32.mxu0 %vm4690_vm1, %v4686_v7 }
 0x2a2   :  { %v784_v58 = vpop.permute.xlu1 %783 }
 0x2a3   :  { %4193 = vmatpush3.xpose.msk.msra.mxu0 %vm256_vm3, %v784_v58 }
 0x2a4   :  { %4202 = vmatprep.subr.mxu0 %v4686_v7 }
 0x2a6   :  { %v782_v59 = vpop.permute.xlu1 %781 }
 0x2a7   :  { %4195 = vmatmul.mubr.msk.f32.vlgmr.msra.gmra.mrb[6].mxu0 %vm256_vm3, %v782_v59 }
 0x2a8   :  { %4204 = vmatprep.mubr.msk.f32.mxu0 %vm4690_vm1, %v4686_v7 }
 0x2aa   :  { %v960_v60 = vpop.permute.xlu1 %959 }
 0x2ab   :  { %4203 = vmatpush3.xpose.msk.msra.mxu0 %vm256_vm3, %v960_v60 }
 0x2ac   :  { %4212 = vmatprep.subr.mxu0 %v4686_v7 }
 0x2ae   :  { %4205 = vmatmul.mubr.msk.f32.vlgmr.msra.gmra.mrb[8].mxu0 %vm256_vm3, %v958_v51  ;;  %v1132_v62 = vpop.permute.xlu1 %1131 }
 0x2af   :  { %4213 = vmatpush3.xpose.msk.msra.mxu0 %vm256_vm3, %v1132_v62  ;;  %4214 = vmatprep.mubr.msk.f32.mxu0 %vm4690_vm1, %v4686_v7 }
 0x2b0   :  { %4222 = vmatprep.subr.mxu0 %v4686_v7 }
 0x2b2   :  { %4215 = vmatmul.mubr.msk.f32.vlgmr.msra.gmra.mrb[10].mxu0 %vm256_vm3, %v1130_v61  ;;  %v1310_v63 = vpop.permute.xlu1 %1309 }
 0x2b3   :  { %4223 = vmatpush3.xpose.msk.msra.mxu0 %vm256_vm3, %v1310_v63  ;;  %4224 = vmatprep.mubr.msk.f32.mxu0 %vm4690_vm1, %v4686_v7 }
 0x2b4   :  { %4232 = vmatprep.subr.mxu0 %v4686_v7 }
 0x2b6   :  { %4225 = vmatmul.mubr.msk.f32.vlgmr.msra.gmra.mrb[12].mxu0 %vm256_vm3, %v1308_v1  ;;  %v1488_v2 = vpop.permute.xlu1 %1487 }
 0x2b7   :  { %4233 = vmatpush3.xpose.msk.msra.mxu0 %vm256_vm3, %v1488_v2  ;;  %4234 = vmatprep.mubr.msk.f32.mxu0 %vm4690_vm1, %v4686_v7 }
 0x2ba   :  { %4235 = vmatmul.mubr.msk.f32.vlgmr.msra.gmra.mrb[14].mxu0 %vm256_vm3, %v1486_v3 }
 0x2bb   :  { %4258 = vmatprep.mubr.msk.f32.mxu0 %vm4690_vm1, %v4686_v7 }
 0x369   :  { %v327_v4 = vpop.f32.mrb[0].mxu1 }
 0x36a   :  { %v331_v5 = vmul.f32 0.25, %v327_v4  ;;  %v4166_v6 = vpop.f32.mrb[1].mxu1 }
 0x36c   :  { %v333_v8 = vsel %vm332_vm5, %v331_v5, -inf }
 0x36d   :  { %334 = vmax.xlane.f32.xlu1 %v333_v8  ;;  %v501_v9 = vpop.f32.mrb[2].mxu0 }
 0x36e   :  { %v505_v10 = vmul.f32 0.25, %v501_v9  ;;  %v4176_v11 = vpop.f32.mrb[3].mxu0 }
 0x370   :  { %v506_v12 = vsel %vm332_vm5, %v505_v10, -inf }
 0x371   :  { %507 = vmax.xlane.f32.xlu0 %v506_v12 }
 0x372   :  { %v678_v13 = vpop.f32.mrb[4].mxu0 }
 0x373   :  { %v682_v14 = vmul.f32 0.25, %v678_v13  ;;  %v4186_v15 = vpop.f32.mrb[5].mxu0 }
 0x375   :  { %v683_v16 = vsel %vm332_vm5, %v682_v14, -inf }
 0x376   :  { %684 = vmax.xlane.f32.xlu0 %v683_v16  ;;  %v1126_v16 = vld [vmem:[#allocation2 + $0x8] sm:$0xf0] }
 0x37a   :  { %v855_v17 = vpop.f32.mrb[6].mxu0 }
 0x37b   :  { %v859_v18 = vmul.f32 0.25, %v855_v17  ;;  %v4196_v19 = vpop.f32.mrb[7].mxu0  ;;  %v1220_v17 = vrot.slane %v1126_v16, 4  ;;  %v1662_v16 = vld [vmem:[%s3918_s2 + $0x10] sm:$0xff] }
 0x37d   :  { %v860_v20 = vsel %vm332_vm5, %v859_v18, -inf }
 0x37e   :  { %861 = vmax.xlane.f32.xlu1 %v860_v20 }
 0x381   :  { %v1031_v21 = vpop.f32.mrb[8].mxu0 }
 0x382   :  { %v1035_v22 = vmul.f32 0.25, %v1031_v21  ;;  %v4206_v23 = vpop.f32.mrb[9].mxu0 }
 0x384   :  { %v1036_v24 = vsel %vm332_vm5, %v1035_v22, -inf }
 0x385   :  { %1037 = vmax.xlane.f32.xlu0 %v1036_v24  ;;  %v1203_v25 = vpop.f32.mrb[10].mxu0 }
 0x386   :  { %v1207_v26 = vmul.f32 0.25, %v1203_v25  ;;  %v4216_v27 = vpop.f32.mrb[11].mxu0  ;;  %v1482_v25 = vld [vmem:[#allocation2 + $0x8] sm:$0xf0] }
 0x388   :  { %v1208_v28 = vsel %vm332_vm5, %v1207_v26, -inf }
 0x389   :  { %1209 = vmax.xlane.f32.xlu1 %v1208_v28  ;;  %v1381_v29 = vpop.f32.mrb[12].mxu0 }
 0x38a   :  { %v4827_v32 = vmul.f32 0.25, %v1381_v29  ;;  %v4226_v34 = vpop.f32.mrb[13].mxu0 }
 0x38c   :  { %v1386_v35 = vsel %vm332_vm5, %v4827_v32, -inf }
 0x38d   :  { %1387 = vmax.xlane.f32.xlu0 %v1386_v35  ;;  %v1559_v36 = vpop.f32.mrb[14].mxu0 }
 0x38e   :  { %v1563_v37 = vmul.f32 0.25, %v1559_v36  ;;  %v4236_v38 = vpop.f32.mrb[15].mxu0 }
 0x390   :  { %v1564_v39 = vsel %vm332_vm5, %v1563_v37, -inf }
 0x391   :  { %1565 = vmax.xlane.f32.xlu1 %v1564_v39 }
 0x3a2   :  { %695 = vrot.lane.b32.xlu1 %v602_v40, %s4694_s25 }
 0x3a3   :  { %518 = vrot.lane.b32.xlu0 %v425_v41, %s4691_s22 }
 0x3a6   :  { %872 = vrot.lane.b32.xlu1 %v779_v42, %s4696_s27 }
 0x3fa   :  { %v335_v43 = vpop.xlane.xlu1 %334 }
 0x3fb   :  { %v336_v44 = vsub.f32 %v331_v5, %v335_v43 }
 0x3fd   :  { %v337_v45 = vmul.f32 1.442695, %v336_v44  ;;  %v956_v44 = vld [vmem:[#allocation2 + $0x8] sm:$0xf0] }
 0x3fe   :  { %v508_v46 = vpop.xlane.xlu0 %507 }
 0x3ff   :  { %4609 = vpow2.f32 %v337_v45  ;;  %v509_v47 = vsub.f32 %v505_v10, %v508_v46 }
 0x401   :  { %v510_v48 = vmul.f32 1.442695, %v509_v47 }
 0x403   :  { %4611 = vpow2.f32 %v510_v48  ;;  %v685_v49 = vpop.xlane.xlu0 %684  ;;  %v1048_v48 = vrot.slane %v956_v44, 4 }
 0x404   :  { %v686_v50 = vsub.f32 %v682_v14, %v685_v49 }
 0x406   :  { %v687_v51 = vmul.f32 1.442695, %v686_v50 }
 0x408   :  { %4613 = vpow2.f32 %v687_v51 }
 0x409   :  { %v4835_v52 = vpop.eup %4609 }
 0x40a   :  { %v339_v53 = vsel %vm332_vm5, %v4835_v52, 0.0 }
 0x40b   :  { %340 = vadd.xlane.f32.xlu0 %v339_v53  ;;  %v862_v54 = vpop.xlane.xlu1 %861 }
 0x40c   :  { %v863_v55 = vsub.f32 %v859_v18, %v862_v54  ;;  %v1304_v18 = vld [vmem:[#allocation2 + $0x8] sm:$0xf0] }
 0x40d   :  { %v4839_v56 = vpop.eup %4611  ;;  %v1398_v19 = vrot.slane %v1304_v18, 4 }
 0x40e   :  { %v864_v57 = vmul.f32 1.442695, %v863_v55  ;;  %v512_v58 = vsel %vm332_vm5, %v4839_v56, 0.0 }
 0x40f   :  { %513 = vadd.xlane.f32.xlu1 %v512_v58 }
 0x410   :  { %4615 = vpow2.f32 %v864_v57 }
 0x412   :  { %v4843_v59 = vpop.eup %4613  ;;  %v1038_v60 = vpop.xlane.xlu0 %1037 }
 0x413   :  { %v1039_v61 = vsub.f32 %v1035_v22, %v1038_v60  ;;  %v689_v62 = vsel %vm332_vm5, %v4843_v59, 0.0 }
 0x414   :  { %690 = vadd.xlane.f32.xlu0 %v689_v62 }
 0x415   :  { %v1040_v63 = vmul.f32 1.442695, %v1039_v61 }
 0x416   :  { %v1210_v1 = vpop.xlane.xlu1 %1209 }
 0x417   :  { %4617 = vpow2.f32 %v1040_v63  ;;  %v1211_v2 = vsub.f32 %v1207_v26, %v1210_v1  ;;  %v1576_v26 = vrot.slane %v1482_v25, 4 }
 0x419   :  { %v1212_v3 = vmul.f32 1.442695, %v1211_v2 }
 0x41a   :  { %v4847_v4 = vpop.eup %4615  ;;  %v1388_v20 = vpop.xlane.xlu0 %1387 }
 0x41b   :  { %4619 = vpow2.f32 %v1212_v3  ;;  %v866_v5 = vsel %vm332_vm5, %v4847_v4, 0.0  ;;  %v1389_v21 = vsub.f32 %v4827_v32, %v1388_v20  ;;  %v1665_v20 = vld [vmem:[%s3918_s2 + $0x28] sm:$0xff] }
 0x41c   :  { %867 = vadd.xlane.f32.xlu1 %v866_v5 }
 0x41d   :  { %v1390_v22 = vmul.f32 1.442695, %v1389_v21  ;;  %v1666_v21 = vld [vmem:[%s3918_s2 + $0x30] sm:$0xff] }
 0x41e   :  { %v1566_v6 = vpop.xlane.xlu1 %1565  ;;  %v519_v28 = vpop.permute.xlu0 %518 }
 0x41f   :  { %v1567_v8 = vsub.f32 %v1563_v37, %v1566_v6  ;;  %v4698_v6 = vmov 0.0|0.0  }
 0x420   :  { %4471 = vmatprep.subr.bf16.mxu0 %v4698_v6 }
 0x421   :  { %v4851_v9 = vpop.eup %4617  ;;  %v1568_v10 = vmul.f32 1.442695, %v1567_v8 }
 0x422   :  { %v1042_v11 = vsel %vm332_vm5, %v4851_v9, 0.0  ;;  %v696_v27 = vpop.permute.xlu1 %695 }
 0x423   :  { %4621 = vpow2.f32 %v1568_v10  ;;  %1043 = vadd.xlane.f32.xlu0 %v1042_v11  ;;  %v1661_v10 = vld [vmem:[%s3918_s2 + $0x8] sm:$0xff] }
 0x424   :  { %4623 = vpow2.f32 %v1390_v22 }
 0x425   :  { %v4855_v12 = vpop.eup %4619 }
 0x426   :  { %v1214_v13 = vsel %vm332_vm5, %v4855_v12, 0.0  ;;  %v873_v29 = vpop.permute.xlu1 %872 }
 0x427   :  { %1215 = vadd.xlane.f32.xlu1 %v1214_v13 }
 0x42d   :  { %v4859_v14 = vpop.eup %4621 }
 0x42e   :  { %v1570_v15 = vsel %vm332_vm5, %v4859_v14, 0.0  ;;  %v4866_v23 = vpop.eup %4623 }
 0x42f   :  { %1571 = vadd.xlane.f32.xlu1 %v1570_v15  ;;  %v1392_v24 = vsel %vm332_vm5, %v4866_v23, 0.0 }
 0x439   :  { %1221 = vrot.lane.b32.xlu0 %v1220_v17, %s4691_s22  ;;  %v1663_v17 = vld [vmem:[%s3918_s2 + $0x18] sm:$0xff] }
 0x43a   :  { %v4475_v18 = vpack.c.bf16 %v1663_v17, %v1662_v16  ;;  %v1880_v16 = vld [vmem:[%s4959_s14 + $0x48] sm:$0xff] }
 0x440   :  { %1399 = vrot.lane.b32.xlu1 %v1398_v19, %s4694_s25  ;;  %v1664_v19 = vld [vmem:[%s3918_s2 + $0x20] sm:$0xff] }
 0x441   :  { %v4478_v22 = vpack.c.bf16 %v1665_v20, %v1664_v19  ;;  %v1882_v19 = vld [vmem:[%s4959_s14 + $0x58] sm:$0xff] }
 0x458   :  { %1393 = vadd.xlane.f32.xlu0 %v1392_v24 }
 0x46e   :  { %1577 = vrot.lane.b32.xlu0 %v1576_v26, %s4696_s27 }
 0x498   :  { %v341_v34 = vpop.xlane.xlu0 %340 }
 0x499   :  { %4625 = vrcp.f32 %v341_v34 }
 0x49c   :  { %v514_v35 = vpop.xlane.xlu1 %513 }
 0x49d   :  { %4627 = vrcp.f32 %v514_v35 }
 0x4a1   :  { %v691_v32 = vpop.xlane.xlu0 %690 }
 0x4a2   :  { %4629 = vrcp.f32 %v691_v32 }
 0x4a3   :  { %v4626_v36 = vpop.eup %4625 }
 0x4a4   :  { %v343_v37 = vmul.f32 %v4626_v36, %v4835_v52 }
 0x4a6   :  { %4170 = vmatmul.mubr.msk.f32.vlgmr.msra.gmra.mrb[2].mxu1 %vm344_vm6, %v343_v37 }
 0x4a7   :  { %v4628_v38 = vpop.eup %4627  ;;  %4178 = vmatpush3.msk.msra.mxu1 %vm348_vm4, %v519_v28  ;;  %4179 = vmatprep.mubr.msk.f32.mxu1 %vm4690_vm1, %v4686_v7 }
 0x4a8   :  { %v516_v39 = vmul.f32 %v4628_v38, %v4839_v56  ;;  %4187 = vmatprep.subr.mxu1 %v4686_v7 }
 0x4a9   :  { %v868_v40 = vpop.xlane.xlu1 %867 }
 0x4aa   :  { %4631 = vrcp.f32 %v868_v40  ;;  %4180 = vmatmul.mubr.msk.f32.vlgmr.msra.gmra.mrb[4].mxu1 %vm344_vm6, %v516_v39  ;;  %v3978_v39 = vld [vmem:[%s3919_s6] ss:$0 sm:$0xff] }
 0x4ab   :  { %4188 = vmatpush3.msk.msra.mxu1 %vm348_vm4, %v696_v27  ;;  %4189 = vmatprep.mubr.msk.f32.mxu1 %vm4690_vm1, %v4686_v7 }
 0x4ac   :  { %v4630_v41 = vpop.eup %4629  ;;  %4197 = vmatprep.subr.mxu1 %v4686_v7 }
 0x4ad   :  { %v693_v42 = vmul.f32 %v4630_v41, %v4843_v59 }
 0x4af   :  { %4190 = vmatmul.mubr.msk.f32.vlgmr.msra.gmra.mrb[6].mxu1 %vm344_vm6, %v693_v42 }
 0x4b0   :  { %4198 = vmatpush3.msk.msra.mxu1 %vm348_vm4, %v873_v29  ;;  %v1044_v43 = vpop.xlane.xlu0 %1043  ;;  %4199 = vmatprep.mubr.msk.f32.mxu1 %vm4690_vm1, %v4686_v7 }
 0x4b1   :  { %4633 = vrcp.f32 %v1044_v43  ;;  %4207 = vmatprep.subr.mxu1 %v4686_v7 }
 0x4b4   :  { %v4632_v45 = vpop.eup %4631  ;;  %v1216_v46 = vpop.xlane.xlu1 %1215 }
 0x4b5   :  { %v870_v47 = vmul.f32 %v4632_v45, %v4847_v4  ;;  %4635 = vrcp.f32 %v1216_v46  ;;  %v1222_v52 = vpop.permute.xlu0 %1221 }
 0x4b7   :  { %4200 = vmatmul.mubr.msk.f32.vlgmr.msra.gmra.mrb[8].mxu1 %vm344_vm6, %v870_v47 }
 0x4b8   :  { %4208 = vmatpush3.msk.msra.mxu1 %vm348_vm4, %v1048_v48  ;;  %4209 = vmatprep.mubr.msk.f32.mxu1 %vm4690_vm1, %v4686_v7 }
 0x4b9   :  { %4217 = vmatprep.subr.mxu1 %v4686_v7 }
 0x4bb   :  { %v4634_v49 = vpop.eup %4633 }
 0x4bc   :  { %v1046_v50 = vmul.f32 %v4634_v49, %v4851_v9  ;;  %v1572_v51 = vpop.xlane.xlu1 %1571  ;;  %v1660_v9 = vld [vmem:[%s3918_s2] sm:$0xff] }
 0x4be   :  { %4210 = vmatmul.mubr.msk.f32.vlgmr.msra.gmra.mrb[10].mxu1 %vm344_vm6, %v1046_v50  ;;  %v1778_v50 = vld [vmem:[%s3922_s10] sm:$0xff] }
 0x4bf   :  { %v4636_v53 = vpop.eup %4635  ;;  %4218 = vmatpush3.msk.msra.mxu1 %vm348_vm4, %v1222_v52  ;;  %4219 = vmatprep.mubr.msk.f32.mxu1 %vm4690_vm1, %v4686_v7 }
 0x4c0   :  { %v1218_v54 = vmul.f32 %v4636_v53, %v4855_v12  ;;  %v1400_v55 = vpop.permute.xlu1 %1399  ;;  %4227 = vmatprep.subr.mxu1 %v4686_v7  ;;  %v4472_v12 = vpack.c.bf16 %v1661_v10, %v1660_v9  ;;  %v1781_v53 = vld [vmem:[%s3922_s10 + $0x18] sm:$0xff]  ;;  %v1875_v9 = vld [vmem:[%s4959_s14 + $0x20] sm:$0xff]  ;;  %v1876_v10 = vld [vmem:[%s4959_s14 + $0x28] sm:$0xff] }
 0x4c2   :  { %4220 = vmatmul.mubr.msk.f32.vlgmr.msra.gmra.mrb[12].mxu1 %vm344_vm6, %v1218_v54  ;;  %4473 = vmatpush3.bf16.msra.mxu0 %v4472_v12  ;;  %v1877_v12 = vld [vmem:[%s4959_s14 + $0x30] sm:$0xff] }
 0x4c3   :  { %4228 = vmatpush3.msk.msra.mxu1 %vm348_vm4, %v1400_v55  ;;  %4229 = vmatprep.mubr.msk.f32.mxu1 %vm4690_vm1, %v4686_v7  ;;  %v1871_v55 = vld [vmem:[%s4959_s14] sm:$0xff] }
 0x4c4   :  { %4237 = vmatprep.subr.mxu1 %v4686_v7  ;;  %4474 = vmatprep.subr.bf16.mxu0 %v4698_v6 }
 0x4c6   :  { %4476 = vmatpush3.bf16.msra.mxu0 %v4475_v18  ;;  %v1881_v18 = vld [vmem:[%s4959_s14 + $0x50] sm:$0xff] }
 0x4c7   :  { %4477 = vmatprep.subr.bf16.mxu0 %v4698_v6  ;;  %v4505_v20 = vpack.c.bf16 %v1882_v19, %v1881_v18 }
 0x4ca   :  { %4479 = vmatpush3.bf16.msra.mxu0 %v4478_v22  ;;  %v1884_v22 = vld [vmem:[%s4959_s14 + $0x68] sm:$0xff] }
 0x4cb   :  { %4480 = vmatprep.subr.bf16.mxu0 %v4698_v6 }
 0x4e5   :  { %v1394_v56 = vpop.xlane.xlu0 %1393 }
 0x4e6   :  { %4637 = vrcp.f32 %v1394_v56  ;;  %v1872_v56 = vld [vmem:[%s4959_s14 + $0x8] sm:$0xff] }
 0x4e7   :  { %4639 = vrcp.f32 %v1572_v51  ;;  %v1780_v51 = vld [vmem:[%s3922_s10 + $0x10] sm:$0xff] }
 0x4e8   :  { %v4487_v54 = vpack.c.bf16 %v1781_v53, %v1780_v51 }
 0x4e9   :  { %v1578_v60 = vpop.permute.xlu0 %1577 }
 0x4f0   :  { %v4638_v57 = vpop.eup %4637 }
 0x4f1   :  { %v1396_v58 = vmul.f32 %v4638_v57, %v4866_v23  ;;  %v4640_v59 = vpop.eup %4639  ;;  %v1667_v23 = vld [vmem:[%s3918_s2 + $0x38] sm:$0xff]  ;;  %v4490_v57 = vpack.c.bf16 %v1872_v56, %v1871_v55  ;;  %v1994_v55 = vld [vmem:[%s3928_s11] sm:$0xff] }
 0x4f2   :  { %v1574_v61 = vmul.f32 %v4640_v59, %v4859_v14  ;;  %v4481_v24 = vpack.c.bf16 %v1667_v23, %v1666_v21  ;;  %v1883_v21 = vld [vmem:[%s4959_s14 + $0x60] sm:$0xff] }
 0x4f3   :  { %4230 = vmatmul.mubr.msk.f32.vlgmr.msra.gmra.mrb[14].mxu1 %vm344_vm6, %v1396_v58  ;;  %v4508_v23 = vpack.c.bf16 %v1884_v22, %v1883_v21 }
 0x4f4   :  { %4238 = vmatpush3.msk.msra.mxu1 %vm348_vm4, %v1578_v60  ;;  %4239 = vmatprep.mubr.msk.f32.mxu1 %vm4690_vm1, %v4686_v7 }
 0x4f5   :  { %4489 = vmatprep.subr.bf16.mxu1 %v4698_v6  ;;  %4482 = vmatpush3.bf16.msra.mxu0 %v4481_v24  ;;  %v1885_v24 = vld [vmem:[%s4959_s14 + $0x70] sm:$0xff] }
 0x4f6   :  { %4483 = vmatprep.subr.bf16.mxu0 %v4698_v6 }
 0x4f7   :  { %4240 = vmatmul.mubr.msk.f32.vlgmr.msra.gmra.mrb[16].mxu1 %vm344_vm6, %v1574_v61 }
 0x4f8   :  { %4304 = vmatprep.mubr.msk.f32.mxu1 %vm4690_vm1, %v4686_v7  ;;  %4491 = vmatpush3.bf16.msra.mxu1 %v4490_v57  ;;  %v1996_v57 = vld [vmem:[%s3928_s11 + $0x10] sm:$0xff] }
 0x4f9   :  { %4492 = vmatprep.subr.bf16.mxu1 %v4698_v6 }
 0x579   :  { %v418_v62 = vpop.f32.mrb[2].mxu1 }
 0x57a   :  { %423 = vst.msk [vmem:[#allocation3] sm:$0xf] %vm422_vm7, %v418_v62  ;;  %v4171_v63 = vpop.f32.mrb[3].mxu1  ;;  %v3980_v62 = vld [vmem:[%s3920_s18] ss:$0 sm:$0xff] }
 0x57d   :  { %v591_v1 = vpop.f32.mrb[4].mxu1 }
 0x57e   :  { %596 = vrot.lane.b32.xlu1 %v591_v1, %s4697_s28  ;;  %v4181_v2 = vpop.f32.mrb[5].mxu1  ;;  %v3981_v1 = vld [vmem:[%s3921_s29] ss:$0 sm:$0xff]  ;;  %s3929_s29 = sld [smem:[%s5252_s0 + %s4697_s28]]  }
 0x582   :  { %v768_v3 = vpop.f32.mrb[6].mxu1 }
 0x583   :  { %773 = vrot.lane.b32.xlu1 %v768_v3, %s4695_s26  ;;  %v4191_v4 = vpop.f32.mrb[7].mxu1 }
 0x584   :  { %v1873_v4 = vld [vmem:[%s4959_s14 + $0x10] sm:$0xff] }
 0x58a   :  { %v945_v5 = vpop.f32.mrb[8].mxu1 }
 0x58b   :  { %950 = vrot.lane.b32.xlu1 %v945_v5, %s4693_s24  ;;  %v4201_v8 = vpop.f32.mrb[9].mxu1  ;;  %v1874_v5 = vld [vmem:[%s4959_s14 + $0x18] sm:$0xff] }
 0x58c   :  { %v4493_v8 = vpack.c.bf16 %v1874_v5, %v1873_v4 }
 0x58e   :  { %4494 = vmatpush3.bf16.msra.mxu1 %v4493_v8  ;;  %v3985_v8 = vld [vmem:[%s3926_s15] ss:$0 sm:$0xff] }
 0x58f   :  { %4495 = vmatprep.subr.bf16.mxu1 %v4698_v6 }
 0x591   :  { %v1120_v11 = vpop.f32.mrb[10].mxu1 }
 0x592   :  { %1124 = vst.msk [vmem:[#allocation3 + $0x4] sm:$0xf] %vm422_vm7, %v1120_v11  ;;  %v4211_v13 = vpop.f32.mrb[11].mxu1  ;;  %v4496_v11 = vpack.c.bf16 %v1876_v10, %v1875_v9  ;;  %v3986_v10 = vld [vmem:[%s3927_s19] ss:$0 sm:$0xff] }
 0x593   :  { %v1878_v13 = vld [vmem:[%s4959_s14 + $0x38] sm:$0xff] }
 0x594   :  { %4497 = vmatpush3.bf16.msra.mxu1 %v4496_v11 }
 0x595   :  { %v1294_v14 = vpop.f32.mrb[12].mxu1  ;;  %4498 = vmatprep.subr.bf16.mxu1 %v4698_v6 }
 0x596   :  { %1299 = vrot.lane.b32.xlu0 %v1294_v14, %s4697_s28  ;;  %v4221_v15 = vpop.f32.mrb[13].mxu1  ;;  %v4499_v14 = vpack.c.bf16 %v1878_v13, %v1877_v12  ;;  %v2002_v13 = vld [vmem:[%s3929_s29] sm:$0x3] }
 0x597   :  { %v1879_v15 = vld [vmem:[%s4959_s14 + $0x40] sm:$0xff] }
 0x598   :  { %4500 = vmatpush3.bf16.msra.mxu1 %v4499_v14  ;;  %v4502_v17 = vpack.c.bf16 %v1880_v16, %v1879_v15  ;;  %v2007_v14 = vrot.slane %v2002_v13, %v166_v31  ;;  %v2011_v15 = vrot.slane %v2002_v13, %v170_v33 }
 0x599   :  { %4501 = vmatprep.subr.bf16.mxu1 %v4698_v6 }
 0x59c   :  { %4503 = vmatpush3.bf16.msra.mxu1 %v4502_v17 }
 0x59d   :  { %4504 = vmatprep.subr.bf16.mxu1 %v4698_v6 }
 0x5a0   :  { %4506 = vmatpush3.bf16.msra.mxu1 %v4505_v20 }
 0x5a1   :  { %4507 = vmatprep.subr.bf16.mxu1 %v4698_v6 }
 0x5a4   :  { %4509 = vmatpush3.bf16.msra.mxu1 %v4508_v23 }
 0x5a5   :  { %4510 = vmatprep.subr.bf16.mxu1 %v4698_v6 }
 0x5c6   :  { %v1472_v25 = vpop.f32.mrb[14].mxu1 }
 0x5c7   :  { %1477 = vrot.lane.b32.xlu0 %v1472_v25, %s4695_s26  ;;  %v4231_v26 = vpop.f32.mrb[15].mxu1  ;;  %v1886_v25 = vld [vmem:[%s4959_s14 + $0x78] sm:$0xff] }
 0x5c8   :  { %v4511_v26 = vpack.c.bf16 %v1886_v25, %v1885_v24 }
 0x5ca   :  { %v1650_v27 = vpop.f32.mrb[16].mxu1  ;;  %4512 = vmatpush3.bf16.msra.mxu1 %v4511_v26 }
 0x5cb   :  { %1655 = vrot.lane.b32.xlu0 %v1650_v27, %s4693_s24  ;;  %v4241_v28 = vpop.f32.mrb[17].mxu1  ;;  %4332 = vmatprep.subr.mxu1 %v4686_v7  ;;  %v3982_v27 = vld [vmem:[%s3923_s3] ss:$0 sm:$0xff]  ;;  %s4720_s3 = smov 26  }
 0x5cc   :  { %s3939_s6 = sld [smem:[%s5252_s0 + %s4720_s3]]  }
 0x5f0   :  { %v597_v29 = vpop.permute.xlu1 %596 }
 0x5f1   :  { %600 = vst.msk [vmem:[#allocation3] sm:$0xf] %vm599_vm8, %v597_v29 }
 0x5f5   :  { %v774_v34 = vpop.permute.xlu1 %773 }
 0x5f6   :  { %777 = vst.msk [vmem:[#allocation3] sm:$0xf] %vm776_vm9, %v774_v34 }
 0x5fd   :  { %v951_v35 = vpop.permute.xlu1 %950 }
 0x5fe   :  { %954 = vst.msk [vmem:[#allocation3] sm:$0xf] %vm953_vm10, %v951_v35 }
 0x608   :  { %v1300_v32 = vpop.permute.xlu0 %1299 }
 0x609   :  { %1302 = vst.msk [vmem:[#allocation3 + $0x4] sm:$0xf] %vm599_vm8, %v1300_v32 }
 0x639   :  { %v1478_v36 = vpop.permute.xlu0 %1477 }
 0x63a   :  { %1480 = vst.msk [vmem:[#allocation3 + $0x4] sm:$0xf] %vm776_vm9, %v1478_v36 }
 0x63d   :  { %v1656_v37 = vpop.permute.xlu0 %1655 }
 0x63e   :  { %1658 = vst.msk [vmem:[#allocation3 + $0x4] sm:$0xf] %vm953_vm10, %v1656_v37 }
 0x645   :  { %v1659_v38 = vld [vmem:[#allocation3] sm:$0xff] }
 0x646   :  { %4259 = vmatmul.mubr.msk.f32.vlgmr.msra.gmra.mrb[16].mxu0 %vm249_vm2, %v1659_v38 }
 0x647   :  { %4269 = vmatprep.mubr.msk.f32.mxu0 %vm4690_vm1, %v4686_v7 }
 0x719   :  { %v1744_v40 = vpop.f32.mrb[16].mxu0 }
 0x71a   :  { %v1745_v41 = vadd.f32 %v3978_v39, %v1744_v40  ;;  %v4260_v42 = vpop.f32.mrb[17].mxu0 }
 0x71c   :  { %v4946_v43 = vadd.f32 %v1745_v41, %v4731_v0  ;;  %v1779_v0 = vld [vmem:[%s3922_s10 + $0x8] sm:$0xff] }
 0x71d   :  { %v4484_v52 = vpack.c.bf16 %v1779_v0, %v1778_v50 }
 0x71e   :  { %v1751_v44 = vsel %vm125_vm0, %v4946_v43, 0.0 }
 0x71f   :  { %1752 = vadd.xlane.f32.xlu1 %v1751_v44  ;;  %4485 = vmatpush3.bf16.msra.mxu0 %v4484_v52  ;;  %v3984_v44 = vld [vmem:[%s3925_s7] ss:$0 sm:$0xff]  ;;  %s4721_s7 = smov 28  }
 0x720   :  { %4486 = vmatprep.subr.bf16.mxu0 %v4698_v6  ;;  %s3941_s10 = sld [smem:[%s5252_s0 + %s4721_s7]]  }
 0x723   :  { %4488 = vmatpush3.bf16.msra.mxu0 %v4487_v54  ;;  %v1995_v54 = vld [vmem:[%s3928_s11 + $0x8] sm:$0xff] }
 0x7ac   :  { %v1753_v45 = vpop.xlane.xlu1 %1752 }
 0x7ad   :  { %v1754_v46 = vmul.f32 0.03125, %v1753_v45 }
 0x7af   :  { %v1755_v47 = vsub.f32 %v4946_v43, %v1754_v46 }
 0x7b1   :  { %v1756_v48 = vmul.f32 %v1755_v47, %v1755_v47 }
 0x7b3   :  { %v1757_v49 = vsel %vm125_vm0, %v1756_v48, 0.0 }
 0x7b4   :  { %1758 = vadd.xlane.f32.xlu0 %v1757_v49 }
 0x841   :  { %v1759_v58 = vpop.xlane.xlu0 %1758 }
 0x842   :  { %v1760_v59 = vmul.f32 0.03125, %v1759_v58  ;;  %v1999_v58 = vld [vmem:[%s3928_s11 + $0x28] sm:$0xff] }
 0x844   :  { %v1761_v60 = vadd.f32 1e-05, %v1760_v59  ;;  %v2001_v59 = vld [vmem:[%s3928_s11 + $0x38] sm:$0xff] }
 0x846   :  { %4641 = vrsqrt.f32 %v1761_v60  ;;  %v4515_v60 = vpack.c.bf16 %v1996_v57, %v1994_v55 }
 0x850   :  { %v4642_v61 = vpop.eup %4641 }
 0x851   :  { %v1763_v63 = vmul.f32 %v4642_v61, %v1755_v47  ;;  %v4517_v61 = vpack.c.bf16 %v2001_v59, %v1999_v58 }
 0x853   :  { %v1770_v2 = vmul.f32 %v3980_v62, %v1763_v63  ;;  %v1998_v62 = vld [vmem:[%s3928_s11 + $0x20] sm:$0xff]  ;;  %v2000_v63 = vld [vmem:[%s3928_s11 + $0x30] sm:$0xff] }
 0x855   :  { %v1777_v3 = vadd.f32 %v3981_v1, %v1770_v2  ;;  %v4519_v1 = vpack.c.bf16 %v2000_v63, %v1998_v62 }
 0x857   :  { %4270 = vmatmul.mubr.msk.f32.vlgmr.msra.gmra.mrb[18].mxu0 %vm125_vm0, %v1777_v3 }
 0x858   :  { %2081 = vmatprep.mubr.f32.mxu0 %v4686_v7 }
 0x92a   :  { %v1858_v28 = vpop.f32.mrb[18].mxu0 }
 0x92b   :  { %v1859_v29 = vadd.f32 %v3982_v27, %v1858_v28  ;;  %v4271_v34 = vpop.f32.mrb[19].mxu0 }
 0x92d   :  { %v1863_v35 = vmul.f32 0.044715, %v1859_v29  ;;  %v1862_v40 = vmul.f32 0.5, %v1859_v29 }
 0x92f   :  { %v1864_v32 = vmul.f32 %v1863_v35, %v1859_v29 }
 0x931   :  { %v1865_v36 = vmul.f32 %v1864_v32, %v1859_v29 }
 0x933   :  { %v1866_v37 = vadd.f32 %v1865_v36, %v1859_v29 }
 0x935   :  { %v1867_v38 = vmul.f32 0.7978846, %v1866_v37 }
 0x937   :  { %4643 = vtanh.f32 %v1867_v38 }
 0x941   :  { %v4644_v39 = vpop.eup %4643 }
 0x942   :  { %v1869_v41 = vadd.f32 1.0, %v4644_v39 }
 0x944   :  { %v1870_v42 = vmul.f32 %v1869_v41, %v1862_v40 }
 0x946   :  { %4305 = vmatmul.mubr.f32.vlgmr.msra.gmra.mrb[18].mxu1 %v1870_v42 }
 0x947   :  { %4334 = vmatprep.mubr.msk.f32.mxu1 %vm4690_vm1, %v4686_v7 }
 0xa19   :  { %v1960_v45 = vpop.f32.mrb[18].mxu1 }
 0xa1a   :  { %v1961_v46 = vadd.f32 %v3984_v44, %v1960_v45  ;;  %v4306_v47 = vpop.f32.mrb[19].mxu1 }
 0xa1c   :  { %v5002_v48 = vadd.f32 %v1961_v46, %v4946_v43  ;;  %v1997_v43 = vld [vmem:[%s3928_s11 + $0x18] sm:$0xff]  ;;  %s4722_s11 = smov 29  }
 0xa1d   :  { %v4513_v56 = vpack.c.bf16 %v1997_v43, %v1995_v54  ;;  %s3942_s14 = sld [smem:[%s5252_s0 + %s4722_s11]]  }
 0xa1e   :  { %v1967_v49 = vsel %vm125_vm0, %v5002_v48, 0.0 }
 0xa1f   :  { %1968 = vadd.xlane.f32.xlu0 %v1967_v49  ;;  %4514 = vmatprep.subr.bf16.mxu0 %v4513_v56 }
 0xa20   :  { %4516 = vmatpush1.bf16.msra.mxu0 %v4515_v60 }
 0xa21   :  { %4518 = vmatprep.subr.bf16.mxu0 %v4517_v61 }
 0xa24   :  { %4520 = vmatpush1.bf16.msra.mxu0 %v4519_v1 }
 0xa25   :  { %4307 = vmatprep.subr.mxu0 %v4686_v7 }
 0xaac   :  { %v1969_v50 = vpop.xlane.xlu0 %1968 }
 0xaad   :  { %v1970_v0 = vmul.f32 0.03125, %v1969_v50 }
 0xaaf   :  { %v1971_v51 = vsub.f32 %v5002_v48, %v1970_v0 }
 0xab1   :  { %v1972_v52 = vmul.f32 %v1971_v51, %v1971_v51 }
 0xab3   :  { %v1973_v53 = vsel %vm125_vm0, %v1972_v52, 0.0 }
 0xab4   :  { %1974 = vadd.xlane.f32.xlu1 %v1973_v53 }
 0xb41   :  { %v1975_v2 = vpop.xlane.xlu1 %1974 }
 0xb42   :  { %v1976_v3 = vmul.f32 0.03125, %v1975_v2 }
 0xb44   :  { %v1977_v4 = vadd.f32 1e-05, %v1976_v3 }
 0xb46   :  { %4645 = vrsqrt.f32 %v1977_v4 }
 0xb50   :  { %v4646_v5 = vpop.eup %4645 }
 0xb51   :  { %v1979_v9 = vmul.f32 %v4646_v5, %v1971_v51 }
 0xb53   :  { %v1986_v11 = vmul.f32 %v3985_v8, %v1979_v9 }
 0xb55   :  { %v1993_v12 = vadd.f32 %v3986_v10, %v1986_v11 }
 0xb57   :  { %3987 = vmatmul.mubr.msk.f32.vlgmr.msra.gmra.mrb[20].mxu0 %vm125_vm0, %v1993_v12 }
 0xb58   :  { %4309 = vmatprep.mubr.msk.f32.mxu0 %vm4690_vm1, %v4686_v7 }
 0xc2a   :  { %v2083_v16 = vpop.f32.mrb[20].mxu0 }
 0xc2b   :  { %v2084_v17 = vadd.f32 %v2083_v16, %v2007_v14  ;;  %v2085_v18 = vpop.f32.mrb[21].mxu0 }
 0xc2c   :  { %v2086_v19 = vadd.f32 %v2085_v18, %v2011_v15 }
 0xc2d   :  { %2088 = vst [vmem:[#allocation2] sm:$0xff] %v2084_v17 }
 0xc2e   :  { %2089 = vst.msk [vmem:[#allocation2 + $0x8] sm:$0xff] %vm249_vm2, %v2086_v19 }
 0xc34   :  { %v2090_v20 = vld [vmem:[#allocation2] sm:$0xf]  ;;  %v2956_v49 = vld [vmem:[#allocation2] sm:$0xf0] }
 0xc35   :  { %2093 = vrot.lane.b32.xlu0 %v2090_v20, %s4692_s23  ;;  %v2258_v21 = vld [vmem:[#allocation2] sm:$0xf]  ;;  %v2091_v30 = vld [vmem:[#allocation2 + $0x8] sm:$0xf]  ;;  %v2959_v50 = vrot.slane %v2956_v49, 4 }
 0xc36   :  { %v2434_v34 = vld [vmem:[#allocation2] sm:$0xf]  ;;  %v2259_v47 = vld [vmem:[#allocation2 + $0x8] sm:$0xf]  ;;  %v3134_v0 = vld [vmem:[#allocation2] sm:$0xf0] }
 0xc37   :  { %v2610_v35 = vld [vmem:[#allocation2] sm:$0xf]  ;;  %v3137_v51 = vrot.slane %v3134_v0, 4  ;;  %v3312_v52 = vld [vmem:[#allocation2] sm:$0xf0] }
 0xc38   :  { %v3315_v53 = vrot.slane %v3312_v52, 4  ;;  %v2786_v59 = vld [vmem:[#allocation2] sm:$0xf0] }
 0xc39   :  { %2261 = vrot.lane.b32.xlu0 %v2258_v21, %s4691_s22  ;;  %v2789_v60 = vrot.slane %v2786_v59, 4 }
 0xca7   :  { %v2094_v22 = vpop.permute.xlu0 %2093 }
 0xca8   :  { %4308 = vmatpush3.xpose.msk.msra.mxu0 %vm256_vm3, %v2094_v22 }
 0xca9   :  { %4312 = vmatprep.subr.mxu0 %v4686_v7 }
 0xcab   :  { %4310 = vmatmul.mubr.msk.f32.vlgmr.msra.gmra.mrb[22].mxu0 %vm256_vm3, %v2090_v20  ;;  %v2262_v39 = vpop.permute.xlu0 %2261 }
 0xcac   :  { %4313 = vmatpush3.msk.msra.mxu0 %vm348_vm4, %v2091_v30  ;;  %4314 = vmatprep.mubr.msk.f32.mxu0 %vm4690_vm1, %v4686_v7 }
 0xcad   :  { %4317 = vmatprep.subr.mxu0 %v4686_v7 }
 0xd7e   :  { %v2165_v31 = vpop.f32.mrb[22].mxu0 }
 0xd7f   :  { %v2169_v33 = vmul.f32 0.25, %v2165_v31  ;;  %v4311_v23 = vpop.f32.mrb[23].mxu0 }
 0xd81   :  { %v2170_v24 = vsel %vm332_vm5, %v2169_v33, -inf }
 0xd82   :  { %2171 = vmax.xlane.f32.xlu1 %v2170_v24 }
 0xe0f   :  { %v2172_v25 = vpop.xlane.xlu1 %2171 }
 0xe10   :  { %v2173_v26 = vsub.f32 %v2169_v33, %v2172_v25 }
 0xe12   :  { %v2174_v27 = vmul.f32 1.442695, %v2173_v26 }
 0xe14   :  { %4647 = vpow2.f32 %v2174_v27 }
 0xe1e   :  { %v4648_v28 = vpop.eup %4647 }
 0xe1f   :  { %v2176_v29 = vsel %vm332_vm5, %v4648_v28, 0.0 }
 0xe20   :  { %2177 = vadd.xlane.f32.xlu1 %v2176_v29 }
 0xe31   :  { %2263 = vrot.lane.b32.xlu1 %v2258_v21, %s4693_s24 }
 0xe35   :  { %2439 = vrot.lane.b32.xlu1 %v2434_v34, %s4695_s26 }
 0xe39   :  { %2615 = vrot.lane.b32.xlu1 %v2610_v35, %s4697_s28 }
 0xead   :  { %v2178_v32 = vpop.xlane.xlu1 %2177 }
 0xeae   :  { %4649 = vrcp.f32 %v2178_v32 }
 0xeb1   :  { %v2264_v38 = vpop.permute.xlu1 %2263 }
 0xeb5   :  { %v2440_v61 = vpop.permute.xlu1 %2439 }
 0xeb8   :  { %v4650_v36 = vpop.eup %4649 }
 0xeb9   :  { %v2180_v37 = vmul.f32 %v4650_v36, %v4648_v28  ;;  %v2616_v62 = vpop.permute.xlu1 %2615 }
 0xebb   :  { %4315 = vmatmul.mubr.msk.f32.vlgmr.msra.gmra.mrb[24].mxu0 %vm344_vm6, %v2180_v37 }
 0xebc   :  { %4318 = vmatpush3.xpose.msk.msra.mxu0 %vm256_vm3, %v2264_v38  ;;  %4319 = vmatprep.mubr.msk.f32.mxu0 %vm4690_vm1, %v4686_v7 }
 0xebd   :  { %4322 = vmatprep.subr.mxu0 %v4686_v7 }
 0xebf   :  { %4320 = vmatmul.mubr.msk.f32.vlgmr.msra.gmra.mrb[26].mxu0 %vm256_vm3, %v2262_v39 }
 0xec0   :  { %4324 = vmatprep.mubr.msk.f32.mxu0 %vm4690_vm1, %v4686_v7 }
 0xf8e   :  { %v2253_v40 = vpop.f32.mrb[24].mxu0 }
 0xf8f   :  { %2257 = vst.msk [vmem:[#allocation3] sm:$0xf] %vm422_vm7, %v2253_v40  ;;  %v4316_v41 = vpop.f32.mrb[25].mxu0  ;;  %v2435_v40 = vld [vmem:[#allocation2 + $0x8] sm:$0xf] }
 0xf92   :  { %v2335_v42 = vpop.f32.mrb[26].mxu0 }
 0xf93   :  { %v2339_v44 = vmul.f32 0.25, %v2335_v42  ;;  %v4321_v45 = vpop.f32.mrb[27].mxu0 }
 0xf95   :  { %v2340_v46 = vsel %vm332_vm5, %v2339_v44, -inf }
 0xf96   :  { %2341 = vmax.xlane.f32.xlu0 %v2340_v46 }
 0xfac   :  { %2352 = vrot.lane.b32.xlu0 %v2259_v47, %s4691_s22 }
 0xfb0   :  { %2437 = vrot.lane.b32.xlu0 %v2434_v34, %s4694_s25 }
 0xfb4   :  { %2613 = vrot.lane.b32.xlu0 %v2610_v35, %s4696_s27 }
 0xfb8   :  { %2962 = vrot.lane.b32.xlu0 %v2959_v50, %s4693_s24 }
 0xfbc   :  { %3140 = vrot.lane.b32.xlu0 %v3137_v51, %s4695_s26 }
 0xfc0   :  { %3318 = vrot.lane.b32.xlu0 %v3315_v53, %s4697_s28 }
0x1023   :  { %v2342_v54 = vpop.xlane.xlu0 %2341 }
0x1024   :  { %v2343_v43 = vsub.f32 %v2339_v44, %v2342_v54  ;;  %v2957_v54 = vld [vmem:[#allocation2 + $0x8] sm:$0xf0] }
0x1026   :  { %v2344_v55 = vmul.f32 1.442695, %v2343_v43  ;;  %v3051_v43 = vrot.slane %v2957_v54, 4 }
0x1027   :  { %v2353_v56 = vpop.permute.xlu0 %2352 }
0x1028   :  { %4651 = vpow2.f32 %v2344_v55  ;;  %4323 = vmatpush3.msk.msra.mxu0 %vm348_vm4, %v2353_v56  ;;  %v2611_v56 = vld [vmem:[#allocation2 + $0x8] sm:$0xf] }
0x1029   :  { %4327 = vmatprep.subr.mxu0 %v4686_v7 }
0x102b   :  { %v2438_v1 = vpop.permute.xlu0 %2437 }
0x102f   :  { %v2614_v4 = vpop.permute.xlu0 %2613 }
0x1032   :  { %v4652_v57 = vpop.eup %4651 }
0x1033   :  { %v2346_v58 = vsel %vm332_vm5, %v4652_v57, 0.0  ;;  %v2963_v8 = vpop.permute.xlu0 %2962 }
0x1034   :  { %2347 = vadd.xlane.f32.xlu1 %v2346_v58 }
0x1037   :  { %v3141_v10 = vpop.permute.xlu0 %3140 }
0x103b   :  { %v3319_v12 = vpop.permute.xlu0 %3318 }
0x1045   :  { %2790 = vrot.lane.b32.xlu1 %v2789_v60, %s4692_s23  ;;  %s3937_s23 = sld [smem:[%s5252_s0 + %s4717_s21]]  }
0x1049   :  { %2960 = vrot.lane.b32.xlu1 %v2959_v50, %s4691_s22 }
0x104d   :  { %3138 = vrot.lane.b32.xlu1 %v3137_v51, %s4694_s25 }
0x1051   :  { %3316 = vrot.lane.b32.xlu1 %v3315_v53, %s4696_s27 }
0x10c1   :  { %v2348_v63 = vpop.xlane.xlu1 %2347 }
0x10c2   :  { %4653 = vrcp.f32 %v2348_v63 }
0x10c5   :  { %v2791_v5 = vpop.permute.xlu1 %2790 }
0x10c9   :  { %v2961_v9 = vpop.permute.xlu1 %2960 }
0x10cc   :  { %v4654_v2 = vpop.eup %4653 }
0x10cd   :  { %v2350_v3 = vmul.f32 %v4654_v2, %v4652_v57  ;;  %v3139_v11 = vpop.permute.xlu1 %3138 }
0x10cf   :  { %4325 = vmatmul.mubr.msk.f32.vlgmr.msra.gmra.mrb[28].mxu0 %vm344_vm6, %v2350_v3 }
0x10d0   :  { %4328 = vmatpush3.xpose.msk.msra.mxu0 %vm256_vm3, %v2440_v61  ;;  %4329 = vmatprep.mubr.msk.f32.mxu0 %vm4690_vm1, %v4686_v7 }
0x10d1   :  { %4337 = vmatprep.subr.mxu0 %v4686_v7  ;;  %v3317_v13 = vpop.permute.xlu1 %3316 }
0x10d3   :  { %4330 = vmatmul.mubr.msk.f32.vlgmr.msra.gmra.mrb[30].mxu0 %vm256_vm3, %v2438_v1 }
0x10d4   :  { %4338 = vmatpush3.xpose.msk.msra.mxu0 %vm256_vm3, %v2616_v62  ;;  %4339 = vmatprep.mubr.msk.f32.mxu0 %vm4690_vm1, %v4686_v7 }
0x10d5   :  { %4347 = vmatprep.subr.mxu0 %v4686_v7 }
0x10d7   :  { %4340 = vmatmul.mubr.msk.f32.vlgmr.msra.gmra.mrb[32].mxu0 %vm256_vm3, %v2614_v4 }
0x10d8   :  { %4348 = vmatpush3.xpose.msk.msra.mxu0 %vm256_vm3, %v2791_v5  ;;  %4349 = vmatprep.mubr.msk.f32.mxu0 %vm4690_vm1, %v4686_v7 }
0x10d9   :  { %4357 = vmatprep.subr.mxu0 %v4686_v7 }
0x10db   :  { %4350 = vmatmul.mubr.msk.f32.vlgmr.msra.gmra.mrb[34].mxu0 %vm256_vm3, %v2789_v60 }
0x10dc   :  { %4358 = vmatpush3.xpose.msk.msra.mxu0 %vm256_vm3, %v2963_v8  ;;  %4359 = vmatprep.mubr.msk.f32.mxu0 %vm4690_vm1, %v4686_v7 }
0x10dd   :  { %4367 = vmatprep.subr.mxu0 %v4686_v7 }
0x10df   :  { %4360 = vmatmul.mubr.msk.f32.vlgmr.msra.gmra.mrb[36].mxu0 %vm256_vm3, %v2961_v9 }
0x10e0   :  { %4368 = vmatpush3.xpose.msk.msra.mxu0 %vm256_vm3, %v3141_v10  ;;  %4369 = vmatprep.mubr.msk.f32.mxu0 %vm4690_vm1, %v4686_v7 }
0x10e1   :  { %4377 = vmatprep.subr.mxu0 %v4686_v7 }
0x10e3   :  { %4370 = vmatmul.mubr.msk.f32.vlgmr.msra.gmra.mrb[38].mxu0 %vm256_vm3, %v3139_v11 }
0x10e4   :  { %4378 = vmatpush3.xpose.msk.msra.mxu0 %vm256_vm3, %v3319_v12  ;;  %4379 = vmatprep.mubr.msk.f32.mxu0 %vm4690_vm1, %v4686_v7 }
0x10e5   :  { %4521 = vmatprep.subr.bf16.mxu0 %v4698_v6 }
0x10e7   :  { %4380 = vmatmul.mubr.msk.f32.vlgmr.msra.gmra.mrb[40].mxu0 %vm256_vm3, %v3317_v13 }
0x10e8   :  { %4403 = vmatprep.mubr.msk.f32.mxu0 %vm4690_vm1, %v4686_v7 }
0x11a2   :  { %v5100_v14 = vpop.f32.mrb[28].mxu0 }
0x11a3   :  { %v4326_v15 = vpop.f32.mrb[29].mxu0 }
0x11a4   :  { %v3135_v15 = vld [vmem:[#allocation2 + $0x8] sm:$0xf0] }
0x11a6   :  { %v2511_v16 = vpop.f32.mrb[30].mxu0 }
0x11a7   :  { %v2515_v17 = vmul.f32 0.25, %v2511_v16  ;;  %v4331_v18 = vpop.f32.mrb[31].mxu0  ;;  %v3229_v16 = vrot.slane %v3135_v15, 4 }
0x11a9   :  { %v2516_v19 = vsel %vm332_vm5, %v2515_v17, -inf }
0x11aa   :  { %2517 = vmax.xlane.f32.xlu0 %v2516_v19  ;;  %v2687_v20 = vpop.f32.mrb[32].mxu0 }
0x11ab   :  { %v2691_v21 = vmul.f32 0.25, %v2687_v20  ;;  %v4341_v22 = vpop.f32.mrb[33].mxu0 }
0x11ad   :  { %v2692_v30 = vsel %vm332_vm5, %v2691_v21, -inf }
0x11ae   :  { %2693 = vmax.xlane.f32.xlu1 %v2692_v30  ;;  %v2862_v31 = vpop.f32.mrb[34].mxu0 }
0x11af   :  { %v2866_v33 = vmul.f32 0.25, %v2862_v31  ;;  %v4351_v23 = vpop.f32.mrb[35].mxu0  ;;  %v2787_v31 = vld [vmem:[#allocation2 + $0x8] sm:$0xf0] }
0x11b0   :  { %v2879_v23 = vrot.slane %v2787_v31, 4  ;;  %v3609_v31 = vld [vmem:[%s3934_s4] sm:$0xff] }
0x11b1   :  { %v2867_v24 = vsel %vm332_vm5, %v2866_v33, -inf }
0x11b2   :  { %2868 = vmax.xlane.f32.xlu0 %v2867_v24  ;;  %v3034_v25 = vpop.f32.mrb[36].mxu0 }
0x11b3   :  { %v3038_v26 = vmul.f32 0.25, %v3034_v25  ;;  %v4361_v27 = vpop.f32.mrb[37].mxu0 }
0x11b5   :  { %v3039_v28 = vsel %vm332_vm5, %v3038_v26, -inf }
0x11b6   :  { %3040 = vmax.xlane.f32.xlu0 %v3039_v28  ;;  %v3212_v29 = vpop.f32.mrb[38].mxu0 }
0x11b7   :  { %v3216_v34 = vmul.f32 0.25, %v3212_v29  ;;  %v4371_v35 = vpop.f32.mrb[39].mxu0 }
0x11b9   :  { %v3217_v32 = vsel %vm332_vm5, %v3216_v34, -inf }
0x11ba   :  { %3218 = vmax.xlane.f32.xlu1 %v3217_v32  ;;  %v3390_v36 = vpop.f32.mrb[40].mxu0 }
0x11bb   :  { %v3394_v37 = vmul.f32 0.25, %v3390_v36  ;;  %v4381_v38 = vpop.f32.mrb[41].mxu0 }
0x11bd   :  { %v3395_v39 = vsel %vm332_vm5, %v3394_v37, -inf }
0x11be   :  { %3396 = vmax.xlane.f32.xlu0 %v3395_v39 }
0x11cb   :  { %2528 = vrot.lane.b32.xlu1 %v2435_v40, %s4694_s25 }
0x1237   :  { %v2518_v41 = vpop.xlane.xlu0 %2517 }
0x1238   :  { %v2519_v42 = vsub.f32 %v2515_v17, %v2518_v41  ;;  %v3313_v17 = vld [vmem:[#allocation2 + $0x8] sm:$0xf0] }
0x1239   :  { %v3407_v18 = vrot.slane %v3313_v17, 4 }
0x123a   :  { %v2520_v44 = vmul.f32 1.442695, %v2519_v42 }
0x123b   :  { %v2694_v45 = vpop.xlane.xlu1 %2693 }
0x123c   :  { %4655 = vpow2.f32 %v2520_v44  ;;  %v2695_v46 = vsub.f32 %v2691_v21, %v2694_v45 }
0x123e   :  { %v2696_v47 = vmul.f32 1.442695, %v2695_v46 }
0x123f   :  { %v2869_v55 = vpop.xlane.xlu0 %2868 }
0x1240   :  { %4657 = vpow2.f32 %v2696_v47  ;;  %v2870_v57 = vsub.f32 %v2866_v33, %v2869_v55 }
0x1242   :  { %v2871_v60 = vmul.f32 1.442695, %v2870_v57 }
0x1243   :  { %v3041_v58 = vpop.xlane.xlu0 %3040 }
0x1244   :  { %v3042_v59 = vsub.f32 %v3038_v26, %v3041_v58  ;;  %4659 = vpow2.f32 %v2871_v60 }
0x1246   :  { %v4656_v49 = vpop.eup %4655  ;;  %v3043_v63 = vmul.f32 1.442695, %v3042_v59 }
0x1247   :  { %v3219_v50 = vpop.xlane.xlu1 %3218  ;;  %v2522_v0 = vsel %vm332_vm5, %v4656_v49, 0.0 }
0x1248   :  { %2523 = vadd.xlane.f32.xlu1 %v2522_v0  ;;  %v3220_v61 = vsub.f32 %v3216_v34, %v3219_v50  ;;  %4661 = vpow2.f32 %v3043_v63 }
0x124a   :  { %v4658_v51 = vpop.eup %4657  ;;  %v3221_v1 = vmul.f32 1.442695, %v3220_v61 }
0x124b   :  { %v2529_v52 = vpop.permute.xlu1 %2528  ;;  %v2698_v53 = vsel %vm332_vm5, %v4658_v51, 0.0  ;;  %v3397_v62 = vpop.xlane.xlu0 %3396 }
0x124c   :  { %4333 = vmatpush3.msk.msra.mxu1 %vm348_vm4, %v2529_v52  ;;  %2699 = vadd.xlane.f32.xlu0 %v2698_v53  ;;  %v3398_v2 = vsub.f32 %v3394_v37, %v3397_v62  ;;  %4663 = vpow2.f32 %v3221_v1 }
0x124d   :  { %4342 = vmatprep.subr.mxu1 %v4686_v7 }
0x124e   :  { %v3399_v3 = vmul.f32 1.442695, %v3398_v2  ;;  %v4660_v4 = vpop.eup %4659 }
0x124f   :  { %v2873_v8 = vsel %vm332_vm5, %v4660_v4, 0.0 }
0x1250   :  { %4665 = vpow2.f32 %v3399_v3 }
0x1252   :  { %v4662_v5 = vpop.eup %4661 }
0x1253   :  { %v3045_v11 = vsel %vm332_vm5, %v4662_v5, 0.0 }
0x1256   :  { %v4664_v9 = vpop.eup %4663 }
0x1257   :  { %v3223_v10 = vsel %vm332_vm5, %v4664_v9, 0.0 }
0x1259   :  { %3052 = vrot.lane.b32.xlu1 %v3051_v43, %s4691_s22  ;;  %s4710_s22 = smov 17  }
0x125a   :  { %v4666_v12 = vpop.eup %4665 }
0x125b   :  { %v3401_v13 = vsel %vm332_vm5, %v4666_v12, 0.0 }
0x1262   :  { %2704 = vrot.lane.b32.xlu0 %v2611_v56, %s4696_s27 }
0x127d   :  { %2874 = vadd.xlane.f32.xlu1 %v2873_v8 }
0x1281   :  { %3224 = vadd.xlane.f32.xlu1 %v3223_v10  ;;  %3046 = vadd.xlane.f32.xlu0 %v3045_v11 }
0x1285   :  { %3402 = vadd.xlane.f32.xlu0 %v3401_v13 }
0x1292   :  { %3230 = vrot.lane.b32.xlu1 %v3229_v16, %s4694_s25  ;;  %s4718_s25 = smov 27  }
0x1296   :  { %2430 = vrot.lane.b32.xlu1 %v5100_v14, %s4697_s28 }
0x129b   :  { %3408 = vrot.lane.b32.xlu0 %v3407_v18, %s4696_s27  ;;  %s3930_s27 = sld [smem:[%s5252_s0 + %s4710_s22]]  }
0x12a1   :  { %v3492_v50 = vld [vmem:[%s3930_s27 + $0x8] sm:$0xff]  ;;  %v3494_v52 = vld [vmem:[%s3930_s27 + $0x18] sm:$0xff]  ;;  %v3495_v55 = vld [vmem:[%s3930_s27 + $0x20] sm:$0xff] }
0x12a2   :  { %v3496_v56 = vld [vmem:[%s3930_s27 + $0x28] sm:$0xff]  ;;  %v3497_v58 = vld [vmem:[%s3930_s27 + $0x30] sm:$0xff]  ;;  %v3498_v59 = vld [vmem:[%s3930_s27 + $0x38] sm:$0xff] }
0x12a3   :  { %v4528_v57 = vpack.c.bf16 %v3496_v56, %v3495_v55  ;;  %v4531_v62 = vpack.c.bf16 %v3498_v59, %v3497_v58  ;;  %v3715_v55 = vld [vmem:[%s5194_s12 + $0x68] sm:$0xff]  ;;  %v3717_v58 = vld [vmem:[%s5194_s12 + $0x78] sm:$0xff] }
0x12d5   :  { %v2524_v19 = vpop.xlane.xlu1 %2523 }
0x12d6   :  { %4667 = vrcp.f32 %v2524_v19 }
0x12d9   :  { %v2700_v20 = vpop.xlane.xlu0 %2699  ;;  %v3053_v24 = vpop.permute.xlu1 %3052 }
0x12da   :  { %4669 = vrcp.f32 %v2700_v20 }
0x12dd   :  { %v2705_v30 = vpop.permute.xlu0 %2704 }
0x12e0   :  { %v4668_v21 = vpop.eup %4667 }
0x12e1   :  { %v2526_v22 = vmul.f32 %v4668_v21, %v4656_v49  ;;  %v3491_v49 = vld [vmem:[%s3930_s27] sm:$0xff] }
0x12e2   :  { %v4522_v0 = vpack.c.bf16 %v3492_v50, %v3491_v49  ;;  %v3709_v49 = vld [vmem:[%s5194_s12 + $0x38] sm:$0xff]  ;;  %v3710_v50 = vld [vmem:[%s5194_s12 + $0x40] sm:$0xff] }
0x12e3   :  { %4335 = vmatmul.mubr.msk.f32.vlgmr.msra.gmra.mrb[20].mxu1 %vm344_vm6, %v2526_v22 }
0x12e4   :  { %v4670_v33 = vpop.eup %4669  ;;  %4343 = vmatpush3.msk.msra.mxu1 %vm348_vm4, %v2705_v30  ;;  %4344 = vmatprep.mubr.msk.f32.mxu1 %vm4690_vm1, %v4686_v7 }
0x12e5   :  { %v2702_v14 = vmul.f32 %v4670_v33, %v4658_v51  ;;  %4352 = vmatprep.subr.mxu1 %v4686_v7  ;;  %v3493_v51 = vld [vmem:[%s3930_s27 + $0x10] sm:$0xff]  ;;  %4523 = vmatpush3.bf16.msra.mxu0 %v4522_v0  ;;  %v3711_v0 = vld [vmem:[%s5194_s12 + $0x48] sm:$0xff] }
0x12e6   :  { %v4525_v53 = vpack.c.bf16 %v3494_v52, %v3493_v51  ;;  %4524 = vmatprep.subr.bf16.mxu0 %v4698_v6  ;;  %v3611_v33 = vld [vmem:[%s3934_s4 + $0x10] sm:$0xff]  ;;  %v4552_v51 = vpack.c.bf16 %v3711_v0, %v3710_v50 }
0x12e7   :  { %4345 = vmatmul.mubr.msk.f32.vlgmr.msra.gmra.mrb[22].mxu1 %vm344_vm6, %v2702_v14  ;;  %v3712_v52 = vld [vmem:[%s5194_s12 + $0x50] sm:$0xff] }
0x12e8   :  { %4353 = vmatpush3.msk.msra.mxu1 %vm348_vm4, %v2879_v23  ;;  %4354 = vmatprep.mubr.msk.f32.mxu1 %vm4690_vm1, %v4686_v7  ;;  %v3612_v23 = vld [vmem:[%s3934_s4 + $0x18] sm:$0xff] }
0x12e9   :  { %4362 = vmatprep.subr.mxu1 %v4686_v7  ;;  %4526 = vmatpush3.bf16.msra.mxu0 %v4525_v53  ;;  %v3713_v53 = vld [vmem:[%s5194_s12 + $0x58] sm:$0xff] }
0x12ea   :  { %4527 = vmatprep.subr.bf16.mxu0 %v4698_v6 }
0x12ed   :  { %4529 = vmatpush3.bf16.msra.mxu0 %v4528_v57  ;;  %v3716_v57 = vld [vmem:[%s5194_s12 + $0x70] sm:$0xff] }
0x12ee   :  { %4530 = vmatprep.subr.bf16.mxu0 %v4698_v6  ;;  %v4561_v59 = vpack.c.bf16 %v3717_v58, %v3716_v57 }
0x12f1   :  { %4532 = vmatpush3.bf16.msra.mxu0 %v4531_v62 }
0x12f2   :  { %4563 = vmatprep.subr.bf16.mxu0 %v4698_v6 }
0x130a   :  { %v2875_v25 = vpop.xlane.xlu1 %2874 }
0x130b   :  { %4671 = vrcp.f32 %v2875_v25 }
0x130e   :  { %v3225_v26 = vpop.xlane.xlu1 %3224  ;;  %v3047_v27 = vpop.xlane.xlu0 %3046 }
0x130f   :  { %4673 = vrcp.f32 %v3047_v27 }
0x1310   :  { %4675 = vrcp.f32 %v3225_v26 }
0x1312   :  { %v3231_v28 = vpop.permute.xlu1 %3230  ;;  %v3403_v29 = vpop.xlane.xlu0 %3402 }
0x1313   :  { %4677 = vrcp.f32 %v3403_v29  ;;  %v4022_v29 = vld [vmem:[%s3932_s8] ss:$0 sm:$0xff] }
0x1315   :  { %v4672_v34 = vpop.eup %4671 }
0x1316   :  { %v2877_v35 = vmul.f32 %v4672_v34, %v4660_v4  ;;  %v2431_v32 = vpop.permute.xlu1 %2430  ;;  %v3409_v41 = vpop.permute.xlu0 %3408 }
0x1317   :  { %2433 = vst.msk [vmem:[#allocation3] sm:$0xf] %vm599_vm8, %v2431_v32  ;;  %v3703_v32 = vld [vmem:[%s5194_s12 + $0x8] sm:$0xff] }
0x1318   :  { %4355 = vmatmul.mubr.msk.f32.vlgmr.msra.gmra.mrb[24].mxu1 %vm344_vm6, %v2877_v35  ;;  %v3702_v35 = vld [vmem:[%s5194_s12] sm:$0xff] }
0x1319   :  { %4363 = vmatpush3.msk.msra.mxu1 %vm348_vm4, %v3053_v24  ;;  %4364 = vmatprep.mubr.msk.f32.mxu1 %vm4690_vm1, %v4686_v7  ;;  %v4674_v36 = vpop.eup %4673  ;;  %v4537_v24 = vpack.c.bf16 %v3612_v23, %v3611_v33 }
0x131a   :  { %4372 = vmatprep.subr.mxu1 %v4686_v7  ;;  %v3049_v37 = vmul.f32 %v4674_v36, %v4662_v5  ;;  %v4676_v38 = vpop.eup %4675  ;;  %v4023_v36 = vld [vmem:[%s3933_s16] ss:$0 sm:$0xff] }
0x131b   :  { %v3227_v39 = vmul.f32 %v4676_v38, %v4664_v9  ;;  %v4540_v38 = vpack.c.bf16 %v3703_v32, %v3702_v35  ;;  %v4028_v35 = vld [vmem:[%s3939_s6] ss:$0 sm:$0xff] }
0x131c   :  { %4365 = vmatmul.mubr.msk.f32.vlgmr.msra.gmra.mrb[26].mxu1 %vm344_vm6, %v3049_v37 }
0x131d   :  { %4373 = vmatpush3.msk.msra.mxu1 %vm348_vm4, %v3231_v28  ;;  %4374 = vmatprep.mubr.msk.f32.mxu1 %vm4690_vm1, %v4686_v7  ;;  %v4678_v40 = vpop.eup %4677 }
0x131e   :  { %4382 = vmatprep.subr.mxu1 %v4686_v7  ;;  %v3405_v42 = vmul.f32 %v4678_v40, %v4666_v12  ;;  %v3704_v40 = vld [vmem:[%s5194_s12 + $0x10] sm:$0xff] }
0x1320   :  { %4375 = vmatmul.mubr.msk.f32.vlgmr.msra.gmra.mrb[28].mxu1 %vm344_vm6, %v3227_v39 }
0x1321   :  { %4383 = vmatpush3.msk.msra.mxu1 %vm348_vm4, %v3409_v41  ;;  %4384 = vmatprep.mubr.msk.f32.mxu1 %vm4690_vm1, %v4686_v7  ;;  %v3705_v41 = vld [vmem:[%s5194_s12 + $0x18] sm:$0xff] }
0x1322   :  { %4533 = vmatprep.subr.bf16.mxu1 %v4698_v6 }
0x1324   :  { %4385 = vmatmul.mubr.msk.f32.vlgmr.msra.gmra.mrb[30].mxu1 %vm344_vm6, %v3405_v42  ;;  %v4543_v42 = vpack.c.bf16 %v3705_v41, %v3704_v40 }
0x1325   :  { %4414 = vmatprep.mubr.msk.f32.mxu1 %vm4690_vm1, %v4686_v7 }
0x13b6   :  { %v2601_v44 = vpop.f32.mrb[20].mxu1 }
0x13b7   :  { %2606 = vrot.lane.b32.xlu1 %v2601_v44, %s4695_s26  ;;  %v4336_v45 = vpop.f32.mrb[21].mxu1  ;;  %v3706_v44 = vld [vmem:[%s5194_s12 + $0x20] sm:$0xff] }
0x13b8   :  { %v3707_v45 = vld [vmem:[%s5194_s12 + $0x28] sm:$0xff] }
0x13ba   :  { %v2777_v46 = vpop.f32.mrb[22].mxu1 }
0x13bb   :  { %2782 = vrot.lane.b32.xlu1 %v2777_v46, %s4693_s24  ;;  %v4346_v47 = vpop.f32.mrb[23].mxu1  ;;  %v4546_v46 = vpack.c.bf16 %v3707_v45, %v3706_v44 }
0x13bc   :  { %v3708_v47 = vld [vmem:[%s5194_s12 + $0x30] sm:$0xff] }
0x13eb   :  { %v2951_v54 = vpop.f32.mrb[24].mxu1 }
0x13ec   :  { %2955 = vst.msk [vmem:[#allocation3 + $0x4] sm:$0xf] %vm422_vm7, %v2951_v54  ;;  %v4356_v43 = vpop.f32.mrb[25].mxu1  ;;  %v4555_v54 = vpack.c.bf16 %v3713_v53, %v3712_v52 }
0x13ed   :  { %v3714_v43 = vld [vmem:[%s5194_s12 + $0x60] sm:$0xff] }
0x13ee   :  { %v4558_v56 = vpack.c.bf16 %v3715_v55, %v3714_v43 }
0x13ef   :  { %v3125_v60 = vpop.f32.mrb[26].mxu1 }
0x13f0   :  { %3130 = vrot.lane.b32.xlu0 %v3125_v60, %s4697_s28  ;;  %v4366_v61 = vpop.f32.mrb[27].mxu1  ;;  %v4024_v60 = vld [vmem:[%s3935_s20] ss:$0 sm:$0xff]  ;;  %s4719_s28 = smov 25  }
0x13f1   :  { %s3938_s2 = sld [smem:[%s5252_s0 + %s4719_s28]]  }
0x13f3   :  { %v3303_v63 = vpop.f32.mrb[28].mxu1 }
0x13f4   :  { %3308 = vrot.lane.b32.xlu0 %v3303_v63, %s4695_s26  ;;  %v4376_v1 = vpop.f32.mrb[29].mxu1  ;;  %s3940_s26 = sld [smem:[%s5252_s0 + %s4718_s25]]  }
0x13f7   :  { %v3481_v2 = vpop.f32.mrb[30].mxu1 }
0x13f8   :  { %3486 = vrot.lane.b32.xlu0 %v3481_v2, %s4693_s24  ;;  %v4386_v3 = vpop.f32.mrb[31].mxu1  ;;  %s4711_s24 = smov 18  }
0x13f9   :  { %s3931_s30 = sld [smem:[%s5252_s0 + %s4711_s24]]  }
0x13fa   :  { %v3826_v33 = vld [vmem:[%s3940_s26 + $0x8] sm:$0xff]  ;;  %v3827_v23 = vld [vmem:[%s3940_s26 + $0x10] sm:$0xff] }
0x13ff   :  { %v4020_v12 = vld [vmem:[%s3931_s30] ss:$0 sm:$0xff] }
0x1429   :  { %v2607_v4 = vpop.permute.xlu1 %2606 }
0x142a   :  { %2609 = vst.msk [vmem:[#allocation3] sm:$0xf] %vm776_vm9, %v2607_v4 }
0x142d   :  { %v2783_v5 = vpop.permute.xlu1 %2782 }
0x142e   :  { %2785 = vst.msk [vmem:[#allocation3] sm:$0xf] %vm953_vm10, %v2783_v5 }
0x1462   :  { %v3131_v8 = vpop.permute.xlu0 %3130 }
0x1463   :  { %3133 = vst.msk [vmem:[#allocation3 + $0x4] sm:$0xf] %vm599_vm8, %v3131_v8 }
0x1466   :  { %v3309_v9 = vpop.permute.xlu0 %3308 }
0x1467   :  { %3311 = vst.msk [vmem:[#allocation3 + $0x4] sm:$0xf] %vm776_vm9, %v3309_v9 }
0x146a   :  { %v3487_v10 = vpop.permute.xlu0 %3486 }
0x146b   :  { %3489 = vst.msk [vmem:[#allocation3 + $0x4] sm:$0xf] %vm953_vm10, %v3487_v10 }
0x1472   :  { %v3490_v11 = vld [vmem:[#allocation3] sm:$0xff] }
0x1473   :  { %4404 = vmatmul.mubr.msk.f32.vlgmr.msra.gmra.mrb[42].mxu0 %vm249_vm2, %v3490_v11 }
0x1474   :  { %4460 = vmatprep.mubr.msk.f32.mxu0 %vm4690_vm1, %v4686_v7 }
0x1546   :  { %v3575_v13 = vpop.f32.mrb[42].mxu0 }
0x1547   :  { %v3576_v15 = vadd.f32 %v4020_v12, %v3575_v13  ;;  %v4405_v16 = vpop.f32.mrb[43].mxu0  ;;  %v4026_v12 = vld [vmem:[%s3937_s23] ss:$0 sm:$0xff] }
0x1549   :  { %v5177_v17 = vadd.f32 %v3576_v15, %v5002_v48  ;;  %v3610_v48 = vld [vmem:[%s3934_s4 + $0x8] sm:$0xff] }
0x154a   :  { %v4534_v14 = vpack.c.bf16 %v3610_v48, %v3609_v31  ;;  %v3825_v48 = vld [vmem:[%s3940_s26] sm:$0xff] }
0x154b   :  { %v3582_v18 = vsel %vm125_vm0, %v5177_v17, 0.0 }
0x154c   :  { %3583 = vadd.xlane.f32.xlu1 %v3582_v18  ;;  %4535 = vmatpush3.bf16.msra.mxu1 %v4534_v14  ;;  %v4564_v14 = vpack.c.bf16 %v3826_v33, %v3825_v48 }
0x154d   :  { %4536 = vmatprep.subr.bf16.mxu1 %v4698_v6 }
0x154e   :  { %4565 = vmatpush3.bf16.msra.mxu0 %v4564_v14 }
0x154f   :  { %4566 = vmatprep.subr.bf16.mxu0 %v4698_v6 }
0x1550   :  { %4538 = vmatpush3.bf16.msra.mxu1 %v4537_v24 }
0x1551   :  { %4539 = vmatprep.subr.bf16.mxu1 %v4698_v6 }
0x15d9   :  { %v3584_v19 = vpop.xlane.xlu1 %3583 }
0x15da   :  { %v3585_v20 = vmul.f32 0.03125, %v3584_v19 }
0x15dc   :  { %v3586_v21 = vsub.f32 %v5177_v17, %v3585_v20 }
0x15de   :  { %v3587_v22 = vmul.f32 %v3586_v21, %v3586_v21 }
0x15e0   :  { %v3588_v30 = vsel %vm125_vm0, %v3587_v22, 0.0 }
0x15e1   :  { %3589 = vadd.xlane.f32.xlu0 %v3588_v30 }
0x166e   :  { %v3590_v25 = vpop.xlane.xlu0 %3589 }
0x166f   :  { %v3591_v26 = vmul.f32 0.03125, %v3590_v25 }
0x1671   :  { %v3592_v27 = vadd.f32 1e-05, %v3591_v26 }
0x1673   :  { %4679 = vrsqrt.f32 %v3592_v27 }
0x167d   :  { %v4680_v28 = vpop.eup %4679 }
0x167e   :  { %v3594_v34 = vmul.f32 %v4680_v28, %v3586_v21 }
0x1680   :  { %v3601_v37 = vmul.f32 %v4022_v29, %v3594_v34  ;;  %v4027_v29 = vld [vmem:[%s3938_s2] ss:$0 sm:$0xff] }
0x1682   :  { %v3608_v39 = vadd.f32 %v4023_v36, %v3601_v37  ;;  %v4029_v36 = vld [vmem:[%s3941_s10] ss:$0 sm:$0xff] }
0x1684   :  { %4415 = vmatmul.mubr.msk.f32.vlgmr.msra.gmra.mrb[32].mxu1 %vm125_vm0, %v3608_v39 }
0x1685   :  { %4541 = vmatpush3.bf16.msra.mxu1 %v4540_v38  ;;  %4449 = vmatprep.mubr.msk.f32.mxu1 %vm4690_vm1, %v4686_v7  ;;  %v4549_v7 = vpack.c.bf16 %v3709_v49, %v3708_v47 }
0x1686   :  { %4542 = vmatprep.subr.bf16.mxu1 %v4698_v6 }
0x1689   :  { %4544 = vmatpush3.bf16.msra.mxu1 %v4543_v42 }
0x168a   :  { %4545 = vmatprep.subr.bf16.mxu1 %v4698_v6 }
0x168d   :  { %4547 = vmatpush3.bf16.msra.mxu1 %v4546_v46 }
0x168e   :  { %4548 = vmatprep.subr.bf16.mxu1 %v4698_v6 }
0x1691   :  { %4550 = vmatpush3.bf16.msra.mxu1 %v4549_v7 }
0x1692   :  { %4551 = vmatprep.subr.bf16.mxu1 %v4698_v6 }
0x1695   :  { %4553 = vmatpush3.bf16.msra.mxu1 %v4552_v51 }
0x1696   :  { %4554 = vmatprep.subr.bf16.mxu1 %v4698_v6 }
0x1699   :  { %4556 = vmatpush3.bf16.msra.mxu1 %v4555_v54 }
0x169a   :  { %4557 = vmatprep.subr.bf16.mxu1 %v4698_v6 }
0x169d   :  { %4559 = vmatpush3.bf16.msra.mxu1 %v4558_v56 }
0x169e   :  { %4560 = vmatprep.subr.bf16.mxu1 %v4698_v6 }
0x16a1   :  { %4562 = vmatpush3.bf16.msra.mxu1 %v4561_v59 }
0x1757   :  { %v3689_v61 = vpop.f32.mrb[32].mxu1 }
0x1758   :  { %v3690_v62 = vadd.f32 %v4024_v60, %v3689_v61  ;;  %v4416_v63 = vpop.f32.mrb[33].mxu1 }
0x175a   :  { %v3694_v1 = vmul.f32 0.044715, %v3690_v62  ;;  %v3693_v9 = vmul.f32 0.5, %v3690_v62 }
0x175c   :  { %v3695_v2 = vmul.f32 %v3694_v1, %v3690_v62 }
0x175e   :  { %v3696_v3 = vmul.f32 %v3695_v2, %v3690_v62 }
0x1760   :  { %v3697_v4 = vadd.f32 %v3696_v3, %v3690_v62 }
0x1762   :  { %v3698_v5 = vmul.f32 0.7978846, %v3697_v4 }
0x1764   :  { %4681 = vtanh.f32 %v3698_v5 }
0x176e   :  { %v4682_v8 = vpop.eup %4681 }
0x176f   :  { %v3700_v10 = vadd.f32 1.0, %v4682_v8 }
0x1771   :  { %v3701_v11 = vmul.f32 %v3700_v10, %v3693_v9 }
0x1773   :  { %4450 = vmatmul.mubr.f32.vlgmr.msra.gmra.mrb[34].mxu1 %v3701_v11 }
0x1846   :  { %v3791_v13 = vpop.f32.mrb[34].mxu1 }
0x1847   :  { %v3792_v15 = vadd.f32 %v4026_v12, %v3791_v13  ;;  %v4451_v16 = vpop.f32.mrb[35].mxu1 }
0x1849   :  { %v3795_v18 = vadd.f32 %v3792_v15, %v5177_v17  ;;  %v3828_v17 = vld [vmem:[%s3940_s26 + $0x18] sm:$0xff] }
0x184a   :  { %v4567_v24 = vpack.c.bf16 %v3828_v17, %v3827_v23 }
0x184b   :  { %v3798_v19 = vsel %vm125_vm0, %v3795_v18, 0.0 }
0x184c   :  { %3799 = vadd.xlane.f32.xlu0 %v3798_v19  ;;  %4568 = vmatpush3.bf16.msra.mxu0 %v4567_v24 }
0x18d9   :  { %v3800_v20 = vpop.xlane.xlu0 %3799 }
0x18da   :  { %v3801_v21 = vmul.f32 0.03125, %v3800_v20 }
0x18dc   :  { %v3802_v22 = vsub.f32 %v3795_v18, %v3801_v21 }
0x18de   :  { %v3803_v30 = vmul.f32 %v3802_v22, %v3802_v22 }
0x18e0   :  { %v3804_v31 = vsel %vm125_vm0, %v3803_v30, 0.0 }
0x18e1   :  { %3805 = vadd.xlane.f32.xlu1 %v3804_v31 }
0x196e   :  { %v3806_v25 = vpop.xlane.xlu1 %3805 }
0x196f   :  { %v3807_v26 = vmul.f32 0.03125, %v3806_v25 }
0x1971   :  { %v3808_v27 = vadd.f32 1e-05, %v3807_v26 }
0x1973   :  { %4683 = vrsqrt.f32 %v3808_v27 }
0x197d   :  { %v4684_v28 = vpop.eup %4683 }
0x197e   :  { %v3810_v34 = vmul.f32 %v4684_v28, %v3802_v22 }
0x1980   :  { %v3817_v6 = vmul.f32 %v4027_v29, %v3810_v34 }
0x1982   :  { %v3824_v32 = vadd.f32 %v4028_v35, %v3817_v6 }
0x1984   :  { %4461 = vmatmul.mubr.msk.f32.vlgmr.msra.gmra.mrb[44].mxu0 %vm125_vm0, %v3824_v32 }
0x1a57   :  { %v3905_v37 = vpop.f32.mrb[44].mxu0 }
0x1a58   :  { %v3906_v38 = vadd.f32 %v4029_v36, %v3905_v37  ;;  %v4462_v39 = vpop.f32.mrb[45].mxu0 }
0x1a5a   :  { %3909 = vst.msk [vmem:[%s3942_s14] sm:$0xff] %vm249_vm2, %v3906_v38 }

// kernel: mae_forward.5
= control target key start
LH: loop header
LB: loop body
LE: loop exit
PB: predicated region body
PF: predicated region fallthrough
CT: control target
= control target key end

     0   :  { %s8300_s0 = inlined_call_operand.vmem [shape: f32[32,64], index: 0, kind: input, shape index: {}]   ;;  %s8301_s1 = inlined_call_operand.vmem [shape: f32[32,192], index: 1, kind: input, shape index: {}]   ;;  %s8302_s2 = inlined_call_operand.vmem [shape: f32[32,1], index: 2, kind: input, shape index: {}]   ;;  %s8303_s3 = inlined_call_operand.vmem [shape: f32[1,64], index: 3, kind: input, shape index: {}]   ;;  %s8304_s4 = inlined_call_operand.vmem [shape: f32[1,64], index: 4, kind: input, shape index: {}]   ;;  %s8305_s5 = inlined_call_operand.vmem [shape: f32[64,1536], index: 5, kind: input, shape index: {}]   ;;  %s8306_s6 = inlined_call_operand.vmem [shape: f32[1,1536], index: 6, kind: input, shape index: {}]   ;;  %s8307_s7 = inlined_call_operand.vmem [shape: f32[512,64], index: 7, kind: input, shape index: {}]   ;;  %s8308_s8 = inlined_call_operand.vmem [shape: f32[1,64], index: 8, kind: input, shape index: {}]   ;;  %s8309_s9 = inlined_call_operand.vmem [shape: f32[1,64], index: 9, kind: input, shape index: {}]   ;;  %s8310_s10 = inlined_call_operand.vmem [shape: f32[1,64], index: 10, kind: input, shape index: {}]   ;;  %s8311_s11 = inlined_call_operand.vmem [shape: f32[64,256], index: 11, kind: input, shape index: {}]   ;;  %s8312_s12 = inlined_call_operand.vmem [shape: f32[1,256], index: 12, kind: input, shape index: {}]   ;;  %s8313_s13 = inlined_call_operand.vmem [shape: f32[256,64], index: 13, kind: input, shape index: {}]   ;;  %s8314_s14 = inlined_call_operand.vmem [shape: f32[1,64], index: 14, kind: input, shape index: {}]   ;;  %s8315_s15 = inlined_call_operand.vmem [shape: f32[1,64], index: 15, kind: input, shape index: {}]   ;;  %s8316_s16 = inlined_call_operand.vmem [shape: f32[1,64], index: 16, kind: input, shape index: {}]   ;;  %s8317_s17 = inlined_call_operand.vmem [shape: f32[64,192], index: 17, kind: input, shape index: {}]   ;;  %s8318_s18 = inlined_call_operand.vmem [shape: f32[1,192], index: 18, kind: input, shape index: {}]   ;;  %s8319_s19 = inlined_call_operand.hbm [shape: f32[1,1], index: 19, kind: output, shape index: {}]  }
   0x1   :  { %8342 = sst [smem:[#allocation22_spill]] %s8300_s0 }
   0x2   :  { %8343 = sst [smem:[#allocation23_spill]] %s8301_s1 }
   0x3   :  { %8344 = sst [smem:[#allocation24_spill]] %s8302_s2 }
   0x4   :  { %8345 = sst [smem:[#allocation25_spill]] %s8303_s3 }
   0x5   :  { %s8346_s20 = sld [smem:[#allocation22_spill]]  ;;  %vm69_vm0 = vcmask 523264  }
   0xb   :  { %v63_v0 = vld [vmem:[%s8346_s20] sm:$0xff]  ;;  %v65_v1 = vld [vmem:[%s8346_s20 + $0x10] sm:$0xff]  ;;  %v64_v2 = vld [vmem:[%s8346_s20 + $0x8] sm:$0xff] }
   0xc   :  { %v70_v3 = vsel %vm69_vm0, %v63_v0, 0.0  ;;  %v76_v4 = vsel %vm69_vm0, %v65_v1, 0.0  ;;  %v66_v5 = vld [vmem:[%s8346_s20 + $0x18] sm:$0xff] }
   0xd   :  { %24 = vsyncpa [#allocation5], 0  ;;  %71 = vadd.xlane.f32.xlu0 %v70_v3  ;;  %77 = vadd.xlane.f32.xlu1 %v76_v4  ;;  %v73_v6 = vsel %vm69_vm0, %v64_v2, 0.0  ;;  %v79_v7 = vsel %vm69_vm0, %v66_v5, 0.0  ;;  %v144_v28 = vld [vmem:[%s8305_s5 + $0x8] sm:$0xff]  ;;  %v146_v30 = vld [vmem:[%s8305_s5 + $0x18] sm:$0xff] }
   0xe   :  { %v156_v29 = vld [vmem:[%s8305_s5 + $0x68] sm:$0xff]  ;;  %v143_v32 = vld [vmem:[%s8305_s5] sm:$0xff]  ;;  %v158_v34 = vld [vmem:[%s8305_s5 + $0x78] sm:$0xff]  ;;  %s8347_s28 = sld [smem:[#allocation25_spill]]  ;;  %vm992_vm2 = vcmask 130048   ;;  %vm1320_vm3 = vcmask 1048064  }
   0xf   :  { %v5892_v31 = vpack.c.bf16 %v156_v29, %v144_v28  ;;  %v155_v33 = vld [vmem:[%s8305_s5 + $0x60] sm:$0xff]  ;;  %v5908_v36 = vpack.c.bf16 %v158_v34, %v146_v30  ;;  %v145_v37 = vld [vmem:[%s8305_s5 + $0x10] sm:$0xff]  ;;  %v168_v40 = vld [vmem:[%s8305_s5 + $0xc8] sm:$0xff]  ;;  %s8396_s27 = sld [smem:[#allocation24_spill]]  ;;  %s8397_s22 = sld [smem:[#allocation23_spill]]  ;;  %vm5256_vm4 = vcmask 0  }
  0x10   :  { %v5894_v35 = vpack.c.bf16 %v155_v33, %v143_v32  ;;  %v157_v38 = vld [vmem:[%s8305_s5 + $0x70] sm:$0xff]  ;;  %v180_v41 = vld [vmem:[%s8305_s5 + $0x128] sm:$0xff]  ;;  %v170_v42 = vld [vmem:[%s8305_s5 + $0xd8] sm:$0xff]  ;;  %s6561_s24 = smov [#allocation4]  }
  0x11   :  { %74 = vadd.xlane.f32.xlu0 %v73_v6  ;;  %80 = vadd.xlane.f32.xlu1 %v79_v7  ;;  %v5910_v39 = vpack.c.bf16 %v157_v38, %v145_v37  ;;  %v5896_v43 = vpack.c.bf16 %v180_v41, %v168_v40  ;;  %v167_v44 = vld [vmem:[%s8305_s5 + $0xc0] sm:$0xff]  ;;  %v182_v46 = vld [vmem:[%s8305_s5 + $0x138] sm:$0xff]  ;;  %v169_v49 = vld [vmem:[%s8305_s5 + $0xd0] sm:$0xff]  ;;  %s5264_s25 = sshll.u32 %s6561_s24, 4  ;;  %s5265_s25 = int_to_ptr.vmem [resolvable:$true] %s5264_s25 }
  0x12   :  { %5893 = vmatprep.subr.bf16.mxu0 %v5892_v31  ;;  %5909 = vmatprep.subr.bf16.mxu1 %v5908_v36  ;;  %v179_v45 = vld [vmem:[%s8305_s5 + $0x120] sm:$0xff]  ;;  %v5912_v48 = vpack.c.bf16 %v182_v46, %v170_v42  ;;  %v181_v50 = vld [vmem:[%s8305_s5 + $0x130] sm:$0xff]  ;;  %v192_v52 = vld [vmem:[%s8305_s5 + $0x188] sm:$0xff]  ;;  %s6534_s3 = scalar_lea.vmem %s5265_s25, 16  ;;  %s6538_s26 = scalar_lea.vmem %s5265_s25, 32 }
  0x13   :  { %5895 = vmatpush1.bf16.msra.mxu0 %v5894_v35  ;;  %5911 = vmatpush1.bf16.msra.mxu1 %v5910_v39  ;;  %v5898_v47 = vpack.c.bf16 %v179_v45, %v167_v44  ;;  %v5914_v51 = vpack.c.bf16 %v181_v50, %v169_v49  ;;  %v204_v53 = vld [vmem:[%s8305_s5 + $0x1e8] sm:$0xff]  ;;  %v194_v54 = vld [vmem:[%s8305_s5 + $0x198] sm:$0xff]  ;;  %v191_v56 = vld [vmem:[%s8305_s5 + $0x180] sm:$0xff]  ;;  %p6535_p0 = scmp.ne.s32.totalorder %s5265_s25, %s6534_s3  ;;  %p6539_p1 = scmp.lt.s32.totalorder %s5265_s25, %s5265_s25 }
  0x14   :  { %5897 = vmatprep.subr.bf16.mxu0 %v5896_v43  ;;  %5913 = vmatprep.subr.bf16.mxu1 %v5912_v48  ;;  %v5900_v55 = vpack.c.bf16 %v204_v53, %v192_v52  ;;  %v203_v57 = vld [vmem:[%s8305_s5 + $0x1e0] sm:$0xff]  ;;  %v206_v58 = vld [vmem:[%s8305_s5 + $0x1f8] sm:$0xff]  ;;  %v193_v61 = vld [vmem:[%s8305_s5 + $0x190] sm:$0xff]  ;;  %p6540_p2 = scmp.lt.s32.totalorder %s6538_s26, %s6534_s3 }
  0x15   :  { %v5902_v59 = vpack.c.bf16 %v203_v57, %v191_v56  ;;  %v5916_v60 = vpack.c.bf16 %v206_v58, %v194_v54  ;;  %v205_v62 = vld [vmem:[%s8305_s5 + $0x1f0] sm:$0xff]  ;;  %v215_v4 = vld [vmem:[%s8305_s5 + $0x240] sm:$0xff]  ;;  %v230_v6 = vld [vmem:[%s8305_s5 + $0x2b8] sm:$0xff] }
  0x16   :  { %v5918_v63 = vpack.c.bf16 %v205_v62, %v193_v61  ;;  %v5272_v36 = vld [vmem:[%s8347_s28] ss:$0 sm:$0xff]  ;;  %v149_v40 = vld [vmem:[%s8305_s5 + $0x30] sm:$0xff]  ;;  %v184_v44 = vld [vmem:[%s8305_s5 + $0x148] sm:$0xff]  ;;  %p6541_p3 = por %p6540_p2, %p6539_p1 }
  0x17   :  { %5899 = vmatpush1.bf16.msra.mxu0 %v5898_v47  ;;  %5915 = vmatpush1.bf16.msra.mxu1 %v5914_v51  ;;  %v147_v37 = vld [vmem:[%s8305_s5 + $0x20] sm:$0xff]  ;;  %v161_v41 = vld [vmem:[%s8305_s5 + $0x90] sm:$0xff]  ;;  %v174_v45 = vld [vmem:[%s8305_s5 + $0xf8] sm:$0xff] }
  0x18   :  { %5901 = vmatprep.subr.bf16.mxu0 %v5900_v55  ;;  %5917 = vmatprep.subr.bf16.mxu1 %v5916_v60  ;;  %v159_v39 = vld [vmem:[%s8305_s5 + $0x80] sm:$0xff]  ;;  %v186_v46 = vld [vmem:[%s8305_s5 + $0x158] sm:$0xff]  ;;  %v5942_v49 = vpack.c.bf16 %v161_v41, %v149_v40  ;;  %v173_v55 = vld [vmem:[%s8305_s5 + $0xf0] sm:$0xff]  ;;  %p6542_p4 = pnand %p6541_p3, %p6535_p0 }
  0x19   :  { %v6827_v42 = vld [vmem:[%s8304_s4] ss:$0 sm:$0xff]  ;;  %v5926_v48 = vpack.c.bf16 %v159_v39, %v147_v37  ;;  %v185_v56 = vld [vmem:[%s8305_s5 + $0x150] sm:$0xff]  ;;  %v208_v61 = vld [vmem:[%s8305_s5 + $0x208] sm:$0xff]  ;;  %s6559_s4 = smov 64  }
  0x1a   :  { %v171_v50 = vld [vmem:[%s8305_s5 + $0xe0] sm:$0xff]  ;;  %v210_v62 = vld [vmem:[%s8305_s5 + $0x218] sm:$0xff]  ;;  %v165_v39 = vld [vmem:[%s8305_s5 + $0xb0] sm:$0xff] }
  0x1b   :  { %5903 = vmatpush1.bf16.msra.mxu0 %v5902_v59  ;;  %5919 = vmatpush1.bf16.msra.mxu1 %v5918_v63  ;;  %v183_v54 = vld [vmem:[%s8305_s5 + $0x140] sm:$0xff]  ;;  %v5944_v59 = vpack.c.bf16 %v186_v46, %v174_v45  ;;  %vm7158_vm1 = vmpackc.low %vm69_vm0, %vm69_vm0 }
  0x1c   :  { %v163_v37 = vld [vmem:[%s8305_s5 + $0xa0] sm:$0xff] }
  0x9a   :  { %v72_v8 = vpop.xlane.xlu0 %71  ;;  %v78_v9 = vpop.xlane.xlu1 %77 }
  0x9b   :  { %v83_v10 = vmul.f32 0.015625, %v72_v8  ;;  %v85_v11 = vmul.f32 0.015625, %v78_v9  ;;  %v217_v9 = vld [vmem:[%s8305_s5 + $0x250] sm:$0xff] }
  0x9d   :  { %v6678_v12 = vsub.f32 %v63_v0, %v83_v10  ;;  %v6680_v13 = vsub.f32 %v65_v1, %v85_v11  ;;  %v216_v0 = vld [vmem:[%s8305_s5 + $0x248] sm:$0xff]  ;;  %v229_v10 = vld [vmem:[%s8305_s5 + $0x2b0] sm:$0xff] }
  0x9e   :  { %v75_v14 = vpop.xlane.xlu0 %74  ;;  %v81_v15 = vpop.xlane.xlu1 %80  ;;  %v228_v1 = vld [vmem:[%s8305_s5 + $0x2a8] sm:$0xff]  ;;  %v5922_v11 = vpack.c.bf16 %v229_v10, %v217_v9 }
  0x9f   :  { %v84_v16 = vmul.f32 0.015625, %v75_v14  ;;  %v86_v17 = vmul.f32 0.015625, %v81_v15  ;;  %v91_v18 = vmul.f32 %v6678_v12, %v6678_v12  ;;  %v93_v19 = vmul.f32 %v6680_v13, %v6680_v13  ;;  %v148_v14 = vld [vmem:[%s8305_s5 + $0x28] sm:$0xff] }
  0xa0   :  { %v5904_v3 = vpack.c.bf16 %v228_v1, %v216_v0  ;;  %v160_v15 = vld [vmem:[%s8305_s5 + $0x88] sm:$0xff]  ;;  %v5930_v0 = vpack.c.bf16 %v183_v54, %v171_v50  ;;  %v5946_v1 = vpack.c.bf16 %v185_v56, %v173_v55  ;;  %v189_v50 = vld [vmem:[%s8305_s5 + $0x170] sm:$0xff]  ;;  %v202_v56 = vld [vmem:[%s8305_s5 + $0x1d8] sm:$0xff] }
  0xa1   :  { %v6686_v20 = vsub.f32 %v64_v2, %v84_v16  ;;  %v6688_v21 = vsub.f32 %v66_v5, %v86_v17  ;;  %v95_v22 = vsel %vm69_vm0, %v91_v18, 0.0  ;;  %v101_v23 = vsel %vm69_vm0, %v93_v19, 0.0  ;;  %v218_v2 = vld [vmem:[%s8305_s5 + $0x258] sm:$0xff]  ;;  %v227_v5 = vld [vmem:[%s8305_s5 + $0x2a0] sm:$0xff]  ;;  %v220_v10 = vld [vmem:[%s8305_s5 + $0x268] sm:$0xff] }
  0xa2   :  { %96 = vadd.xlane.f32.xlu0 %v95_v22  ;;  %v5906_v7 = vpack.c.bf16 %v227_v5, %v215_v4  ;;  %v5920_v8 = vpack.c.bf16 %v230_v6, %v218_v2  ;;  %5905 = vmatprep.subr.bf16.mxu0 %v5904_v3  ;;  %v5924_v16 = vpack.c.bf16 %v160_v15, %v148_v14  ;;  %v150_v17 = vld [vmem:[%s8305_s5 + $0x38] sm:$0xff]  ;;  %v8323_v18 = vmov 0.0   ;;  %v195_v2 = vld [vmem:[%s8305_s5 + $0x1a0] sm:$0xff]  ;;  %v200_v54 = vld [vmem:[%s8305_s5 + $0x1c8] sm:$0xff] }
  0xa3   :  { %v92_v24 = vmul.f32 %v6686_v20, %v6686_v20  ;;  %v94_v25 = vmul.f32 %v6688_v21, %v6688_v21  ;;  %379 = vmatprep.mubr.f32.mxu0 %v8323_v18  ;;  %468 = vmatprep.mubr.f32.mxu1 %v8323_v18  ;;  %v162_v19 = vld [vmem:[%s8305_s5 + $0x98] sm:$0xff]  ;;  %v207_v6 = vld [vmem:[%s8305_s5 + $0x200] sm:$0xff]  ;;  %v212_v55 = vld [vmem:[%s8305_s5 + $0x228] sm:$0xff] }
  0xa4   :  { %5907 = vmatpush1.bf16.msra.mxu0 %v5906_v7  ;;  %5921 = vmatprep.subr.bf16.mxu1 %v5920_v8  ;;  %v5940_v22 = vpack.c.bf16 %v162_v19, %v150_v17  ;;  %v197_v7 = vld [vmem:[%s8305_s5 + $0x1b0] sm:$0xff]  ;;  %v222_v14 = vld [vmem:[%s8305_s5 + $0x278] sm:$0xff]  ;;  %v219_v19 = vld [vmem:[%s8305_s5 + $0x260] sm:$0xff] }
  0xa5   :  { %v98_v26 = vsel %vm69_vm0, %v92_v24, 0.0  ;;  %v104_v27 = vsel %vm69_vm0, %v94_v25, 0.0  ;;  %5923 = vmatpush1.bf16.msra.mxu1 %v5922_v11  ;;  %5925 = vmatprep.subr.bf16.mxu0 %v5924_v16  ;;  %v209_v8 = vld [vmem:[%s8305_s5 + $0x210] sm:$0xff]  ;;  %v232_v11 = vld [vmem:[%s8305_s5 + $0x2c8] sm:$0xff]  ;;  %v234_v15 = vld [vmem:[%s8305_s5 + $0x2d8] sm:$0xff]  ;;  %v5934_v16 = vpack.c.bf16 %v207_v6, %v195_v2 }
  0xa6   :  { %102 = vadd.xlane.f32.xlu0 %v101_v23  ;;  %99 = vadd.xlane.f32.xlu1 %v98_v26  ;;  %v5950_v17 = vpack.c.bf16 %v209_v8, %v197_v7  ;;  %v226_v2 = vld [vmem:[%s8305_s5 + $0x298] sm:$0xff]  ;;  %v223_v7 = vld [vmem:[%s8305_s5 + $0x280] sm:$0xff] }
  0xa7   :  { %5941 = vmatprep.subr.bf16.mxu1 %v5940_v22  ;;  %v235_v8 = vld [vmem:[%s8305_s5 + $0x2e0] sm:$0xff] }
  0xaa   :  { %105 = vadd.xlane.f32.xlu1 %v104_v27 }
 0x12f   :  { %v97_v23 = vpop.xlane.xlu0 %96 }
 0x130   :  { %v107_v24 = vmul.f32 0.015625, %v97_v23 }
 0x132   :  { %v111_v25 = vadd.f32 1e-05, %v107_v24  ;;  %v231_v24 = vld [vmem:[%s8305_s5 + $0x2c0] sm:$0xff] }
 0x133   :  { %v100_v26 = vpop.xlane.xlu1 %99  ;;  %v103_v27 = vpop.xlane.xlu0 %102 }
 0x134   :  { %6362 = vrsqrt.f32 %v111_v25  ;;  %v108_v28 = vmul.f32 0.015625, %v100_v26  ;;  %v109_v29 = vmul.f32 0.015625, %v103_v27  ;;  %v221_v25 = vld [vmem:[%s8305_s5 + $0x270] sm:$0xff]  ;;  %v5936_v27 = vpack.c.bf16 %v232_v11, %v220_v10 }
 0x135   :  { %v233_v26 = vld [vmem:[%s8305_s5 + $0x2d0] sm:$0xff] }
 0x136   :  { %v112_v30 = vadd.f32 1e-05, %v108_v28  ;;  %v113_v31 = vadd.f32 1e-05, %v109_v29  ;;  %v5952_v28 = vpack.c.bf16 %v234_v15, %v222_v14  ;;  %v152_v29 = vld [vmem:[%s8305_s5 + $0x48] sm:$0xff]  ;;  %v5970_v14 = vpack.c.bf16 %v235_v8, %v223_v7 }
 0x137   :  { %v106_v32 = vpop.xlane.xlu1 %105 }
 0x138   :  { %6364 = vrsqrt.f32 %v112_v30  ;;  %v110_v33 = vmul.f32 0.015625, %v106_v32  ;;  %v164_v30 = vld [vmem:[%s8305_s5 + $0xa8] sm:$0xff]  ;;  %v166_v32 = vld [vmem:[%s8305_s5 + $0xb8] sm:$0xff] }
 0x139   :  { %6366 = vrsqrt.f32 %v113_v31  ;;  %v154_v31 = vld [vmem:[%s8305_s5 + $0x58] sm:$0xff]  ;;  %v5956_v40 = vpack.c.bf16 %v164_v30, %v152_v29 }
 0x13a   :  { %v114_v34 = vadd.f32 1e-05, %v110_v33  ;;  %v5938_v33 = vpack.c.bf16 %v231_v24, %v219_v19  ;;  %v5972_v41 = vpack.c.bf16 %v166_v32, %v154_v31  ;;  %v239_v19 = vld [vmem:[%s8306_s6] sm:$0xff] }
 0x13c   :  { %6368 = vrsqrt.f32 %v114_v34  ;;  %v5954_v34 = vpack.c.bf16 %v233_v26, %v221_v25 }
 0x13e   :  { %v6363_v35 = vpop.eup %6362 }
 0x13f   :  { %v119_v38 = vmul.f32 %v6363_v35, %v6678_v12  ;;  %v172_v12 = vld [vmem:[%s8305_s5 + $0xe8] sm:$0xff]  ;;  %v151_v35 = vld [vmem:[%s8305_s5 + $0x40] sm:$0xff] }
 0x140   :  { %v5928_v58 = vpack.c.bf16 %v184_v44, %v172_v12  ;;  %v188_v12 = vld [vmem:[%s8305_s5 + $0x168] sm:$0xff]  ;;  %v190_v44 = vld [vmem:[%s8305_s5 + $0x178] sm:$0xff]  ;;  %v5958_v45 = vpack.c.bf16 %v163_v37, %v151_v35 }
 0x141   :  { %v129_v43 = vmul.f32 %v5272_v36, %v119_v38  ;;  %v153_v38 = vld [vmem:[%s8305_s5 + $0x50] sm:$0xff] }
 0x142   :  { %v6365_v47 = vpop.eup %6364  ;;  %v5974_v46 = vpack.c.bf16 %v165_v39, %v153_v38 }
 0x143   :  { %v6367_v51 = vpop.eup %6366  ;;  %v120_v52 = vmul.f32 %v6365_v47, %v6686_v20  ;;  %v6846_v53 = vadd.f32 %v6827_v42, %v129_v43  ;;  %v196_v20 = vld [vmem:[%s8305_s5 + $0x1a8] sm:$0xff]  ;;  %v178_v43 = vld [vmem:[%s8305_s5 + $0x118] sm:$0xff]  ;;  %v175_v47 = vld [vmem:[%s8305_s5 + $0x100] sm:$0xff] }
 0x144   :  { %v121_v57 = vmul.f32 %v6367_v51, %v6680_v13  ;;  %v198_v13 = vld [vmem:[%s8305_s5 + $0x1b8] sm:$0xff] }
 0x145   :  { %v130_v60 = vmul.f32 %v5272_v36, %v120_v52  ;;  %5274 = vmatmul.mubr.msk.f32.vlgmr.msra.gmra.mrb[0].mxu0 %vm69_vm0, %v6846_v53  ;;  %5278 = vmatmul.mubr.msk.f32.vlgmr.msra.gmra.mrb[0].mxu1 %vm69_vm0, %v6846_v53  ;;  %v5948_v9 = vpack.c.bf16 %v210_v62, %v198_v13  ;;  %v5976_v52 = vpack.c.bf16 %v190_v44, %v178_v43  ;;  %v213_v13 = vld [vmem:[%s8305_s5 + $0x230] sm:$0xff] }
 0x146   :  { %v6369_v63 = vpop.eup %6368  ;;  %5927 = vmatpush1.bf16.msra.mxu0 %v5926_v48  ;;  %5943 = vmatpush1.bf16.msra.mxu1 %v5942_v49  ;;  %v131_v3 = vmul.f32 %v5272_v36, %v121_v57  ;;  %v187_v48 = vld [vmem:[%s8305_s5 + $0x160] sm:$0xff]  ;;  %v177_v49 = vld [vmem:[%s8305_s5 + $0x110] sm:$0xff]  ;;  %v214_v57 = vld [vmem:[%s8305_s5 + $0x238] sm:$0xff]  ;;  %v5964_v62 = vpack.c.bf16 %v212_v55, %v200_v54 }
 0x147   :  { %v122_v4 = vmul.f32 %v6369_v63, %v6688_v21  ;;  %385 = vmatprep.mubr.f32.mxu0 %v8323_v18  ;;  %474 = vmatprep.mubr.f32.mxu1 %v8323_v18  ;;  %v6881_v5 = vadd.f32 %v6827_v42, %v130_v60  ;;  %v5932_v21 = vpack.c.bf16 %v208_v61, %v196_v20  ;;  %v199_v20 = vld [vmem:[%s8305_s5 + $0x1c0] sm:$0xff]  ;;  %v201_v61 = vld [vmem:[%s8305_s5 + $0x1d0] sm:$0xff] }
 0x148   :  { %5929 = vmatprep.subr.bf16.mxu0 %v5928_v58  ;;  %5945 = vmatprep.subr.bf16.mxu1 %v5944_v59  ;;  %v6914_v23 = vadd.f32 %v6827_v42, %v131_v3  ;;  %v5962_v58 = vpack.c.bf16 %v187_v48, %v175_v47  ;;  %v5978_v59 = vpack.c.bf16 %v189_v50, %v177_v49  ;;  %v211_v60 = vld [vmem:[%s8305_s5 + $0x220] sm:$0xff]  ;;  %v238_v3 = vld [vmem:[%s8305_s5 + $0x2f8] sm:$0xff] }
 0x149   :  { %5275 = vmatmul.mubr.msk.f32.gmra.mrb[2].mxu0 %vm69_vm0, %v6881_v5  ;;  %5279 = vmatmul.mubr.msk.f32.gmra.mrb[2].mxu1 %vm69_vm0, %v6881_v5  ;;  %v132_v22 = vmul.f32 %v5272_v36, %v122_v4  ;;  %v5980_v63 = vpack.c.bf16 %v214_v57, %v202_v56  ;;  %v5966_v4 = vpack.c.bf16 %v211_v60, %v199_v20 }
 0x14a   :  { %5931 = vmatpush1.bf16.msra.mxu0 %v5930_v0  ;;  %5947 = vmatpush1.bf16.msra.mxu1 %v5946_v1  ;;  %v224_v0 = vld [vmem:[%s8305_s5 + $0x288] sm:$0xff]  ;;  %v5982_v6 = vpack.c.bf16 %v213_v13, %v201_v61  ;;  %v5984_v11 = vpack.c.bf16 %v238_v3, %v226_v2 }
 0x14b   :  { %391 = vmatprep.mubr.f32.mxu0 %v8323_v18  ;;  %480 = vmatprep.mubr.f32.mxu1 %v8323_v18  ;;  %v6947_v36 = vadd.f32 %v6827_v42, %v132_v22  ;;  %v176_v42 = vld [vmem:[%s8305_s5 + $0x108] sm:$0xff] }
 0x14c   :  { %5933 = vmatprep.subr.bf16.mxu0 %v5932_v21  ;;  %5949 = vmatprep.subr.bf16.mxu1 %v5948_v9  ;;  %v5960_v51 = vpack.c.bf16 %v188_v12, %v176_v42  ;;  %v236_v1 = vld [vmem:[%s8305_s5 + $0x2e8] sm:$0xff]  ;;  %v225_v21 = vld [vmem:[%s8305_s5 + $0x290] sm:$0xff] }
 0x14d   :  { %5276 = vmatmul.mubr.msk.f32.gmra.mrb[4].mxu0 %vm69_vm0, %v6914_v23  ;;  %5280 = vmatmul.mubr.msk.f32.gmra.mrb[4].mxu1 %vm69_vm0, %v6914_v23  ;;  %v237_v9 = vld [vmem:[%s8305_s5 + $0x2f0] sm:$0xff]  ;;  %v5968_v10 = vpack.c.bf16 %v236_v1, %v224_v0 }
 0x14e   :  { %5935 = vmatpush1.bf16.msra.mxu0 %v5934_v16  ;;  %5951 = vmatpush1.bf16.msra.mxu1 %v5950_v17  ;;  %v5986_v15 = vpack.c.bf16 %v237_v9, %v225_v21 }
 0x14f   :  { %397 = vmatprep.mubr.f32.mxu0 %v8323_v18  ;;  %486 = vmatprep.mubr.f32.mxu1 %v8323_v18 }
 0x150   :  { %5937 = vmatprep.subr.bf16.mxu0 %v5936_v27  ;;  %5953 = vmatprep.subr.bf16.mxu1 %v5952_v28 }
 0x151   :  { %5277 = vmatmul.mubr.msk.f32.gmra.mrb[6].mxu0 %vm69_vm0, %v6947_v36  ;;  %5281 = vmatmul.mubr.msk.f32.gmra.mrb[6].mxu1 %vm69_vm0, %v6947_v36 }
 0x152   :  { %5939 = vmatpush1.bf16.msra.mxu0 %v5938_v33  ;;  %5955 = vmatpush1.bf16.msra.mxu1 %v5954_v34 }
 0x153   :  { %557 = vmatprep.mubr.f32.mxu0 %v8323_v18  ;;  %646 = vmatprep.mubr.f32.mxu1 %v8323_v18 }
 0x154   :  { %5957 = vmatprep.subr.bf16.mxu0 %v5956_v40  ;;  %5973 = vmatprep.subr.bf16.mxu1 %v5972_v41 }
 0x155   :  { %5282 = vmatmul.mubr.msk.f32.vlgmr.msra.gmra.mrb[8].mxu0 %vm69_vm0, %v6846_v53  ;;  %5286 = vmatmul.mubr.msk.f32.vlgmr.msra.gmra.mrb[8].mxu1 %vm69_vm0, %v6846_v53 }
 0x156   :  { %5959 = vmatpush1.bf16.msra.mxu0 %v5958_v45  ;;  %5975 = vmatpush1.bf16.msra.mxu1 %v5974_v46 }
 0x157   :  { %563 = vmatprep.mubr.f32.mxu0 %v8323_v18  ;;  %652 = vmatprep.mubr.f32.mxu1 %v8323_v18 }
 0x158   :  { %5961 = vmatprep.subr.bf16.mxu0 %v5960_v51  ;;  %5977 = vmatprep.subr.bf16.mxu1 %v5976_v52 }
 0x159   :  { %5283 = vmatmul.mubr.msk.f32.gmra.mrb[10].mxu0 %vm69_vm0, %v6881_v5  ;;  %5287 = vmatmul.mubr.msk.f32.gmra.mrb[10].mxu1 %vm69_vm0, %v6881_v5 }
 0x15a   :  { %5963 = vmatpush1.bf16.msra.mxu0 %v5962_v58  ;;  %5979 = vmatpush1.bf16.msra.mxu1 %v5978_v59 }
 0x15b   :  { %569 = vmatprep.mubr.f32.mxu0 %v8323_v18  ;;  %658 = vmatprep.mubr.f32.mxu1 %v8323_v18 }
 0x15c   :  { %5965 = vmatprep.subr.bf16.mxu0 %v5964_v62  ;;  %5981 = vmatprep.subr.bf16.mxu1 %v5980_v63 }
 0x15d   :  { %5284 = vmatmul.mubr.msk.f32.gmra.mrb[12].mxu0 %vm69_vm0, %v6914_v23  ;;  %5288 = vmatmul.mubr.msk.f32.gmra.mrb[12].mxu1 %vm69_vm0, %v6914_v23 }
 0x15e   :  { %5967 = vmatpush1.bf16.msra.mxu0 %v5966_v4  ;;  %5983 = vmatpush1.bf16.msra.mxu1 %v5982_v6 }
 0x15f   :  { %575 = vmatprep.mubr.f32.mxu0 %v8323_v18  ;;  %664 = vmatprep.mubr.f32.mxu1 %v8323_v18 }
 0x160   :  { %5969 = vmatprep.subr.bf16.mxu0 %v5968_v10  ;;  %5985 = vmatprep.subr.bf16.mxu1 %v5984_v11 }
 0x161   :  { %5285 = vmatmul.mubr.msk.f32.gmra.mrb[14].mxu0 %vm69_vm0, %v6947_v36  ;;  %5289 = vmatmul.mubr.msk.f32.gmra.mrb[14].mxu1 %vm69_vm0, %v6947_v36 }
 0x162   :  { %5971 = vmatpush1.bf16.msra.mxu0 %v5970_v14  ;;  %5987 = vmatpush1.bf16.msra.mxu1 %v5986_v15 }
 0x163   :  { %735 = vmatprep.mubr.f32.mxu0 %v8323_v18  ;;  %824 = vmatprep.mubr.f32.mxu1 %v8323_v18 }
 0x165   :  { %5290 = vmatmul.mubr.msk.f32.vlgmr.msra.gmra.mrb[16].mxu0 %vm69_vm0, %v6846_v53  ;;  %5294 = vmatmul.mubr.msk.f32.vlgmr.msra.gmra.mrb[16].mxu1 %vm69_vm0, %v6846_v53  ;;  %v243_v53 = vlaneseq }
 0x166   :  { %741 = vmatprep.mubr.f32.mxu0 %v8323_v18  ;;  %830 = vmatprep.mubr.f32.mxu1 %v8323_v18 }
 0x169   :  { %5291 = vmatmul.mubr.msk.f32.gmra.mrb[18].mxu0 %vm69_vm0, %v6881_v5  ;;  %5295 = vmatmul.mubr.msk.f32.gmra.mrb[18].mxu1 %vm69_vm0, %v6881_v5  ;;  %v7082_v5 = vshrl.u32 %v243_v53, 7 }
 0x16a   :  { %747 = vmatprep.mubr.f32.mxu0 %v8323_v18  ;;  %836 = vmatprep.mubr.f32.mxu1 %v8323_v18 }
 0x16b   :  { %v7085_v16 = vsub.s32 0, %v7082_v5  ;;  %v253_v17 = vsub.s32 2, %v7082_v5  ;;  %v7092_v22 = vsub.s32 1, %v7082_v5  ;;  %v261_v57 = vsub.s32 4, %v7082_v5 }
 0x16c   :  { %v269_v58 = vsub.s32 6, %v7082_v5  ;;  %v265_v60 = vsub.s32 5, %v7082_v5  ;;  %v273_v61 = vsub.s32 7, %v7082_v5 }
 0x16d   :  { %5292 = vmatmul.mubr.msk.f32.gmra.mrb[20].mxu0 %vm69_vm0, %v6914_v23  ;;  %5296 = vmatmul.mubr.msk.f32.gmra.mrb[20].mxu1 %vm69_vm0, %v6914_v23  ;;  %8348 = vst [vmem:[#allocation7_spill] sm:$0xff] %v7085_v16  ;;  %8349 = vst [vmem:[#allocation8_spill] sm:$0xff] %v7092_v22  ;;  %v257_v23 = vsub.s32 3, %v7082_v5  ;;  %v246_v24 = vrot.slane %v239_v19, %v7085_v16  ;;  %v254_v25 = vrot.slane %v239_v19, %v253_v17 }
 0x16e   :  { %753 = vmatprep.mubr.f32.mxu0 %v8323_v18  ;;  %842 = vmatprep.mubr.f32.mxu1 %v8323_v18  ;;  %v7099_v26 = vrot.slane %v239_v19, %v7092_v22  ;;  %v262_v63 = vrot.slane %v239_v19, %v261_v57  ;;  %v270_v0 = vrot.slane %v239_v19, %v269_v58 }
 0x16f   :  { %v258_v27 = vrot.slane %v239_v19, %v257_v23  ;;  %v266_v3 = vrot.slane %v239_v19, %v265_v60  ;;  %v274_v4 = vrot.slane %v239_v19, %v273_v61 }
 0x171   :  { %5293 = vmatmul.mubr.msk.f32.gmra.mrb[22].mxu0 %vm69_vm0, %v6947_v36  ;;  %5297 = vmatmul.mubr.msk.f32.gmra.mrb[22].mxu1 %vm69_vm0, %v6947_v36 }
 0x218   :  { %v381_v28 = vpop.f32.mrb[0].mxu0  ;;  %v470_v29 = vpop.f32.mrb[0].mxu1 }
 0x219   :  { %v382_v30 = vadd.f32 %v381_v28, %v246_v24  ;;  %v7103_v31 = vadd.f32 %v470_v29, %v254_v25  ;;  %v383_v32 = vpop.f32.mrb[1].mxu0  ;;  %v472_v33 = vpop.f32.mrb[1].mxu1 }
 0x21a   :  { %v7106_v34 = vadd.f32 %v383_v32, %v7099_v26  ;;  %v7108_v35 = vadd.f32 %v472_v33, %v258_v27 }
 0x21b   :  { %1106 = vrot.lane.b32.xlu1 %v382_v30, %s6559_s4  ;;  %5672 = vmatprep.mubr.msk.f32.mxu0 %vm69_vm0, %v382_v30 }
 0x21c   :  { %v387_v36 = vpop.f32.mrb[2].mxu0  ;;  %v476_v37 = vpop.f32.mrb[2].mxu1 }
 0x21d   :  { %v7112_v38 = vadd.f32 %v387_v36, %v246_v24  ;;  %v7114_v39 = vadd.f32 %v476_v37, %v254_v25  ;;  %v7116_v40 = vpop.f32.mrb[3].mxu0  ;;  %v478_v41 = vpop.f32.mrb[3].mxu1 }
 0x21e   :  { %v7118_v42 = vadd.f32 %v478_v41, %v258_v27 }
 0x21f   :  { %1108 = vrot.lane.b32.xlu1 %v7112_v38, %s6559_s4 }
 0x220   :  { %v393_v12 = vpop.f32.mrb[4].mxu0  ;;  %v482_v43 = vpop.f32.mrb[4].mxu1 }
 0x221   :  { %v7122_v44 = vadd.f32 %v393_v12, %v246_v24  ;;  %v7124_v45 = vadd.f32 %v482_v43, %v254_v25  ;;  %v395_v46 = vpop.f32.mrb[5].mxu0  ;;  %v484_v47 = vpop.f32.mrb[5].mxu1 }
 0x222   :  { %v7127_v48 = vadd.f32 %v395_v46, %v7099_v26  ;;  %v7129_v49 = vadd.f32 %v484_v47, %v258_v27 }
 0x223   :  { %8350 = vst [vmem:[#allocation9_spill] sm:$0xff] %v7124_v45 }
 0x224   :  { %8351 = vst [vmem:[#allocation10_spill] sm:$0xff] %v7129_v49  ;;  %v399_v50 = vpop.f32.mrb[6].mxu0  ;;  %v488_v51 = vpop.f32.mrb[6].mxu1 }
 0x225   :  { %v7131_v52 = vadd.f32 %v399_v50, %v246_v24  ;;  %v7133_v54 = vadd.f32 %v488_v51, %v254_v25  ;;  %v401_v55 = vpop.f32.mrb[7].mxu0  ;;  %v490_v56 = vpop.f32.mrb[7].mxu1 }
 0x226   :  { %v7138_v59 = vadd.f32 %v401_v55, %v7099_v26  ;;  %v7140_v20 = vadd.f32 %v490_v56, %v258_v27  ;;  %v240_v56 = vld [vmem:[%s8306_s6 + $0x8] sm:$0xf] }
 0x227   :  { %8352 = vst [vmem:[#allocation11_spill] sm:$0xff] %v7133_v54 }
 0x228   :  { %8353 = vst [vmem:[#allocation12_spill] sm:$0xff] %v7140_v20  ;;  %v559_v13 = vpop.f32.mrb[8].mxu0  ;;  %v648_v62 = vpop.f32.mrb[8].mxu1 }
 0x229   :  { %v561_v1 = vpop.f32.mrb[9].mxu0  ;;  %v650_v2 = vpop.f32.mrb[9].mxu1  ;;  %v560_v8 = vadd.f32 %v559_v13, %v262_v63  ;;  %v7144_v21 = vadd.f32 %v648_v62, %v270_v0 }
 0x22a   :  { %v7148_v15 = vadd.f32 %v561_v1, %v266_v3  ;;  %v7150_v53 = vadd.f32 %v650_v2, %v274_v4  ;;  %v286_v1 = vrot.slane %v240_v56, %v253_v17 }
 0x22c   :  { %v565_v6 = vpop.f32.mrb[10].mxu0  ;;  %v654_v7 = vpop.f32.mrb[10].mxu1 }
 0x22d   :  { %v566_v9 = vadd.f32 %v565_v6, %v262_v63  ;;  %v7146_v10 = vadd.f32 %v654_v7, %v270_v0  ;;  %v567_v11 = vpop.f32.mrb[11].mxu0  ;;  %v656_v14 = vpop.f32.mrb[11].mxu1  ;;  %v282_v7 = vrot.slane %v240_v56, %v7092_v22 }
 0x22e   :  { %v7152_v24 = vadd.f32 %v567_v11, %v266_v3  ;;  %v7154_v25 = vadd.f32 %v656_v14, %v274_v4 }
 0x22f   :  { %v6280_v27 = vpack.i.bf16 %v566_v9, %v560_v8  ;;  %v5988_v28 = vpack.c.bf16 %v566_v9, %v560_v8  ;;  %v7166_v30 = vpack.c.bf16 %v7146_v10, %v7144_v21  ;;  %v290_v8 = vrot.slane %v240_v56, %v257_v23 }
 0x230   :  { %v7172_v33 = vpack.c.bf16 %v7152_v24, %v7148_v15  ;;  %v7178_v37 = vpack.c.bf16 %v7154_v25, %v7150_v53  ;;  %v571_v41 = vpop.f32.mrb[12].mxu0  ;;  %v660_v12 = vpop.f32.mrb[12].mxu1 }
 0x231   :  { %v7180_v43 = vadd.f32 %v571_v41, %v262_v63  ;;  %v7182_v46 = vadd.f32 %v660_v12, %v270_v0  ;;  %v573_v47 = vpop.f32.mrb[13].mxu0  ;;  %v662_v50 = vpop.f32.mrb[13].mxu1  ;;  %6281 = vrot.lane.b32.xlu0 %v6280_v27, %s6559_s4  ;;  %5990 = vmatprep.subr.msk.bf16.mxu0 %vm7158_vm1, %v5988_v28  ;;  %v278_v27 = vrot.slane %v240_v56, %v7085_v16 }
 0x232   :  { %v7187_v51 = vadd.f32 %v573_v47, %v266_v3  ;;  %v7189_v55 = vadd.f32 %v662_v50, %v274_v4  ;;  %5993 = vmatpush3.bf16.xpose.msk.msra.mxu0 %vm7158_vm1, %v5988_v28 }
 0x234   :  { %8356 = vst [vmem:[#allocation13_spill] sm:$0xff] %v7189_v55  ;;  %v577_v57 = vpop.f32.mrb[14].mxu0  ;;  %v666_v58 = vpop.f32.mrb[14].mxu1 }
 0x235   :  { %v7196_v60 = vadd.f32 %v577_v57, %v262_v63  ;;  %v7198_v61 = vadd.f32 %v666_v58, %v270_v0  ;;  %v579_v13 = vpop.f32.mrb[15].mxu0  ;;  %v668_v62 = vpop.f32.mrb[15].mxu1 }
 0x236   :  { %v7202_v2 = vadd.f32 %v579_v13, %v266_v3  ;;  %v7204_v6 = vadd.f32 %v668_v62, %v274_v4 }
 0x237   :  { %v7213_v0 = vpack.c.bf16 %v7196_v60, %v7180_v43  ;;  %v7219_v17 = vpack.c.bf16 %v7198_v61, %v7182_v46 }
 0x238   :  { %8357 = vst [vmem:[#allocation14_spill] sm:$0xff] %v7204_v6  ;;  %v7225_v5 = vpack.c.bf16 %v7202_v2, %v7187_v51  ;;  %v7231_v4 = vpack.c.bf16 %v7204_v6, %v7189_v55  ;;  %v737_v11 = vpop.f32.mrb[16].mxu0  ;;  %v826_v14 = vpop.f32.mrb[16].mxu1 }
 0x239   :  { %8358 = vst [vmem:[#allocation15_spill] sm:$0xff] %v7219_v17  ;;  %v7234_v28 = vadd.f32 %v826_v14, %v286_v1  ;;  %v739_v41 = vpop.f32.mrb[17].mxu0  ;;  %v828_v12 = vpop.f32.mrb[17].mxu1  ;;  %5673 = vmatmul.mubr.msk.f32.vlgmr.msra.gmra.mrb[24].mxu0 %vm69_vm0, %v7112_v38  ;;  %v7242_v13 = vadd.f32 %v737_v11, %v278_v27 }
 0x23a   :  { %8359 = vst [vmem:[#allocation16_spill] sm:$0xff] %v7231_v4  ;;  %v7238_v47 = vadd.f32 %v739_v41, %v282_v7  ;;  %v7240_v50 = vadd.f32 %v828_v12, %v290_v8 }
 0x23c   :  { %v743_v57 = vpop.f32.mrb[18].mxu0  ;;  %v832_v58 = vpop.f32.mrb[18].mxu1 }
 0x23d   :  { %v7244_v62 = vadd.f32 %v743_v57, %v278_v27  ;;  %v7246_v18 = vadd.f32 %v832_v58, %v286_v1  ;;  %v745_v56 = vpop.f32.mrb[19].mxu0  ;;  %v834_v14 = vpop.f32.mrb[19].mxu1 }
 0x23e   :  { %v7248_v23 = vadd.f32 %v745_v56, %v282_v7  ;;  %v7250_v9 = vadd.f32 %v834_v14, %v290_v8 }
 0x23f   :  { %v5994_v41 = vpack.c.bf16 %v7244_v62, %v7242_v13  ;;  %v7260_v12 = vpack.c.bf16 %v7246_v18, %v7234_v28 }
 0x240   :  { %v6014_v58 = vpack.c.bf16 %v7248_v23, %v7238_v47  ;;  %v7270_v14 = vpack.c.bf16 %v7250_v9, %v7240_v50  ;;  %v749_v3 = vpop.f32.mrb[20].mxu0  ;;  %v838_v63 = vpop.f32.mrb[20].mxu1 }
 0x241   :  { %v7272_v36 = vadd.f32 %v749_v3, %v278_v27  ;;  %v7274_v11 = vadd.f32 %v838_v63, %v286_v1  ;;  %v751_v29 = vpop.f32.mrb[21].mxu0  ;;  %v840_v32 = vpop.f32.mrb[21].mxu1  ;;  %5995 = vmatprep.subr.bf16.mxu1 %v5994_v41 }
 0x242   :  { %v7276_v57 = vadd.f32 %v751_v29, %v282_v7  ;;  %v7278_v38 = vadd.f32 %v840_v32, %v290_v8  ;;  %5997 = vmatpush3.bf16.msra.mxu1 %v5994_v41 }
 0x243   :  { %8360 = vst [vmem:[#allocation17_spill] sm:$0xff] %v7274_v11 }
 0x244   :  { %8361 = vst [vmem:[#allocation18_spill] sm:$0xff] %v7278_v38  ;;  %v755_v22 = vpop.f32.mrb[22].mxu0  ;;  %v844_v56 = vpop.f32.mrb[22].mxu1 }
 0x245   :  { %v7280_v16 = vadd.f32 %v755_v22, %v278_v27  ;;  %v7282_v49 = vadd.f32 %v844_v56, %v286_v1  ;;  %v757_v4 = vpop.f32.mrb[23].mxu0  ;;  %v846_v20 = vpop.f32.mrb[23].mxu1 }
 0x246   :  { %v7284_v3 = vadd.f32 %v757_v4, %v282_v7  ;;  %v7286_v63 = vadd.f32 %v846_v20, %v290_v8 }
 0x247   :  { %8362 = vst [vmem:[#allocation19_spill] sm:$0xff] %v7282_v49  ;;  %v7292_v29 = vpack.c.bf16 %v7280_v16, %v7272_v36  ;;  %v7298_v22 = vpack.c.bf16 %v7282_v49, %v7274_v11 }
 0x248   :  { %8363 = vst [vmem:[#allocation20_spill] sm:$0xff] %v7286_v63  ;;  %v7304_v20 = vpack.c.bf16 %v7284_v3, %v7276_v57  ;;  %v7310_v8 = vpack.c.bf16 %v7286_v63, %v7278_v38 }
 0x24a   :  { %8364 = vst [vmem:[#allocation21_spill] sm:$0xff] %v7310_v8 }
 0x28d   :  { %v1107_v4 = vpop.permute.xlu1 %1106 }
 0x28e   :  { %5686 = vmatprep.mubr.msk.f32.mxu0 %vm69_vm0, %v1107_v4 }
 0x291   :  { %v1109_v1 = vpop.permute.xlu1 %1108 }
 0x2a3   :  { %v6282_v27 = vpop.permute.xlu0 %6281 }
 0x2a4   :  { %v6284_v41 = vunpack.i.h.bf16 %v6282_v27  ;;  %v6283_v56 = vunpack.i.l.bf16 %v6282_v27 }
 0x2a6   :  { %v5998_v32 = vpack.c.bf16 %v6284_v41, %v6283_v56 }
 0x2a8   :  { %6000 = vmatprep.subr.msk.bf16.mxu0 %vm7158_vm1, %v5998_v32 }
 0x2a9   :  { %6003 = vmatpush3.bf16.xpose.msk.msra.mxu0 %vm7158_vm1, %v5998_v32 }
 0x2aa   :  { %6015 = vmatprep.subr.bf16.mxu0 %v6014_v58 }
 0x2b0   :  { %5687 = vmatmul.mubr.msk.f32.vlgmr.msra.gmra.mrb[26].mxu0 %vm69_vm0, %v1109_v1 }
 0x2b1   :  { %6017 = vmatpush3.bf16.msra.mxu0 %v6014_v58 }
 0x30c   :  { %v5674_v7 = vpop.f32.mrb[24].mxu0 }
 0x30d   :  { %v991_v55 = vmul.f32 0.125, %v5674_v7  ;;  %v981_v38 = vpop.f32.mrb[25].mxu0 }
 0x30e   :  { %v990_v4 = vmul.f32 0.125, %v981_v38 }
 0x30f   :  { %v996_v63 = vsel %vm992_vm2, %v991_v55, -inf }
 0x310   :  { %997 = vmax.xlane.f32.xlu0 %v996_v63  ;;  %v993_v27 = vsel %vm992_vm2, %v990_v4, -inf }
 0x311   :  { %994 = vmax.xlane.f32.xlu1 %v993_v27 }
 0x383   :  { %v5688_v41 = vpop.f32.mrb[26].mxu0 }
 0x384   :  { %v1190_v56 = vpop.f32.mrb[27].mxu0  ;;  %v1200_v32 = vmul.f32 0.125, %v5688_v41 }
 0x385   :  { %v1199_v6 = vmul.f32 0.125, %v1190_v56 }
 0x386   :  { %v1204_v58 = vsel %vm992_vm2, %v1200_v32, -inf }
 0x387   :  { %v1201_v11 = vsel %vm992_vm2, %v1199_v6, -inf }
 0x388   :  { %1202 = vmax.xlane.f32.xlu0 %v1201_v11 }
 0x38c   :  { %1205 = vmax.xlane.f32.xlu0 %v1204_v58 }
 0x39d   :  { %v998_v1 = vpop.xlane.xlu0 %997 }
 0x39e   :  { %v1000_v7 = vsub.f32 %v991_v55, %v998_v1  ;;  %v995_v49 = vpop.xlane.xlu1 %994 }
 0x39f   :  { %v999_v38 = vsub.f32 %v990_v4, %v995_v49 }
 0x3a0   :  { %v1003_v8 = vmul.f32 1.442695, %v1000_v7  ;;  %v390_v7 = vadd.f32 %v7116_v40, %v7099_v26 }
 0x3a1   :  { %v1001_v45 = vmul.f32 1.442695, %v999_v38 }
 0x3a2   :  { %6370 = vpow2.f32 %v1003_v8 }
 0x3a3   :  { %6372 = vpow2.f32 %v1001_v45 }
 0x3ac   :  { %v6371_v63 = vpop.eup %6370 }
 0x3ad   :  { %v6373_v27 = vpop.eup %6372  ;;  %v1008_v17 = vsel %vm992_vm2, %v6371_v63, 0.0 }
 0x3ae   :  { %1009 = vadd.xlane.f32.xlu0 %v1008_v17  ;;  %v1005_v41 = vsel %vm992_vm2, %v6373_v27, 0.0  ;;  %v8365_v17 = vpack.i.bf16 %v7244_v62, %v7242_v13 }
 0x3af   :  { %1006 = vadd.xlane.f32.xlu1 %v1005_v41 }
 0x415   :  { %v1203_v11 = vpop.xlane.xlu0 %1202 }
 0x416   :  { %v1207_v56 = vsub.f32 %v1199_v6, %v1203_v11 }
 0x418   :  { %v1209_v54 = vmul.f32 1.442695, %v1207_v56 }
 0x419   :  { %v1206_v58 = vpop.xlane.xlu0 %1205 }
 0x41a   :  { %6374 = vpow2.f32 %v1209_v54  ;;  %v1208_v55 = vsub.f32 %v1200_v32, %v1206_v58  ;;  %v8366_v54 = vpack.i.bf16 %v7152_v24, %v7148_v15 }
 0x41c   :  { %v1211_v1 = vmul.f32 1.442695, %v1208_v55 }
 0x41e   :  { %6376 = vpow2.f32 %v1211_v1 }
 0x424   :  { %v6375_v49 = vpop.eup %6374 }
 0x425   :  { %v1213_v8 = vsel %vm992_vm2, %v6375_v49, 0.0 }
 0x426   :  { %1214 = vadd.xlane.f32.xlu1 %v1213_v8 }
 0x428   :  { %v6377_v45 = vpop.eup %6376 }
 0x429   :  { %v1216_v4 = vsel %vm992_vm2, %v6377_v45, 0.0 }
 0x42a   :  { %1217 = vadd.xlane.f32.xlu0 %v1216_v4 }
 0x437   :  { %6286 = vrot.lane.b32.xlu1 %v8365_v17, %s6559_s4 }
 0x43b   :  { %v1010_v6 = vpop.xlane.xlu0 %1009  ;;  %6291 = vrot.lane.b32.xlu1 %v8366_v54, %s6559_s4 }
 0x43c   :  { %6378 = vrcp.f32 %v1010_v6  ;;  %v1007_v32 = vpop.xlane.xlu1 %1006 }
 0x43d   :  { %6380 = vrcp.f32 %v1007_v32 }
 0x43f   :  { %1533 = vrot.lane.b32.xlu1 %v390_v7, %s6559_s4 }
 0x446   :  { %v6379_v38 = vpop.eup %6378 }
 0x447   :  { %v6381_v41 = vpop.eup %6380  ;;  %v1014_v56 = vmul.f32 %v6379_v38, %v6371_v63 }
 0x448   :  { %v1013_v11 = vmul.f32 %v6381_v41, %v6373_v27 }
 0x44a   :  { %5679 = vmatprep.mubr.msk.f32.mxu1 %vm992_vm2, %v1013_v11 }
 0x44b   :  { %5680 = vmatmul.mubr.msk.f32.vlgmr.msra.gmra.mrb[24].mxu1 %vm992_vm2, %v1014_v56 }
 0x4b3   :  { %v1215_v13 = vpop.xlane.xlu1 %1214 }
 0x4b4   :  { %6382 = vrcp.f32 %v1215_v13 }
 0x4b7   :  { %v1218_v15 = vpop.xlane.xlu0 %1217  ;;  %v6287_v24 = vpop.permute.xlu1 %6286 }
 0x4b8   :  { %6384 = vrcp.f32 %v1218_v15  ;;  %v6289_v62 = vunpack.i.h.bf16 %v6287_v24  ;;  %v6288_v58 = vunpack.i.l.bf16 %v6287_v24 }
 0x4ba   :  { %v6004_v55 = vpack.c.bf16 %v6289_v62, %v6288_v58 }
 0x4bb   :  { %v6292_v26 = vpop.permute.xlu1 %6291 }
 0x4bc   :  { %v6294_v40 = vunpack.i.h.bf16 %v6292_v26  ;;  %v6293_v1 = vunpack.i.l.bf16 %v6292_v26  ;;  %6005 = vmatprep.subr.bf16.mxu1 %v6004_v55 }
 0x4bd   :  { %6007 = vmatpush3.bf16.msra.mxu1 %v6004_v55 }
 0x4be   :  { %v6383_v8 = vpop.eup %6382  ;;  %v6018_v27 = vpack.c.bf16 %v6294_v40, %v6293_v1  ;;  %6010 = vmatprep.subr.msk.bf16.mxu1 %vm7158_vm1, %v7172_v33 }
 0x4bf   :  { %v1221_v63 = vmul.f32 %v6383_v8, %v6375_v49 }
 0x4c0   :  { %6020 = vmatprep.subr.msk.bf16.mxu0 %vm7158_vm1, %v6018_v27 }
 0x4c1   :  { %5693 = vmatprep.mubr.msk.f32.mxu1 %vm992_vm2, %v1221_v63 }
 0x4c2   :  { %v6385_v4 = vpop.eup %6384 }
 0x4c3   :  { %v1222_v17 = vmul.f32 %v6385_v4, %v6377_v45 }
 0x4c5   :  { %5694 = vmatmul.mubr.msk.f32.vlgmr.msra.gmra.mrb[26].mxu1 %vm992_vm2, %v1222_v17 }
 0x4c6   :  { %6013 = vmatpush3.bf16.xpose.msk.msra.mxu1 %vm7158_vm1, %v7172_v33  ;;  %5700 = vmatprep.mubr.msk.f32.mxu1 %vm69_vm0, %v7106_v34 }
 0x4cd   :  { %5701 = vmatmul.mubr.msk.f32.vlgmr.msra.gmra.mrb[28].mxu1 %vm69_vm0, %v390_v7 }
 0x51e   :  { %v5681_v6 = vpop.f32.mrb[24].mxu1 }
 0x51f   :  { %1097 = vst.msk [vmem:[#allocation3 + $0x20] sm:$0xff] %vm69_vm0, %v5681_v6  ;;  %v1087_v49 = vpop.f32.mrb[25].mxu1 }
 0x520   :  { %1096 = vst.msk [vmem:[#allocation3] sm:$0xff] %vm69_vm0, %v1087_v49 }
 0x598   :  { %v7354_v54 = vpop.f32.mrb[26].mxu1 }
 0x599   :  { %v7356_v45 = vpop.f32.mrb[27].mxu1 }
 0x5a0   :  { %v5702_v32 = vpop.f32.mrb[28].mxu1 }
 0x5a1   :  { %v1407_v38 = vpop.f32.mrb[29].mxu1  ;;  %v1417_v11 = vmul.f32 0.125, %v5702_v32 }
 0x5a2   :  { %v1416_v41 = vmul.f32 0.125, %v1407_v38 }
 0x5a3   :  { %v1421_v56 = vsel %vm992_vm2, %v1417_v11, -inf }
 0x5a4   :  { %v1418_v33 = vsel %vm992_vm2, %v1416_v41, -inf }
 0x5a5   :  { %1419 = vmax.xlane.f32.xlu0 %v1418_v33 }
 0x5a9   :  { %1422 = vmax.xlane.f32.xlu0 %v1421_v56 }
 0x632   :  { %v1420_v7 = vpop.xlane.xlu0 %1419 }
 0x633   :  { %v1424_v13 = vsub.f32 %v1416_v41, %v1420_v7 }
 0x635   :  { %v1426_v15 = vmul.f32 1.442695, %v1424_v13 }
 0x636   :  { %v1423_v24 = vpop.xlane.xlu0 %1422 }
 0x637   :  { %6386 = vpow2.f32 %v1426_v15  ;;  %v1425_v62 = vsub.f32 %v1417_v11, %v1423_v24 }
 0x639   :  { %v1428_v58 = vmul.f32 1.442695, %v1425_v62 }
 0x63b   :  { %6388 = vpow2.f32 %v1428_v58 }
 0x641   :  { %v6387_v55 = vpop.eup %6386 }
 0x642   :  { %v1430_v26 = vsel %vm992_vm2, %v6387_v55, 0.0 }
 0x643   :  { %1431 = vadd.xlane.f32.xlu0 %v1430_v26 }
 0x645   :  { %v6389_v40 = vpop.eup %6388 }
 0x646   :  { %v1433_v1 = vsel %vm992_vm2, %v6389_v40, 0.0 }
 0x647   :  { %1434 = vadd.xlane.f32.xlu0 %v1433_v1 }
 0x65d   :  { %1531 = vrot.lane.b32.xlu0 %v7106_v34, %s6559_s4  ;;  %v1534_v34 = vpop.permute.xlu1 %1533 }
 0x6d0   :  { %v1432_v8 = vpop.xlane.xlu0 %1431 }
 0x6d1   :  { %6390 = vrcp.f32 %v1432_v8 }
 0x6d4   :  { %v1435_v63 = vpop.xlane.xlu0 %1434 }
 0x6d5   :  { %6392 = vrcp.f32 %v1435_v63  ;;  %v8367_v63 = vpack.i.bf16 %v7248_v23, %v7238_v47 }
 0x6d8   :  { %v1532_v32 = vpop.permute.xlu0 %1531 }
 0x6db   :  { %v6391_v4 = vpop.eup %6390 }
 0x6dc   :  { %v1438_v17 = vmul.f32 %v6391_v4, %v6387_v55  ;;  %v8368_v4 = vpack.i.bf16 %v7146_v10, %v7144_v21 }
 0x6de   :  { %5707 = vmatprep.mubr.msk.f32.mxu0 %vm992_vm2, %v1438_v17 }
 0x6df   :  { %v6393_v6 = vpop.eup %6392 }
 0x6e0   :  { %v1439_v49 = vmul.f32 %v6393_v6, %v6389_v40 }
 0x6e2   :  { %5708 = vmatmul.mubr.msk.f32.vlgmr.msra.gmra.mrb[28].mxu0 %vm992_vm2, %v1439_v49 }
 0x6e3   :  { %6023 = vmatpush3.bf16.xpose.msk.msra.mxu0 %vm7158_vm1, %v6018_v27  ;;  %5714 = vmatprep.mubr.msk.f32.mxu0 %vm69_vm0, %v1532_v32 }
 0x6e4   :  { %6035 = vmatprep.subr.bf16.mxu0 %v7260_v12 }
 0x6ea   :  { %5715 = vmatmul.mubr.msk.f32.vlgmr.msra.gmra.mrb[30].mxu0 %vm69_vm0, %v1534_v34 }
 0x6eb   :  { %6037 = vmatpush3.bf16.msra.mxu0 %v7260_v12 }
 0x7b5   :  { %v5709_v38 = vpop.f32.mrb[28].mxu0 }
 0x7b6   :  { %1522 = vst.msk [vmem:[#allocation3 + $0x28] sm:$0xff] %vm69_vm0, %v5709_v38  ;;  %v1512_v41 = vpop.f32.mrb[29].mxu0 }
 0x7b7   :  { %1521 = vst.msk [vmem:[#allocation3 + $0x8] sm:$0xff] %vm69_vm0, %v1512_v41 }
 0x7bd   :  { %v5716_v11 = vpop.f32.mrb[30].mxu0 }
 0x7be   :  { %v1625_v33 = vmul.f32 0.125, %v5716_v11  ;;  %v1615_v56 = vpop.f32.mrb[31].mxu0 }
 0x7bf   :  { %v1624_v7 = vmul.f32 0.125, %v1615_v56 }
 0x7c0   :  { %v1629_v27 = vsel %vm992_vm2, %v1625_v33, -inf }
 0x7c1   :  { %1630 = vmax.xlane.f32.xlu0 %v1629_v27  ;;  %v1626_v13 = vsel %vm992_vm2, %v1624_v7, -inf }
 0x7c2   :  { %1627 = vmax.xlane.f32.xlu1 %v1626_v13 }
 0x84e   :  { %v1631_v15 = vpop.xlane.xlu0 %1630 }
 0x84f   :  { %v1633_v24 = vsub.f32 %v1625_v33, %v1631_v15  ;;  %v1628_v62 = vpop.xlane.xlu1 %1627 }
 0x850   :  { %v1632_v12 = vsub.f32 %v1624_v7, %v1628_v62 }
 0x851   :  { %v1636_v58 = vmul.f32 1.442695, %v1633_v24 }
 0x852   :  { %v1634_v55 = vmul.f32 1.442695, %v1632_v12 }
 0x853   :  { %6394 = vpow2.f32 %v1636_v58 }
 0x854   :  { %6396 = vpow2.f32 %v1634_v55 }
 0x85d   :  { %v6395_v26 = vpop.eup %6394 }
 0x85e   :  { %v1641_v40 = vsel %vm992_vm2, %v6395_v26, 0.0  ;;  %v6397_v1 = vpop.eup %6396 }
 0x85f   :  { %1642 = vadd.xlane.f32.xlu1 %v1641_v40  ;;  %v1638_v8 = vsel %vm992_vm2, %v6397_v1, 0.0 }
 0x863   :  { %1639 = vadd.xlane.f32.xlu1 %v1638_v8 }
 0x874   :  { %6296 = vrot.lane.b32.xlu1 %v8367_v63, %s6559_s4 }
 0x878   :  { %6301 = vrot.lane.b32.xlu1 %v8368_v4, %s6559_s4 }
 0x87c   :  { %1957 = vrot.lane.b32.xlu1 %v7114_v39, %s6559_s4 }
 0x8ec   :  { %v1643_v17 = vpop.xlane.xlu1 %1642 }
 0x8ed   :  { %6398 = vrcp.f32 %v1643_v17 }
 0x8f0   :  { %v1640_v6 = vpop.xlane.xlu1 %1639 }
 0x8f1   :  { %6400 = vrcp.f32 %v1640_v6 }
 0x8f4   :  { %v6297_v49 = vpop.permute.xlu1 %6296 }
 0x8f5   :  { %v6299_v32 = vunpack.i.h.bf16 %v6297_v49  ;;  %v6298_v34 = vunpack.i.l.bf16 %v6297_v49 }
 0x8f7   :  { %v6024_v38 = vpack.c.bf16 %v6299_v32, %v6298_v34  ;;  %v6399_v47 = vpop.eup %6398 }
 0x8f8   :  { %v6302_v41 = vpop.permute.xlu1 %6301  ;;  %v1647_v56 = vmul.f32 %v6399_v47, %v6395_v26 }
 0x8f9   :  { %v6304_v11 = vunpack.i.h.bf16 %v6302_v41  ;;  %v6303_v23 = vunpack.i.l.bf16 %v6302_v41  ;;  %6025 = vmatprep.subr.bf16.mxu1 %v6024_v38 }
 0x8fa   :  { %6027 = vmatpush3.bf16.msra.mxu1 %v6024_v38 }
 0x8fb   :  { %v6401_v33 = vpop.eup %6400  ;;  %v6038_v21 = vpack.c.bf16 %v6304_v11, %v6303_v23  ;;  %6030 = vmatprep.subr.msk.bf16.mxu1 %vm7158_vm1, %v7166_v30 }
 0x8fc   :  { %v1646_v10 = vmul.f32 %v6401_v33, %v6397_v1 }
 0x8fd   :  { %6040 = vmatprep.subr.msk.bf16.mxu0 %vm7158_vm1, %v6038_v21 }
 0x8fe   :  { %5721 = vmatprep.mubr.msk.f32.mxu1 %vm992_vm2, %v1646_v10 }
 0x8ff   :  { %5722 = vmatmul.mubr.msk.f32.vlgmr.msra.gmra.mrb[30].mxu1 %vm992_vm2, %v1647_v56 }
 0x900   :  { %5728 = vmatprep.mubr.msk.f32.mxu1 %vm69_vm0, %v7103_v31 }
 0x903   :  { %6033 = vmatpush3.bf16.xpose.msk.msra.mxu1 %vm7158_vm1, %v7166_v30 }
 0x90a   :  { %5729 = vmatmul.mubr.msk.f32.vlgmr.msra.gmra.mrb[32].mxu1 %vm69_vm0, %v7114_v39 }
 0x9d2   :  { %v7402_v7 = vpop.f32.mrb[30].mxu1 }
 0x9d3   :  { %v7404_v27 = vpop.f32.mrb[31].mxu1 }
 0x9dd   :  { %v5730_v13 = vpop.f32.mrb[32].mxu1 }
 0x9de   :  { %v1831_v15 = vpop.f32.mrb[33].mxu1  ;;  %v1841_v62 = vmul.f32 0.125, %v5730_v13 }
 0x9df   :  { %v1840_v24 = vmul.f32 0.125, %v1831_v15 }
 0x9e0   :  { %v1845_v58 = vsel %vm992_vm2, %v1841_v62, -inf }
 0x9e1   :  { %v1842_v12 = vsel %vm992_vm2, %v1840_v24, -inf }
 0x9e2   :  { %1843 = vmax.xlane.f32.xlu0 %v1842_v12 }
 0x9e6   :  { %1846 = vmax.xlane.f32.xlu0 %v1845_v58 }
 0xa6f   :  { %v1844_v55 = vpop.xlane.xlu0 %1843 }
 0xa70   :  { %v1848_v26 = vsub.f32 %v1840_v24, %v1844_v55 }
 0xa72   :  { %v1850_v30 = vmul.f32 1.442695, %v1848_v26 }
 0xa73   :  { %v1847_v40 = vpop.xlane.xlu0 %1846 }
 0xa74   :  { %6402 = vpow2.f32 %v1850_v30  ;;  %v1849_v39 = vsub.f32 %v1841_v62, %v1847_v40 }
 0xa76   :  { %v1852_v1 = vmul.f32 1.442695, %v1849_v39 }
 0xa78   :  { %6404 = vpow2.f32 %v1852_v1  ;;  %v8369_v1 = vpack.i.bf16 %v7246_v18, %v7234_v28 }
 0xa7e   :  { %v6403_v8 = vpop.eup %6402 }
 0xa7f   :  { %v1854_v63 = vsel %vm992_vm2, %v6403_v8, 0.0 }
 0xa80   :  { %1855 = vadd.xlane.f32.xlu0 %v1854_v63 }
 0xa82   :  { %v6405_v4 = vpop.eup %6404 }
 0xa83   :  { %v1857_v17 = vsel %vm992_vm2, %v6405_v4, 0.0 }
 0xa84   :  { %1858 = vadd.xlane.f32.xlu0 %v1857_v17 }
 0xa9a   :  { %1955 = vrot.lane.b32.xlu0 %v7103_v31, %s6559_s4  ;;  %v1958_v31 = vpop.permute.xlu1 %1957 }
 0xb0d   :  { %v1856_v6 = vpop.xlane.xlu0 %1855 }
 0xb0e   :  { %6406 = vrcp.f32 %v1856_v6 }
 0xb11   :  { %v1859_v49 = vpop.xlane.xlu0 %1858 }
 0xb12   :  { %6408 = vrcp.f32 %v1859_v49 }
 0xb15   :  { %v1956_v11 = vpop.permute.xlu0 %1955 }
 0xb18   :  { %v6407_v32 = vpop.eup %6406 }
 0xb19   :  { %v1862_v34 = vmul.f32 %v6407_v32, %v6403_v8  ;;  %v8370_v8 = vpack.i.bf16 %v7154_v25, %v7150_v53 }
 0xb1b   :  { %5735 = vmatprep.mubr.msk.f32.mxu0 %vm992_vm2, %v1862_v34 }
 0xb1c   :  { %v6409_v38 = vpop.eup %6408 }
 0xb1d   :  { %v1863_v41 = vmul.f32 %v6409_v38, %v6405_v4 }
 0xb1f   :  { %5736 = vmatmul.mubr.msk.f32.vlgmr.msra.gmra.mrb[32].mxu0 %vm992_vm2, %v1863_v41 }
 0xb20   :  { %6043 = vmatpush3.bf16.xpose.msk.msra.mxu0 %vm7158_vm1, %v6038_v21  ;;  %5742 = vmatprep.mubr.msk.f32.mxu0 %vm69_vm0, %v1956_v11 }
 0xb21   :  { %6055 = vmatprep.subr.bf16.mxu0 %v7270_v14 }
 0xb27   :  { %5743 = vmatmul.mubr.msk.f32.vlgmr.msra.gmra.mrb[34].mxu0 %vm69_vm0, %v1958_v31 }
 0xb28   :  { %6057 = vmatpush3.bf16.msra.mxu0 %v7270_v14 }
 0xbf2   :  { %v5737_v23 = vpop.f32.mrb[32].mxu0 }
 0xbf3   :  { %1946 = vst.msk [vmem:[#allocation3 + $0x30] sm:$0xff] %vm69_vm0, %v5737_v23  ;;  %v1936_v47 = vpop.f32.mrb[33].mxu0 }
 0xbf4   :  { %1945 = vst.msk [vmem:[#allocation3 + $0x10] sm:$0xff] %vm69_vm0, %v1936_v47 }
 0xbfa   :  { %v5744_v33 = vpop.f32.mrb[34].mxu0 }
 0xbfb   :  { %v2049_v10 = vmul.f32 0.125, %v5744_v33  ;;  %v2039_v56 = vpop.f32.mrb[35].mxu0 }
 0xbfc   :  { %v2048_v13 = vmul.f32 0.125, %v2039_v56 }
 0xbfd   :  { %v2053_v21 = vsel %vm992_vm2, %v2049_v10, -inf }
 0xbfe   :  { %2054 = vmax.xlane.f32.xlu0 %v2053_v21  ;;  %v2050_v15 = vsel %vm992_vm2, %v2048_v13, -inf }
 0xbff   :  { %2051 = vmax.xlane.f32.xlu1 %v2050_v15 }
 0xc8b   :  { %v2055_v24 = vpop.xlane.xlu0 %2054 }
 0xc8c   :  { %v2057_v62 = vsub.f32 %v2049_v10, %v2055_v24  ;;  %v2052_v12 = vpop.xlane.xlu1 %2051 }
 0xc8d   :  { %v2056_v14 = vsub.f32 %v2048_v13, %v2052_v12 }
 0xc8e   :  { %v2060_v58 = vmul.f32 1.442695, %v2057_v62 }
 0xc8f   :  { %v2058_v55 = vmul.f32 1.442695, %v2056_v14 }
 0xc90   :  { %6410 = vpow2.f32 %v2060_v58 }
 0xc91   :  { %6412 = vpow2.f32 %v2058_v55 }
 0xc9a   :  { %v6411_v26 = vpop.eup %6410 }
 0xc9b   :  { %v2065_v30 = vsel %vm992_vm2, %v6411_v26, 0.0  ;;  %v6413_v40 = vpop.eup %6412 }
 0xc9c   :  { %2066 = vadd.xlane.f32.xlu1 %v2065_v30  ;;  %v2062_v39 = vsel %vm992_vm2, %v6413_v40, 0.0 }
 0xca0   :  { %2063 = vadd.xlane.f32.xlu1 %v2062_v39 }
 0xcb1   :  { %6306 = vrot.lane.b32.xlu1 %v8369_v1, %s6559_s4 }
 0xcb5   :  { %6311 = vrot.lane.b32.xlu1 %v8370_v8, %s6559_s4 }
 0xcb9   :  { %2381 = vrot.lane.b32.xlu1 %v7118_v42, %s6559_s4 }
 0xd29   :  { %v2067_v63 = vpop.xlane.xlu1 %2066 }
 0xd2a   :  { %6414 = vrcp.f32 %v2067_v63 }
 0xd2d   :  { %v2064_v4 = vpop.xlane.xlu1 %2063 }
 0xd2e   :  { %6416 = vrcp.f32 %v2064_v4 }
 0xd31   :  { %v6307_v17 = vpop.permute.xlu1 %6306 }
 0xd32   :  { %v6309_v6 = vunpack.i.h.bf16 %v6307_v17  ;;  %v6308_v49 = vunpack.i.l.bf16 %v6307_v17 }
 0xd34   :  { %v6044_v32 = vpack.c.bf16 %v6309_v6, %v6308_v49  ;;  %v6415_v28 = vpop.eup %6414 }
 0xd35   :  { %v6312_v34 = vpop.permute.xlu1 %6311  ;;  %v2071_v11 = vmul.f32 %v6415_v28, %v6411_v26 }
 0xd36   :  { %v6314_v38 = vunpack.i.h.bf16 %v6312_v34  ;;  %v6313_v18 = vunpack.i.l.bf16 %v6312_v34  ;;  %6045 = vmatprep.subr.bf16.mxu1 %v6044_v32 }
 0xd37   :  { %6047 = vmatpush3.bf16.msra.mxu1 %v6044_v32 }
 0xd38   :  { %v6417_v41 = vpop.eup %6416  ;;  %v6058_v53 = vpack.c.bf16 %v6314_v38, %v6313_v18  ;;  %6050 = vmatprep.subr.msk.bf16.mxu1 %vm7158_vm1, %v7178_v37 }
 0xd39   :  { %v2070_v25 = vmul.f32 %v6417_v41, %v6413_v40 }
 0xd3a   :  { %6060 = vmatprep.subr.msk.bf16.mxu0 %vm7158_vm1, %v6058_v53 }
 0xd3b   :  { %5749 = vmatprep.mubr.msk.f32.mxu1 %vm992_vm2, %v2070_v25 }
 0xd3c   :  { %5750 = vmatmul.mubr.msk.f32.vlgmr.msra.gmra.mrb[34].mxu1 %vm992_vm2, %v2071_v11 }
 0xd3d   :  { %5756 = vmatprep.mubr.msk.f32.mxu1 %vm69_vm0, %v7108_v35 }
 0xd40   :  { %6053 = vmatpush3.bf16.xpose.msk.msra.mxu1 %vm7158_vm1, %v7178_v37 }
 0xd47   :  { %5757 = vmatmul.mubr.msk.f32.vlgmr.msra.gmra.mrb[36].mxu1 %vm69_vm0, %v7118_v42 }
 0xe0f   :  { %v7450_v31 = vpop.f32.mrb[34].mxu1 }
 0xe10   :  { %v7452_v23 = vpop.f32.mrb[35].mxu1 }
 0xe1a   :  { %v5758_v47 = vpop.f32.mrb[36].mxu1 }
 0xe1b   :  { %v2255_v33 = vpop.f32.mrb[37].mxu1  ;;  %v2265_v56 = vmul.f32 0.125, %v5758_v47 }
 0xe1c   :  { %v2264_v10 = vmul.f32 0.125, %v2255_v33 }
 0xe1d   :  { %v2269_v21 = vsel %vm992_vm2, %v2265_v56, -inf }
 0xe1e   :  { %v2266_v13 = vsel %vm992_vm2, %v2264_v10, -inf }
 0xe1f   :  { %2267 = vmax.xlane.f32.xlu0 %v2266_v13 }
 0xe23   :  { %2270 = vmax.xlane.f32.xlu0 %v2269_v21  ;;  %v8371_v21 = vpack.i.bf16 %v7250_v9, %v7240_v50 }
 0xeac   :  { %v2268_v15 = vpop.xlane.xlu0 %2267 }
 0xead   :  { %v2272_v24 = vsub.f32 %v2264_v10, %v2268_v15  ;;  %v8372_v15 = vpack.i.bf16 %v7196_v60, %v7180_v43 }
 0xeaf   :  { %v2274_v37 = vmul.f32 1.442695, %v2272_v24 }
 0xeb0   :  { %v2271_v62 = vpop.xlane.xlu0 %2270 }
 0xeb1   :  { %6418 = vpow2.f32 %v2274_v37  ;;  %v2273_v42 = vsub.f32 %v2265_v56, %v2271_v62 }
 0xeb3   :  { %v2276_v12 = vmul.f32 1.442695, %v2273_v42 }
 0xeb5   :  { %6420 = vpow2.f32 %v2276_v12 }
 0xebb   :  { %v6419_v14 = vpop.eup %6418 }
 0xebc   :  { %v2278_v58 = vsel %vm992_vm2, %v6419_v14, 0.0 }
 0xebd   :  { %2279 = vadd.xlane.f32.xlu0 %v2278_v58 }
 0xebf   :  { %v6421_v55 = vpop.eup %6420 }
 0xec0   :  { %v2281_v26 = vsel %vm992_vm2, %v6421_v55, 0.0 }
 0xec1   :  { %2282 = vadd.xlane.f32.xlu0 %v2281_v26 }
 0xed7   :  { %2379 = vrot.lane.b32.xlu0 %v7108_v35, %s6559_s4  ;;  %v2382_v35 = vpop.permute.xlu1 %2381 }
 0xf4a   :  { %v2280_v30 = vpop.xlane.xlu0 %2279 }
 0xf4b   :  { %6422 = vrcp.f32 %v2280_v30 }
 0xf4e   :  { %v2283_v40 = vpop.xlane.xlu0 %2282 }
 0xf4f   :  { %6424 = vrcp.f32 %v2283_v40 }
 0xf52   :  { %v2380_v4 = vpop.permute.xlu0 %2379 }
 0xf55   :  { %v6423_v39 = vpop.eup %6422 }
 0xf56   :  { %v2286_v1 = vmul.f32 %v6423_v39, %v6419_v14 }
 0xf58   :  { %5763 = vmatprep.mubr.msk.f32.mxu0 %vm992_vm2, %v2286_v1 }
 0xf59   :  { %v6425_v8 = vpop.eup %6424 }
 0xf5a   :  { %v2287_v63 = vmul.f32 %v6425_v8, %v6421_v55 }
 0xf5c   :  { %5764 = vmatmul.mubr.msk.f32.vlgmr.msra.gmra.mrb[36].mxu0 %vm992_vm2, %v2287_v63 }
 0xf5d   :  { %6063 = vmatpush3.bf16.xpose.msk.msra.mxu0 %vm7158_vm1, %v6058_v53  ;;  %5770 = vmatprep.mubr.msk.f32.mxu0 %vm69_vm0, %v2380_v4 }
 0xf5e   :  { %6075 = vmatprep.subr.bf16.mxu0 %v7292_v29 }
 0xf64   :  { %5771 = vmatmul.mubr.msk.f32.vlgmr.msra.gmra.mrb[38].mxu0 %vm69_vm0, %v2382_v35 }
 0xf65   :  { %6077 = vmatpush3.bf16.msra.mxu0 %v7292_v29 }
0x102f   :  { %v5765_v17 = vpop.f32.mrb[36].mxu0 }
0x1030   :  { %2370 = vst.msk [vmem:[#allocation3 + $0x38] sm:$0xff] %vm69_vm0, %v5765_v17  ;;  %v2360_v6 = vpop.f32.mrb[37].mxu0 }
0x1031   :  { %2369 = vst.msk [vmem:[#allocation3 + $0x18] sm:$0xff] %vm69_vm0, %v2360_v6 }
0x1037   :  { %v5772_v49 = vpop.f32.mrb[38].mxu0 }
0x1038   :  { %v2473_v32 = vmul.f32 0.125, %v5772_v49  ;;  %v2463_v34 = vpop.f32.mrb[39].mxu0 }
0x1039   :  { %v2472_v38 = vmul.f32 0.125, %v2463_v34 }
0x103a   :  { %v2477_v18 = vsel %vm992_vm2, %v2473_v32, -inf }
0x103b   :  { %2478 = vmax.xlane.f32.xlu0 %v2477_v18  ;;  %v2474_v28 = vsel %vm992_vm2, %v2472_v38, -inf }
0x103c   :  { %2475 = vmax.xlane.f32.xlu1 %v2474_v28 }
0x10c8   :  { %v2479_v41 = vpop.xlane.xlu0 %2478 }
0x10c9   :  { %v2481_v53 = vsub.f32 %v2473_v32, %v2479_v41  ;;  %v2476_v25 = vpop.xlane.xlu1 %2475 }
0x10ca   :  { %v2480_v29 = vsub.f32 %v2472_v38, %v2476_v25 }
0x10cb   :  { %v2484_v11 = vmul.f32 1.442695, %v2481_v53 }
0x10cc   :  { %v2482_v47 = vmul.f32 1.442695, %v2480_v29 }
0x10cd   :  { %6426 = vpow2.f32 %v2484_v11 }
0x10ce   :  { %6428 = vpow2.f32 %v2482_v47 }
0x10d7   :  { %v6427_v33 = vpop.eup %6426 }
0x10d8   :  { %v2489_v10 = vsel %vm992_vm2, %v6427_v33, 0.0  ;;  %v6429_v56 = vpop.eup %6428 }
0x10d9   :  { %2490 = vadd.xlane.f32.xlu1 %v2489_v10  ;;  %v2486_v13 = vsel %vm992_vm2, %v6429_v56, 0.0 }
0x10dd   :  { %2487 = vadd.xlane.f32.xlu1 %v2486_v13 }
0x10ee   :  { %6316 = vrot.lane.b32.xlu1 %v8371_v21, %s6559_s4 }
0x10f2   :  { %6321 = vrot.lane.b32.xlu1 %v8372_v15, %s6559_s4 }
0x10f6   :  { %2805 = vrot.lane.b32.xlu1 %v7131_v52, %s6559_s4 }
0x1166   :  { %v2491_v24 = vpop.xlane.xlu1 %2490 }
0x1167   :  { %6430 = vrcp.f32 %v2491_v24 }
0x116a   :  { %v2488_v37 = vpop.xlane.xlu1 %2487 }
0x116b   :  { %6432 = vrcp.f32 %v2488_v37 }
0x116e   :  { %v6317_v62 = vpop.permute.xlu1 %6316 }
0x116f   :  { %v6319_v42 = vunpack.i.h.bf16 %v6317_v62  ;;  %v6318_v12 = vunpack.i.l.bf16 %v6317_v62 }
0x1171   :  { %v6064_v14 = vpack.c.bf16 %v6319_v42, %v6318_v12  ;;  %v6431_v50 = vpop.eup %6430 }
0x1172   :  { %v6322_v58 = vpop.permute.xlu1 %6321  ;;  %v2495_v30 = vmul.f32 %v6431_v50, %v6427_v33 }
0x1173   :  { %v6324_v55 = vunpack.i.h.bf16 %v6322_v58  ;;  %v6323_v9 = vunpack.i.l.bf16 %v6322_v58  ;;  %6065 = vmatprep.subr.bf16.mxu1 %v6064_v14 }
0x1174   :  { %6067 = vmatpush3.bf16.msra.mxu1 %v6064_v14 }
0x1175   :  { %v6433_v26 = vpop.eup %6432  ;;  %v6078_v43 = vpack.c.bf16 %v6324_v55, %v6323_v9  ;;  %6070 = vmatprep.subr.msk.bf16.mxu1 %vm7158_vm1, %v7213_v0 }
0x1176   :  { %v2494_v60 = vmul.f32 %v6433_v26, %v6429_v56 }
0x1177   :  { %6080 = vmatprep.subr.msk.bf16.mxu0 %vm7158_vm1, %v6078_v43 }
0x1178   :  { %5777 = vmatprep.mubr.msk.f32.mxu1 %vm992_vm2, %v2494_v60 }
0x1179   :  { %5778 = vmatmul.mubr.msk.f32.vlgmr.msra.gmra.mrb[38].mxu1 %vm992_vm2, %v2495_v30  ;;  %v8373_v30 = vpack.i.bf16 %v7280_v16, %v7272_v36 }
0x117a   :  { %5784 = vmatprep.mubr.msk.f32.mxu1 %vm69_vm0, %v7122_v44 }
0x117d   :  { %6073 = vmatpush3.bf16.xpose.msk.msra.mxu1 %vm7158_vm1, %v7213_v0 }
0x1184   :  { %5785 = vmatmul.mubr.msk.f32.vlgmr.msra.gmra.mrb[40].mxu1 %vm69_vm0, %v7131_v52 }
0x124c   :  { %v7498_v40 = vpop.f32.mrb[38].mxu1 }
0x124d   :  { %v7500_v39 = vpop.f32.mrb[39].mxu1 }
0x1257   :  { %v5786_v1 = vpop.f32.mrb[40].mxu1 }
0x1258   :  { %v2679_v8 = vpop.f32.mrb[41].mxu1  ;;  %v2689_v4 = vmul.f32 0.125, %v5786_v1  ;;  %v8374_v1 = vpack.i.bf16 %v7202_v2, %v7187_v51 }
0x1259   :  { %v2688_v63 = vmul.f32 0.125, %v2679_v8 }
0x125a   :  { %v2693_v17 = vsel %vm992_vm2, %v2689_v4, -inf }
0x125b   :  { %v2690_v35 = vsel %vm992_vm2, %v2688_v63, -inf }
0x125c   :  { %2691 = vmax.xlane.f32.xlu0 %v2690_v35 }
0x1260   :  { %2694 = vmax.xlane.f32.xlu0 %v2693_v17 }
0x12e9   :  { %v2692_v6 = vpop.xlane.xlu0 %2691 }
0x12ea   :  { %v2696_v49 = vsub.f32 %v2688_v63, %v2692_v6 }
0x12ec   :  { %v2698_v0 = vmul.f32 1.442695, %v2696_v49 }
0x12ed   :  { %v2695_v32 = vpop.xlane.xlu0 %2694 }
0x12ee   :  { %6434 = vpow2.f32 %v2698_v0  ;;  %v2697_v52 = vsub.f32 %v2689_v4, %v2695_v32 }
0x12f0   :  { %v2700_v34 = vmul.f32 1.442695, %v2697_v52 }
0x12f2   :  { %6436 = vpow2.f32 %v2700_v34 }
0x12f8   :  { %v6435_v38 = vpop.eup %6434 }
0x12f9   :  { %v2702_v18 = vsel %vm992_vm2, %v6435_v38, 0.0 }
0x12fa   :  { %2703 = vadd.xlane.f32.xlu0 %v2702_v18 }
0x12fc   :  { %v6437_v28 = vpop.eup %6436 }
0x12fd   :  { %v2705_v41 = vsel %vm992_vm2, %v6437_v28, 0.0 }
0x12fe   :  { %2706 = vadd.xlane.f32.xlu0 %v2705_v41 }
0x1314   :  { %2803 = vrot.lane.b32.xlu0 %v7122_v44, %s6559_s4  ;;  %v2806_v44 = vpop.permute.xlu1 %2805 }
0x1387   :  { %v2704_v53 = vpop.xlane.xlu0 %2703 }
0x1388   :  { %6438 = vrcp.f32 %v2704_v53 }
0x138b   :  { %v2707_v25 = vpop.xlane.xlu0 %2706 }
0x138c   :  { %6440 = vrcp.f32 %v2707_v25 }
0x138f   :  { %v2804_v10 = vpop.permute.xlu0 %2803 }
0x1392   :  { %v6439_v29 = vpop.eup %6438 }
0x1393   :  { %v2710_v11 = vmul.f32 %v6439_v29, %v6435_v38 }
0x1395   :  { %5791 = vmatprep.mubr.msk.f32.mxu0 %vm992_vm2, %v2710_v11 }
0x1396   :  { %v6441_v47 = vpop.eup %6440 }
0x1397   :  { %v2711_v33 = vmul.f32 %v6441_v47, %v6437_v28 }
0x1399   :  { %5792 = vmatmul.mubr.msk.f32.vlgmr.msra.gmra.mrb[40].mxu0 %vm992_vm2, %v2711_v33 }
0x139a   :  { %6083 = vmatpush3.bf16.xpose.msk.msra.mxu0 %vm7158_vm1, %v6078_v43  ;;  %5798 = vmatprep.mubr.msk.f32.mxu0 %vm69_vm0, %v2804_v10 }
0x139b   :  { %6095 = vmatprep.subr.bf16.mxu0 %v7304_v20 }
0x13a1   :  { %5799 = vmatmul.mubr.msk.f32.vlgmr.msra.gmra.mrb[42].mxu0 %vm69_vm0, %v2806_v44 }
0x13a2   :  { %6097 = vmatpush3.bf16.msra.mxu0 %v7304_v20 }
0x146c   :  { %v5793_v56 = vpop.f32.mrb[40].mxu0 }
0x146d   :  { %2794 = vst.msk [vmem:[#allocation3 + $0x60] sm:$0xff] %vm69_vm0, %v5793_v56  ;;  %v2784_v13 = vpop.f32.mrb[41].mxu0 }
0x146e   :  { %2793 = vst.msk [vmem:[#allocation3 + $0x40] sm:$0xff] %vm69_vm0, %v2784_v13 }
0x1474   :  { %v5800_v21 = vpop.f32.mrb[42].mxu0 }
0x1475   :  { %v2897_v15 = vmul.f32 0.125, %v5800_v21  ;;  %v2887_v24 = vpop.f32.mrb[43].mxu0 }
0x1476   :  { %v2896_v37 = vmul.f32 0.125, %v2887_v24 }
0x1477   :  { %v2901_v62 = vsel %vm992_vm2, %v2897_v15, -inf }
0x1478   :  { %2902 = vmax.xlane.f32.xlu0 %v2901_v62  ;;  %v2898_v42 = vsel %vm992_vm2, %v2896_v37, -inf }
0x1479   :  { %2899 = vmax.xlane.f32.xlu1 %v2898_v42 }
0x1505   :  { %v2903_v12 = vpop.xlane.xlu0 %2902 }
0x1506   :  { %v2905_v14 = vsub.f32 %v2897_v15, %v2903_v12  ;;  %v2900_v58 = vpop.xlane.xlu1 %2899 }
0x1507   :  { %v2904_v20 = vsub.f32 %v2896_v37, %v2900_v58 }
0x1508   :  { %v2908_v55 = vmul.f32 1.442695, %v2905_v14 }
0x1509   :  { %v2906_v9 = vmul.f32 1.442695, %v2904_v20 }
0x150a   :  { %6442 = vpow2.f32 %v2908_v55 }
0x150b   :  { %6444 = vpow2.f32 %v2906_v9 }
0x1514   :  { %v6443_v50 = vpop.eup %6442 }
0x1515   :  { %v2913_v26 = vsel %vm992_vm2, %v6443_v50, 0.0  ;;  %v6445_v43 = vpop.eup %6444 }
0x1516   :  { %2914 = vadd.xlane.f32.xlu1 %v2913_v26  ;;  %v2910_v60 = vsel %vm992_vm2, %v6445_v43, 0.0 }
0x151a   :  { %2911 = vadd.xlane.f32.xlu1 %v2910_v60 }
0x152b   :  { %6326 = vrot.lane.b32.xlu1 %v8373_v30, %s6559_s4 }
0x152f   :  { %6331 = vrot.lane.b32.xlu1 %v8374_v1, %s6559_s4 }
0x1533   :  { %3229 = vrot.lane.b32.xlu1 %v7138_v59, %s6559_s4 }
0x15a3   :  { %v2915_v8 = vpop.xlane.xlu1 %2914 }
0x15a4   :  { %6446 = vrcp.f32 %v2915_v8 }
0x15a7   :  { %v2912_v63 = vpop.xlane.xlu1 %2911 }
0x15a8   :  { %6448 = vrcp.f32 %v2912_v63 }
0x15ab   :  { %v6327_v4 = vpop.permute.xlu1 %6326 }
0x15ac   :  { %v6329_v35 = vunpack.i.h.bf16 %v6327_v4  ;;  %v6328_v17 = vunpack.i.l.bf16 %v6327_v4 }
0x15ae   :  { %v6084_v6 = vpack.c.bf16 %v6329_v35, %v6328_v17  ;;  %v6447_v36 = vpop.eup %6446 }
0x15af   :  { %v6332_v49 = vpop.permute.xlu1 %6331  ;;  %v2919_v52 = vmul.f32 %v6447_v36, %v6443_v50  ;;  %v8377_v36 = vld [vmem:[#allocation11_spill] sm:$0xff] }
0x15b0   :  { %v6334_v0 = vunpack.i.h.bf16 %v6332_v49  ;;  %v6333_v16 = vunpack.i.l.bf16 %v6332_v49  ;;  %6085 = vmatprep.subr.bf16.mxu1 %v6084_v6 }
0x15b1   :  { %6087 = vmatpush3.bf16.msra.mxu1 %v6084_v6 }
0x15b2   :  { %v6449_v32 = vpop.eup %6448  ;;  %v6098_v51 = vpack.c.bf16 %v6334_v0, %v6333_v16  ;;  %6090 = vmatprep.subr.msk.bf16.mxu1 %vm7158_vm1, %v7225_v5  ;;  %v8375_v0 = vpack.i.bf16 %v7284_v3, %v7276_v57  ;;  %v8376_v16 = vpack.i.bf16 %v7198_v61, %v7182_v46  ;;  %v8378_v61 = vld [vmem:[#allocation15_spill] sm:$0xff] }
0x15b3   :  { %v2918_v2 = vmul.f32 %v6449_v32, %v6445_v43 }
0x15b4   :  { %6100 = vmatprep.subr.msk.bf16.mxu0 %vm7158_vm1, %v6098_v51 }
0x15b5   :  { %5805 = vmatprep.mubr.msk.f32.mxu1 %vm992_vm2, %v2918_v2 }
0x15b6   :  { %5806 = vmatmul.mubr.msk.f32.vlgmr.msra.gmra.mrb[42].mxu1 %vm992_vm2, %v2919_v52 }
0x15b7   :  { %5812 = vmatprep.mubr.msk.f32.mxu1 %vm69_vm0, %v7127_v48 }
0x15ba   :  { %6093 = vmatpush3.bf16.xpose.msk.msra.mxu1 %vm7158_vm1, %v7225_v5 }
0x15c1   :  { %5813 = vmatmul.mubr.msk.f32.vlgmr.msra.gmra.mrb[44].mxu1 %vm69_vm0, %v7138_v59 }
0x1689   :  { %v7546_v34 = vpop.f32.mrb[42].mxu1 }
0x168a   :  { %v7548_v38 = vpop.f32.mrb[43].mxu1 }
0x1694   :  { %v5814_v18 = vpop.f32.mrb[44].mxu1 }
0x1695   :  { %v3103_v28 = vpop.f32.mrb[45].mxu1  ;;  %v3113_v53 = vmul.f32 0.125, %v5814_v18 }
0x1696   :  { %v3112_v41 = vmul.f32 0.125, %v3103_v28 }
0x1697   :  { %v3117_v29 = vsel %vm992_vm2, %v3113_v53, -inf }
0x1698   :  { %v3114_v25 = vsel %vm992_vm2, %v3112_v41, -inf }
0x1699   :  { %3115 = vmax.xlane.f32.xlu0 %v3114_v25 }
0x169d   :  { %3118 = vmax.xlane.f32.xlu0 %v3117_v29 }
0x1726   :  { %v3116_v11 = vpop.xlane.xlu0 %3115 }
0x1727   :  { %v3120_v47 = vsub.f32 %v3112_v41, %v3116_v11 }
0x1729   :  { %v3122_v5 = vmul.f32 1.442695, %v3120_v47  ;;  %v8379_v47 = vld [vmem:[#allocation9_spill] sm:$0xff] }
0x172a   :  { %v3119_v33 = vpop.xlane.xlu0 %3118 }
0x172b   :  { %6450 = vpow2.f32 %v3122_v5  ;;  %v3121_v59 = vsub.f32 %v3113_v53, %v3119_v33 }
0x172d   :  { %v3124_v10 = vmul.f32 1.442695, %v3121_v59 }
0x172f   :  { %6452 = vpow2.f32 %v3124_v10 }
0x1735   :  { %v6451_v44 = vpop.eup %6450 }
0x1736   :  { %v3126_v56 = vsel %vm992_vm2, %v6451_v44, 0.0 }
0x1737   :  { %3127 = vadd.xlane.f32.xlu0 %v3126_v56 }
0x1739   :  { %v6453_v13 = vpop.eup %6452 }
0x173a   :  { %v3129_v21 = vsel %vm992_vm2, %v6453_v13, 0.0 }
0x173b   :  { %3130 = vadd.xlane.f32.xlu0 %v3129_v21 }
0x1751   :  { %3227 = vrot.lane.b32.xlu0 %v7127_v48, %s6559_s4  ;;  %v3230_v48 = vpop.permute.xlu1 %3229 }
0x17c4   :  { %v3128_v15 = vpop.xlane.xlu0 %3127 }
0x17c5   :  { %6454 = vrcp.f32 %v3128_v15 }
0x17c8   :  { %v3131_v24 = vpop.xlane.xlu0 %3130 }
0x17c9   :  { %6456 = vrcp.f32 %v3131_v24 }
0x17cc   :  { %v3228_v14 = vpop.permute.xlu0 %3227 }
0x17cf   :  { %v6455_v37 = vpop.eup %6454 }
0x17d0   :  { %v3134_v62 = vmul.f32 %v6455_v37, %v6451_v44 }
0x17d2   :  { %5819 = vmatprep.mubr.msk.f32.mxu0 %vm992_vm2, %v3134_v62 }
0x17d3   :  { %v6457_v42 = vpop.eup %6456 }
0x17d4   :  { %v3135_v12 = vmul.f32 %v6457_v42, %v6453_v13 }
0x17d6   :  { %5820 = vmatmul.mubr.msk.f32.vlgmr.msra.gmra.mrb[44].mxu0 %vm992_vm2, %v3135_v12 }
0x17d7   :  { %6103 = vmatpush3.bf16.xpose.msk.msra.mxu0 %vm7158_vm1, %v6098_v51  ;;  %5826 = vmatprep.mubr.msk.f32.mxu0 %vm69_vm0, %v3228_v14 }
0x17d8   :  { %6115 = vmatprep.subr.bf16.mxu0 %v7298_v22 }
0x17de   :  { %5827 = vmatmul.mubr.msk.f32.vlgmr.msra.gmra.mrb[46].mxu0 %vm69_vm0, %v3230_v48 }
0x17df   :  { %6117 = vmatpush3.bf16.msra.mxu0 %v7298_v22 }
0x18a9   :  { %v5821_v58 = vpop.f32.mrb[44].mxu0 }
0x18aa   :  { %3218 = vst.msk [vmem:[#allocation3 + $0x68] sm:$0xff] %vm69_vm0, %v5821_v58  ;;  %v3208_v20 = vpop.f32.mrb[45].mxu0 }
0x18ab   :  { %3217 = vst.msk [vmem:[#allocation3 + $0x48] sm:$0xff] %vm69_vm0, %v3208_v20 }
0x18b1   :  { %v5828_v55 = vpop.f32.mrb[46].mxu0 }
0x18b2   :  { %v3321_v9 = vmul.f32 0.125, %v5828_v55  ;;  %v3311_v50 = vpop.f32.mrb[47].mxu0 }
0x18b3   :  { %v3320_v26 = vmul.f32 0.125, %v3311_v50 }
0x18b4   :  { %v3325_v43 = vsel %vm992_vm2, %v3321_v9, -inf }
0x18b5   :  { %3326 = vmax.xlane.f32.xlu0 %v3325_v43  ;;  %v3322_v60 = vsel %vm992_vm2, %v3320_v26, -inf }
0x18b6   :  { %3323 = vmax.xlane.f32.xlu1 %v3322_v60 }
0x1942   :  { %v3327_v30 = vpop.xlane.xlu0 %3326 }
0x1943   :  { %v3329_v1 = vsub.f32 %v3321_v9, %v3327_v30  ;;  %v3324_v8 = vpop.xlane.xlu1 %3323 }
0x1944   :  { %v3328_v22 = vsub.f32 %v3320_v26, %v3324_v8 }
0x1945   :  { %v3332_v63 = vmul.f32 1.442695, %v3329_v1  ;;  %v8380_v1 = vld [vmem:[#allocation21_spill] sm:$0xff] }
0x1946   :  { %v3330_v4 = vmul.f32 1.442695, %v3328_v22 }
0x1947   :  { %6458 = vpow2.f32 %v3332_v63 }
0x1948   :  { %6460 = vpow2.f32 %v3330_v4 }
0x1951   :  { %v6459_v35 = vpop.eup %6458 }
0x1952   :  { %v3337_v17 = vsel %vm992_vm2, %v6459_v35, 0.0  ;;  %v6461_v6 = vpop.eup %6460 }
0x1953   :  { %3338 = vadd.xlane.f32.xlu1 %v3337_v17  ;;  %v3334_v49 = vsel %vm992_vm2, %v6461_v6, 0.0 }
0x1957   :  { %3335 = vadd.xlane.f32.xlu1 %v3334_v49 }
0x1968   :  { %6336 = vrot.lane.b32.xlu1 %v8375_v0, %s6559_s4 }
0x196c   :  { %6341 = vrot.lane.b32.xlu1 %v8376_v16, %s6559_s4 }
0x1970   :  { %3653 = vrot.lane.b32.xlu1 %v8377_v36, %s6559_s4 }
0x19e0   :  { %v3339_v32 = vpop.xlane.xlu1 %3338 }
0x19e1   :  { %6462 = vrcp.f32 %v3339_v32 }
0x19e4   :  { %v3336_v51 = vpop.xlane.xlu1 %3335 }
0x19e5   :  { %6464 = vrcp.f32 %v3336_v51 }
0x19e8   :  { %v6337_v2 = vpop.permute.xlu1 %6336 }
0x19e9   :  { %v6339_v52 = vunpack.i.h.bf16 %v6337_v2  ;;  %v6338_v18 = vunpack.i.l.bf16 %v6337_v2 }
0x19eb   :  { %v6104_v28 = vpack.c.bf16 %v6339_v52, %v6338_v18  ;;  %v6463_v3 = vpop.eup %6462 }
0x19ec   :  { %v6342_v41 = vpop.permute.xlu1 %6341  ;;  %v3343_v11 = vmul.f32 %v6463_v3, %v6459_v35  ;;  %v8382_v3 = vld [vmem:[#allocation17_spill] sm:$0xff] }
0x19ed   :  { %v6344_v53 = vunpack.i.h.bf16 %v6342_v41  ;;  %v6343_v57 = vunpack.i.l.bf16 %v6342_v41  ;;  %6105 = vmatprep.subr.bf16.mxu1 %v6104_v28 }
0x19ee   :  { %6107 = vmatpush3.bf16.msra.mxu1 %v6104_v28 }
0x19ef   :  { %v6465_v25 = vpop.eup %6464  ;;  %v6118_v46 = vpack.c.bf16 %v6344_v53, %v6343_v57  ;;  %6110 = vmatprep.subr.msk.bf16.mxu1 %vm7158_vm1, %v8378_v61  ;;  %v8381_v57 = vld [vmem:[#allocation19_spill] sm:$0xff] }
0x19f0   :  { %v3342_v29 = vmul.f32 %v6465_v25, %v6461_v6  ;;  %v3654_v8 = vpop.permute.xlu1 %3653  ;;  %v8383_v25 = vpack.i.bf16 %v8381_v57, %v8382_v3 }
0x19f1   :  { %6120 = vmatprep.subr.msk.bf16.mxu0 %vm7158_vm1, %v6118_v46 }
0x19f2   :  { %5833 = vmatprep.mubr.msk.f32.mxu1 %vm992_vm2, %v3342_v29 }
0x19f3   :  { %5834 = vmatmul.mubr.msk.f32.vlgmr.msra.gmra.mrb[46].mxu1 %vm992_vm2, %v3343_v11  ;;  %v8387_v11 = vld [vmem:[#allocation12_spill] sm:$0xff] }
0x19f4   :  { %5840 = vmatprep.mubr.msk.f32.mxu1 %vm69_vm0, %v8379_v47 }
0x19f7   :  { %6113 = vmatpush3.bf16.xpose.msk.msra.mxu1 %vm7158_vm1, %v8378_v61  ;;  %v8385_v61 = vld [vmem:[#allocation13_spill] sm:$0xff] }
0x19fe   :  { %5841 = vmatmul.mubr.msk.f32.vlgmr.msra.gmra.mrb[48].mxu1 %vm69_vm0, %v8377_v36 }
0x1ac6   :  { %v7594_v5 = vpop.f32.mrb[46].mxu1 }
0x1ac7   :  { %v7596_v33 = vpop.f32.mrb[47].mxu1 }
0x1ad1   :  { %v5842_v59 = vpop.f32.mrb[48].mxu1 }
0x1ad2   :  { %v3527_v10 = vpop.f32.mrb[49].mxu1  ;;  %v3537_v56 = vmul.f32 0.125, %v5842_v59 }
0x1ad3   :  { %v3536_v44 = vmul.f32 0.125, %v3527_v10 }
0x1ad4   :  { %v3541_v21 = vsel %vm992_vm2, %v3537_v56, -inf }
0x1ad5   :  { %v3538_v13 = vsel %vm992_vm2, %v3536_v44, -inf }
0x1ad6   :  { %3539 = vmax.xlane.f32.xlu0 %v3538_v13 }
0x1ada   :  { %3542 = vmax.xlane.f32.xlu0 %v3541_v21 }
0x1b63   :  { %v3540_v15 = vpop.xlane.xlu0 %3539 }
0x1b64   :  { %v3544_v24 = vsub.f32 %v3536_v44, %v3540_v15 }
0x1b66   :  { %v3546_v37 = vmul.f32 1.442695, %v3544_v24 }
0x1b67   :  { %v3543_v62 = vpop.xlane.xlu0 %3542 }
0x1b68   :  { %6466 = vpow2.f32 %v3546_v37  ;;  %v3545_v42 = vsub.f32 %v3537_v56, %v3543_v62 }
0x1b6a   :  { %v3548_v12 = vmul.f32 1.442695, %v3545_v42 }
0x1b6c   :  { %6468 = vpow2.f32 %v3548_v12  ;;  %v8388_v12 = vld [vmem:[#allocation16_spill] sm:$0xff] }
0x1b72   :  { %v6467_v14 = vpop.eup %6466 }
0x1b73   :  { %v3550_v48 = vsel %vm992_vm2, %v6467_v14, 0.0 }
0x1b74   :  { %3551 = vadd.xlane.f32.xlu0 %v3550_v48 }
0x1b76   :  { %v6469_v58 = vpop.eup %6468 }
0x1b77   :  { %v3553_v20 = vsel %vm992_vm2, %v6469_v58, 0.0 }
0x1b78   :  { %3554 = vadd.xlane.f32.xlu0 %v3553_v20 }
0x1b8e   :  { %3651 = vrot.lane.b32.xlu0 %v8379_v47, %s6559_s4 }
0x1c01   :  { %v3552_v55 = vpop.xlane.xlu0 %3551 }
0x1c02   :  { %6470 = vrcp.f32 %v3552_v55 }
0x1c05   :  { %v3555_v9 = vpop.xlane.xlu0 %3554 }
0x1c06   :  { %6472 = vrcp.f32 %v3555_v9 }
0x1c09   :  { %v3652_v30 = vpop.permute.xlu0 %3651 }
0x1c0c   :  { %v6471_v50 = vpop.eup %6470 }
0x1c0d   :  { %v3558_v26 = vmul.f32 %v6471_v50, %v6467_v14 }
0x1c0f   :  { %5847 = vmatprep.mubr.msk.f32.mxu0 %vm992_vm2, %v3558_v26 }
0x1c10   :  { %v6473_v43 = vpop.eup %6472 }
0x1c11   :  { %v3559_v60 = vmul.f32 %v6473_v43, %v6469_v58  ;;  %v8389_v58 = vld [vmem:[#allocation10_spill] sm:$0xff] }
0x1c13   :  { %5848 = vmatmul.mubr.msk.f32.vlgmr.msra.gmra.mrb[48].mxu0 %vm992_vm2, %v3559_v60 }
0x1c14   :  { %6123 = vmatpush3.bf16.xpose.msk.msra.mxu0 %vm7158_vm1, %v6118_v46  ;;  %5854 = vmatprep.mubr.msk.f32.mxu0 %vm69_vm0, %v3652_v30  ;;  %v8384_v46 = vld [vmem:[#allocation14_spill] sm:$0xff] }
0x1c15   :  { %6135 = vmatprep.subr.bf16.mxu0 %v8380_v1  ;;  %v8386_v29 = vpack.i.bf16 %v8384_v46, %v8385_v61 }
0x1c1b   :  { %5855 = vmatmul.mubr.msk.f32.vlgmr.msra.gmra.mrb[50].mxu0 %vm69_vm0, %v3654_v8 }
0x1c1c   :  { %6137 = vmatpush3.bf16.msra.mxu0 %v8380_v1 }
0x1ce6   :  { %v5849_v22 = vpop.f32.mrb[48].mxu0 }
0x1ce7   :  { %3642 = vst.msk [vmem:[#allocation3 + $0x70] sm:$0xff] %vm69_vm0, %v5849_v22  ;;  %v3632_v63 = vpop.f32.mrb[49].mxu0 }
0x1ce8   :  { %3641 = vst.msk [vmem:[#allocation3 + $0x50] sm:$0xff] %vm69_vm0, %v3632_v63 }
0x1cee   :  { %v5856_v4 = vpop.f32.mrb[50].mxu0 }
0x1cef   :  { %v3745_v35 = vmul.f32 0.125, %v5856_v4  ;;  %v3735_v17 = vpop.f32.mrb[51].mxu0 }
0x1cf0   :  { %v3744_v6 = vmul.f32 0.125, %v3735_v17 }
0x1cf1   :  { %v3749_v49 = vsel %vm992_vm2, %v3745_v35, -inf }
0x1cf2   :  { %3750 = vmax.xlane.f32.xlu0 %v3749_v49  ;;  %v3746_v0 = vsel %vm992_vm2, %v3744_v6, -inf }
0x1cf3   :  { %3747 = vmax.xlane.f32.xlu1 %v3746_v0 }
0x1d7f   :  { %v3751_v16 = vpop.xlane.xlu0 %3750 }
0x1d80   :  { %v3753_v36 = vsub.f32 %v3745_v35, %v3751_v16  ;;  %v3748_v32 = vpop.xlane.xlu1 %3747 }
0x1d81   :  { %v3752_v51 = vsub.f32 %v3744_v6, %v3748_v32 }
0x1d82   :  { %v3756_v2 = vmul.f32 1.442695, %v3753_v36 }
0x1d83   :  { %v3754_v52 = vmul.f32 1.442695, %v3752_v51 }
0x1d84   :  { %6474 = vpow2.f32 %v3756_v2 }
0x1d85   :  { %6476 = vpow2.f32 %v3754_v52 }
0x1d8e   :  { %v6475_v18 = vpop.eup %6474 }
0x1d8f   :  { %v3761_v28 = vsel %vm992_vm2, %v6475_v18, 0.0  ;;  %v6477_v41 = vpop.eup %6476 }
0x1d90   :  { %3762 = vadd.xlane.f32.xlu1 %v3761_v28  ;;  %v3758_v53 = vsel %vm992_vm2, %v6477_v41, 0.0 }
0x1d94   :  { %3759 = vadd.xlane.f32.xlu1 %v3758_v53 }
0x1da5   :  { %6346 = vrot.lane.b32.xlu1 %v8383_v25, %s6559_s4 }
0x1da9   :  { %6351 = vrot.lane.b32.xlu1 %v8386_v29, %s6559_s4  ;;  %v4355_v29 = vld [vmem:[%s8307_s7 + $0x180] sm:$0xff] }
0x1dad   :  { %4077 = vrot.lane.b32.xlu1 %v8387_v11, %s6559_s4 }
0x1e1d   :  { %v3763_v47 = vpop.xlane.xlu1 %3762 }
0x1e1e   :  { %6478 = vrcp.f32 %v3763_v47 }
0x1e21   :  { %v3760_v59 = vpop.xlane.xlu1 %3759 }
0x1e22   :  { %6480 = vrcp.f32 %v3760_v59 }
0x1e25   :  { %v6347_v10 = vpop.permute.xlu1 %6346 }
0x1e26   :  { %v6349_v44 = vunpack.i.h.bf16 %v6347_v10  ;;  %v6348_v56 = vunpack.i.l.bf16 %v6347_v10 }
0x1e28   :  { %v6124_v13 = vpack.c.bf16 %v6349_v44, %v6348_v56  ;;  %v6479_v37 = vpop.eup %6478 }
0x1e29   :  { %v6352_v21 = vpop.permute.xlu1 %6351  ;;  %v3767_v48 = vmul.f32 %v6479_v37, %v6475_v18 }
0x1e2a   :  { %v6354_v15 = vunpack.i.h.bf16 %v6352_v21  ;;  %v6353_v24 = vunpack.i.l.bf16 %v6352_v21  ;;  %6125 = vmatprep.subr.bf16.mxu1 %v6124_v13 }
0x1e2b   :  { %6127 = vmatpush3.bf16.msra.mxu1 %v6124_v13 }
0x1e2c   :  { %v6481_v62 = vpop.eup %6480  ;;  %v6138_v42 = vpack.c.bf16 %v6354_v15, %v6353_v24  ;;  %6130 = vmatprep.subr.msk.bf16.mxu1 %vm7158_vm1, %v8388_v12 }
0x1e2d   :  { %v3766_v14 = vmul.f32 %v6481_v62, %v6477_v41  ;;  %v4078_v28 = vpop.permute.xlu1 %4077 }
0x1e2e   :  { %6140 = vmatprep.subr.msk.bf16.mxu0 %vm7158_vm1, %v6138_v42 }
0x1e2f   :  { %5861 = vmatprep.mubr.msk.f32.mxu1 %vm992_vm2, %v3766_v14 }
0x1e30   :  { %5862 = vmatmul.mubr.msk.f32.vlgmr.msra.gmra.mrb[50].mxu1 %vm992_vm2, %v3767_v48  ;;  %v4357_v48 = vld [vmem:[%s8307_s7 + $0x190] sm:$0xff] }
0x1e31   :  { %5868 = vmatprep.mubr.msk.f32.mxu1 %vm69_vm0, %v8389_v58 }
0x1e34   :  { %6133 = vmatpush3.bf16.xpose.msk.msra.mxu1 %vm7158_vm1, %v8388_v12 }
0x1e3b   :  { %5869 = vmatmul.mubr.msk.f32.vlgmr.msra.gmra.mrb[52].mxu1 %vm69_vm0, %v8387_v11 }
0x1f03   :  { %v7642_v20 = vpop.f32.mrb[50].mxu1 }
0x1f04   :  { %v7644_v55 = vpop.f32.mrb[51].mxu1 }
0x1f0e   :  { %v5870_v9 = vpop.f32.mrb[52].mxu1 }
0x1f0f   :  { %v3951_v50 = vpop.f32.mrb[53].mxu1  ;;  %v3961_v43 = vmul.f32 0.125, %v5870_v9 }
0x1f10   :  { %v3960_v26 = vmul.f32 0.125, %v3951_v50  ;;  %v4341_v50 = vld [vmem:[%s8307_s7 + $0x110] sm:$0xff] }
0x1f11   :  { %v3965_v30 = vsel %vm992_vm2, %v3961_v43, -inf }
0x1f12   :  { %v3962_v60 = vsel %vm992_vm2, %v3960_v26, -inf }
0x1f13   :  { %3963 = vmax.xlane.f32.xlu0 %v3962_v60  ;;  %v4359_v60 = vld [vmem:[%s8307_s7 + $0x1a0] sm:$0xff] }
0x1f17   :  { %3966 = vmax.xlane.f32.xlu0 %v3965_v30  ;;  %v4360_v30 = vld [vmem:[%s8307_s7 + $0x1a8] sm:$0xff] }
0x1fa0   :  { %v3964_v1 = vpop.xlane.xlu0 %3963 }
0x1fa1   :  { %v3968_v8 = vsub.f32 %v3960_v26, %v3964_v1  ;;  %v4342_v26 = vld [vmem:[%s8307_s7 + $0x118] sm:$0xff]  ;;  %v6188_v1 = vpack.c.bf16 %v4360_v30, %v4359_v60 }
0x1fa3   :  { %v3970_v22 = vmul.f32 1.442695, %v3968_v8  ;;  %v4343_v8 = vld [vmem:[%s8307_s7 + $0x120] sm:$0xff] }
0x1fa4   :  { %v3967_v63 = vpop.xlane.xlu0 %3966 }
0x1fa5   :  { %6482 = vpow2.f32 %v3970_v22  ;;  %v3969_v4 = vsub.f32 %v3961_v43, %v3967_v63  ;;  %v6186_v43 = vpack.c.bf16 %v4342_v26, %v4341_v50  ;;  %v4344_v22 = vld [vmem:[%s8307_s7 + $0x128] sm:$0xff]  ;;  %v4309_v26 = vld [vmem:[%s8307_s7 + $0x10] sm:$0xff] }
0x1fa6   :  { %v6190_v63 = vpack.c.bf16 %v4344_v22, %v4343_v8  ;;  %v4311_v22 = vld [vmem:[%s8307_s7 + $0x20] sm:$0xff] }
0x1fa7   :  { %v3972_v35 = vmul.f32 1.442695, %v3969_v4  ;;  %v4361_v4 = vld [vmem:[%s8307_s7 + $0x1b0] sm:$0xff] }
0x1fa9   :  { %6484 = vpow2.f32 %v3972_v35  ;;  %v4362_v35 = vld [vmem:[%s8307_s7 + $0x1b8] sm:$0xff] }
0x1faf   :  { %v6483_v17 = vpop.eup %6482 }
0x1fb0   :  { %v3974_v6 = vsel %vm992_vm2, %v6483_v17, 0.0 }
0x1fb1   :  { %3975 = vadd.xlane.f32.xlu0 %v3974_v6  ;;  %v4345_v6 = vld [vmem:[%s8307_s7 + $0x130] sm:$0xff] }
0x1fb3   :  { %v6485_v49 = vpop.eup %6484 }
0x1fb4   :  { %v3977_v0 = vsel %vm992_vm2, %v6485_v49, 0.0 }
0x1fb5   :  { %3978 = vadd.xlane.f32.xlu0 %v3977_v0  ;;  %v8390_v0 = vld [vmem:[#allocation20_spill] sm:$0xff] }
0x1fcb   :  { %4075 = vrot.lane.b32.xlu0 %v8389_v58, %s6559_s4  ;;  %v4358_v58 = vld [vmem:[%s8307_s7 + $0x198] sm:$0xff] }
0x1fcc   :  { %v6184_v9 = vpack.c.bf16 %v4358_v58, %v4357_v48 }
0x203e   :  { %v3976_v16 = vpop.xlane.xlu0 %3975 }
0x203f   :  { %6486 = vrcp.f32 %v3976_v16  ;;  %v8391_v16 = vld [vmem:[#allocation18_spill] sm:$0xff] }
0x2042   :  { %v3979_v36 = vpop.xlane.xlu0 %3978 }
0x2043   :  { %6488 = vrcp.f32 %v3979_v36  ;;  %v8392_v36 = vpack.i.bf16 %v8390_v0, %v8391_v16  ;;  %v4313_v16 = vld [vmem:[%s8307_s7 + $0x30] sm:$0xff] }
0x2046   :  { %v4076_v18 = vpop.permute.xlu0 %4075 }
0x2049   :  { %v6487_v32 = vpop.eup %6486 }
0x204a   :  { %v3982_v51 = vmul.f32 %v6487_v32, %v6483_v17  ;;  %v6192_v17 = vpack.c.bf16 %v4362_v35, %v4361_v4  ;;  %v4329_v4 = vld [vmem:[%s8307_s7 + $0xb0] sm:$0xff]  ;;  %v4330_v35 = vld [vmem:[%s8307_s7 + $0xb8] sm:$0xff] }
0x204b   :  { %v6160_v0 = vpack.c.bf16 %v4330_v35, %v4329_v4 }
0x204c   :  { %5875 = vmatprep.mubr.msk.f32.mxu0 %vm992_vm2, %v3982_v51  ;;  %v4363_v51 = vld [vmem:[%s8307_s7 + $0x1c0] sm:$0xff] }
0x204d   :  { %v6489_v2 = vpop.eup %6488 }
0x204e   :  { %v3983_v52 = vmul.f32 %v6489_v2, %v6485_v49  ;;  %v4346_v49 = vld [vmem:[%s8307_s7 + $0x138] sm:$0xff]  ;;  %v4364_v2 = vld [vmem:[%s8307_s7 + $0x1c8] sm:$0xff] }
0x204f   :  { %v6194_v32 = vpack.c.bf16 %v4346_v49, %v4345_v6 }
0x2050   :  { %5876 = vmatmul.mubr.msk.f32.vlgmr.msra.gmra.mrb[52].mxu0 %vm992_vm2, %v3983_v52  ;;  %v6196_v52 = vpack.c.bf16 %v4364_v2, %v4363_v51  ;;  %v4332_v51 = vld [vmem:[%s8307_s7 + $0xc8] sm:$0xff] }
0x2051   :  { %6143 = vmatpush3.bf16.xpose.msk.msra.mxu0 %vm7158_vm1, %v6138_v42  ;;  %5882 = vmatprep.mubr.msk.f32.mxu0 %vm69_vm0, %v4076_v18  ;;  %v4347_v18 = vld [vmem:[%s8307_s7 + $0x140] sm:$0xff] }
0x2058   :  { %5883 = vmatmul.mubr.msk.f32.vlgmr.msra.gmra.mrb[54].mxu0 %vm69_vm0, %v4078_v28  ;;  %v4348_v28 = vld [vmem:[%s8307_s7 + $0x148] sm:$0xff] }
0x2123   :  { %v5877_v41 = vpop.f32.mrb[52].mxu0 }
0x2124   :  { %4066 = vst.msk [vmem:[#allocation3 + $0x78] sm:$0xff] %vm69_vm0, %v5877_v41  ;;  %v4056_v53 = vpop.f32.mrb[53].mxu0  ;;  %v6198_v41 = vpack.c.bf16 %v4348_v28, %v4347_v18 }
0x2125   :  { %4065 = vst.msk [vmem:[#allocation3 + $0x58] sm:$0xff] %vm69_vm0, %v4056_v53  ;;  %v4365_v53 = vld [vmem:[%s8307_s7 + $0x1d0] sm:$0xff] }
0x212b   :  { %v5884_v57 = vpop.f32.mrb[54].mxu0 }
0x212c   :  { %v4169_v3 = vmul.f32 0.125, %v5884_v57  ;;  %v4159_v25 = vpop.f32.mrb[55].mxu0  ;;  %v4366_v57 = vld [vmem:[%s8307_s7 + $0x1d8] sm:$0xff] }
0x212d   :  { %v4168_v46 = vmul.f32 0.125, %v4159_v25  ;;  %v4349_v25 = vld [vmem:[%s8307_s7 + $0x150] sm:$0xff] }
0x212e   :  { %v4173_v61 = vsel %vm992_vm2, %v4169_v3, -inf }
0x212f   :  { %4174 = vmax.xlane.f32.xlu0 %v4173_v61  ;;  %v4170_v19 = vsel %vm992_vm2, %v4168_v46, -inf  ;;  %v4367_v61 = vld [vmem:[%s8307_s7 + $0x1e0] sm:$0xff] }
0x2130   :  { %4171 = vmax.xlane.f32.xlu1 %v4170_v19  ;;  %v4368_v19 = vld [vmem:[%s8307_s7 + $0x1e8] sm:$0xff] }
0x2145   :  { %1739 = vrot.lane.b32.xlu0 %v7404_v27, %s6559_s4  ;;  %v4356_v27 = vld [vmem:[%s8307_s7 + $0x188] sm:$0xff] }
0x2146   :  { %v6180_v11 = vpack.c.bf16 %v4356_v27, %v4355_v29  ;;  %v6204_v29 = vpack.c.bf16 %v4368_v19, %v4367_v61  ;;  %v4352_v27 = vld [vmem:[%s8307_s7 + $0x168] sm:$0xff]  ;;  %v4317_v19 = vld [vmem:[%s8307_s7 + $0x50] sm:$0xff] }
0x2148   :  { %6181 = vmatprep.subr.bf16.mxu0 %v6180_v11  ;;  %v4369_v11 = vld [vmem:[%s8307_s7 + $0x1f0] sm:$0xff] }
0x2149   :  { %1741 = vrot.lane.b32.xlu0 %v7402_v7, %s6559_s4  ;;  %v4339_v7 = vld [vmem:[%s8307_s7 + $0x100] sm:$0xff] }
0x214d   :  { %2589 = vrot.lane.b32.xlu0 %v7498_v40, %s6559_s4  ;;  %v4340_v40 = vld [vmem:[%s8307_s7 + $0x108] sm:$0xff] }
0x2151   :  { %3435 = vrot.lane.b32.xlu0 %v7596_v33, %s6559_s4  ;;  %v6182_v33 = vpack.c.bf16 %v4340_v40, %v4339_v7  ;;  %v4370_v40 = vld [vmem:[%s8307_s7 + $0x1f8] sm:$0xff] }
0x2153   :  { %6183 = vmatpush3.bf16.msra.mxu0 %v6182_v33  ;;  %v4353_v33 = vld [vmem:[%s8307_s7 + $0x170] sm:$0xff] }
0x2154   :  { %6185 = vmatprep.subr.bf16.mxu0 %v6184_v9 }
0x2155   :  { %3437 = vrot.lane.b32.xlu0 %v7594_v5, %s6559_s4 }
0x2157   :  { %6187 = vmatpush3.bf16.msra.mxu0 %v6186_v43  ;;  %v4310_v43 = vld [vmem:[%s8307_s7 + $0x18] sm:$0xff] }
0x2158   :  { %6189 = vmatprep.subr.bf16.mxu0 %v6188_v1  ;;  %v6154_v1 = vpack.c.bf16 %v4310_v43, %v4309_v26 }
0x215b   :  { %6191 = vmatpush3.bf16.msra.mxu0 %v6190_v63  ;;  %v4312_v63 = vld [vmem:[%s8307_s7 + $0x28] sm:$0xff] }
0x215c   :  { %6193 = vmatprep.subr.bf16.mxu0 %v6192_v17  ;;  %v6158_v49 = vpack.c.bf16 %v4312_v63, %v4311_v22 }
0x215f   :  { %6195 = vmatpush3.bf16.msra.mxu0 %v6194_v32  ;;  %v4331_v32 = vld [vmem:[%s8307_s7 + $0xc0] sm:$0xff] }
0x2160   :  { %6197 = vmatprep.subr.bf16.mxu0 %v6196_v52 }
0x2163   :  { %6199 = vmatpush3.bf16.msra.mxu0 %v6198_v41  ;;  %v6164_v41 = vpack.c.bf16 %v4332_v51, %v4331_v32 }
0x21bc   :  { %v4175_v5 = vpop.xlane.xlu0 %4174 }
0x21bd   :  { %v4177_v47 = vsub.f32 %v4169_v3, %v4175_v5  ;;  %v4172_v59 = vpop.xlane.xlu1 %4171  ;;  %v6200_v3 = vpack.c.bf16 %v4366_v57, %v4365_v53  ;;  %v4354_v5 = vld [vmem:[%s8307_s7 + $0x178] sm:$0xff]  ;;  %v4315_v53 = vld [vmem:[%s8307_s7 + $0x40] sm:$0xff]  ;;  %v4316_v57 = vld [vmem:[%s8307_s7 + $0x48] sm:$0xff] }
0x21be   :  { %v4176_v10 = vsub.f32 %v4168_v46, %v4172_v59 }
0x21bf   :  { %v4180_v44 = vmul.f32 1.442695, %v4177_v47  ;;  %6201 = vmatprep.subr.bf16.mxu0 %v6200_v3  ;;  %v6210_v47 = vpack.c.bf16 %v4354_v5, %v4353_v33  ;;  %v4333_v3 = vld [vmem:[%s8307_s7 + $0xd0] sm:$0xff]  ;;  %v4319_v33 = vld [vmem:[%s8307_s7 + $0x60] sm:$0xff]  ;;  %v4320_v5 = vld [vmem:[%s8307_s7 + $0x68] sm:$0xff] }
0x21c0   :  { %v4178_v56 = vmul.f32 1.442695, %v4176_v10  ;;  %v1740_v13 = vpop.permute.xlu0 %1739 }
0x21c1   :  { %6490 = vpow2.f32 %v4180_v44  ;;  %1745 = vst.msk [vmem:[#allocation3 + $0x8] sm:$0xff] %vm1320_vm3, %v1740_v13 }
0x21c2   :  { %6492 = vpow2.f32 %v4178_v56 }
0x21c4   :  { %v1742_v21 = vpop.permute.xlu0 %1741 }
0x21c5   :  { %1746 = vst.msk [vmem:[#allocation3 + $0x28] sm:$0xff] %vm1320_vm3, %v1742_v21  ;;  %v4308_v21 = vld [vmem:[%s8307_s7 + $0x8] sm:$0xff] }
0x21c8   :  { %v2590_v15 = vpop.permute.xlu0 %2589  ;;  %v4292_v60 = vld [vmem:[#allocation3 + $0x8] sm:$0xff] }
0x21c9   :  { %2594 = vst.msk [vmem:[#allocation3 + $0x38] sm:$0xff] %vm1320_vm3, %v2590_v15 }
0x21cb   :  { %v7687_v24 = vpop.eup %6490 }
0x21cc   :  { %v3436_v37 = vpop.permute.xlu0 %3435  ;;  %v4185_v62 = vsel %vm992_vm2, %v7687_v24, 0.0  ;;  %v7691_v42 = vpop.eup %6492 }
0x21cd   :  { %3441 = vst.msk [vmem:[#allocation3 + $0x48] sm:$0xff] %vm1320_vm3, %v3436_v37  ;;  %4186 = vadd.xlane.f32.xlu1 %v4185_v62  ;;  %v4182_v14 = vsel %vm992_vm2, %v7691_v42, 0.0  ;;  %v4325_v37 = vld [vmem:[%s8307_s7 + $0x90] sm:$0xff]  ;;  %v4326_v62 = vld [vmem:[%s8307_s7 + $0x98] sm:$0xff] }
0x21ce   :  { %v6152_v50 = vpack.c.bf16 %v4326_v62, %v4325_v37 }
0x21d0   :  { %v3438_v12 = vpop.permute.xlu0 %3437  ;;  %v4298_v28 = vld [vmem:[#allocation3 + $0x38] sm:$0xff] }
0x21d1   :  { %3442 = vst.msk [vmem:[#allocation3 + $0x68] sm:$0xff] %vm1320_vm3, %v3438_v12  ;;  %4183 = vadd.xlane.f32.xlu1 %v4182_v14 }
0x21d8   :  { %v4304_v37 = vld [vmem:[#allocation3 + $0x68] sm:$0xff] }
0x21e2   :  { %6356 = vrot.lane.b32.xlu1 %v8392_v36, %s6559_s4  ;;  %v4314_v36 = vld [vmem:[%s8307_s7 + $0x38] sm:$0xff] }
0x21e3   :  { %v6162_v18 = vpack.c.bf16 %v4314_v36, %v4313_v16 }
0x21e6   :  { %1314 = vrot.lane.b32.xlu1 %v7356_v45, %s6559_s4  ;;  %v4350_v45 = vld [vmem:[%s8307_s7 + $0x158] sm:$0xff] }
0x21e7   :  { %v6202_v46 = vpack.c.bf16 %v4350_v45, %v4349_v25  ;;  %v4334_v25 = vld [vmem:[%s8307_s7 + $0xd8] sm:$0xff] }
0x21e8   :  { %v6168_v61 = vpack.c.bf16 %v4334_v25, %v4333_v3 }
0x21e9   :  { %6203 = vmatpush3.bf16.msra.mxu0 %v6202_v46  ;;  %v6166_v46 = vpack.c.bf16 %v4316_v57, %v4315_v53 }
0x21ea   :  { %2587 = vrot.lane.b32.xlu1 %v7500_v39, %s6559_s4  ;;  %v4351_v39 = vld [vmem:[%s8307_s7 + $0x160] sm:$0xff]  ;;  %6205 = vmatprep.subr.bf16.mxu0 %v6204_v29  ;;  %v4318_v29 = vld [vmem:[%s8307_s7 + $0x58] sm:$0xff] }
0x21eb   :  { %v6206_v7 = vpack.c.bf16 %v4352_v27, %v4351_v39  ;;  %v4335_v39 = vld [vmem:[%s8307_s7 + $0xe0] sm:$0xff]  ;;  %v4336_v27 = vld [vmem:[%s8307_s7 + $0xe8] sm:$0xff] }
0x21ed   :  { %6207 = vmatpush3.bf16.msra.mxu0 %v6206_v7 }
0x21ee   :  { %2163 = vrot.lane.b32.xlu1 %v7452_v23, %s6559_s4  ;;  %v6208_v23 = vpack.c.bf16 %v4370_v40, %v4369_v11  ;;  %v6170_v40 = vpack.c.bf16 %v4318_v29, %v4317_v19 }
0x21f0   :  { %6209 = vmatprep.subr.bf16.mxu0 %v6208_v23  ;;  %v6172_v23 = vpack.c.bf16 %v4336_v27, %v4335_v39 }
0x21f1   :  { %6211 = vmatpush3.bf16.msra.mxu0 %v6210_v47  ;;  %v4337_v47 = vld [vmem:[%s8307_s7 + $0xf0] sm:$0xff] }
0x21f2   :  { %1316 = vrot.lane.b32.xlu1 %v7354_v54, %s6559_s4 }
0x21f6   :  { %2165 = vrot.lane.b32.xlu1 %v7450_v31, %s6559_s4  ;;  %v4323_v31 = vld [vmem:[%s8307_s7 + $0x80] sm:$0xff] }
0x21fa   :  { %3011 = vrot.lane.b32.xlu1 %v7548_v38, %s6559_s4  ;;  %v4324_v38 = vld [vmem:[%s8307_s7 + $0x88] sm:$0xff] }
0x21fe   :  { %3859 = vrot.lane.b32.xlu1 %v7644_v55, %s6559_s4 }
0x2202   :  { %3013 = vrot.lane.b32.xlu1 %v7546_v34, %s6559_s4  ;;  %v6148_v34 = vpack.c.bf16 %v4324_v38, %v4323_v31  ;;  %v4321_v38 = vld [vmem:[%s8307_s7 + $0x70] sm:$0xff] }
0x2206   :  { %3861 = vrot.lane.b32.xlu1 %v7642_v20, %s6559_s4  ;;  %v4307_v20 = vld [vmem:[%s8307_s7] sm:$0xff] }
0x2207   :  { %v6150_v58 = vpack.c.bf16 %v4308_v21, %v4307_v20  ;;  %v4300_v21 = vld [vmem:[#allocation3 + $0x48] sm:$0xff] }
0x225a   :  { %v4187_v54 = vpop.xlane.xlu1 %4186 }
0x225b   :  { %6494 = vrcp.f32 %v4187_v54  ;;  %v4338_v54 = vld [vmem:[%s8307_s7 + $0xf8] sm:$0xff] }
0x225c   :  { %v6176_v31 = vpack.c.bf16 %v4338_v54, %v4337_v47 }
0x225e   :  { %v4184_v59 = vpop.xlane.xlu1 %4183 }
0x225f   :  { %6496 = vrcp.f32 %v4184_v59 }
0x2262   :  { %v6357_v10 = vpop.permute.xlu1 %6356 }
0x2263   :  { %v6359_v55 = vunpack.i.h.bf16 %v6357_v10  ;;  %v6358_v44 = vunpack.i.l.bf16 %v6357_v10  ;;  %v6174_v10 = vpack.c.bf16 %v4320_v5, %v4319_v33 }
0x2265   :  { %v6144_v56 = vpack.c.bf16 %v6359_v55, %v6358_v44  ;;  %v6495_v15 = vpop.eup %6494  ;;  %v4322_v55 = vld [vmem:[%s8307_s7 + $0x78] sm:$0xff] }
0x2266   :  { %v1315_v13 = vpop.permute.xlu1 %1314  ;;  %v4191_v9 = vmul.f32 %v6495_v15, %v7687_v24  ;;  %v4328_v24 = vld [vmem:[%s8307_s7 + $0xa8] sm:$0xff] }
0x2267   :  { %1321 = vst.msk [vmem:[#allocation3] sm:$0xff] %vm1320_vm3, %v1315_v13  ;;  %6145 = vmatprep.subr.bf16.mxu1 %v6144_v56  ;;  %v4296_v13 = vld [vmem:[#allocation3 + $0x28] sm:$0xff] }
0x2268   :  { %6147 = vmatpush3.bf16.msra.mxu1 %v6144_v56  ;;  %v6178_v56 = vpack.c.bf16 %v4322_v55, %v4321_v38  ;;  %v6532_v38 = vld [vmem:[%s8346_s20 + $0x10] sm:$0xff] }
0x2269   :  { %v6497_v12 = vpop.eup %6496  ;;  %6149 = vmatprep.subr.bf16.mxu1 %v6148_v34 }
0x226a   :  { %v2588_v14 = vpop.permute.xlu1 %2587  ;;  %v4190_v48 = vmul.f32 %v6497_v12, %v7691_v42  ;;  %v4327_v42 = vld [vmem:[%s8307_s7 + $0xa0] sm:$0xff]  ;;  %v8393_v12 = vmov 0.0  }
0x226b   :  { %2593 = vst.msk [vmem:[#allocation3 + $0x18] sm:$0xff] %vm1320_vm3, %v2588_v14  ;;  %v6156_v8 = vpack.c.bf16 %v4328_v24, %v4327_v42 }
0x226c   :  { %5889 = vmatprep.mubr.msk.f32.mxu1 %vm992_vm2, %v4190_v48 }
0x226d   :  { %5890 = vmatmul.mubr.msk.f32.vlgmr.msra.gmra.mrb[54].mxu1 %vm992_vm2, %v4191_v9 }
0x226e   :  { %6151 = vmatpush3.bf16.msra.mxu1 %v6150_v58  ;;  %v2164_v30 = vpop.permute.xlu1 %2163  ;;  %4442 = vmatprep.mubr.f32.mxu1 %v4292_v60  ;;  %v4291_v34 = vld [vmem:[#allocation3] sm:$0xff] }
0x226f   :  { %2169 = vst.msk [vmem:[#allocation3 + $0x10] sm:$0xff] %vm1320_vm3, %v2164_v30  ;;  %6153 = vmatprep.subr.bf16.mxu1 %v6152_v50  ;;  %v5394_v60 = vld [vmem:[%s8308_s8] ss:$0 sm:$0xff] }
0x2272   :  { %6155 = vmatpush3.bf16.msra.mxu1 %v6154_v1  ;;  %v1317_v17 = vpop.permute.xlu1 %1316  ;;  %v4294_v6 = vld [vmem:[#allocation3 + $0x18] sm:$0xff] }
0x2273   :  { %1322 = vst.msk [vmem:[#allocation3 + $0x20] sm:$0xff] %vm1320_vm3, %v1317_v17  ;;  %4527 = vmatprep.mubr.f32.mxu0 %v4294_v6  ;;  %6157 = vmatprep.subr.bf16.mxu1 %v6156_v8 }
0x2276   :  { %6159 = vmatpush3.bf16.msra.mxu1 %v6158_v49  ;;  %v2166_v2 = vpop.permute.xlu1 %2165  ;;  %v4293_v52 = vld [vmem:[#allocation3 + $0x10] sm:$0xff]  ;;  %v6530_v49 = vld [vmem:[%s8346_s20] sm:$0xff] }
0x2277   :  { %2170 = vst.msk [vmem:[#allocation3 + $0x30] sm:$0xff] %vm1320_vm3, %v2166_v2  ;;  %4528 = vmatmul.mubr.f32.vlgmr.msra.gmra.mrb[56].mxu0 %v4293_v52  ;;  %6161 = vmatprep.subr.bf16.mxu1 %v6160_v0 }
0x2278   :  { %4532 = vmatprep.mubr.f32.mxu0 %v4298_v28 }
0x227a   :  { %6163 = vmatpush3.bf16.msra.mxu1 %v6162_v18  ;;  %v3012_v45 = vpop.permute.xlu1 %3011  ;;  %v4295_v20 = vld [vmem:[#allocation3 + $0x20] sm:$0xff]  ;;  %v6531_v18 = vld [vmem:[%s8346_s20 + $0x8] sm:$0xff] }
0x227b   :  { %3017 = vst.msk [vmem:[#allocation3 + $0x40] sm:$0xff] %vm1320_vm3, %v3012_v45  ;;  %6165 = vmatprep.subr.bf16.mxu1 %v6164_v41 }
0x227e   :  { %6167 = vmatpush3.bf16.msra.mxu1 %v6166_v46  ;;  %v3860_v7 = vpop.permute.xlu1 %3859  ;;  %v4297_v11 = vld [vmem:[#allocation3 + $0x30] sm:$0xff] }
0x227f   :  { %3865 = vst.msk [vmem:[#allocation3 + $0x50] sm:$0xff] %vm1320_vm3, %v3860_v7  ;;  %4533 = vmatmul.mubr.f32.gmra.mrb[58].mxu0 %v4297_v11  ;;  %6169 = vmatprep.subr.bf16.mxu1 %v6168_v61 }
0x2282   :  { %6171 = vmatpush3.bf16.msra.mxu1 %v6170_v40  ;;  %v3014_v59 = vpop.permute.xlu1 %3013  ;;  %v4299_v15 = vld [vmem:[#allocation3 + $0x40] sm:$0xff] }
0x2283   :  { %3018 = vst.msk [vmem:[#allocation3 + $0x60] sm:$0xff] %vm1320_vm3, %v3014_v59  ;;  %6173 = vmatprep.subr.bf16.mxu1 %v6172_v23 }
0x2286   :  { %6175 = vmatpush3.bf16.msra.mxu1 %v6174_v10  ;;  %v3862_v44 = vpop.permute.xlu1 %3861  ;;  %v4301_v61 = vld [vmem:[#allocation3 + $0x50] sm:$0xff] }
0x2287   :  { %3866 = vst.msk [vmem:[#allocation3 + $0x70] sm:$0xff] %vm1320_vm3, %v3862_v44  ;;  %6177 = vmatprep.subr.bf16.mxu1 %v6176_v31 }
0x228a   :  { %6179 = vmatpush3.bf16.msra.mxu1 %v6178_v56  ;;  %v4303_v62 = vld [vmem:[#allocation3 + $0x60] sm:$0xff] }
0x228d   :  { %4443 = vmatmul.mubr.f32.vlgmr.msra.gmra.mrb[56].mxu1 %v4291_v34 }
0x228e   :  { %4447 = vmatprep.mubr.f32.mxu1 %v4296_v13  ;;  %v4305_v29 = vld [vmem:[#allocation3 + $0x70] sm:$0xff] }
0x2291   :  { %4448 = vmatmul.mubr.f32.gmra.mrb[58].mxu1 %v4295_v20  ;;  %v6533_v20 = vld [vmem:[%s8346_s20 + $0x18] sm:$0xff] }
0x2292   :  { %4452 = vmatprep.mubr.f32.mxu1 %v4300_v21 }
0x2295   :  { %4453 = vmatmul.mubr.f32.gmra.mrb[60].mxu1 %v4299_v15 }
0x2296   :  { %4457 = vmatprep.mubr.f32.mxu1 %v4304_v37 }
0x2299   :  { %4458 = vmatmul.mubr.f32.gmra.mrb[62].mxu1 %v4303_v62 }
0x229a   :  { %4730 = vmatprep.mubr.f32.mxu1 %v8393_v12 }
0x2340   :  { %v5891_v14 = vpop.f32.mrb[54].mxu1 }
0x2341   :  { %v4272_v48 = vpop.f32.mrb[55].mxu1 }
0x2342   :  { %4283 = vrot.lane.b32.xlu0 %v4272_v48, %s6559_s4  ;;  %v4629_v48 = vld [vmem:[%s8311_s11 + $0x18] sm:$0xff] }
0x2346   :  { %4285 = vrot.lane.b32.xlu0 %v5891_v14, %s6559_s4  ;;  %v4627_v14 = vld [vmem:[%s8311_s11 + $0x8] sm:$0xff] }
0x234a   :  { %v5612_v58 = vpop.f32.mrb[56].mxu0 }
0x234b   :  { %v5613_v9 = vpop.f32.mrb[57].mxu0 }
0x234c   :  { %v5614_v50 = vadd.f32 %v5613_v9, %v5612_v58  ;;  %v6212_v58 = vpack.c.bf16 %v4629_v48, %v4627_v14  ;;  %v4626_v9 = vld [vmem:[%s8311_s11] sm:$0xff]  ;;  %v4829_v14 = vld [vmem:[%s8313_s13 + $0x10] sm:$0xff]  ;;  %v4830_v48 = vld [vmem:[%s8313_s13 + $0x18] sm:$0xff] }
0x234e   :  { %6213 = vmatprep.subr.bf16.mxu1 %v6212_v58  ;;  %v6234_v58 = vpack.c.bf16 %v4830_v48, %v4829_v14  ;;  %v8395_v14 = vld [vmem:[#allocation8_spill] sm:$0xff] }
0x2352   :  { %v5615_v26 = vpop.f32.mrb[58].mxu0 }
0x2353   :  { %v5616_v43 = vpop.f32.mrb[59].mxu0 }
0x2354   :  { %v5617_v42 = vadd.f32 %v5616_v43, %v5615_v26  ;;  %v4631_v43 = vld [vmem:[%s8311_s11 + $0x28] sm:$0xff] }
0x2360   :  { %v5568_v24 = vpop.f32.mrb[56].mxu1 }
0x2361   :  { %v5569_v30 = vpop.f32.mrb[57].mxu1 }
0x2362   :  { %v5570_v1 = vadd.f32 %v5569_v30, %v5568_v24  ;;  %v4632_v30 = vld [vmem:[%s8311_s11 + $0x30] sm:$0xff] }
0x2364   :  { %v4445_v8 = vadd.f32 %v5570_v1, %v5394_v60  ;;  %v5571_v22 = vpop.f32.mrb[58].mxu1 }
0x2365   :  { %v5572_v63 = vpop.f32.mrb[59].mxu1 }
0x2366   :  { %v4530_v4 = vadd.f32 %v5614_v50, %v4445_v8  ;;  %v5573_v35 = vadd.f32 %v5572_v63, %v5571_v22  ;;  %v4628_v50 = vld [vmem:[%s8311_s11 + $0x10] sm:$0xff]  ;;  %v4635_v8 = vld [vmem:[%s8311_s11 + $0x48] sm:$0xff]  ;;  %v4637_v22 = vld [vmem:[%s8311_s11 + $0x58] sm:$0xff] }
0x2367   :  { %v6214_v26 = vpack.c.bf16 %v4628_v50, %v4626_v9  ;;  %v6220_v63 = vpack.c.bf16 %v4637_v22, %v4635_v8  ;;  %v4847_v9 = vld [vmem:[%s8313_s13 + $0xa0] sm:$0xff]  ;;  %v4848_v50 = vld [vmem:[%s8313_s13 + $0xa8] sm:$0xff]  ;;  %v4833_v8 = vld [vmem:[%s8313_s13 + $0x30] sm:$0xff] }
0x2368   :  { %v4450_v17 = vadd.f32 %v5573_v35, %v5394_v60  ;;  %v5574_v6 = vpop.f32.mrb[60].mxu1  ;;  %v7921_v0 = vadd.f32 %v6530_v49, %v4530_v4  ;;  %v4634_v4 = vld [vmem:[%s8311_s11 + $0x40] sm:$0xff]  ;;  %v4636_v35 = vld [vmem:[%s8311_s11 + $0x50] sm:$0xff]  ;;  %v4641_v49 = vld [vmem:[%s8311_s11 + $0x78] sm:$0xff] }
0x2369   :  { %v5575_v16 = vpop.f32.mrb[61].mxu1  ;;  %6215 = vmatpush1.bf16.msra.mxu1 %v6214_v26  ;;  %v6236_v26 = vpack.c.bf16 %v4848_v50, %v4847_v9  ;;  %v4834_v22 = vld [vmem:[%s8313_s13 + $0x38] sm:$0xff] }
0x236a   :  { %v4535_v36 = vadd.f32 %v5617_v42, %v4450_v17  ;;  %v5576_v32 = vadd.f32 %v5575_v16, %v5574_v6  ;;  %v4554_v51 = vsel %vm69_vm0, %v7921_v0, 0.0  ;;  %v4633_v42 = vld [vmem:[%s8311_s11 + $0x38] sm:$0xff]  ;;  %v6222_v17 = vpack.c.bf16 %v4636_v35, %v4634_v4  ;;  %v4639_v6 = vld [vmem:[%s8311_s11 + $0x68] sm:$0xff]  ;;  %v4851_v4 = vld [vmem:[%s8313_s13 + $0xc0] sm:$0xff] }
0x236b   :  { %4555 = vadd.xlane.f32.xlu0 %v4554_v51  ;;  %v6216_v24 = vpack.c.bf16 %v4633_v42, %v4631_v43  ;;  %v6224_v16 = vpack.c.bf16 %v4641_v49, %v4639_v6  ;;  %v4831_v43 = vld [vmem:[%s8313_s13 + $0x20] sm:$0xff]  ;;  %v4832_v42 = vld [vmem:[%s8313_s13 + $0x28] sm:$0xff] }
0x236c   :  { %v4455_v2 = vadd.f32 %v5576_v32, %v5394_v60  ;;  %v5577_v52 = vpop.f32.mrb[62].mxu1  ;;  %v7928_v28 = vadd.f32 %v6531_v18, %v4535_v36  ;;  %v4638_v36 = vld [vmem:[%s8311_s11 + $0x60] sm:$0xff]  ;;  %v4640_v32 = vld [vmem:[%s8311_s11 + $0x70] sm:$0xff]  ;;  %v4852_v35 = vld [vmem:[%s8313_s13 + $0xc8] sm:$0xff] }
0x236d   :  { %v5578_v41 = vpop.f32.mrb[63].mxu1  ;;  %6217 = vmatprep.subr.bf16.mxu1 %v6216_v24  ;;  %v6226_v51 = vpack.c.bf16 %v4640_v32, %v4638_v36  ;;  %v6238_v24 = vpack.c.bf16 %v4832_v42, %v4831_v43  ;;  %v4835_v6 = vld [vmem:[%s8313_s13 + $0x40] sm:$0xff]  ;;  %v4836_v49 = vld [vmem:[%s8313_s13 + $0x48] sm:$0xff]  ;;  %v4854_v32 = vld [vmem:[%s8313_s13 + $0xd8] sm:$0xff] }
0x236e   :  { %v5579_v53 = vadd.f32 %v5578_v41, %v5577_v52  ;;  %v4557_v57 = vsel %vm69_vm0, %v7928_v28, 0.0  ;;  %v6246_v36 = vpack.c.bf16 %v4836_v49, %v4835_v6 }
0x236f   :  { %4558 = vadd.xlane.f32.xlu1 %v4557_v57 }
0x2370   :  { %v4460_v3 = vadd.f32 %v5579_v53, %v5394_v60  ;;  %v4630_v60 = vld [vmem:[%s8311_s11 + $0x20] sm:$0xff] }
0x2371   :  { %v6218_v1 = vpack.c.bf16 %v4632_v30, %v4630_v60  ;;  %v4849_v60 = vld [vmem:[%s8313_s13 + $0xb0] sm:$0xff]  ;;  %v4850_v30 = vld [vmem:[%s8313_s13 + $0xb8] sm:$0xff] }
0x2373   :  { %6219 = vmatpush1.bf16.msra.mxu1 %v6218_v1  ;;  %v6240_v1 = vpack.c.bf16 %v4850_v30, %v4849_v60 }
0x2374   :  { %6221 = vmatprep.subr.bf16.mxu1 %v6220_v63  ;;  %v6242_v63 = vpack.c.bf16 %v4834_v22, %v4833_v8 }
0x2377   :  { %6223 = vmatpush1.bf16.msra.mxu1 %v6222_v17  ;;  %v6244_v17 = vpack.c.bf16 %v4852_v35, %v4851_v4 }
0x2378   :  { %6225 = vmatprep.subr.bf16.mxu1 %v6224_v16  ;;  %v4853_v16 = vld [vmem:[%s8313_s13 + $0xd0] sm:$0xff] }
0x237b   :  { %6227 = vmatpush1.bf16.msra.mxu1 %v6226_v51  ;;  %v4837_v51 = vld [vmem:[%s8313_s13 + $0x50] sm:$0xff] }
0x23b4   :  { %v4284_v25 = vpop.permute.xlu0 %4283 }
0x23b5   :  { %4289 = vst.msk [vmem:[#allocation3 + $0x58] sm:$0xff] %vm1320_vm3, %v4284_v25 }
0x23b8   :  { %v4286_v45 = vpop.permute.xlu0 %4285 }
0x23b9   :  { %4290 = vst.msk [vmem:[#allocation3 + $0x78] sm:$0xff] %vm1320_vm3, %v4286_v45 }
0x23bc   :  { %v4302_v46 = vld [vmem:[#allocation3 + $0x58] sm:$0xff] }
0x23bd   :  { %4537 = vmatprep.mubr.f32.mxu0 %v4302_v46 }
0x23be   :  { %4538 = vmatmul.mubr.f32.gmra.mrb[60].mxu0 %v4301_v61 }
0x23c0   :  { %v4306_v19 = vld [vmem:[#allocation3 + $0x78] sm:$0xff] }
0x23c1   :  { %4542 = vmatprep.mubr.f32.mxu0 %v4306_v19 }
0x23c2   :  { %4543 = vmatmul.mubr.f32.gmra.mrb[62].mxu0 %v4305_v29 }
0x23f8   :  { %v4556_v33 = vpop.xlane.xlu0 %4555 }
0x23f9   :  { %v4566_v54 = vmul.f32 0.015625, %v4556_v33 }
0x23fb   :  { %v7946_v56 = vsub.f32 %v7921_v0, %v4566_v54 }
0x23fc   :  { %v4559_v39 = vpop.xlane.xlu1 %4558 }
0x23fd   :  { %v4567_v27 = vmul.f32 0.015625, %v4559_v39  ;;  %v4574_v37 = vmul.f32 %v7946_v56, %v7946_v56 }
0x23ff   :  { %v7935_v7 = vsub.f32 %v7928_v28, %v4567_v27  ;;  %v4578_v62 = vsel %vm69_vm0, %v4574_v37, 0.0  ;;  %v4846_v37 = vld [vmem:[%s8313_s13 + $0x98] sm:$0xff] }
0x2401   :  { %v4575_v11 = vmul.f32 %v7935_v7, %v7935_v7 }
0x2403   :  { %v4581_v40 = vsel %vm69_vm0, %v4575_v11, 0.0 }
0x2404   :  { %4582 = vadd.xlane.f32.xlu1 %v4581_v40 }
0x2491   :  { %v5618_v23 = vpop.f32.mrb[60].mxu0 }
0x2492   :  { %v5619_v5 = vpop.f32.mrb[61].mxu0 }
0x2493   :  { %v5620_v47 = vadd.f32 %v5619_v5, %v5618_v23 }
0x2495   :  { %v4540_v59 = vadd.f32 %v5620_v47, %v4455_v2  ;;  %v5621_v10 = vpop.f32.mrb[62].mxu0  ;;  %v4583_v2 = vpop.xlane.xlu1 %4582  ;;  %v8025_v47 = vld [vmem:[%s8309_s9] ss:$0 sm:$0xff] }
0x2496   :  { %v5622_v31 = vpop.f32.mrb[63].mxu0  ;;  %v4591_v41 = vmul.f32 0.015625, %v4583_v2  ;;  %v4838_v2 = vld [vmem:[%s8313_s13 + $0x58] sm:$0xff] }
0x2497   :  { %v7943_v55 = vadd.f32 %v6532_v38, %v4540_v59  ;;  %v5623_v44 = vadd.f32 %v5622_v31, %v5621_v10  ;;  %v8031_v59 = vld [vmem:[%s8310_s10] ss:$0 sm:$0xff] }
0x2498   :  { %v4595_v45 = vadd.f32 1e-05, %v4591_v41  ;;  %v4843_v38 = vld [vmem:[%s8313_s13 + $0x80] sm:$0xff]  ;;  %v4856_v41 = vld [vmem:[%s8313_s13 + $0xe8] sm:$0xff] }
0x2499   :  { %v4545_v34 = vadd.f32 %v5623_v44, %v4460_v3  ;;  %v4560_v13 = vsel %vm69_vm0, %v7943_v55, 0.0  ;;  %v4844_v44 = vld [vmem:[%s8313_s13 + $0x88] sm:$0xff] }
0x249a   :  { %4561 = vadd.xlane.f32.xlu0 %v4560_v13  ;;  %6498 = vrsqrt.f32 %v4595_v45  ;;  %v4828_v13 = vld [vmem:[%s8313_s13 + $0x8] sm:$0xff] }
0x249b   :  { %v7953_v21 = vadd.f32 %v6533_v20, %v4545_v34  ;;  %v6228_v34 = vpack.c.bf16 %v4844_v44, %v4843_v38  ;;  %v4840_v45 = vld [vmem:[%s8313_s13 + $0x68] sm:$0xff] }
0x249d   :  { %v4563_v15 = vsel %vm69_vm0, %v7953_v21, 0.0  ;;  %6229 = vmatprep.subr.bf16.mxu0 %v6228_v34 }
0x249e   :  { %4564 = vadd.xlane.f32.xlu0 %v4563_v15  ;;  %v4845_v15 = vld [vmem:[%s8313_s13 + $0x90] sm:$0xff] }
0x24a2   :  { %4579 = vadd.xlane.f32.xlu0 %v4578_v62  ;;  %v6232_v62 = vpack.c.bf16 %v4846_v37, %v4845_v15  ;;  %v8394_v37 = vld [vmem:[#allocation7_spill] sm:$0xff] }
0x24a4   :  { %v6499_v40 = vpop.eup %6498 }
0x24a5   :  { %v4603_v5 = vmul.f32 %v6499_v40, %v7935_v7 }
0x24a7   :  { %v4613_v31 = vmul.f32 %v8025_v47, %v4603_v5 }
0x24a9   :  { %v4623_v7 = vadd.f32 %v8031_v59, %v4613_v31 }
0x2527   :  { %v4562_v52 = vpop.xlane.xlu0 %4561 }
0x2528   :  { %v4568_v18 = vmul.f32 0.015625, %v4562_v52  ;;  %v6248_v52 = vpack.c.bf16 %v4854_v32, %v4853_v16 }
0x252a   :  { %v8009_v53 = vsub.f32 %v7943_v55, %v4568_v18  ;;  %v4855_v18 = vld [vmem:[%s8313_s13 + $0xe0] sm:$0xff] }
0x252b   :  { %v4565_v57 = vpop.xlane.xlu0 %4564 }
0x252c   :  { %v4569_v3 = vmul.f32 0.015625, %v4565_v57  ;;  %v4576_v25 = vmul.f32 %v8009_v53, %v8009_v53  ;;  %v6250_v57 = vpack.c.bf16 %v4838_v2, %v4837_v51 }
0x252e   :  { %v8014_v46 = vsub.f32 %v7953_v21, %v4569_v3  ;;  %v4584_v61 = vsel %vm69_vm0, %v4576_v25, 0.0  ;;  %v6252_v3 = vpack.c.bf16 %v4856_v41, %v4855_v18  ;;  %v4839_v25 = vld [vmem:[%s8313_s13 + $0x60] sm:$0xff] }
0x252f   :  { %4585 = vadd.xlane.f32.xlu0 %v4584_v61  ;;  %v4580_v19 = vpop.xlane.xlu0 %4579  ;;  %v4857_v61 = vld [vmem:[%s8313_s13 + $0xf0] sm:$0xff] }
0x2530   :  { %v4590_v29 = vmul.f32 0.015625, %v4580_v19  ;;  %v4577_v39 = vmul.f32 %v8014_v46, %v8014_v46  ;;  %v4858_v19 = vld [vmem:[%s8313_s13 + $0xf8] sm:$0xff] }
0x2532   :  { %v4594_v27 = vadd.f32 1e-05, %v4590_v29  ;;  %v4587_v11 = vsel %vm69_vm0, %v4577_v39, 0.0  ;;  %v6254_v29 = vpack.c.bf16 %v4840_v45, %v4839_v25  ;;  %v6256_v39 = vpack.c.bf16 %v4858_v19, %v4857_v61 }
0x2533   :  { %4588 = vadd.xlane.f32.xlu1 %v4587_v11  ;;  %v4842_v11 = vld [vmem:[%s8313_s13 + $0x78] sm:$0xff] }
0x2534   :  { %6500 = vrsqrt.f32 %v4594_v27  ;;  %v4841_v27 = vld [vmem:[%s8313_s13 + $0x70] sm:$0xff] }
0x2535   :  { %v6258_v40 = vpack.c.bf16 %v4842_v11, %v4841_v27 }
0x253e   :  { %v6501_v23 = vpop.eup %6500 }
0x253f   :  { %v4602_v33 = vmul.f32 %v6501_v23, %v7946_v56  ;;  %v4827_v56 = vld [vmem:[%s8313_s13] sm:$0xff] }
0x2540   :  { %v6230_v20 = vpack.c.bf16 %v4828_v13, %v4827_v56 }
0x2541   :  { %v4612_v54 = vmul.f32 %v8025_v47, %v4602_v33 }
0x2542   :  { %6231 = vmatpush3.bf16.msra.mxu0 %v6230_v20 }
0x2543   :  { %v4622_v10 = vadd.f32 %v8031_v59, %v4612_v54  ;;  %6233 = vmatprep.subr.bf16.mxu0 %v6232_v62 }
0x2545   :  { %5397 = vmatmul.mubr.msk.f32.vlgmr.msra.gmra.mrb[64].mxu1 %vm69_vm0, %v4622_v10 }
0x2546   :  { %4736 = vmatprep.mubr.f32.mxu1 %v8393_v12  ;;  %6235 = vmatpush3.bf16.msra.mxu0 %v6234_v58 }
0x2547   :  { %6237 = vmatprep.subr.bf16.mxu0 %v6236_v26 }
0x2549   :  { %5398 = vmatmul.mubr.msk.f32.gmra.mrb[66].mxu1 %vm69_vm0, %v4623_v7 }
0x254a   :  { %4742 = vmatprep.mubr.f32.mxu1 %v8393_v12  ;;  %6239 = vmatpush3.bf16.msra.mxu0 %v6238_v24 }
0x254b   :  { %6241 = vmatprep.subr.bf16.mxu0 %v6240_v1 }
0x254e   :  { %6243 = vmatpush3.bf16.msra.mxu0 %v6242_v63 }
0x254f   :  { %6245 = vmatprep.subr.bf16.mxu0 %v6244_v17 }
0x2552   :  { %6247 = vmatpush3.bf16.msra.mxu0 %v6246_v36 }
0x2553   :  { %6249 = vmatprep.subr.bf16.mxu0 %v6248_v52 }
0x2556   :  { %6251 = vmatpush3.bf16.msra.mxu0 %v6250_v57 }
0x2557   :  { %6253 = vmatprep.subr.bf16.mxu0 %v6252_v3 }
0x255a   :  { %6255 = vmatpush3.bf16.msra.mxu0 %v6254_v29 }
0x255b   :  { %6257 = vmatprep.subr.bf16.mxu0 %v6256_v39 }
0x255e   :  { %6259 = vmatpush3.bf16.msra.mxu0 %v6258_v40 }
0x25bc   :  { %v4586_v23 = vpop.xlane.xlu0 %4585 }
0x25bd   :  { %v4592_v33 = vmul.f32 0.015625, %v4586_v23 }
0x25bf   :  { %v4596_v5 = vadd.f32 1e-05, %v4592_v33 }
0x25c0   :  { %v4589_v54 = vpop.xlane.xlu1 %4588 }
0x25c1   :  { %6502 = vrsqrt.f32 %v4596_v5  ;;  %v4593_v10 = vmul.f32 0.015625, %v4589_v54 }
0x25c3   :  { %v4597_v31 = vadd.f32 1e-05, %v4593_v10 }
0x25c5   :  { %6504 = vrsqrt.f32 %v4597_v31 }
0x25cb   :  { %v6503_v7 = vpop.eup %6502 }
0x25cc   :  { %v4604_v38 = vmul.f32 %v6503_v7, %v8009_v53  ;;  %v4642_v53 = vld [vmem:[%s8312_s12] sm:$0x3] }
0x25cd   :  { %v4647_v62 = vrot.slane %v4642_v53, %v8394_v37 }
0x25ce   :  { %v4614_v44 = vmul.f32 %v8025_v47, %v4604_v38 }
0x25cf   :  { %v6505_v56 = vpop.eup %6504 }
0x25d0   :  { %v4624_v34 = vadd.f32 %v8031_v59, %v4614_v44  ;;  %v4605_v13 = vmul.f32 %v6505_v56, %v8014_v46  ;;  %v8151_v46 = vrot.slane %v4642_v53, %v8395_v14 }
0x25d2   :  { %5399 = vmatmul.mubr.msk.f32.gmra.mrb[68].mxu1 %vm69_vm0, %v4624_v34  ;;  %v4615_v20 = vmul.f32 %v8025_v47, %v4605_v13 }
0x25d3   :  { %4748 = vmatprep.mubr.f32.mxu1 %v8393_v12 }
0x25d4   :  { %v4625_v15 = vadd.f32 %v8031_v59, %v4615_v20 }
0x25d6   :  { %5400 = vmatmul.mubr.msk.f32.gmra.mrb[70].mxu1 %vm69_vm0, %v4625_v15 }
0x25d7   :  { %5133 = vmatprep.mubr.f32.mxu1 %v8393_v12 }
0x2618   :  { %v4732_v48 = vpop.f32.mrb[64].mxu1 }
0x2619   :  { %v4733_v58 = vadd.f32 %v4732_v48, %v4647_v62  ;;  %v4734_v47 = vpop.f32.mrb[65].mxu1 }
0x261a   :  { %v4735_v9 = vadd.f32 %v4734_v47, %v8151_v46 }
0x261b   :  { %v4763_v50 = vmul.f32 0.044715, %v4733_v58  ;;  %v4755_v61 = vmul.f32 0.5, %v4733_v58 }
0x261c   :  { %v4764_v59 = vmul.f32 0.044715, %v4735_v9  ;;  %v4738_v26 = vpop.f32.mrb[66].mxu1  ;;  %v4756_v25 = vmul.f32 0.5, %v4735_v9 }
0x261d   :  { %v4771_v43 = vmul.f32 %v4763_v50, %v4733_v58  ;;  %v4739_v42 = vadd.f32 %v4738_v26, %v4647_v62  ;;  %v4740_v24 = vpop.f32.mrb[67].mxu1 }
0x261e   :  { %v4772_v60 = vmul.f32 %v4764_v59, %v4735_v9  ;;  %v4741_v30 = vadd.f32 %v4740_v24, %v8151_v46 }
0x261f   :  { %v4779_v1 = vmul.f32 %v4771_v43, %v4733_v58  ;;  %v4765_v8 = vmul.f32 0.044715, %v4739_v42  ;;  %v4757_v33 = vmul.f32 0.5, %v4739_v42 }
0x2620   :  { %v4766_v22 = vmul.f32 0.044715, %v4741_v30  ;;  %v4780_v63 = vmul.f32 %v4772_v60, %v4735_v9  ;;  %v4758_v40 = vmul.f32 0.5, %v4741_v30 }
0x2621   :  { %v4787_v4 = vadd.f32 %v4779_v1, %v4733_v58  ;;  %v4773_v35 = vmul.f32 %v4765_v8, %v4739_v42 }
0x2622   :  { %v4774_v17 = vmul.f32 %v4766_v22, %v4741_v30  ;;  %v4788_v6 = vadd.f32 %v4780_v63, %v4735_v9 }
0x2623   :  { %v4795_v49 = vmul.f32 0.7978846, %v4787_v4  ;;  %v4781_v16 = vmul.f32 %v4773_v35, %v4739_v42 }
0x2624   :  { %v4796_v36 = vmul.f32 0.7978846, %v4788_v6  ;;  %v4782_v32 = vmul.f32 %v4774_v17, %v4741_v30 }
0x2625   :  { %6506 = vtanh.f32 %v4795_v49  ;;  %v4789_v51 = vadd.f32 %v4781_v16, %v4739_v42 }
0x2626   :  { %6508 = vtanh.f32 %v4796_v36  ;;  %v4790_v2 = vadd.f32 %v4782_v32, %v4741_v30 }
0x2627   :  { %v4797_v52 = vmul.f32 0.7978846, %v4789_v51 }
0x2628   :  { %v4798_v18 = vmul.f32 0.7978846, %v4790_v2 }
0x2629   :  { %6510 = vtanh.f32 %v4797_v52 }
0x262a   :  { %6512 = vtanh.f32 %v4798_v18 }
0x262f   :  { %v6507_v41 = vpop.eup %6506 }
0x2630   :  { %v6509_v57 = vpop.eup %6508  ;;  %v4811_v3 = vadd.f32 1.0, %v6507_v41 }
0x2631   :  { %v4812_v45 = vadd.f32 1.0, %v6509_v57 }
0x2632   :  { %v4819_v27 = vmul.f32 %v4811_v3, %v4755_v61 }
0x2633   :  { %v6511_v19 = vpop.eup %6510  ;;  %v4820_v29 = vmul.f32 %v4812_v45, %v4756_v25  ;;  %v5401_v45 = vld [vmem:[%s8314_s14] ss:$0 sm:$0xff] }
0x2634   :  { %v6513_v39 = vpop.eup %6512  ;;  %v4813_v11 = vadd.f32 1.0, %v6511_v19 }
0x2635   :  { %4930 = vmatprep.mubr.f32.mxu0 %v4820_v29  ;;  %v4814_v23 = vadd.f32 1.0, %v6513_v39 }
0x2636   :  { %4931 = vmatmul.mubr.f32.vlgmr.msra.gmra.mrb[64].mxu0 %v4819_v27  ;;  %v4821_v54 = vmul.f32 %v4813_v11, %v4757_v33 }
0x2637   :  { %v4822_v5 = vmul.f32 %v4814_v23, %v4758_v40 }
0x2639   :  { %4935 = vmatprep.mubr.f32.mxu0 %v4822_v5 }
0x263a   :  { %4936 = vmatmul.mubr.f32.gmra.mrb[66].mxu0 %v4821_v54 }
0x26a5   :  { %v4744_v10 = vpop.f32.mrb[68].mxu1 }
0x26a6   :  { %v4745_v31 = vadd.f32 %v4744_v10, %v4647_v62  ;;  %v4746_v7 = vpop.f32.mrb[69].mxu1 }
0x26a7   :  { %v4747_v38 = vadd.f32 %v4746_v7, %v8151_v46 }
0x26a8   :  { %v4767_v44 = vmul.f32 0.044715, %v4745_v31  ;;  %v4759_v49 = vmul.f32 0.5, %v4745_v31 }
0x26a9   :  { %v4768_v56 = vmul.f32 0.044715, %v4747_v38  ;;  %v4750_v34 = vpop.f32.mrb[70].mxu1  ;;  %v4760_v17 = vmul.f32 0.5, %v4747_v38 }
0x26aa   :  { %v4775_v13 = vmul.f32 %v4767_v44, %v4745_v31  ;;  %v4751_v20 = vadd.f32 %v4750_v34, %v4647_v62  ;;  %v4752_v15 = vpop.f32.mrb[71].mxu1 }
0x26ab   :  { %v4776_v53 = vmul.f32 %v4768_v56, %v4747_v38  ;;  %v4753_v48 = vadd.f32 %v4752_v15, %v8151_v46 }
0x26ac   :  { %v4769_v58 = vmul.f32 0.044715, %v4751_v20  ;;  %v4783_v47 = vmul.f32 %v4775_v13, %v4745_v31  ;;  %v4761_v41 = vmul.f32 0.5, %v4751_v20 }
0x26ad   :  { %v4770_v9 = vmul.f32 0.044715, %v4753_v48  ;;  %v4784_v50 = vmul.f32 %v4776_v53, %v4747_v38  ;;  %v4762_v52 = vmul.f32 0.5, %v4753_v48 }
0x26ae   :  { %v4777_v59 = vmul.f32 %v4769_v58, %v4751_v20  ;;  %v4791_v26 = vadd.f32 %v4783_v47, %v4745_v31 }
0x26af   :  { %v4778_v43 = vmul.f32 %v4770_v9, %v4753_v48  ;;  %v4792_v42 = vadd.f32 %v4784_v50, %v4747_v38 }
0x26b0   :  { %v4799_v24 = vmul.f32 0.7978846, %v4791_v26  ;;  %v4785_v60 = vmul.f32 %v4777_v59, %v4751_v20 }
0x26b1   :  { %v4800_v30 = vmul.f32 0.7978846, %v4792_v42  ;;  %v4786_v1 = vmul.f32 %v4778_v43, %v4753_v48  ;;  %v5030_v43 = vld [vmem:[%s8317_s17 + $0x8] sm:$0xff]  ;;  %v5032_v42 = vld [vmem:[%s8317_s17 + $0x18] sm:$0xff] }
0x26b2   :  { %6514 = vtanh.f32 %v4799_v24  ;;  %v4793_v8 = vadd.f32 %v4785_v60, %v4751_v20  ;;  %v6260_v24 = vpack.c.bf16 %v5032_v42, %v5030_v43  ;;  %v5029_v60 = vld [vmem:[%s8317_s17] sm:$0xff] }
0x26b3   :  { %6516 = vtanh.f32 %v4800_v30  ;;  %v4794_v62 = vadd.f32 %v4786_v1, %v4753_v48  ;;  %v5031_v30 = vld [vmem:[%s8317_s17 + $0x10] sm:$0xff] }
0x26b4   :  { %v4801_v22 = vmul.f32 0.7978846, %v4793_v8  ;;  %v6262_v1 = vpack.c.bf16 %v5031_v30, %v5029_v60  ;;  %6261 = vmatprep.subr.bf16.mxu1 %v6260_v24  ;;  %v5034_v8 = vld [vmem:[%s8317_s17 + $0x28] sm:$0xff] }
0x26b5   :  { %v4802_v63 = vmul.f32 0.7978846, %v4794_v62  ;;  %v5036_v62 = vld [vmem:[%s8317_s17 + $0x38] sm:$0xff] }
0x26b6   :  { %6518 = vtanh.f32 %v4801_v22  ;;  %6263 = vmatpush1.bf16.msra.mxu1 %v6262_v1  ;;  %v6264_v22 = vpack.c.bf16 %v5036_v62, %v5034_v8 }
0x26b7   :  { %6520 = vtanh.f32 %v4802_v63  ;;  %v5033_v63 = vld [vmem:[%s8317_s17 + $0x20] sm:$0xff] }
0x26b8   :  { %6265 = vmatprep.subr.bf16.mxu1 %v6264_v22  ;;  %v5045_v22 = vld [vmem:[%s8318_s18] sm:$0x3] }
0x26bc   :  { %v6515_v46 = vpop.eup %6514 }
0x26bd   :  { %v6517_v4 = vpop.eup %6516  ;;  %v4815_v35 = vadd.f32 1.0, %v6515_v46  ;;  %v5035_v46 = vld [vmem:[%s8317_s17 + $0x30] sm:$0xff] }
0x26be   :  { %v4816_v6 = vadd.f32 1.0, %v6517_v4  ;;  %v6266_v4 = vpack.c.bf16 %v5035_v46, %v5033_v63  ;;  %v5050_v63 = vrot.slane %v5045_v22, %v8394_v37  ;;  %v5054_v46 = vrot.slane %v5045_v22, %v8395_v14  ;;  %v5160_v37 = vld [vmem:[%s8397_s22 + $0x10] sm:$0xff] }
0x26bf   :  { %v4823_v51 = vmul.f32 %v4815_v35, %v4759_v49  ;;  %v5038_v35 = vld [vmem:[%s8317_s17 + $0x48] sm:$0xff]  ;;  %v5037_v49 = vld [vmem:[%s8317_s17 + $0x40] sm:$0xff] }
0x26c0   :  { %v6519_v16 = vpop.eup %6518  ;;  %v4824_v36 = vmul.f32 %v4816_v6, %v4760_v17  ;;  %6267 = vmatpush1.bf16.msra.mxu1 %v6266_v4  ;;  %v5040_v17 = vld [vmem:[%s8317_s17 + $0x58] sm:$0xff] }
0x26c1   :  { %v6521_v32 = vpop.eup %6520  ;;  %v4817_v2 = vadd.f32 1.0, %v6519_v16  ;;  %v6268_v6 = vpack.c.bf16 %v5040_v17, %v5038_v35  ;;  %v5039_v16 = vld [vmem:[%s8317_s17 + $0x50] sm:$0xff]  ;;  %v5158_v35 = vld [vmem:[%s8397_s22] sm:$0xff] }
0x26c2   :  { %4940 = vmatprep.mubr.f32.mxu0 %v4824_v36  ;;  %v4818_v18 = vadd.f32 1.0, %v6521_v32  ;;  %v6270_v36 = vpack.c.bf16 %v5039_v16, %v5037_v49  ;;  %v5042_v32 = vld [vmem:[%s8317_s17 + $0x68] sm:$0xff] }
0x26c3   :  { %4941 = vmatmul.mubr.f32.gmra.mrb[68].mxu0 %v4823_v51  ;;  %v4825_v3 = vmul.f32 %v4817_v2, %v4761_v41  ;;  %6269 = vmatprep.subr.bf16.mxu1 %v6268_v6  ;;  %v5044_v51 = vld [vmem:[%s8317_s17 + $0x78] sm:$0xff] }
0x26c4   :  { %v4826_v57 = vmul.f32 %v4818_v18, %v4762_v52  ;;  %6271 = vmatpush1.bf16.msra.mxu1 %v6270_v36  ;;  %v6272_v2 = vpack.c.bf16 %v5044_v51, %v5042_v32  ;;  %v5041_v52 = vld [vmem:[%s8317_s17 + $0x60] sm:$0xff]  ;;  %v5043_v18 = vld [vmem:[%s8317_s17 + $0x70] sm:$0xff] }
0x26c5   :  { %v6274_v41 = vpack.c.bf16 %v5043_v18, %v5041_v52 }
0x26c6   :  { %4945 = vmatprep.mubr.f32.mxu0 %v4826_v57  ;;  %6273 = vmatprep.subr.bf16.mxu1 %v6272_v2  ;;  %v6560_v57 = vmov 0  }
0x26c7   :  { %4946 = vmatmul.mubr.f32.gmra.mrb[70].mxu0 %v4825_v3  ;;  %6360 = vset.pattern.permute.xlu0 %v6560_v57 }
0x26c8   :  { %6275 = vmatpush1.bf16.msra.mxu1 %v6274_v41  ;;  %6361 = vset.pattern.permute.xlu1 %v6560_v57  ;;  %v5161_v57 = vld [vmem:[%s8397_s22 + $0x18] sm:$0xff] }
0x2709   :  { %v5656_v25 = vpop.f32.mrb[64].mxu0 }
0x270a   :  { %v5657_v61 = vpop.f32.mrb[65].mxu0 }
0x270b   :  { %v5658_v19 = vadd.f32 %v5657_v61, %v5656_v25 }
0x270d   :  { %v4933_v29 = vadd.f32 %v5658_v19, %v5401_v45  ;;  %v5659_v39 = vpop.f32.mrb[66].mxu0 }
0x270e   :  { %v5660_v27 = vpop.f32.mrb[67].mxu0 }
0x270f   :  { %v5661_v11 = vadd.f32 %v5660_v27, %v5659_v39  ;;  %v4951_v40 = vadd.f32 %v4933_v29, %v7921_v0 }
0x2711   :  { %v4938_v23 = vadd.f32 %v5661_v11, %v5401_v45  ;;  %v4957_v33 = vsel %vm69_vm0, %v4951_v40, 0.0 }
0x2712   :  { %4958 = vadd.xlane.f32.xlu0 %v4957_v33 }
0x2713   :  { %v4952_v5 = vadd.f32 %v4938_v23, %v7928_v28 }
0x2715   :  { %v4960_v54 = vsel %vm69_vm0, %v4952_v5, 0.0 }
0x2716   :  { %4961 = vadd.xlane.f32.xlu1 %v4960_v54 }
0x2796   :  { %v5662_v10 = vpop.f32.mrb[68].mxu0 }
0x2797   :  { %v5663_v31 = vpop.f32.mrb[69].mxu0 }
0x2798   :  { %v5664_v7 = vadd.f32 %v5663_v31, %v5662_v10 }
0x279a   :  { %v4943_v38 = vadd.f32 %v5664_v7, %v5401_v45  ;;  %v5665_v44 = vpop.f32.mrb[70].mxu0 }
0x279b   :  { %v5666_v56 = vpop.f32.mrb[71].mxu0 }
0x279c   :  { %v5667_v34 = vadd.f32 %v5666_v56, %v5665_v44  ;;  %v4953_v13 = vadd.f32 %v4943_v38, %v7943_v55  ;;  %v5402_v38 = vld [vmem:[%s8315_s15] ss:$0 sm:$0xff] }
0x279d   :  { %v5403_v56 = vld [vmem:[%s8316_s16] ss:$0 sm:$0xff] }
0x279e   :  { %v4948_v20 = vadd.f32 %v5667_v34, %v5401_v45  ;;  %v4963_v0 = vsel %vm69_vm0, %v4953_v13, 0.0 }
0x279f   :  { %4964 = vadd.xlane.f32.xlu0 %v4963_v0  ;;  %v4959_v15 = vpop.xlane.xlu0 %4958  ;;  %v5174_v0 = vld [vmem:[%s8396_s27] sm:$0xff] }
0x27a0   :  { %v4969_v53 = vmul.f32 0.015625, %v4959_v15  ;;  %v4954_v28 = vadd.f32 %v4948_v20, %v7953_v21 }
0x27a2   :  { %v8167_v48 = vsub.f32 %v4951_v40, %v4969_v53  ;;  %v4966_v58 = vsel %vm69_vm0, %v4954_v28, 0.0 }
0x27a3   :  { %v4962_v47 = vpop.xlane.xlu1 %4961  ;;  %4967 = vadd.xlane.f32.xlu1 %v4966_v58  ;;  %v5176_v58 = vld [vmem:[%s8396_s27 + $0x10] sm:$0xff] }
0x27a4   :  { %v4970_v9 = vmul.f32 0.015625, %v4962_v47  ;;  %v4977_v50 = vmul.f32 %v8167_v48, %v8167_v48  ;;  %v5177_v47 = vld [vmem:[%s8396_s27 + $0x18] sm:$0xff] }
0x27a6   :  { %v8172_v59 = vsub.f32 %v4952_v5, %v4970_v9  ;;  %v4981_v55 = vsel %vm69_vm0, %v4977_v50, 0.0 }
0x27a7   :  { %4982 = vadd.xlane.f32.xlu0 %v4981_v55 }
0x27a8   :  { %v4978_v26 = vmul.f32 %v8172_v59, %v8172_v59 }
0x27aa   :  { %v4984_v21 = vsel %vm69_vm0, %v4978_v26, 0.0 }
0x27ab   :  { %4985 = vadd.xlane.f32.xlu1 %v4984_v21 }
0x282c   :  { %v4965_v3 = vpop.xlane.xlu0 %4964 }
0x282d   :  { %v4971_v25 = vmul.f32 0.015625, %v4965_v3 }
0x282f   :  { %v4975_v45 = vsub.f32 %v4953_v13, %v4971_v25  ;;  %v5175_v13 = vld [vmem:[%s8396_s27 + $0x8] sm:$0xff] }
0x2830   :  { %v4968_v61 = vpop.xlane.xlu1 %4967 }
0x2831   :  { %v4972_v19 = vmul.f32 0.015625, %v4968_v61  ;;  %v4979_v29 = vmul.f32 %v4975_v45, %v4975_v45 }
0x2833   :  { %v4976_v39 = vsub.f32 %v4954_v28, %v4972_v19  ;;  %v4987_v27 = vsel %vm69_vm0, %v4979_v29, 0.0 }
0x2834   :  { %4988 = vadd.xlane.f32.xlu0 %v4987_v27  ;;  %v4983_v11 = vpop.xlane.xlu0 %4982 }
0x2835   :  { %v4993_v40 = vmul.f32 0.015625, %v4983_v11  ;;  %v4980_v23 = vmul.f32 %v4976_v39, %v4976_v39 }
0x2837   :  { %v4997_v33 = vadd.f32 1e-05, %v4993_v40  ;;  %v4990_v5 = vsel %vm69_vm0, %v4980_v23, 0.0 }
0x2838   :  { %4991 = vadd.xlane.f32.xlu1 %v4990_v5  ;;  %v4986_v54 = vpop.xlane.xlu1 %4985 }
0x2839   :  { %6522 = vrsqrt.f32 %v4997_v33  ;;  %v4994_v10 = vmul.f32 0.015625, %v4986_v54 }
0x283b   :  { %v4998_v31 = vadd.f32 1e-05, %v4994_v10 }
0x283d   :  { %6524 = vrsqrt.f32 %v4998_v31 }
0x2843   :  { %v6523_v7 = vpop.eup %6522 }
0x2844   :  { %v5005_v44 = vmul.f32 %v6523_v7, %v8167_v48 }
0x2846   :  { %v5015_v34 = vmul.f32 %v5402_v38, %v5005_v44 }
0x2847   :  { %v6525_v20 = vpop.eup %6524 }
0x2848   :  { %v5025_v15 = vadd.f32 %v5403_v56, %v5015_v34  ;;  %v5006_v53 = vmul.f32 %v6525_v20, %v8172_v59 }
0x2849   :  { %5185 = vperm.xlu1 %6361, %v5175_v13  }
0x284a   :  { %5404 = vmatmul.mubr.msk.f32.vlgmr.msra.gmra.mrb[72].mxu1 %vm69_vm0, %v5025_v15  ;;  %v5016_v28 = vmul.f32 %v5402_v38, %v5006_v53  ;;  %5180 = vperm.xlu0 %6360, %v5174_v0   ;;  %v5163_v0 = vld [vmem:[%s8397_s22 + $0x28] sm:$0xff] }
0x284b   :  { %5139 = vmatprep.mubr.f32.mxu1 %v8393_v12 }
0x284c   :  { %v5026_v48 = vadd.f32 %v5403_v56, %v5016_v28 }
0x284d   :  { %5190 = vperm.xlu1 %6361, %v5176_v58  }
0x284e   :  { %5405 = vmatmul.mubr.msk.f32.gmra.mrb[74].mxu1 %vm69_vm0, %v5026_v48 }
0x284f   :  { %5145 = vmatprep.mubr.f32.mxu1 %v8393_v12 }
0x2851   :  { %5195 = vperm.xlu1 %6361, %v5177_v47  }
0x28c1   :  { %v4989_v9 = vpop.xlane.xlu0 %4988 }
0x28c2   :  { %v4995_v50 = vmul.f32 0.015625, %v4989_v9 }
0x28c4   :  { %v4999_v59 = vadd.f32 1e-05, %v4995_v50  ;;  %v5164_v50 = vld [vmem:[%s8397_s22 + $0x30] sm:$0xff] }
0x28c5   :  { %v4992_v55 = vpop.xlane.xlu1 %4991 }
0x28c6   :  { %6526 = vrsqrt.f32 %v4999_v59  ;;  %v4996_v26 = vmul.f32 0.015625, %v4992_v55 }
0x28c8   :  { %v5000_v21 = vadd.f32 1e-05, %v4996_v26 }
0x28c9   :  { %v5181_v49 = vpop.permute.xlu0 %5180  ;;  %v5186_v3 = vpop.permute.xlu1 %5185 }
0x28ca   :  { %6528 = vrsqrt.f32 %v5000_v21  ;;  %v5198_v18 = vmul.f32 %v5181_v49, %v5158_v35  ;;  %v5200_v40 = vmul.f32 %v5186_v3, %v5160_v37  ;;  %v5165_v21 = vld [vmem:[%s8397_s22 + $0x38] sm:$0xff] }
0x28d0   :  { %v6527_v43 = vpop.eup %6526 }
0x28d1   :  { %v5007_v42 = vmul.f32 %v6527_v43, %v4975_v45 }
0x28d3   :  { %v5017_v24 = vmul.f32 %v5402_v38, %v5007_v42 }
0x28d4   :  { %v6529_v60 = vpop.eup %6528 }
0x28d5   :  { %v5027_v30 = vadd.f32 %v5403_v56, %v5017_v24  ;;  %v5008_v1 = vmul.f32 %v6529_v60, %v4976_v39  ;;  %v5201_v39 = vmul.f32 %v5186_v3, %v5161_v57 }
0x28d7   :  { %5406 = vmatmul.mubr.msk.f32.gmra.mrb[76].mxu1 %vm69_vm0, %v5027_v30  ;;  %v5018_v8 = vmul.f32 %v5402_v38, %v5008_v1  ;;  %v5162_v38 = vld [vmem:[%s8397_s22 + $0x20] sm:$0xff] }
0x28d8   :  { %5151 = vmatprep.mubr.f32.mxu1 %v8393_v12  ;;  %v5159_v12 = vld [vmem:[%s8397_s22 + $0x8] sm:$0xff] }
0x28d9   :  { %v5028_v62 = vadd.f32 %v5403_v56, %v5018_v8  ;;  %v5199_v14 = vmul.f32 %v5181_v49, %v5159_v12  ;;  %v5191_v56 = vpop.permute.xlu1 %5190 }
0x28da   :  { %v5203_v9 = vmul.f32 %v5191_v56, %v5163_v0  ;;  %v5202_v26 = vmul.f32 %v5191_v56, %v5162_v38 }
0x28db   :  { %5407 = vmatmul.mubr.msk.f32.gmra.mrb[78].mxu1 %vm69_vm0, %v5028_v62 }
0x28dd   :  { %v5196_v43 = vpop.permute.xlu1 %5195 }
0x28de   :  { %v5205_v8 = vmul.f32 %v5196_v43, %v5165_v21 }
0x291d   :  { %v5135_v4 = vpop.f32.mrb[72].mxu1 }
0x291e   :  { %v5136_v17 = vadd.f32 %v5135_v4, %v5050_v63  ;;  %v5137_v6 = vpop.f32.mrb[73].mxu1 }
0x291f   :  { %v5138_v16 = vadd.f32 %v5137_v6, %v5054_v46 }
0x2920   :  { %v5206_v36 = vsub.f32 %v5136_v17, %v5158_v35 }
0x2921   :  { %v5207_v32 = vsub.f32 %v5138_v16, %v5159_v12  ;;  %v5141_v51 = vpop.f32.mrb[74].mxu1 }
0x2922   :  { %v5214_v2 = vmul.f32 %v5206_v36, %v5206_v36  ;;  %v5142_v52 = vadd.f32 %v5141_v51, %v5050_v63  ;;  %v5143_v41 = vpop.f32.mrb[75].mxu1 }
0x2923   :  { %v5215_v25 = vmul.f32 %v5207_v32, %v5207_v32  ;;  %v5144_v45 = vadd.f32 %v5143_v41, %v5054_v46 }
0x2924   :  { %v5208_v61 = vsub.f32 %v5142_v52, %v5160_v37  ;;  %v5222_v11 = vmul.f32 %v5214_v2, %v5198_v18 }
0x2925   :  { %v5223_v19 = vmul.f32 %v5215_v25, %v5199_v14  ;;  %v5209_v29 = vsub.f32 %v5144_v45, %v5161_v57 }
0x2926   :  { %v5216_v27 = vmul.f32 %v5208_v61, %v5208_v61 }
0x2927   :  { %v5217_v23 = vmul.f32 %v5209_v29, %v5209_v29  ;;  %v5230_v33 = vsel %vm69_vm0, %v5223_v19, 0.0 }
0x2928   :  { %v5231_v5 = vadd.f32 %v5230_v33, %v5222_v11  ;;  %v5224_v10 = vmul.f32 %v5216_v27, %v5200_v40 }
0x2929   :  { %v5225_v54 = vmul.f32 %v5217_v23, %v5201_v39 }
0x292a   :  { %5232 = vadd.xlane.f32.xlu1 %v5231_v5 }
0x292b   :  { %v5234_v31 = vsel %vm69_vm0, %v5225_v54, 0.0 }
0x292c   :  { %v5235_v7 = vadd.f32 %v5234_v31, %v5224_v10 }
0x292e   :  { %5236 = vadd.xlane.f32.xlu0 %v5235_v7 }
0x29aa   :  { %v5147_v44 = vpop.f32.mrb[76].mxu1 }
0x29ab   :  { %v5148_v34 = vadd.f32 %v5147_v44, %v5050_v63  ;;  %v5149_v13 = vpop.f32.mrb[77].mxu1 }
0x29ac   :  { %v5150_v20 = vadd.f32 %v5149_v13, %v5054_v46 }
0x29ad   :  { %v5210_v15 = vsub.f32 %v5148_v34, %v5162_v38 }
0x29ae   :  { %v5211_v53 = vsub.f32 %v5150_v20, %v5163_v0  ;;  %v5153_v28 = vpop.f32.mrb[78].mxu1 }
0x29af   :  { %v5218_v48 = vmul.f32 %v5210_v15, %v5210_v15  ;;  %v5154_v58 = vadd.f32 %v5153_v28, %v5050_v63  ;;  %v5155_v47 = vpop.f32.mrb[79].mxu1  ;;  %v5204_v63 = vmul.f32 %v5196_v43, %v5164_v50 }
0x29b0   :  { %v5219_v59 = vmul.f32 %v5211_v53, %v5211_v53  ;;  %v5156_v55 = vadd.f32 %v5155_v47, %v5054_v46 }
0x29b1   :  { %v5212_v42 = vsub.f32 %v5154_v58, %v5164_v50  ;;  %v5226_v30 = vmul.f32 %v5218_v48, %v5202_v26 }
0x29b2   :  { %v5227_v24 = vmul.f32 %v5219_v59, %v5203_v9  ;;  %v5213_v60 = vsub.f32 %v5156_v55, %v5165_v21 }
0x29b3   :  { %v5220_v1 = vmul.f32 %v5212_v42, %v5212_v42 }
0x29b4   :  { %v5221_v62 = vmul.f32 %v5213_v60, %v5213_v60  ;;  %v5238_v22 = vsel %vm69_vm0, %v5227_v24, 0.0 }
0x29b5   :  { %v5239_v4 = vadd.f32 %v5238_v22, %v5226_v30  ;;  %v5228_v17 = vmul.f32 %v5220_v1, %v5204_v63 }
0x29b6   :  { %v5229_v35 = vmul.f32 %v5221_v62, %v5205_v8 }
0x29b7   :  { %5240 = vadd.xlane.f32.xlu1 %v5239_v4  ;;  %v5233_v12 = vpop.xlane.xlu1 %5232 }
0x29b8   :  { %v5242_v46 = vsel %vm69_vm0, %v5229_v35, 0.0 }
0x29b9   :  { %v5243_v6 = vadd.f32 %v5242_v46, %v5228_v17 }
0x29bb   :  { %5244 = vadd.xlane.f32.xlu1 %v5243_v6  ;;  %v5237_v49 = vpop.xlane.xlu0 %5236 }
0x29bc   :  { %v5246_v36 = vadd.f32 %v5237_v49, %v5233_v12 }
0x2a44   :  { %v5241_v16 = vpop.xlane.xlu1 %5240 }
0x2a45   :  { %v5247_v32 = vadd.f32 %v5246_v36, %v5241_v16 }
0x2a48   :  { %v5245_v51 = vpop.xlane.xlu1 %5244 }
0x2a49   :  { %v5248_v37 = vadd.f32 %v5247_v32, %v5245_v51 }
0x2a4b   :  { %v5249_v14 = vrot.slane %v5248_v37, 4 }
0x2a4d   :  { %v5250_v2 = vadd.f32 %v5249_v14, %v5248_v37 }
0x2a4f   :  { %v5251_v52 = vrot.slane %v5250_v2, 2 }
0x2a51   :  { %v5252_v18 = vadd.f32 %v5251_v52, %v5250_v2 }
0x2a53   :  { %v5253_v41 = vrot.slane %v5252_v18, 1 }
0x2a55   :  { %v5254_v57 = vadd.f32 %v5253_v41, %v5252_v18 }
0x2a57   :  { %v5255_v3 = vmul.f32 0.002170139, %v5254_v57 }
0x2a59   :  { %5257 = vst.msk [vmem:[#allocation4] sm:$0x1] %vm5256_vm4, %v5255_v3 }
0x2a5a   :  { %6545 = shalt.err (!%p6542_p4)
}
0x2a5b   :  { %s6546_s29 = scalar_lea.hbm %s8319_s19, 16 }
0x2a5c   :  { %p6547_p5 = scmp.ne.s32.totalorder %s8319_s19, %s6546_s29  ;;  %p6550_p6 = scmp.lt.u32.totalorder %s6546_s29, %s8319_s19 }
0x2a5e   :  { %p6552_p7 = pnand %p6550_p6, %p6547_p5 }
0x2a60   :  { %6555 = shalt.err (!%p6552_p7)
}
0x2a61   :  { %5267 = dma.vmem_to_hbm [thread:$0]  %s5265_s25, 16, %s8319_s19, [#allocation5]  }
0x2a62   :  { %6556 = dma.done.wait [#allocation5], 16  }
0x2a63   :  { %6557 = vsyncadd [#allocation5], 4294967280 }
0x2a64   :  { %5271 = vsyncpa [#allocation5], 1 }

</bundles_post_ra>
